<compile_context>
chip_gen: v7x
topology: tpu7x:2x2x1
jax: 0.10.0
libtpu: 0.0.40
codegen_flags: <defaults>
</compile_context>

<pallas_src>
import functools

import jax
import jax.numpy as jnp
from jax.experimental import pallas as pl
from jax.experimental.pallas import tpu as pltpu


# ----------------------------------------------------------------------------
# Static geometry plan (per batch element; everything is contiguous row slabs)
# ----------------------------------------------------------------------------
def _make_plan(H0, W0, Cin):
    assert H0 == W0, "square input expected"
    assert 9 * Cin <= 128, "conv1 tap packing requires 9*Cin <= 128"

    # stage 1: dense input, pitch W0, w-step 1
    h1c, w1c = H0 - 2, W0 - 2
    assert h1c % 2 == 0 and w1c % 2 == 0, "conv1 output must be 2x2-poolable"
    hp1, wp1 = h1c // 2, w1c // 2
    taps1 = tuple(kh * W0 + kw for kh in range(3) for kw in range(3))
    e1 = (h1c - 1) * W0 + (w1c - 1) + 1
    assert e1 + taps1[-1] <= H0 * W0
    assert 2 * (hp1 - 1) * W0 + W0 + 1 + (w1c - 2) < e1          # pool1 reads

    # pool1 output: h-compacted, w kept at step 2 -> pitch (w1c - 1)
    pp1 = w1c - 1
    p1_rows = hp1 * pp1

    # stage 2: pitch pp1, w-step 2
    h2c, w2c = hp1 - 2, wp1 - 2
    assert h2c % 2 == 0 and w2c % 2 == 0
    hp2, wp2 = h2c // 2, w2c // 2
    taps2 = tuple(kh * pp1 + 2 * kw for kh in range(3) for kw in range(3))
    e2 = (h2c - 1) * pp1 + 2 * (w2c - 1) + 1
    assert e2 + taps2[-1] <= p1_rows
    assert 2 * (hp2 - 1) * pp1 + pp1 + 2 + 4 * (wp2 - 1) < e2    # pool2 reads

    # pool2 output: fully dense, pitch wp2
    p2_rows = hp2 * wp2

    # stage 3: dense pitch wp2, w-step 1
    h3c, w3c = hp2 - 2, wp2 - 2
    assert h3c % 2 == 0 and w3c % 2 == 0
    hp3, wp3 = h3c // 2, w3c // 2
    taps3 = tuple(kh * wp2 + kw for kh in range(3) for kw in range(3))
    e3 = (h3c - 1) * wp2 + (w3c - 1) + 1
    assert e3 + taps3[-1] <= p2_rows
    assert 2 * (hp3 - 1) * wp2 + wp2 + 1 + 2 * (wp3 - 1) < e3    # pool3 reads

    return dict(W0=W0, e1=e1, taps1=taps1, hp1=hp1, pp1=pp1, p1_rows=p1_rows,
                e2=e2, taps2=taps2, hp2=hp2, wp2=wp2, p2_rows=p2_rows,
                e3=e3, taps3=taps3, hp3=hp3, wp3=wp3)


# ----------------------------------------------------------------------------
# The fused kernel (one grid step = one batch element)
# ----------------------------------------------------------------------------
def _network2d_kernel(a_ref, x_ref,
                      w1_ref, b1_ref,
                      w2a_ref, w2b_ref, b2_ref,
                      w3a_ref, w3b_ref, w3c_ref, b3_ref,
                      wf1_ref, bf1_ref, wf2_ref, bf2_ref, wf3_ref, bf3_ref,
                      o_ref,
                      c1_ref, p1_ref, xs2_ref, c2_ref, p2_ref,
                      xs3a_ref, xs3b_ref, c3_ref,
                      *, plan):
    a = a_ref[0, 0]                                   # shared PReLU slope (SMEM)

    def prelu(v):
        return jnp.where(v >= 0.0, v, a * v)

    def win_max(src_ref, r0, dh, dw, n):
        """Max over the 2x2 pool window rows {r0, r0+dw, r0+dh, r0+dh+dw},
        vectorised over n consecutive band offsets (contiguous slabs only)."""
        top = jnp.maximum(src_ref[pl.ds(r0, n), :], src_ref[pl.ds(r0 + dw, n), :])
        bot = jnp.maximum(src_ref[pl.ds(r0 + dh, n), :],
                          src_ref[pl.ds(r0 + dh + dw, n), :])
        return jnp.maximum(top, bot)

    # ---- stage 1: conv1 (taps pre-packed along K in the wrapper, K = 9*Cin) --
    c1_ref[...] = prelu(
        jnp.dot(x_ref[0], w1_ref[...], preferred_element_type=jnp.float32)
        + b1_ref[...])

    # ---- pool1: h-compacted band max (w stays at step 2, pitch pp1) ----------
    W0, pp1, hp1 = plan['W0'], plan['pp1'], plan['hp1']
    for hp in range(hp1):
        p1_ref[pl.ds(hp * pp1, pp1), :] = win_max(c1_ref, 2 * hp * W0, W0, 1, pp1)

    # ---- stage 2: conv2, 8 taps packed to K=128 + 1 direct K=16 tap ----------
    e2, taps2 = plan['e2'], plan['taps2']
    for t in range(8):                                # lane-offset slab copies
        xs2_ref[:, pl.ds(t * 16, 16)] = p1_ref[pl.ds(taps2[t], e2), :]
    acc2 = jnp.dot(xs2_ref[...], w2a_ref[...], preferred_element_type=jnp.float32)
    acc2 = acc2 + jnp.dot(p1_ref[pl.ds(taps2[8], e2), :], w2b_ref[...],
                          preferred_element_type=jnp.float32)
    c2_ref[...] = prelu(acc2 + b2_ref[...])

    # ---- pool2: band max + static even-row extraction -> dense pitch wp2 -----
    hp2, wp2 = plan['hp2'], plan['wp2']
    for hp in range(hp2):
        band = win_max(c2_ref, 2 * hp * pp1, pp1, 2, 4 * (wp2 - 1) + 1)
        rows = [band[4 * wp:4 * wp + 1, :] for wp in range(wp2)]
        p2_ref[pl.ds(hp * wp2, wp2), :] = jnp.concatenate(rows, axis=0)

    # ---- stage 3: conv3, taps packed 4+4 (K=128) + 1 direct (K=32) -----------
    e3, taps3 = plan['e3'], plan['taps3']
    for t in range(4):
        xs3a_ref[:, pl.ds(t * 32, 32)] = p2_ref[pl.ds(taps3[t], e3), :]
        xs3b_ref[:, pl.ds(t * 32, 32)] = p2_ref[pl.ds(taps3[4 + t], e3), :]
    acc3 = jnp.dot(xs3a_ref[...], w3a_ref[...], preferred_element_type=jnp.float32)
    acc3 = acc3 + jnp.dot(xs3b_ref[...], w3b_ref[...],
                          preferred_element_type=jnp.float32)
    acc3 = acc3 + jnp.dot(p2_ref[pl.ds(taps3[8], e3), :], w3c_ref[...],
                          preferred_element_type=jnp.float32)
    c3_ref[...] = prelu(acc3 + b3_ref[...])

    # ---- pool3 + lane-packed FC features (position-major, channel-minor) -----
    hp3, wp3 = plan['hp3'], plan['wp3']
    feats = []
    for hp in range(hp3):
        for wp in range(wp3):
            feats.append(win_max(c3_ref, 2 * hp * wp2 + 2 * wp, wp2, 1, 1))
    feat = jnp.concatenate(feats, axis=1)             # (1, hp3*wp3*64) = (1, 256)

    # ---- FC head: three dense matmuls, no per-position accumulation chain ----
    h = prelu(jnp.dot(feat, wf1_ref[...], preferred_element_type=jnp.float32)
              + bf1_ref[...])
    h = prelu(jnp.dot(h, wf2_ref[...], preferred_element_type=jnp.float32)
              + bf2_ref[...])
    o_ref[0] = jnp.dot(h, wf3_ref[...], preferred_element_type=jnp.float32) + bf3_ref[...]


# ----------------------------------------------------------------------------
# Wrapper: layout plumbing only (fused into the caller's jit)
# ----------------------------------------------------------------------------
def network2d_forward(x_nchw, p):
    B, Cin, H0, W0 = x_nchw.shape
    plan = _make_plan(H0, W0, Cin)

    co1, co2, co3 = p['w1'].shape[-1], p['w2'].shape[-1], p['w3'].shape[-1]
    n1, n2, n_act = p['wf1'].shape[-1], p['wf2'].shape[-1], p['wf3'].shape[-1]
    t_pos = plan['hp3'] * plan['wp3']
    assert p['w1'].shape[2] == Cin
    assert 8 * co1 == 128 and 4 * co2 == 128, "tap grouping assumes 16/32 conv channels"
    assert p['wf1'].shape[0] == co3 * t_pos, "conv/pool geometry != fc1 in_features"

    E1, E2, E3 = plan['e1'], plan['e2'], plan['e3']

    # NCHW -> flat (B, H*W, Cin) row space, channels on lanes; pre-pack conv1's
    # 9 taps along the lane/K dimension (free: fused slices + concat in jit).
    x_rows = jnp.transpose(x_nchw, (0, 2, 3, 1)).reshape(B, H0 * W0, Cin)
    x_packed = jnp.concatenate([x_rows[:, o:o + E1, :] for o in plan['taps1']],
                               axis=-1)                         # (B, E1, 9*Cin)

    # Conv weights HWIO -> tap-major/channel-minor rows, split to match the
    # in-kernel K groupings; fc1 rows regrouped per spatial position so the
    # PyTorch NCHW flatten order is preserved exactly.
    w1p = p['w1'].reshape(9 * Cin, co1)                         # (54, 16)
    w2f = p['w2'].reshape(9 * co1, co2)                         # (144, 32)
    w2a, w2b = w2f[:8 * co1], w2f[8 * co1:]
    w3f = p['w3'].reshape(9 * co2, co3)                         # (288, 64)
    w3a, w3b, w3c = w3f[:4 * co2], w3f[4 * co2:8 * co2], w3f[8 * co2:]
    wf1p = (p['wf1'].reshape(co3, t_pos, n1)
            .transpose(1, 0, 2).reshape(co3 * t_pos, n1))       # (256, 128)

    flops = 2 * B * (E1 * 9 * Cin * co1 + E2 * 9 * co1 * co2 + E3 * 9 * co2 * co3
                     + co3 * t_pos * n1 + n1 * n2 + n2 * n_act)
    bytes_accessed = 4 * (B * E1 * 9 * Cin + 9 * Cin * co1 + 9 * co1 * co2
                          + 9 * co2 * co3 + co3 * t_pos * n1 + n1 * n2 + n2 * n_act
                          + co1 + co2 + co3 + n1 + n2 + n_act + B * n_act)

    vmem = pltpu.MemorySpace.VMEM
    smem = pltpu.MemorySpace.SMEM
    kernel = functools.partial(_network2d_kernel, plan=plan)

    out = pl.pallas_call(
        kernel,
        out_shape=jax.ShapeDtypeStruct((B, 1, n_act), jnp.float32),
        grid=(B,),
        in_specs=[pl.BlockSpec(memory_space=smem),                      # prelu_a
                  pl.BlockSpec((1, E1, 9 * Cin), lambda b: (b, 0, 0))]  # x_packed
                 + [pl.BlockSpec(memory_space=vmem)] * 15,              # weights
        out_specs=pl.BlockSpec((1, 1, n_act), lambda b: (b, 0, 0)),
        scratch_shapes=[
            pltpu.VMEM((E1, co1), jnp.float32),                  # conv1 (+PReLU)
            pltpu.VMEM((plan['p1_rows'], co1), jnp.float32),     # pool1 (h-compact)
            pltpu.VMEM((E2, 8 * co1), jnp.float32),              # conv2 tap staging
            pltpu.VMEM((E2, co2), jnp.float32),                  # conv2 output
            pltpu.VMEM((plan['p2_rows'], co2), jnp.float32),     # pool2 (dense)
            pltpu.VMEM((E3, 4 * co2), jnp.float32),              # conv3 taps 0..3
            pltpu.VMEM((E3, 4 * co2), jnp.float32),              # conv3 taps 4..7
            pltpu.VMEM((E3, co3), jnp.float32),                  # conv3 output
        ],
        compiler_params=pltpu.CompilerParams(
            dimension_semantics=("parallel",)),                  # v7x: B over 2 TCs
        cost_estimate=pl.CostEstimate(flops=flops, transcendentals=0,
                                      bytes_accessed=bytes_accessed),
    )(p['prelu_a'], x_packed,
      w1p, p['b1'].reshape(1, co1),
      w2a, w2b, p['b2'].reshape(1, co2),
      w3a, w3b, w3c, p['b3'].reshape(1, co3),
      wf1p, p['bf1'].reshape(1, n1),
      p['wf2'], p['bf2'].reshape(1, n2),
      p['wf3'], p['bf3'].reshape(1, n_act))
    return out.reshape(B, n_act)


# ----------------------------------------------------------------------------
# Deterministic parameter init (shapes from Network2D.__init__)
# ----------------------------------------------------------------------------
def init_params(key, number_actions=4, state_num=2):
    ks = jax.random.split(key, 12)

    def nrm(k, shape, scale=0.05):
        return jax.random.normal(k, shape, jnp.float32) * scale

    return {
        'w1': nrm(ks[0], (3, 3, state_num * 3, 16)),
        'b1': nrm(ks[1], (16,)),
        'w2': nrm(ks[2], (3, 3, 16, 32)),
        'b2': nrm(ks[3], (32,)),
        'w3': nrm(ks[4], (3, 3, 32, 64)),
        'b3': nrm(ks[5], (64,)),
        'wf1': nrm(ks[6], (256, 128)),
        'bf1': nrm(ks[7], (128,)),
        'wf2': nrm(ks[8], (128, 64)),
        'bf2': nrm(ks[9], (64,)),
        'wf3': nrm(ks[10], (64, number_actions)),
        'bf3': nrm(ks[11], (number_actions,)),
        'prelu_a': jnp.full((1, 1), 0.25, jnp.float32),  # nn.PReLU() default
    }


# ----------------------------------------------------------------------------
# Pure-JAX reference (correctness check of the Pallas path)
# ----------------------------------------------------------------------------
def reference_forward(x_nchw, p):
    a = p['prelu_a'][0, 0]
    prelu = lambda t: jnp.where(t >= 0, t, a * t)

    def conv(x, w, b):
        y = jax.lax.conv_general_dilated(
            x, w, window_strides=(1, 1), padding='VALID',
            dimension_numbers=('NHWC', 'HWIO', 'NHWC'))
        return y + b

    def pool(x):
        B, H, W, C = x.shape
        return jnp.max(x.reshape(B, H // 2, 2, W // 2, 2, C), axis=(2, 4))

    B = x_nchw.shape[0]
    x = jnp.transpose(x_nchw, (0, 2, 3, 1))
    x = pool(prelu(conv(x, p['w1'], p['b1'])))
    x = pool(prelu(conv(x, p['w2'], p['b2'])))
    x = pool(prelu(conv(x, p['w3'], p['b3'])))
    x = jnp.transpose(x, (0, 3, 1, 2)).reshape(B, -1)
    x = prelu(x @ p['wf1'] + p['bf1'])
    x = prelu(x @ p['wf2'] + p['bf2'])
    x = x @ p['wf3'] + p['bf3']
    return x


if __name__ == "__main__":
    key = jax.random.PRNGKey(0)
    kx, kp = jax.random.split(key)

    # state_num=2 -> 6 input channels; 30x30 spatial so the conv/pool stack
    # yields 64*2*2 = 256 flattened features (fc1 expects 256).
    B, C, H, W = 2, 6, 30, 30
    x = jax.random.normal(kx, (B, C, H, W), jnp.float32)
    params = init_params(kp, number_actions=4, state_num=2)

    fwd = jax.jit(network2d_forward)
    out = jax.block_until_ready(fwd(x, params))
    ref = reference_forward(x, params)

    assert out.shape == (B, 4), out.shape
    if not jnp.allclose(out, ref, rtol=1e-3, atol=1e-3):
        raise SystemExit("Pallas output does not match JAX reference")
    print("KERNEL_OK")
</pallas_src>

<mosaic_0001>
module attributes {stable_mosaic.version = 11 : i64} {
  func.func @_network2d_kernel(%arg0: i32, %arg1: memref<1x1xf32, #tpu.memory_space<smem>>, %arg2: memref<1x838x54xf32, #tpu.memory_space<vmem>>, %arg3: memref<54x16xf32, #tpu.memory_space<vmem>>, %arg4: memref<1x16xf32, #tpu.memory_space<vmem>>, %arg5: memref<128x32xf32, #tpu.memory_space<vmem>>, %arg6: memref<16x32xf32, #tpu.memory_space<vmem>>, %arg7: memref<1x32xf32, #tpu.memory_space<vmem>>, %arg8: memref<128x64xf32, #tpu.memory_space<vmem>>, %arg9: memref<128x64xf32, #tpu.memory_space<vmem>>, %arg10: memref<32x64xf32, #tpu.memory_space<vmem>>, %arg11: memref<1x64xf32, #tpu.memory_space<vmem>>, %arg12: memref<256x128xf32, #tpu.memory_space<vmem>>, %arg13: memref<1x128xf32, #tpu.memory_space<vmem>>, %arg14: memref<128x64xf32, #tpu.memory_space<vmem>>, %arg15: memref<1x64xf32, #tpu.memory_space<vmem>>, %arg16: memref<64x4xf32, #tpu.memory_space<vmem>>, %arg17: memref<1x4xf32, #tpu.memory_space<vmem>>, %arg18: memref<1x1x4xf32, #tpu.memory_space<vmem>>, %arg19: memref<838x16xf32, #tpu.memory_space<vmem>>, %arg20: memref<378x16xf32, #tpu.memory_space<vmem>>, %arg21: memref<320x128xf32, #tpu.memory_space<vmem>>, %arg22: memref<320x32xf32, #tpu.memory_space<vmem>>, %arg23: memref<36x32xf32, #tpu.memory_space<vmem>>, %arg24: memref<22x128xf32, #tpu.memory_space<vmem>>, %arg25: memref<22x128xf32, #tpu.memory_space<vmem>>, %arg26: memref<22x64xf32, #tpu.memory_space<vmem>>) attributes {dimension_semantics = [#tpu.dimension_semantics<parallel>], iteration_bounds = array<i64: 2>, scalar_prefetch = 0 : i64, scratch_operands = 8 : i64, tpu.core_type = #tpu.core_type<tc>, window_params = [{transform_indices = @transform_0, window_bounds = array<i64: 1, 1>}, {transform_indices = @transform_1, window_bounds = array<i64: 1, 838, 54>}, {pipeline_mode = #tpu.pipeline_mode<synchronous>, transform_indices = @transform_2, window_bounds = array<i64: 54, 16>}, {pipeline_mode = #tpu.pipeline_mode<synchronous>, transform_indices = @transform_3, window_bounds = array<i64: 1, 16>}, {pipeline_mode = #tpu.pipeline_mode<synchronous>, transform_indices = @transform_4, window_bounds = array<i64: 128, 32>}, {pipeline_mode = #tpu.pipeline_mode<synchronous>, transform_indices = @transform_5, window_bounds = array<i64: 16, 32>}, {pipeline_mode = #tpu.pipeline_mode<synchronous>, transform_indices = @transform_6, window_bounds = array<i64: 1, 32>}, {pipeline_mode = #tpu.pipeline_mode<synchronous>, transform_indices = @transform_7, window_bounds = array<i64: 128, 64>}, {pipeline_mode = #tpu.pipeline_mode<synchronous>, transform_indices = @transform_8, window_bounds = array<i64: 128, 64>}, {pipeline_mode = #tpu.pipeline_mode<synchronous>, transform_indices = @transform_9, window_bounds = array<i64: 32, 64>}, {pipeline_mode = #tpu.pipeline_mode<synchronous>, transform_indices = @transform_10, window_bounds = array<i64: 1, 64>}, {pipeline_mode = #tpu.pipeline_mode<synchronous>, transform_indices = @transform_11, window_bounds = array<i64: 256, 128>}, {pipeline_mode = #tpu.pipeline_mode<synchronous>, transform_indices = @transform_12, window_bounds = array<i64: 1, 128>}, {pipeline_mode = #tpu.pipeline_mode<synchronous>, transform_indices = @transform_13, window_bounds = array<i64: 128, 64>}, {pipeline_mode = #tpu.pipeline_mode<synchronous>, transform_indices = @transform_14, window_bounds = array<i64: 1, 64>}, {pipeline_mode = #tpu.pipeline_mode<synchronous>, transform_indices = @transform_15, window_bounds = array<i64: 64, 4>}, {pipeline_mode = #tpu.pipeline_mode<synchronous>, transform_indices = @transform_16, window_bounds = array<i64: 1, 4>}, {transform_indices = @transform_17, window_bounds = array<i64: 1, 1, 4>}]} {
    %c0 = arith.constant 0 : index
    %c0_0 = arith.constant 0 : index
    %0 = memref.load %arg1[%c0, %c0_0] : memref<1x1xf32, #tpu.memory_space<smem>>
    %c0_1 = arith.constant 0 : index
    %c0_2 = arith.constant 0 : index
    %c0_3 = arith.constant 0 : index
    %1 = vector.load %arg2[%c0_1, %c0_2, %c0_3] : memref<1x838x54xf32, #tpu.memory_space<vmem>>, vector<1x838x54xf32>
    %2 = vector.shape_cast %1 : vector<1x838x54xf32> to vector<838x54xf32>
    %c0_4 = arith.constant 0 : index
    %c0_5 = arith.constant 0 : index
    %3 = vector.load %arg3[%c0_4, %c0_5] : memref<54x16xf32, #tpu.memory_space<vmem>>, vector<54x16xf32>
    %cst = arith.constant dense<0.000000e+00> : vector<838x16xf32>
    %4 = tpu.matmul %2, %3, %cst {dimension_numbers = #tpu.dot_dimension_numbers<[1], [0], [0], [1], [0, 0, 1, 1], [], []>} : vector<838x54xf32>, vector<54x16xf32>, vector<838x16xf32> -> vector<838x16xf32>
    %c0_6 = arith.constant 0 : index
    %c0_7 = arith.constant 0 : index
    %5 = vector.load %arg4[%c0_6, %c0_7] : memref<1x16xf32, #tpu.memory_space<vmem>>, vector<1x16xf32>
    %6 = vector.broadcast %5 : vector<1x16xf32> to vector<838x16xf32>
    %7 = arith.addf %4, %6 : vector<838x16xf32>
    %cst_8 = arith.constant 0.000000e+00 : f32
    %8 = vector.broadcast %cst_8 : f32 to vector<838x16xf32>
    %9 = arith.cmpf oge, %7, %8 : vector<838x16xf32>
    %10 = vector.broadcast %0 : f32 to vector<838x16xf32>
    %11 = arith.mulf %10, %7 : vector<838x16xf32>
    %12 = arith.select %9, %7, %11 : vector<838x16xi1>, vector<838x16xf32>
    %c0_9 = arith.constant 0 : index
    %c0_10 = arith.constant 0 : index
    %13 = vector.load %arg19[%c0_9, %c0_10] : memref<838x16xf32, #tpu.memory_space<vmem>>, vector<838x16xf32>
    tpu.vector_store %arg19[%c0_9, %c0_10], %12 {strides = array<i32>} : memref<838x16xf32, #tpu.memory_space<vmem>>, vector<838x16xf32>,
    %c0_11 = arith.constant 0 : index
    %c0_12 = arith.constant 0 : index
    %14 = vector.load %arg19[%c0_11, %c0_12] : memref<838x16xf32, #tpu.memory_space<vmem>>, vector<27x16xf32>
    %c1 = arith.constant 1 : index
    %c0_13 = arith.constant 0 : index
    %15 = vector.load %arg19[%c1, %c0_13] : memref<838x16xf32, #tpu.memory_space<vmem>>, vector<27x16xf32>
    %16 = arith.maximumf %14, %15 : vector<27x16xf32>
    %c30 = arith.constant 30 : index
    %c0_14 = arith.constant 0 : index
    %17 = vector.load %arg19[%c30, %c0_14] : memref<838x16xf32, #tpu.memory_space<vmem>>, vector<27x16xf32>
    %c31 = arith.constant 31 : index
    %c0_15 = arith.constant 0 : index
    %18 = vector.load %arg19[%c31, %c0_15] : memref<838x16xf32, #tpu.memory_space<vmem>>, vector<27x16xf32>
    %19 = arith.maximumf %17, %18 : vector<27x16xf32>
    %20 = arith.maximumf %16, %19 : vector<27x16xf32>
    %c0_16 = arith.constant 0 : index
    %c0_17 = arith.constant 0 : index
    %21 = vector.load %arg20[%c0_16, %c0_17] : memref<378x16xf32, #tpu.memory_space<vmem>>, vector<27x16xf32>
    tpu.vector_store %arg20[%c0_16, %c0_17], %20 {strides = array<i32>} : memref<378x16xf32, #tpu.memory_space<vmem>>, vector<27x16xf32>,
    %c60 = arith.constant 60 : index
    %c0_18 = arith.constant 0 : index
    %22 = vector.load %arg19[%c60, %c0_18] : memref<838x16xf32, #tpu.memory_space<vmem>>, vector<27x16xf32>
    %c61 = arith.constant 61 : index
    %c0_19 = arith.constant 0 : index
    %23 = vector.load %arg19[%c61, %c0_19] : memref<838x16xf32, #tpu.memory_space<vmem>>, vector<27x16xf32>
    %24 = arith.maximumf %22, %23 : vector<27x16xf32>
    %c90 = arith.constant 90 : index
    %c0_20 = arith.constant 0 : index
    %25 = vector.load %arg19[%c90, %c0_20] : memref<838x16xf32, #tpu.memory_space<vmem>>, vector<27x16xf32>
    %c91 = arith.constant 91 : index
    %c0_21 = arith.constant 0 : index
    %26 = vector.load %arg19[%c91, %c0_21] : memref<838x16xf32, #tpu.memory_space<vmem>>, vector<27x16xf32>
    %27 = arith.maximumf %25, %26 : vector<27x16xf32>
    %28 = arith.maximumf %24, %27 : vector<27x16xf32>
    %c27 = arith.constant 27 : index
    %c0_22 = arith.constant 0 : index
    %29 = vector.load %arg20[%c27, %c0_22] : memref<378x16xf32, #tpu.memory_space<vmem>>, vector<27x16xf32>
    tpu.vector_store %arg20[%c27, %c0_22], %28 {strides = array<i32>} : memref<378x16xf32, #tpu.memory_space<vmem>>, vector<27x16xf32>,
    %c120 = arith.constant 120 : index
    %c0_23 = arith.constant 0 : index
    %30 = vector.load %arg19[%c120, %c0_23] : memref<838x16xf32, #tpu.memory_space<vmem>>, vector<27x16xf32>
    %c121 = arith.constant 121 : index
    %c0_24 = arith.constant 0 : index
    %31 = vector.load %arg19[%c121, %c0_24] : memref<838x16xf32, #tpu.memory_space<vmem>>, vector<27x16xf32>
    %32 = arith.maximumf %30, %31 : vector<27x16xf32>
    %c150 = arith.constant 150 : index
    %c0_25 = arith.constant 0 : index
    %33 = vector.load %arg19[%c150, %c0_25] : memref<838x16xf32, #tpu.memory_space<vmem>>, vector<27x16xf32>
    %c151 = arith.constant 151 : index
    %c0_26 = arith.constant 0 : index
    %34 = vector.load %arg19[%c151, %c0_26] : memref<838x16xf32, #tpu.memory_space<vmem>>, vector<27x16xf32>
    %35 = arith.maximumf %33, %34 : vector<27x16xf32>
    %36 = arith.maximumf %32, %35 : vector<27x16xf32>
    %c54 = arith.constant 54 : index
    %c0_27 = arith.constant 0 : index
    %37 = vector.load %arg20[%c54, %c0_27] : memref<378x16xf32, #tpu.memory_space<vmem>>, vector<27x16xf32>
    tpu.vector_store %arg20[%c54, %c0_27], %36 {strides = array<i32>} : memref<378x16xf32, #tpu.memory_space<vmem>>, vector<27x16xf32>,
    %c180 = arith.constant 180 : index
    %c0_28 = arith.constant 0 : index
    %38 = vector.load %arg19[%c180, %c0_28] : memref<838x16xf32, #tpu.memory_space<vmem>>, vector<27x16xf32>
    %c181 = arith.constant 181 : index
    %c0_29 = arith.constant 0 : index
    %39 = vector.load %arg19[%c181, %c0_29] : memref<838x16xf32, #tpu.memory_space<vmem>>, vector<27x16xf32>
    %40 = arith.maximumf %38, %39 : vector<27x16xf32>
    %c210 = arith.constant 210 : index
    %c0_30 = arith.constant 0 : index
    %41 = vector.load %arg19[%c210, %c0_30] : memref<838x16xf32, #tpu.memory_space<vmem>>, vector<27x16xf32>
    %c211 = arith.constant 211 : index
    %c0_31 = arith.constant 0 : index
    %42 = vector.load %arg19[%c211, %c0_31] : memref<838x16xf32, #tpu.memory_space<vmem>>, vector<27x16xf32>
    %43 = arith.maximumf %41, %42 : vector<27x16xf32>
    %44 = arith.maximumf %40, %43 : vector<27x16xf32>
    %c81 = arith.constant 81 : index
    %c0_32 = arith.constant 0 : index
    %45 = vector.load %arg20[%c81, %c0_32] : memref<378x16xf32, #tpu.memory_space<vmem>>, vector<27x16xf32>
    tpu.vector_store %arg20[%c81, %c0_32], %44 {strides = array<i32>} : memref<378x16xf32, #tpu.memory_space<vmem>>, vector<27x16xf32>,
    %c240 = arith.constant 240 : index
    %c0_33 = arith.constant 0 : index
    %46 = vector.load %arg19[%c240, %c0_33] : memref<838x16xf32, #tpu.memory_space<vmem>>, vector<27x16xf32>
    %c241 = arith.constant 241 : index
    %c0_34 = arith.constant 0 : index
    %47 = vector.load %arg19[%c241, %c0_34] : memref<838x16xf32, #tpu.memory_space<vmem>>, vector<27x16xf32>
    %48 = arith.maximumf %46, %47 : vector<27x16xf32>
    %c270 = arith.constant 270 : index
    %c0_35 = arith.constant 0 : index
    %49 = vector.load %arg19[%c270, %c0_35] : memref<838x16xf32, #tpu.memory_space<vmem>>, vector<27x16xf32>
    %c271 = arith.constant 271 : index
    %c0_36 = arith.constant 0 : index
    %50 = vector.load %arg19[%c271, %c0_36] : memref<838x16xf32, #tpu.memory_space<vmem>>, vector<27x16xf32>
    %51 = arith.maximumf %49, %50 : vector<27x16xf32>
    %52 = arith.maximumf %48, %51 : vector<27x16xf32>
    %c108 = arith.constant 108 : index
    %c0_37 = arith.constant 0 : index
    %53 = vector.load %arg20[%c108, %c0_37] : memref<378x16xf32, #tpu.memory_space<vmem>>, vector<27x16xf32>
    tpu.vector_store %arg20[%c108, %c0_37], %52 {strides = array<i32>} : memref<378x16xf32, #tpu.memory_space<vmem>>, vector<27x16xf32>,
    %c300 = arith.constant 300 : index
    %c0_38 = arith.constant 0 : index
    %54 = vector.load %arg19[%c300, %c0_38] : memref<838x16xf32, #tpu.memory_space<vmem>>, vector<27x16xf32>
    %c301 = arith.constant 301 : index
    %c0_39 = arith.constant 0 : index
    %55 = vector.load %arg19[%c301, %c0_39] : memref<838x16xf32, #tpu.memory_space<vmem>>, vector<27x16xf32>
    %56 = arith.maximumf %54, %55 : vector<27x16xf32>
    %c330 = arith.constant 330 : index
    %c0_40 = arith.constant 0 : index
    %57 = vector.load %arg19[%c330, %c0_40] : memref<838x16xf32, #tpu.memory_space<vmem>>, vector<27x16xf32>
    %c331 = arith.constant 331 : index
    %c0_41 = arith.constant 0 : index
    %58 = vector.load %arg19[%c331, %c0_41] : memref<838x16xf32, #tpu.memory_space<vmem>>, vector<27x16xf32>
    %59 = arith.maximumf %57, %58 : vector<27x16xf32>
    %60 = arith.maximumf %56, %59 : vector<27x16xf32>
    %c135 = arith.constant 135 : index
    %c0_42 = arith.constant 0 : index
    %61 = vector.load %arg20[%c135, %c0_42] : memref<378x16xf32, #tpu.memory_space<vmem>>, vector<27x16xf32>
    tpu.vector_store %arg20[%c135, %c0_42], %60 {strides = array<i32>} : memref<378x16xf32, #tpu.memory_space<vmem>>, vector<27x16xf32>,
    %c360 = arith.constant 360 : index
    %c0_43 = arith.constant 0 : index
    %62 = vector.load %arg19[%c360, %c0_43] : memref<838x16xf32, #tpu.memory_space<vmem>>, vector<27x16xf32>
    %c361 = arith.constant 361 : index
    %c0_44 = arith.constant 0 : index
    %63 = vector.load %arg19[%c361, %c0_44] : memref<838x16xf32, #tpu.memory_space<vmem>>, vector<27x16xf32>
    %64 = arith.maximumf %62, %63 : vector<27x16xf32>
    %c390 = arith.constant 390 : index
    %c0_45 = arith.constant 0 : index
    %65 = vector.load %arg19[%c390, %c0_45] : memref<838x16xf32, #tpu.memory_space<vmem>>, vector<27x16xf32>
    %c391 = arith.constant 391 : index
    %c0_46 = arith.constant 0 : index
    %66 = vector.load %arg19[%c391, %c0_46] : memref<838x16xf32, #tpu.memory_space<vmem>>, vector<27x16xf32>
    %67 = arith.maximumf %65, %66 : vector<27x16xf32>
    %68 = arith.maximumf %64, %67 : vector<27x16xf32>
    %c162 = arith.constant 162 : index
    %c0_47 = arith.constant 0 : index
    %69 = vector.load %arg20[%c162, %c0_47] : memref<378x16xf32, #tpu.memory_space<vmem>>, vector<27x16xf32>
    tpu.vector_store %arg20[%c162, %c0_47], %68 {strides = array<i32>} : memref<378x16xf32, #tpu.memory_space<vmem>>, vector<27x16xf32>,
    %c420 = arith.constant 420 : index
    %c0_48 = arith.constant 0 : index
    %70 = vector.load %arg19[%c420, %c0_48] : memref<838x16xf32, #tpu.memory_space<vmem>>, vector<27x16xf32>
    %c421 = arith.constant 421 : index
    %c0_49 = arith.constant 0 : index
    %71 = vector.load %arg19[%c421, %c0_49] : memref<838x16xf32, #tpu.memory_space<vmem>>, vector<27x16xf32>
    %72 = arith.maximumf %70, %71 : vector<27x16xf32>
    %c450 = arith.constant 450 : index
    %c0_50 = arith.constant 0 : index
    %73 = vector.load %arg19[%c450, %c0_50] : memref<838x16xf32, #tpu.memory_space<vmem>>, vector<27x16xf32>
    %c451 = arith.constant 451 : index
    %c0_51 = arith.constant 0 : index
    %74 = vector.load %arg19[%c451, %c0_51] : memref<838x16xf32, #tpu.memory_space<vmem>>, vector<27x16xf32>
    %75 = arith.maximumf %73, %74 : vector<27x16xf32>
    %76 = arith.maximumf %72, %75 : vector<27x16xf32>
    %c189 = arith.constant 189 : index
    %c0_52 = arith.constant 0 : index
    %77 = vector.load %arg20[%c189, %c0_52] : memref<378x16xf32, #tpu.memory_space<vmem>>, vector<27x16xf32>
    tpu.vector_store %arg20[%c189, %c0_52], %76 {strides = array<i32>} : memref<378x16xf32, #tpu.memory_space<vmem>>, vector<27x16xf32>,
    %c480 = arith.constant 480 : index
    %c0_53 = arith.constant 0 : index
    %78 = vector.load %arg19[%c480, %c0_53] : memref<838x16xf32, #tpu.memory_space<vmem>>, vector<27x16xf32>
    %c481 = arith.constant 481 : index
    %c0_54 = arith.constant 0 : index
    %79 = vector.load %arg19[%c481, %c0_54] : memref<838x16xf32, #tpu.memory_space<vmem>>, vector<27x16xf32>
    %80 = arith.maximumf %78, %79 : vector<27x16xf32>
    %c510 = arith.constant 510 : index
    %c0_55 = arith.constant 0 : index
    %81 = vector.load %arg19[%c510, %c0_55] : memref<838x16xf32, #tpu.memory_space<vmem>>, vector<27x16xf32>
    %c511 = arith.constant 511 : index
    %c0_56 = arith.constant 0 : index
    %82 = vector.load %arg19[%c511, %c0_56] : memref<838x16xf32, #tpu.memory_space<vmem>>, vector<27x16xf32>
    %83 = arith.maximumf %81, %82 : vector<27x16xf32>
    %84 = arith.maximumf %80, %83 : vector<27x16xf32>
    %c216 = arith.constant 216 : index
    %c0_57 = arith.constant 0 : index
    %85 = vector.load %arg20[%c216, %c0_57] : memref<378x16xf32, #tpu.memory_space<vmem>>, vector<27x16xf32>
    tpu.vector_store %arg20[%c216, %c0_57], %84 {strides = array<i32>} : memref<378x16xf32, #tpu.memory_space<vmem>>, vector<27x16xf32>,
    %c540 = arith.constant 540 : index
    %c0_58 = arith.constant 0 : index
    %86 = vector.load %arg19[%c540, %c0_58] : memref<838x16xf32, #tpu.memory_space<vmem>>, vector<27x16xf32>
    %c541 = arith.constant 541 : index
    %c0_59 = arith.constant 0 : index
    %87 = vector.load %arg19[%c541, %c0_59] : memref<838x16xf32, #tpu.memory_space<vmem>>, vector<27x16xf32>
    %88 = arith.maximumf %86, %87 : vector<27x16xf32>
    %c570 = arith.constant 570 : index
    %c0_60 = arith.constant 0 : index
    %89 = vector.load %arg19[%c570, %c0_60] : memref<838x16xf32, #tpu.memory_space<vmem>>, vector<27x16xf32>
    %c571 = arith.constant 571 : index
    %c0_61 = arith.constant 0 : index
    %90 = vector.load %arg19[%c571, %c0_61] : memref<838x16xf32, #tpu.memory_space<vmem>>, vector<27x16xf32>
    %91 = arith.maximumf %89, %90 : vector<27x16xf32>
    %92 = arith.maximumf %88, %91 : vector<27x16xf32>
    %c243 = arith.constant 243 : index
    %c0_62 = arith.constant 0 : index
    %93 = vector.load %arg20[%c243, %c0_62] : memref<378x16xf32, #tpu.memory_space<vmem>>, vector<27x16xf32>
    tpu.vector_store %arg20[%c243, %c0_62], %92 {strides = array<i32>} : memref<378x16xf32, #tpu.memory_space<vmem>>, vector<27x16xf32>,
    %c600 = arith.constant 600 : index
    %c0_63 = arith.constant 0 : index
    %94 = vector.load %arg19[%c600, %c0_63] : memref<838x16xf32, #tpu.memory_space<vmem>>, vector<27x16xf32>
    %c601 = arith.constant 601 : index
    %c0_64 = arith.constant 0 : index
    %95 = vector.load %arg19[%c601, %c0_64] : memref<838x16xf32, #tpu.memory_space<vmem>>, vector<27x16xf32>
    %96 = arith.maximumf %94, %95 : vector<27x16xf32>
    %c630 = arith.constant 630 : index
    %c0_65 = arith.constant 0 : index
    %97 = vector.load %arg19[%c630, %c0_65] : memref<838x16xf32, #tpu.memory_space<vmem>>, vector<27x16xf32>
    %c631 = arith.constant 631 : index
    %c0_66 = arith.constant 0 : index
    %98 = vector.load %arg19[%c631, %c0_66] : memref<838x16xf32, #tpu.memory_space<vmem>>, vector<27x16xf32>
    %99 = arith.maximumf %97, %98 : vector<27x16xf32>
    %100 = arith.maximumf %96, %99 : vector<27x16xf32>
    %c270_67 = arith.constant 270 : index
    %c0_68 = arith.constant 0 : index
    %101 = vector.load %arg20[%c270_67, %c0_68] : memref<378x16xf32, #tpu.memory_space<vmem>>, vector<27x16xf32>
    tpu.vector_store %arg20[%c270_67, %c0_68], %100 {strides = array<i32>} : memref<378x16xf32, #tpu.memory_space<vmem>>, vector<27x16xf32>,
    %c660 = arith.constant 660 : index
    %c0_69 = arith.constant 0 : index
    %102 = vector.load %arg19[%c660, %c0_69] : memref<838x16xf32, #tpu.memory_space<vmem>>, vector<27x16xf32>
    %c661 = arith.constant 661 : index
    %c0_70 = arith.constant 0 : index
    %103 = vector.load %arg19[%c661, %c0_70] : memref<838x16xf32, #tpu.memory_space<vmem>>, vector<27x16xf32>
    %104 = arith.maximumf %102, %103 : vector<27x16xf32>
    %c690 = arith.constant 690 : index
    %c0_71 = arith.constant 0 : index
    %105 = vector.load %arg19[%c690, %c0_71] : memref<838x16xf32, #tpu.memory_space<vmem>>, vector<27x16xf32>
    %c691 = arith.constant 691 : index
    %c0_72 = arith.constant 0 : index
    %106 = vector.load %arg19[%c691, %c0_72] : memref<838x16xf32, #tpu.memory_space<vmem>>, vector<27x16xf32>
    %107 = arith.maximumf %105, %106 : vector<27x16xf32>
    %108 = arith.maximumf %104, %107 : vector<27x16xf32>
    %c297 = arith.constant 297 : index
    %c0_73 = arith.constant 0 : index
    %109 = vector.load %arg20[%c297, %c0_73] : memref<378x16xf32, #tpu.memory_space<vmem>>, vector<27x16xf32>
    tpu.vector_store %arg20[%c297, %c0_73], %108 {strides = array<i32>} : memref<378x16xf32, #tpu.memory_space<vmem>>, vector<27x16xf32>,
    %c720 = arith.constant 720 : index
    %c0_74 = arith.constant 0 : index
    %110 = vector.load %arg19[%c720, %c0_74] : memref<838x16xf32, #tpu.memory_space<vmem>>, vector<27x16xf32>
    %c721 = arith.constant 721 : index
    %c0_75 = arith.constant 0 : index
    %111 = vector.load %arg19[%c721, %c0_75] : memref<838x16xf32, #tpu.memory_space<vmem>>, vector<27x16xf32>
    %112 = arith.maximumf %110, %111 : vector<27x16xf32>
    %c750 = arith.constant 750 : index
    %c0_76 = arith.constant 0 : index
    %113 = vector.load %arg19[%c750, %c0_76] : memref<838x16xf32, #tpu.memory_space<vmem>>, vector<27x16xf32>
    %c751 = arith.constant 751 : index
    %c0_77 = arith.constant 0 : index
    %114 = vector.load %arg19[%c751, %c0_77] : memref<838x16xf32, #tpu.memory_space<vmem>>, vector<27x16xf32>
    %115 = arith.maximumf %113, %114 : vector<27x16xf32>
    %116 = arith.maximumf %112, %115 : vector<27x16xf32>
    %c324 = arith.constant 324 : index
    %c0_78 = arith.constant 0 : index
    %117 = vector.load %arg20[%c324, %c0_78] : memref<378x16xf32, #tpu.memory_space<vmem>>, vector<27x16xf32>
    tpu.vector_store %arg20[%c324, %c0_78], %116 {strides = array<i32>} : memref<378x16xf32, #tpu.memory_space<vmem>>, vector<27x16xf32>,
    %c780 = arith.constant 780 : index
    %c0_79 = arith.constant 0 : index
    %118 = vector.load %arg19[%c780, %c0_79] : memref<838x16xf32, #tpu.memory_space<vmem>>, vector<27x16xf32>
    %c781 = arith.constant 781 : index
    %c0_80 = arith.constant 0 : index
    %119 = vector.load %arg19[%c781, %c0_80] : memref<838x16xf32, #tpu.memory_space<vmem>>, vector<27x16xf32>
    %120 = arith.maximumf %118, %119 : vector<27x16xf32>
    %c810 = arith.constant 810 : index
    %c0_81 = arith.constant 0 : index
    %121 = vector.load %arg19[%c810, %c0_81] : memref<838x16xf32, #tpu.memory_space<vmem>>, vector<27x16xf32>
    %c811 = arith.constant 811 : index
    %c0_82 = arith.constant 0 : index
    %122 = vector.load %arg19[%c811, %c0_82] : memref<838x16xf32, #tpu.memory_space<vmem>>, vector<27x16xf32>
    %123 = arith.maximumf %121, %122 : vector<27x16xf32>
    %124 = arith.maximumf %120, %123 : vector<27x16xf32>
    %c351 = arith.constant 351 : index
    %c0_83 = arith.constant 0 : index
    %125 = vector.load %arg20[%c351, %c0_83] : memref<378x16xf32, #tpu.memory_space<vmem>>, vector<27x16xf32>
    tpu.vector_store %arg20[%c351, %c0_83], %124 {strides = array<i32>} : memref<378x16xf32, #tpu.memory_space<vmem>>, vector<27x16xf32>,
    %c0_84 = arith.constant 0 : index
    %c0_85 = arith.constant 0 : index
    %126 = vector.load %arg20[%c0_84, %c0_85] : memref<378x16xf32, #tpu.memory_space<vmem>>, vector<320x16xf32>
    %c0_86 = arith.constant 0 : index
    %c0_87 = arith.constant 0 : index
    %127 = vector.load %arg21[%c0_86, %c0_87] : memref<320x128xf32, #tpu.memory_space<vmem>>, vector<320x16xf32>
    tpu.vector_store %arg21[%c0_86, %c0_87], %126 {strides = array<i32>} : memref<320x128xf32, #tpu.memory_space<vmem>>, vector<320x16xf32>,
    %c2 = arith.constant 2 : index
    %c0_88 = arith.constant 0 : index
    %128 = vector.load %arg20[%c2, %c0_88] : memref<378x16xf32, #tpu.memory_space<vmem>>, vector<320x16xf32>
    %c0_89 = arith.constant 0 : index
    %c16 = arith.constant 16 : index
    %129 = vector.load %arg21[%c0_89, %c16] : memref<320x128xf32, #tpu.memory_space<vmem>>, vector<320x16xf32>
    tpu.vector_store %arg21[%c0_89, %c16], %128 {strides = array<i32>} : memref<320x128xf32, #tpu.memory_space<vmem>>, vector<320x16xf32>,
    %c4 = arith.constant 4 : index
    %c0_90 = arith.constant 0 : index
    %130 = vector.load %arg20[%c4, %c0_90] : memref<378x16xf32, #tpu.memory_space<vmem>>, vector<320x16xf32>
    %c0_91 = arith.constant 0 : index
    %c32 = arith.constant 32 : index
    %131 = vector.load %arg21[%c0_91, %c32] : memref<320x128xf32, #tpu.memory_space<vmem>>, vector<320x16xf32>
    tpu.vector_store %arg21[%c0_91, %c32], %130 {strides = array<i32>} : memref<320x128xf32, #tpu.memory_space<vmem>>, vector<320x16xf32>,
    %c27_92 = arith.constant 27 : index
    %c0_93 = arith.constant 0 : index
    %132 = vector.load %arg20[%c27_92, %c0_93] : memref<378x16xf32, #tpu.memory_space<vmem>>, vector<320x16xf32>
    %c0_94 = arith.constant 0 : index
    %c48 = arith.constant 48 : index
    %133 = vector.load %arg21[%c0_94, %c48] : memref<320x128xf32, #tpu.memory_space<vmem>>, vector<320x16xf32>
    tpu.vector_store %arg21[%c0_94, %c48], %132 {strides = array<i32>} : memref<320x128xf32, #tpu.memory_space<vmem>>, vector<320x16xf32>,
    %c29 = arith.constant 29 : index
    %c0_95 = arith.constant 0 : index
    %134 = vector.load %arg20[%c29, %c0_95] : memref<378x16xf32, #tpu.memory_space<vmem>>, vector<320x16xf32>
    %c0_96 = arith.constant 0 : index
    %c64 = arith.constant 64 : index
    %135 = vector.load %arg21[%c0_96, %c64] : memref<320x128xf32, #tpu.memory_space<vmem>>, vector<320x16xf32>
    tpu.vector_store %arg21[%c0_96, %c64], %134 {strides = array<i32>} : memref<320x128xf32, #tpu.memory_space<vmem>>, vector<320x16xf32>,
    %c31_97 = arith.constant 31 : index
    %c0_98 = arith.constant 0 : index
    %136 = vector.load %arg20[%c31_97, %c0_98] : memref<378x16xf32, #tpu.memory_space<vmem>>, vector<320x16xf32>
    %c0_99 = arith.constant 0 : index
    %c80 = arith.constant 80 : index
    %137 = vector.load %arg21[%c0_99, %c80] : memref<320x128xf32, #tpu.memory_space<vmem>>, vector<320x16xf32>
    tpu.vector_store %arg21[%c0_99, %c80], %136 {strides = array<i32>} : memref<320x128xf32, #tpu.memory_space<vmem>>, vector<320x16xf32>,
    %c54_100 = arith.constant 54 : index
    %c0_101 = arith.constant 0 : index
    %138 = vector.load %arg20[%c54_100, %c0_101] : memref<378x16xf32, #tpu.memory_space<vmem>>, vector<320x16xf32>
    %c0_102 = arith.constant 0 : index
    %c96 = arith.constant 96 : index
    %139 = vector.load %arg21[%c0_102, %c96] : memref<320x128xf32, #tpu.memory_space<vmem>>, vector<320x16xf32>
    tpu.vector_store %arg21[%c0_102, %c96], %138 {strides = array<i32>} : memref<320x128xf32, #tpu.memory_space<vmem>>, vector<320x16xf32>,
    %c56 = arith.constant 56 : index
    %c0_103 = arith.constant 0 : index
    %140 = vector.load %arg20[%c56, %c0_103] : memref<378x16xf32, #tpu.memory_space<vmem>>, vector<320x16xf32>
    %c0_104 = arith.constant 0 : index
    %c112 = arith.constant 112 : index
    %141 = vector.load %arg21[%c0_104, %c112] : memref<320x128xf32, #tpu.memory_space<vmem>>, vector<320x16xf32>
    tpu.vector_store %arg21[%c0_104, %c112], %140 {strides = array<i32>} : memref<320x128xf32, #tpu.memory_space<vmem>>, vector<320x16xf32>,
    %c0_105 = arith.constant 0 : index
    %c0_106 = arith.constant 0 : index
    %142 = vector.load %arg21[%c0_105, %c0_106] : memref<320x128xf32, #tpu.memory_space<vmem>>, vector<320x128xf32>
    %c0_107 = arith.constant 0 : index
    %c0_108 = arith.constant 0 : index
    %143 = vector.load %arg5[%c0_107, %c0_108] : memref<128x32xf32, #tpu.memory_space<vmem>>, vector<128x32xf32>
    %cst_109 = arith.constant dense<0.000000e+00> : vector<320x32xf32>
    %144 = tpu.matmul %142, %143, %cst_109 {dimension_numbers = #tpu.dot_dimension_numbers<[1], [0], [0], [1], [0, 0, 1, 1], [], []>} : vector<320x128xf32>, vector<128x32xf32>, vector<320x32xf32> -> vector<320x32xf32>
    %c58 = arith.constant 58 : index
    %c0_110 = arith.constant 0 : index
    %145 = vector.load %arg20[%c58, %c0_110] : memref<378x16xf32, #tpu.memory_space<vmem>>, vector<320x16xf32>
    %c0_111 = arith.constant 0 : index
    %c0_112 = arith.constant 0 : index
    %146 = vector.load %arg6[%c0_111, %c0_112] : memref<16x32xf32, #tpu.memory_space<vmem>>, vector<16x32xf32>
    %cst_113 = arith.constant dense<0.000000e+00> : vector<320x32xf32>
    %147 = tpu.matmul %145, %146, %cst_113 {dimension_numbers = #tpu.dot_dimension_numbers<[1], [0], [0], [1], [0, 0, 1, 1], [], []>} : vector<320x16xf32>, vector<16x32xf32>, vector<320x32xf32> -> vector<320x32xf32>
    %148 = arith.addf %144, %147 : vector<320x32xf32>
    %c0_114 = arith.constant 0 : index
    %c0_115 = arith.constant 0 : index
    %149 = vector.load %arg7[%c0_114, %c0_115] : memref<1x32xf32, #tpu.memory_space<vmem>>, vector<1x32xf32>
    %150 = vector.broadcast %149 : vector<1x32xf32> to vector<320x32xf32>
    %151 = arith.addf %148, %150 : vector<320x32xf32>
    %cst_116 = arith.constant 0.000000e+00 : f32
    %152 = vector.broadcast %cst_116 : f32 to vector<320x32xf32>
    %153 = arith.cmpf oge, %151, %152 : vector<320x32xf32>
    %154 = vector.broadcast %0 : f32 to vector<320x32xf32>
    %155 = arith.mulf %154, %151 : vector<320x32xf32>
    %156 = arith.select %153, %151, %155 : vector<320x32xi1>, vector<320x32xf32>
    %c0_117 = arith.constant 0 : index
    %c0_118 = arith.constant 0 : index
    %157 = vector.load %arg22[%c0_117, %c0_118] : memref<320x32xf32, #tpu.memory_space<vmem>>, vector<320x32xf32>
    tpu.vector_store %arg22[%c0_117, %c0_118], %156 {strides = array<i32>} : memref<320x32xf32, #tpu.memory_space<vmem>>, vector<320x32xf32>,
    %c0_119 = arith.constant 0 : index
    %c0_120 = arith.constant 0 : index
    %158 = vector.load %arg22[%c0_119, %c0_120] : memref<320x32xf32, #tpu.memory_space<vmem>>, vector<21x32xf32>
    %c2_121 = arith.constant 2 : index
    %c0_122 = arith.constant 0 : index
    %159 = vector.load %arg22[%c2_121, %c0_122] : memref<320x32xf32, #tpu.memory_space<vmem>>, vector<21x32xf32>
    %160 = arith.maximumf %158, %159 : vector<21x32xf32>
    %c27_123 = arith.constant 27 : index
    %c0_124 = arith.constant 0 : index
    %161 = vector.load %arg22[%c27_123, %c0_124] : memref<320x32xf32, #tpu.memory_space<vmem>>, vector<21x32xf32>
    %c29_125 = arith.constant 29 : index
    %c0_126 = arith.constant 0 : index
    %162 = vector.load %arg22[%c29_125, %c0_126] : memref<320x32xf32, #tpu.memory_space<vmem>>, vector<21x32xf32>
    %163 = arith.maximumf %161, %162 : vector<21x32xf32>
    %164 = arith.maximumf %160, %163 : vector<21x32xf32>
    %165 = vector.extract_strided_slice %164 {offsets = [0, 0], sizes = [1, 32], strides = [1, 1]} : vector<21x32xf32> to vector<1x32xf32>
    %166 = vector.extract_strided_slice %164 {offsets = [4, 0], sizes = [1, 32], strides = [1, 1]} : vector<21x32xf32> to vector<1x32xf32>
    %167 = vector.extract_strided_slice %164 {offsets = [8, 0], sizes = [1, 32], strides = [1, 1]} : vector<21x32xf32> to vector<1x32xf32>
    %168 = vector.extract_strided_slice %164 {offsets = [12, 0], sizes = [1, 32], strides = [1, 1]} : vector<21x32xf32> to vector<1x32xf32>
    %169 = vector.extract_strided_slice %164 {offsets = [16, 0], sizes = [1, 32], strides = [1, 1]} : vector<21x32xf32> to vector<1x32xf32>
    %170 = vector.extract_strided_slice %164 {offsets = [20, 0], sizes = [1, 32], strides = [1, 1]} : vector<21x32xf32> to vector<1x32xf32>
    %171 = tpu.concatenate %165, %166, %167, %168, %169, %170 in 0 : vector<1x32xf32>, vector<1x32xf32>, vector<1x32xf32>, vector<1x32xf32>, vector<1x32xf32>, vector<1x32xf32> -> vector<6x32xf32>
    %c0_127 = arith.constant 0 : index
    %c0_128 = arith.constant 0 : index
    %172 = vector.load %arg23[%c0_127, %c0_128] : memref<36x32xf32, #tpu.memory_space<vmem>>, vector<6x32xf32>
    tpu.vector_store %arg23[%c0_127, %c0_128], %171 {strides = array<i32>} : memref<36x32xf32, #tpu.memory_space<vmem>>, vector<6x32xf32>,
    %c54_129 = arith.constant 54 : index
    %c0_130 = arith.constant 0 : index
    %173 = vector.load %arg22[%c54_129, %c0_130] : memref<320x32xf32, #tpu.memory_space<vmem>>, vector<21x32xf32>
    %c56_131 = arith.constant 56 : index
    %c0_132 = arith.constant 0 : index
    %174 = vector.load %arg22[%c56_131, %c0_132] : memref<320x32xf32, #tpu.memory_space<vmem>>, vector<21x32xf32>
    %175 = arith.maximumf %173, %174 : vector<21x32xf32>
    %c81_133 = arith.constant 81 : index
    %c0_134 = arith.constant 0 : index
    %176 = vector.load %arg22[%c81_133, %c0_134] : memref<320x32xf32, #tpu.memory_space<vmem>>, vector<21x32xf32>
    %c83 = arith.constant 83 : index
    %c0_135 = arith.constant 0 : index
    %177 = vector.load %arg22[%c83, %c0_135] : memref<320x32xf32, #tpu.memory_space<vmem>>, vector<21x32xf32>
    %178 = arith.maximumf %176, %177 : vector<21x32xf32>
    %179 = arith.maximumf %175, %178 : vector<21x32xf32>
    %180 = vector.extract_strided_slice %179 {offsets = [0, 0], sizes = [1, 32], strides = [1, 1]} : vector<21x32xf32> to vector<1x32xf32>
    %181 = vector.extract_strided_slice %179 {offsets = [4, 0], sizes = [1, 32], strides = [1, 1]} : vector<21x32xf32> to vector<1x32xf32>
    %182 = vector.extract_strided_slice %179 {offsets = [8, 0], sizes = [1, 32], strides = [1, 1]} : vector<21x32xf32> to vector<1x32xf32>
    %183 = vector.extract_strided_slice %179 {offsets = [12, 0], sizes = [1, 32], strides = [1, 1]} : vector<21x32xf32> to vector<1x32xf32>
    %184 = vector.extract_strided_slice %179 {offsets = [16, 0], sizes = [1, 32], strides = [1, 1]} : vector<21x32xf32> to vector<1x32xf32>
    %185 = vector.extract_strided_slice %179 {offsets = [20, 0], sizes = [1, 32], strides = [1, 1]} : vector<21x32xf32> to vector<1x32xf32>
    %186 = tpu.concatenate %180, %181, %182, %183, %184, %185 in 0 : vector<1x32xf32>, vector<1x32xf32>, vector<1x32xf32>, vector<1x32xf32>, vector<1x32xf32>, vector<1x32xf32> -> vector<6x32xf32>
    %c6 = arith.constant 6 : index
    %c0_136 = arith.constant 0 : index
    %187 = vector.load %arg23[%c6, %c0_136] : memref<36x32xf32, #tpu.memory_space<vmem>>, vector<6x32xf32>
    tpu.vector_store %arg23[%c6, %c0_136], %186 {strides = array<i32>} : memref<36x32xf32, #tpu.memory_space<vmem>>, vector<6x32xf32>,
    %c108_137 = arith.constant 108 : index
    %c0_138 = arith.constant 0 : index
    %188 = vector.load %arg22[%c108_137, %c0_138] : memref<320x32xf32, #tpu.memory_space<vmem>>, vector<21x32xf32>
    %c110 = arith.constant 110 : index
    %c0_139 = arith.constant 0 : index
    %189 = vector.load %arg22[%c110, %c0_139] : memref<320x32xf32, #tpu.memory_space<vmem>>, vector<21x32xf32>
    %190 = arith.maximumf %188, %189 : vector<21x32xf32>
    %c135_140 = arith.constant 135 : index
    %c0_141 = arith.constant 0 : index
    %191 = vector.load %arg22[%c135_140, %c0_141] : memref<320x32xf32, #tpu.memory_space<vmem>>, vector<21x32xf32>
    %c137 = arith.constant 137 : index
    %c0_142 = arith.constant 0 : index
    %192 = vector.load %arg22[%c137, %c0_142] : memref<320x32xf32, #tpu.memory_space<vmem>>, vector<21x32xf32>
    %193 = arith.maximumf %191, %192 : vector<21x32xf32>
    %194 = arith.maximumf %190, %193 : vector<21x32xf32>
    %195 = vector.extract_strided_slice %194 {offsets = [0, 0], sizes = [1, 32], strides = [1, 1]} : vector<21x32xf32> to vector<1x32xf32>
    %196 = vector.extract_strided_slice %194 {offsets = [4, 0], sizes = [1, 32], strides = [1, 1]} : vector<21x32xf32> to vector<1x32xf32>
    %197 = vector.extract_strided_slice %194 {offsets = [8, 0], sizes = [1, 32], strides = [1, 1]} : vector<21x32xf32> to vector<1x32xf32>
    %198 = vector.extract_strided_slice %194 {offsets = [12, 0], sizes = [1, 32], strides = [1, 1]} : vector<21x32xf32> to vector<1x32xf32>
    %199 = vector.extract_strided_slice %194 {offsets = [16, 0], sizes = [1, 32], strides = [1, 1]} : vector<21x32xf32> to vector<1x32xf32>
    %200 = vector.extract_strided_slice %194 {offsets = [20, 0], sizes = [1, 32], strides = [1, 1]} : vector<21x32xf32> to vector<1x32xf32>
    %201 = tpu.concatenate %195, %196, %197, %198, %199, %200 in 0 : vector<1x32xf32>, vector<1x32xf32>, vector<1x32xf32>, vector<1x32xf32>, vector<1x32xf32>, vector<1x32xf32> -> vector<6x32xf32>
    %c12 = arith.constant 12 : index
    %c0_143 = arith.constant 0 : index
    %202 = vector.load %arg23[%c12, %c0_143] : memref<36x32xf32, #tpu.memory_space<vmem>>, vector<6x32xf32>
    tpu.vector_store %arg23[%c12, %c0_143], %201 {strides = array<i32>} : memref<36x32xf32, #tpu.memory_space<vmem>>, vector<6x32xf32>,
    %c162_144 = arith.constant 162 : index
    %c0_145 = arith.constant 0 : index
    %203 = vector.load %arg22[%c162_144, %c0_145] : memref<320x32xf32, #tpu.memory_space<vmem>>, vector<21x32xf32>
    %c164 = arith.constant 164 : index
    %c0_146 = arith.constant 0 : index
    %204 = vector.load %arg22[%c164, %c0_146] : memref<320x32xf32, #tpu.memory_space<vmem>>, vector<21x32xf32>
    %205 = arith.maximumf %203, %204 : vector<21x32xf32>
    %c189_147 = arith.constant 189 : index
    %c0_148 = arith.constant 0 : index
    %206 = vector.load %arg22[%c189_147, %c0_148] : memref<320x32xf32, #tpu.memory_space<vmem>>, vector<21x32xf32>
    %c191 = arith.constant 191 : index
    %c0_149 = arith.constant 0 : index
    %207 = vector.load %arg22[%c191, %c0_149] : memref<320x32xf32, #tpu.memory_space<vmem>>, vector<21x32xf32>
    %208 = arith.maximumf %206, %207 : vector<21x32xf32>
    %209 = arith.maximumf %205, %208 : vector<21x32xf32>
    %210 = vector.extract_strided_slice %209 {offsets = [0, 0], sizes = [1, 32], strides = [1, 1]} : vector<21x32xf32> to vector<1x32xf32>
    %211 = vector.extract_strided_slice %209 {offsets = [4, 0], sizes = [1, 32], strides = [1, 1]} : vector<21x32xf32> to vector<1x32xf32>
    %212 = vector.extract_strided_slice %209 {offsets = [8, 0], sizes = [1, 32], strides = [1, 1]} : vector<21x32xf32> to vector<1x32xf32>
    %213 = vector.extract_strided_slice %209 {offsets = [12, 0], sizes = [1, 32], strides = [1, 1]} : vector<21x32xf32> to vector<1x32xf32>
    %214 = vector.extract_strided_slice %209 {offsets = [16, 0], sizes = [1, 32], strides = [1, 1]} : vector<21x32xf32> to vector<1x32xf32>
    %215 = vector.extract_strided_slice %209 {offsets = [20, 0], sizes = [1, 32], strides = [1, 1]} : vector<21x32xf32> to vector<1x32xf32>
    %216 = tpu.concatenate %210, %211, %212, %213, %214, %215 in 0 : vector<1x32xf32>, vector<1x32xf32>, vector<1x32xf32>, vector<1x32xf32>, vector<1x32xf32>, vector<1x32xf32> -> vector<6x32xf32>
    %c18 = arith.constant 18 : index
    %c0_150 = arith.constant 0 : index
    %217 = vector.load %arg23[%c18, %c0_150] : memref<36x32xf32, #tpu.memory_space<vmem>>, vector<6x32xf32>
    tpu.vector_store %arg23[%c18, %c0_150], %216 {strides = array<i32>} : memref<36x32xf32, #tpu.memory_space<vmem>>, vector<6x32xf32>,
    %c216_151 = arith.constant 216 : index
    %c0_152 = arith.constant 0 : index
    %218 = vector.load %arg22[%c216_151, %c0_152] : memref<320x32xf32, #tpu.memory_space<vmem>>, vector<21x32xf32>
    %c218 = arith.constant 218 : index
    %c0_153 = arith.constant 0 : index
    %219 = vector.load %arg22[%c218, %c0_153] : memref<320x32xf32, #tpu.memory_space<vmem>>, vector<21x32xf32>
    %220 = arith.maximumf %218, %219 : vector<21x32xf32>
    %c243_154 = arith.constant 243 : index
    %c0_155 = arith.constant 0 : index
    %221 = vector.load %arg22[%c243_154, %c0_155] : memref<320x32xf32, #tpu.memory_space<vmem>>, vector<21x32xf32>
    %c245 = arith.constant 245 : index
    %c0_156 = arith.constant 0 : index
    %222 = vector.load %arg22[%c245, %c0_156] : memref<320x32xf32, #tpu.memory_space<vmem>>, vector<21x32xf32>
    %223 = arith.maximumf %221, %222 : vector<21x32xf32>
    %224 = arith.maximumf %220, %223 : vector<21x32xf32>
    %225 = vector.extract_strided_slice %224 {offsets = [0, 0], sizes = [1, 32], strides = [1, 1]} : vector<21x32xf32> to vector<1x32xf32>
    %226 = vector.extract_strided_slice %224 {offsets = [4, 0], sizes = [1, 32], strides = [1, 1]} : vector<21x32xf32> to vector<1x32xf32>
    %227 = vector.extract_strided_slice %224 {offsets = [8, 0], sizes = [1, 32], strides = [1, 1]} : vector<21x32xf32> to vector<1x32xf32>
    %228 = vector.extract_strided_slice %224 {offsets = [12, 0], sizes = [1, 32], strides = [1, 1]} : vector<21x32xf32> to vector<1x32xf32>
    %229 = vector.extract_strided_slice %224 {offsets = [16, 0], sizes = [1, 32], strides = [1, 1]} : vector<21x32xf32> to vector<1x32xf32>
    %230 = vector.extract_strided_slice %224 {offsets = [20, 0], sizes = [1, 32], strides = [1, 1]} : vector<21x32xf32> to vector<1x32xf32>
    %231 = tpu.concatenate %225, %226, %227, %228, %229, %230 in 0 : vector<1x32xf32>, vector<1x32xf32>, vector<1x32xf32>, vector<1x32xf32>, vector<1x32xf32>, vector<1x32xf32> -> vector<6x32xf32>
    %c24 = arith.constant 24 : index
    %c0_157 = arith.constant 0 : index
    %232 = vector.load %arg23[%c24, %c0_157] : memref<36x32xf32, #tpu.memory_space<vmem>>, vector<6x32xf32>
    tpu.vector_store %arg23[%c24, %c0_157], %231 {strides = array<i32>} : memref<36x32xf32, #tpu.memory_space<vmem>>, vector<6x32xf32>,
    %c270_158 = arith.constant 270 : index
    %c0_159 = arith.constant 0 : index
    %233 = vector.load %arg22[%c270_158, %c0_159] : memref<320x32xf32, #tpu.memory_space<vmem>>, vector<21x32xf32>
    %c272 = arith.constant 272 : index
    %c0_160 = arith.constant 0 : index
    %234 = vector.load %arg22[%c272, %c0_160] : memref<320x32xf32, #tpu.memory_space<vmem>>, vector<21x32xf32>
    %235 = arith.maximumf %233, %234 : vector<21x32xf32>
    %c297_161 = arith.constant 297 : index
    %c0_162 = arith.constant 0 : index
    %236 = vector.load %arg22[%c297_161, %c0_162] : memref<320x32xf32, #tpu.memory_space<vmem>>, vector<21x32xf32>
    %c299 = arith.constant 299 : index
    %c0_163 = arith.constant 0 : index
    %237 = vector.load %arg22[%c299, %c0_163] : memref<320x32xf32, #tpu.memory_space<vmem>>, vector<21x32xf32>
    %238 = arith.maximumf %236, %237 : vector<21x32xf32>
    %239 = arith.maximumf %235, %238 : vector<21x32xf32>
    %240 = vector.extract_strided_slice %239 {offsets = [0, 0], sizes = [1, 32], strides = [1, 1]} : vector<21x32xf32> to vector<1x32xf32>
    %241 = vector.extract_strided_slice %239 {offsets = [4, 0], sizes = [1, 32], strides = [1, 1]} : vector<21x32xf32> to vector<1x32xf32>
    %242 = vector.extract_strided_slice %239 {offsets = [8, 0], sizes = [1, 32], strides = [1, 1]} : vector<21x32xf32> to vector<1x32xf32>
    %243 = vector.extract_strided_slice %239 {offsets = [12, 0], sizes = [1, 32], strides = [1, 1]} : vector<21x32xf32> to vector<1x32xf32>
    %244 = vector.extract_strided_slice %239 {offsets = [16, 0], sizes = [1, 32], strides = [1, 1]} : vector<21x32xf32> to vector<1x32xf32>
    %245 = vector.extract_strided_slice %239 {offsets = [20, 0], sizes = [1, 32], strides = [1, 1]} : vector<21x32xf32> to vector<1x32xf32>
    %246 = tpu.concatenate %240, %241, %242, %243, %244, %245 in 0 : vector<1x32xf32>, vector<1x32xf32>, vector<1x32xf32>, vector<1x32xf32>, vector<1x32xf32>, vector<1x32xf32> -> vector<6x32xf32>
    %c30_164 = arith.constant 30 : index
    %c0_165 = arith.constant 0 : index
    %247 = vector.load %arg23[%c30_164, %c0_165] : memref<36x32xf32, #tpu.memory_space<vmem>>, vector<6x32xf32>
    tpu.vector_store %arg23[%c30_164, %c0_165], %246 {strides = array<i32>} : memref<36x32xf32, #tpu.memory_space<vmem>>, vector<6x32xf32>,
    %c0_166 = arith.constant 0 : index
    %c0_167 = arith.constant 0 : index
    %248 = vector.load %arg23[%c0_166, %c0_167] : memref<36x32xf32, #tpu.memory_space<vmem>>, vector<22x32xf32>
    %c0_168 = arith.constant 0 : index
    %c0_169 = arith.constant 0 : index
    %249 = vector.load %arg24[%c0_168, %c0_169] : memref<22x128xf32, #tpu.memory_space<vmem>>, vector<22x32xf32>
    tpu.vector_store %arg24[%c0_168, %c0_169], %248 {strides = array<i32>} : memref<22x128xf32, #tpu.memory_space<vmem>>, vector<22x32xf32>,
    %c7 = arith.constant 7 : index
    %c0_170 = arith.constant 0 : index
    %250 = vector.load %arg23[%c7, %c0_170] : memref<36x32xf32, #tpu.memory_space<vmem>>, vector<22x32xf32>
    %c0_171 = arith.constant 0 : index
    %c0_172 = arith.constant 0 : index
    %251 = vector.load %arg25[%c0_171, %c0_172] : memref<22x128xf32, #tpu.memory_space<vmem>>, vector<22x32xf32>
    tpu.vector_store %arg25[%c0_171, %c0_172], %250 {strides = array<i32>} : memref<22x128xf32, #tpu.memory_space<vmem>>, vector<22x32xf32>,
    %c1_173 = arith.constant 1 : index
    %c0_174 = arith.constant 0 : index
    %252 = vector.load %arg23[%c1_173, %c0_174] : memref<36x32xf32, #tpu.memory_space<vmem>>, vector<22x32xf32>
    %c0_175 = arith.constant 0 : index
    %c32_176 = arith.constant 32 : index
    %253 = vector.load %arg24[%c0_175, %c32_176] : memref<22x128xf32, #tpu.memory_space<vmem>>, vector<22x32xf32>
    tpu.vector_store %arg24[%c0_175, %c32_176], %252 {strides = array<i32>} : memref<22x128xf32, #tpu.memory_space<vmem>>, vector<22x32xf32>,
    %c8 = arith.constant 8 : index
    %c0_177 = arith.constant 0 : index
    %254 = vector.load %arg23[%c8, %c0_177] : memref<36x32xf32, #tpu.memory_space<vmem>>, vector<22x32xf32>
    %c0_178 = arith.constant 0 : index
    %c32_179 = arith.constant 32 : index
    %255 = vector.load %arg25[%c0_178, %c32_179] : memref<22x128xf32, #tpu.memory_space<vmem>>, vector<22x32xf32>
    tpu.vector_store %arg25[%c0_178, %c32_179], %254 {strides = array<i32>} : memref<22x128xf32, #tpu.memory_space<vmem>>, vector<22x32xf32>,
    %c2_180 = arith.constant 2 : index
    %c0_181 = arith.constant 0 : index
    %256 = vector.load %arg23[%c2_180, %c0_181] : memref<36x32xf32, #tpu.memory_space<vmem>>, vector<22x32xf32>
    %c0_182 = arith.constant 0 : index
    %c64_183 = arith.constant 64 : index
    %257 = vector.load %arg24[%c0_182, %c64_183] : memref<22x128xf32, #tpu.memory_space<vmem>>, vector<22x32xf32>
    tpu.vector_store %arg24[%c0_182, %c64_183], %256 {strides = array<i32>} : memref<22x128xf32, #tpu.memory_space<vmem>>, vector<22x32xf32>,
    %c12_184 = arith.constant 12 : index
    %c0_185 = arith.constant 0 : index
    %258 = vector.load %arg23[%c12_184, %c0_185] : memref<36x32xf32, #tpu.memory_space<vmem>>, vector<22x32xf32>
    %c0_186 = arith.constant 0 : index
    %c64_187 = arith.constant 64 : index
    %259 = vector.load %arg25[%c0_186, %c64_187] : memref<22x128xf32, #tpu.memory_space<vmem>>, vector<22x32xf32>
    tpu.vector_store %arg25[%c0_186, %c64_187], %258 {strides = array<i32>} : memref<22x128xf32, #tpu.memory_space<vmem>>, vector<22x32xf32>,
    %c6_188 = arith.constant 6 : index
    %c0_189 = arith.constant 0 : index
    %260 = vector.load %arg23[%c6_188, %c0_189] : memref<36x32xf32, #tpu.memory_space<vmem>>, vector<22x32xf32>
    %c0_190 = arith.constant 0 : index
    %c96_191 = arith.constant 96 : index
    %261 = vector.load %arg24[%c0_190, %c96_191] : memref<22x128xf32, #tpu.memory_space<vmem>>, vector<22x32xf32>
    tpu.vector_store %arg24[%c0_190, %c96_191], %260 {strides = array<i32>} : memref<22x128xf32, #tpu.memory_space<vmem>>, vector<22x32xf32>,
    %c13 = arith.constant 13 : index
    %c0_192 = arith.constant 0 : index
    %262 = vector.load %arg23[%c13, %c0_192] : memref<36x32xf32, #tpu.memory_space<vmem>>, vector<22x32xf32>
    %c0_193 = arith.constant 0 : index
    %c96_194 = arith.constant 96 : index
    %263 = vector.load %arg25[%c0_193, %c96_194] : memref<22x128xf32, #tpu.memory_space<vmem>>, vector<22x32xf32>
    tpu.vector_store %arg25[%c0_193, %c96_194], %262 {strides = array<i32>} : memref<22x128xf32, #tpu.memory_space<vmem>>, vector<22x32xf32>,
    %c0_195 = arith.constant 0 : index
    %c0_196 = arith.constant 0 : index
    %264 = vector.load %arg24[%c0_195, %c0_196] : memref<22x128xf32, #tpu.memory_space<vmem>>, vector<22x128xf32>
    %c0_197 = arith.constant 0 : index
    %c0_198 = arith.constant 0 : index
    %265 = vector.load %arg8[%c0_197, %c0_198] : memref<128x64xf32, #tpu.memory_space<vmem>>, vector<128x64xf32>
    %cst_199 = arith.constant dense<0.000000e+00> : vector<22x64xf32>
    %266 = tpu.matmul %264, %265, %cst_199 {dimension_numbers = #tpu.dot_dimension_numbers<[1], [0], [0], [1], [0, 0, 1, 1], [], []>} : vector<22x128xf32>, vector<128x64xf32>, vector<22x64xf32> -> vector<22x64xf32>
    %c0_200 = arith.constant 0 : index
    %c0_201 = arith.constant 0 : index
    %267 = vector.load %arg25[%c0_200, %c0_201] : memref<22x128xf32, #tpu.memory_space<vmem>>, vector<22x128xf32>
    %c0_202 = arith.constant 0 : index
    %c0_203 = arith.constant 0 : index
    %268 = vector.load %arg9[%c0_202, %c0_203] : memref<128x64xf32, #tpu.memory_space<vmem>>, vector<128x64xf32>
    %cst_204 = arith.constant dense<0.000000e+00> : vector<22x64xf32>
    %269 = tpu.matmul %267, %268, %cst_204 {dimension_numbers = #tpu.dot_dimension_numbers<[1], [0], [0], [1], [0, 0, 1, 1], [], []>} : vector<22x128xf32>, vector<128x64xf32>, vector<22x64xf32> -> vector<22x64xf32>
    %270 = arith.addf %266, %269 : vector<22x64xf32>
    %c14 = arith.constant 14 : index
    %c0_205 = arith.constant 0 : index
    %271 = vector.load %arg23[%c14, %c0_205] : memref<36x32xf32, #tpu.memory_space<vmem>>, vector<22x32xf32>
    %c0_206 = arith.constant 0 : index
    %c0_207 = arith.constant 0 : index
    %272 = vector.load %arg10[%c0_206, %c0_207] : memref<32x64xf32, #tpu.memory_space<vmem>>, vector<32x64xf32>
    %cst_208 = arith.constant dense<0.000000e+00> : vector<22x64xf32>
    %273 = tpu.matmul %271, %272, %cst_208 {dimension_numbers = #tpu.dot_dimension_numbers<[1], [0], [0], [1], [0, 0, 1, 1], [], []>} : vector<22x32xf32>, vector<32x64xf32>, vector<22x64xf32> -> vector<22x64xf32>
    %274 = arith.addf %270, %273 : vector<22x64xf32>
    %c0_209 = arith.constant 0 : index
    %c0_210 = arith.constant 0 : index
    %275 = vector.load %arg11[%c0_209, %c0_210] : memref<1x64xf32, #tpu.memory_space<vmem>>, vector<1x64xf32>
    %276 = vector.broadcast %275 : vector<1x64xf32> to vector<22x64xf32>
    %277 = arith.addf %274, %276 : vector<22x64xf32>
    %cst_211 = arith.constant 0.000000e+00 : f32
    %278 = vector.broadcast %cst_211 : f32 to vector<22x64xf32>
    %279 = arith.cmpf oge, %277, %278 : vector<22x64xf32>
    %280 = vector.broadcast %0 : f32 to vector<22x64xf32>
    %281 = arith.mulf %280, %277 : vector<22x64xf32>
    %282 = arith.select %279, %277, %281 : vector<22x64xi1>, vector<22x64xf32>
    %c0_212 = arith.constant 0 : index
    %c0_213 = arith.constant 0 : index
    %283 = vector.load %arg26[%c0_212, %c0_213] : memref<22x64xf32, #tpu.memory_space<vmem>>, vector<22x64xf32>
    tpu.vector_store %arg26[%c0_212, %c0_213], %282 {strides = array<i32>} : memref<22x64xf32, #tpu.memory_space<vmem>>, vector<22x64xf32>,
    %c0_214 = arith.constant 0 : index
    %c0_215 = arith.constant 0 : index
    %284 = vector.load %arg26[%c0_214, %c0_215] : memref<22x64xf32, #tpu.memory_space<vmem>>, vector<1x64xf32>
    %c1_216 = arith.constant 1 : index
    %c0_217 = arith.constant 0 : index
    %285 = vector.load %arg26[%c1_216, %c0_217] : memref<22x64xf32, #tpu.memory_space<vmem>>, vector<1x64xf32>
    %286 = arith.maximumf %284, %285 : vector<1x64xf32>
    %c6_218 = arith.constant 6 : index
    %c0_219 = arith.constant 0 : index
    %287 = vector.load %arg26[%c6_218, %c0_219] : memref<22x64xf32, #tpu.memory_space<vmem>>, vector<1x64xf32>
    %c7_220 = arith.constant 7 : index
    %c0_221 = arith.constant 0 : index
    %288 = vector.load %arg26[%c7_220, %c0_221] : memref<22x64xf32, #tpu.memory_space<vmem>>, vector<1x64xf32>
    %289 = arith.maximumf %287, %288 : vector<1x64xf32>
    %290 = arith.maximumf %286, %289 : vector<1x64xf32>
    %c2_222 = arith.constant 2 : index
    %c0_223 = arith.constant 0 : index
    %291 = vector.load %arg26[%c2_222, %c0_223] : memref<22x64xf32, #tpu.memory_space<vmem>>, vector<1x64xf32>
    %c3 = arith.constant 3 : index
    %c0_224 = arith.constant 0 : index
    %292 = vector.load %arg26[%c3, %c0_224] : memref<22x64xf32, #tpu.memory_space<vmem>>, vector<1x64xf32>
    %293 = arith.maximumf %291, %292 : vector<1x64xf32>
    %c8_225 = arith.constant 8 : index
    %c0_226 = arith.constant 0 : index
    %294 = vector.load %arg26[%c8_225, %c0_226] : memref<22x64xf32, #tpu.memory_space<vmem>>, vector<1x64xf32>
    %c9 = arith.constant 9 : index
    %c0_227 = arith.constant 0 : index
    %295 = vector.load %arg26[%c9, %c0_227] : memref<22x64xf32, #tpu.memory_space<vmem>>, vector<1x64xf32>
    %296 = arith.maximumf %294, %295 : vector<1x64xf32>
    %297 = arith.maximumf %293, %296 : vector<1x64xf32>
    %c12_228 = arith.constant 12 : index
    %c0_229 = arith.constant 0 : index
    %298 = vector.load %arg26[%c12_228, %c0_229] : memref<22x64xf32, #tpu.memory_space<vmem>>, vector<1x64xf32>
    %c13_230 = arith.constant 13 : index
    %c0_231 = arith.constant 0 : index
    %299 = vector.load %arg26[%c13_230, %c0_231] : memref<22x64xf32, #tpu.memory_space<vmem>>, vector<1x64xf32>
    %300 = arith.maximumf %298, %299 : vector<1x64xf32>
    %c18_232 = arith.constant 18 : index
    %c0_233 = arith.constant 0 : index
    %301 = vector.load %arg26[%c18_232, %c0_233] : memref<22x64xf32, #tpu.memory_space<vmem>>, vector<1x64xf32>
    %c19 = arith.constant 19 : index
    %c0_234 = arith.constant 0 : index
    %302 = vector.load %arg26[%c19, %c0_234] : memref<22x64xf32, #tpu.memory_space<vmem>>, vector<1x64xf32>
    %303 = arith.maximumf %301, %302 : vector<1x64xf32>
    %304 = arith.maximumf %300, %303 : vector<1x64xf32>
    %c14_235 = arith.constant 14 : index
    %c0_236 = arith.constant 0 : index
    %305 = vector.load %arg26[%c14_235, %c0_236] : memref<22x64xf32, #tpu.memory_space<vmem>>, vector<1x64xf32>
    %c15 = arith.constant 15 : index
    %c0_237 = arith.constant 0 : index
    %306 = vector.load %arg26[%c15, %c0_237] : memref<22x64xf32, #tpu.memory_space<vmem>>, vector<1x64xf32>
    %307 = arith.maximumf %305, %306 : vector<1x64xf32>
    %c20 = arith.constant 20 : index
    %c0_238 = arith.constant 0 : index
    %308 = vector.load %arg26[%c20, %c0_238] : memref<22x64xf32, #tpu.memory_space<vmem>>, vector<1x64xf32>
    %c21 = arith.constant 21 : index
    %c0_239 = arith.constant 0 : index
    %309 = vector.load %arg26[%c21, %c0_239] : memref<22x64xf32, #tpu.memory_space<vmem>>, vector<1x64xf32>
    %310 = arith.maximumf %308, %309 : vector<1x64xf32>
    %311 = arith.maximumf %307, %310 : vector<1x64xf32>
    %312 = tpu.concatenate %290, %297, %304, %311 in 1 : vector<1x64xf32>, vector<1x64xf32>, vector<1x64xf32>, vector<1x64xf32> -> vector<1x256xf32>
    %c0_240 = arith.constant 0 : index
    %c0_241 = arith.constant 0 : index
    %313 = vector.load %arg12[%c0_240, %c0_241] : memref<256x128xf32, #tpu.memory_space<vmem>>, vector<256x128xf32>
    %cst_242 = arith.constant dense<0.000000e+00> : vector<1x128xf32>
    %314 = tpu.matmul %312, %313, %cst_242 {dimension_numbers = #tpu.dot_dimension_numbers<[1], [0], [0], [1], [0, 0, 1, 1], [], []>} : vector<1x256xf32>, vector<256x128xf32>, vector<1x128xf32> -> vector<1x128xf32>
    %c0_243 = arith.constant 0 : index
    %c0_244 = arith.constant 0 : index
    %315 = vector.load %arg13[%c0_243, %c0_244] : memref<1x128xf32, #tpu.memory_space<vmem>>, vector<1x128xf32>
    %316 = arith.addf %314, %315 : vector<1x128xf32>
    %cst_245 = arith.constant 0.000000e+00 : f32
    %317 = vector.broadcast %cst_245 : f32 to vector<1x128xf32>
    %318 = arith.cmpf oge, %316, %317 : vector<1x128xf32>
    %319 = vector.broadcast %0 : f32 to vector<1x128xf32>
    %320 = arith.mulf %319, %316 : vector<1x128xf32>
    %321 = arith.select %318, %316, %320 : vector<1x128xi1>, vector<1x128xf32>
    %c0_246 = arith.constant 0 : index
    %c0_247 = arith.constant 0 : index
    %322 = vector.load %arg14[%c0_246, %c0_247] : memref<128x64xf32, #tpu.memory_space<vmem>>, vector<128x64xf32>
    %cst_248 = arith.constant dense<0.000000e+00> : vector<1x64xf32>
    %323 = tpu.matmul %321, %322, %cst_248 {dimension_numbers = #tpu.dot_dimension_numbers<[1], [0], [0], [1], [0, 0, 1, 1], [], []>} : vector<1x128xf32>, vector<128x64xf32>, vector<1x64xf32> -> vector<1x64xf32>
    %c0_249 = arith.constant 0 : index
    %c0_250 = arith.constant 0 : index
    %324 = vector.load %arg15[%c0_249, %c0_250] : memref<1x64xf32, #tpu.memory_space<vmem>>, vector<1x64xf32>
    %325 = arith.addf %323, %324 : vector<1x64xf32>
    %cst_251 = arith.constant 0.000000e+00 : f32
    %326 = vector.broadcast %cst_251 : f32 to vector<1x64xf32>
    %327 = arith.cmpf oge, %325, %326 : vector<1x64xf32>
    %328 = vector.broadcast %0 : f32 to vector<1x64xf32>
    %329 = arith.mulf %328, %325 : vector<1x64xf32>
    %330 = arith.select %327, %325, %329 : vector<1x64xi1>, vector<1x64xf32>
    %c0_252 = arith.constant 0 : index
    %c0_253 = arith.constant 0 : index
    %331 = vector.load %arg16[%c0_252, %c0_253] : memref<64x4xf32, #tpu.memory_space<vmem>>, vector<64x4xf32>
    %cst_254 = arith.constant dense<0.000000e+00> : vector<1x4xf32>
    %332 = tpu.matmul %330, %331, %cst_254 {dimension_numbers = #tpu.dot_dimension_numbers<[1], [0], [0], [1], [0, 0, 1, 1], [], []>} : vector<1x64xf32>, vector<64x4xf32>, vector<1x4xf32> -> vector<1x4xf32>
    %c0_255 = arith.constant 0 : index
    %c0_256 = arith.constant 0 : index
    %333 = vector.load %arg17[%c0_255, %c0_256] : memref<1x4xf32, #tpu.memory_space<vmem>>, vector<1x4xf32>
    %334 = arith.addf %332, %333 : vector<1x4xf32>
    %c0_257 = arith.constant 0 : index
    %c0_258 = arith.constant 0 : index
    %c0_259 = arith.constant 0 : index
    %335 = vector.load %arg18[%c0_257, %c0_258, %c0_259] : memref<1x1x4xf32, #tpu.memory_space<vmem>>, vector<1x1x4xf32>
    %336 = vector.shape_cast %335 : vector<1x1x4xf32> to vector<1x4xf32>
    %337 = vector.shape_cast %334 : vector<1x4xf32> to vector<1x1x4xf32>
    tpu.vector_store %arg18[%c0_257, %c0_258, %c0_259], %337 {strides = array<i32>} : memref<1x1x4xf32, #tpu.memory_space<vmem>>, vector<1x1x4xf32>,
    return
  }
  func.func @transform_0(%arg0: i32) -> (i32, i32) {
    %c0_i32 = arith.constant 0 : i32
    %c0_i32_0 = arith.constant 0 : i32
    %c0_i32_1 = arith.constant 0 : i32
    return %c0_i32, %c0_i32_0 : i32, i32
  }
  func.func @transform_1(%arg0: i32) -> (i32, i32, i32) {
    %c0_i32 = arith.constant 0 : i32
    %c0_i32_0 = arith.constant 0 : i32
    %c0_i32_1 = arith.constant 0 : i32
    return %arg0, %c0_i32, %c0_i32_0 : i32, i32, i32
  }
  func.func @transform_2(%arg0: i32) -> (i32, i32) {
    %c0_i32 = arith.constant 0 : i32
    %c0_i32_0 = arith.constant 0 : i32
    %c0_i32_1 = arith.constant 0 : i32
    return %c0_i32, %c0_i32_0 : i32, i32
  }
  func.func @transform_3(%arg0: i32) -> (i32, i32) {
    %c0_i32 = arith.constant 0 : i32
    %c0_i32_0 = arith.constant 0 : i32
    %c0_i32_1 = arith.constant 0 : i32
    return %c0_i32, %c0_i32_0 : i32, i32
  }
  func.func @transform_4(%arg0: i32) -> (i32, i32) {
    %c0_i32 = arith.constant 0 : i32
    %c0_i32_0 = arith.constant 0 : i32
    %c0_i32_1 = arith.constant 0 : i32
    return %c0_i32, %c0_i32_0 : i32, i32
  }
  func.func @transform_5(%arg0: i32) -> (i32, i32) {
    %c0_i32 = arith.constant 0 : i32
    %c0_i32_0 = arith.constant 0 : i32
    %c0_i32_1 = arith.constant 0 : i32
    return %c0_i32, %c0_i32_0 : i32, i32
  }
  func.func @transform_6(%arg0: i32) -> (i32, i32) {
    %c0_i32 = arith.constant 0 : i32
    %c0_i32_0 = arith.constant 0 : i32
    %c0_i32_1 = arith.constant 0 : i32
    return %c0_i32, %c0_i32_0 : i32, i32
  }
  func.func @transform_7(%arg0: i32) -> (i32, i32) {
    %c0_i32 = arith.constant 0 : i32
    %c0_i32_0 = arith.constant 0 : i32
    %c0_i32_1 = arith.constant 0 : i32
    return %c0_i32, %c0_i32_0 : i32, i32
  }
  func.func @transform_8(%arg0: i32) -> (i32, i32) {
    %c0_i32 = arith.constant 0 : i32
    %c0_i32_0 = arith.constant 0 : i32
    %c0_i32_1 = arith.constant 0 : i32
    return %c0_i32, %c0_i32_0 : i32, i32
  }
  func.func @transform_9(%arg0: i32) -> (i32, i32) {
    %c0_i32 = arith.constant 0 : i32
    %c0_i32_0 = arith.constant 0 : i32
    %c0_i32_1 = arith.constant 0 : i32
    return %c0_i32, %c0_i32_0 : i32, i32
  }
  func.func @transform_10(%arg0: i32) -> (i32, i32) {
    %c0_i32 = arith.constant 0 : i32
    %c0_i32_0 = arith.constant 0 : i32
    %c0_i32_1 = arith.constant 0 : i32
    return %c0_i32, %c0_i32_0 : i32, i32
  }
  func.func @transform_11(%arg0: i32) -> (i32, i32) {
    %c0_i32 = arith.constant 0 : i32
    %c0_i32_0 = arith.constant 0 : i32
    %c0_i32_1 = arith.constant 0 : i32
    return %c0_i32, %c0_i32_0 : i32, i32
  }
  func.func @transform_12(%arg0: i32) -> (i32, i32) {
    %c0_i32 = arith.constant 0 : i32
    %c0_i32_0 = arith.constant 0 : i32
    %c0_i32_1 = arith.constant 0 : i32
    return %c0_i32, %c0_i32_0 : i32, i32
  }
  func.func @transform_13(%arg0: i32) -> (i32, i32) {
    %c0_i32 = arith.constant 0 : i32
    %c0_i32_0 = arith.constant 0 : i32
    %c0_i32_1 = arith.constant 0 : i32
    return %c0_i32, %c0_i32_0 : i32, i32
  }
  func.func @transform_14(%arg0: i32) -> (i32, i32) {
    %c0_i32 = arith.constant 0 : i32
    %c0_i32_0 = arith.constant 0 : i32
    %c0_i32_1 = arith.constant 0 : i32
    return %c0_i32, %c0_i32_0 : i32, i32
  }
  func.func @transform_15(%arg0: i32) -> (i32, i32) {
    %c0_i32 = arith.constant 0 : i32
    %c0_i32_0 = arith.constant 0 : i32
    %c0_i32_1 = arith.constant 0 : i32
    return %c0_i32, %c0_i32_0 : i32, i32
  }
  func.func @transform_16(%arg0: i32) -> (i32, i32) {
    %c0_i32 = arith.constant 0 : i32
    %c0_i32_0 = arith.constant 0 : i32
    %c0_i32_1 = arith.constant 0 : i32
    return %c0_i32, %c0_i32_0 : i32, i32
  }
  func.func @transform_17(%arg0: i32) -> (i32, i32, i32) {
    %c0_i32 = arith.constant 0 : i32
    %c0_i32_0 = arith.constant 0 : i32
    %c0_i32_1 = arith.constant 0 : i32
    return %arg0, %c0_i32, %c0_i32_0 : i32, i32, i32
  }
}

</mosaic_0001>

<bundles_post_ra>
// kernel: network2d_forward.1
= control target key start
LH: loop header
LB: loop body
LE: loop exit
PB: predicated region body
PF: predicated region fallthrough
CT: control target
= control target key end

     0   :  { %s10249_s0 = inlined_call_operand.<no memory space> [shape: f32[1,1], index: 0, kind: input, shape index: {}]   ;;  %s10250_s1 = inlined_call_operand.vmem [shape: f32[2,838,54], index: 1, kind: input, shape index: {}]   ;;  %s10251_s2 = inlined_call_operand.vmem [shape: f32[54,16], index: 2, kind: input, shape index: {}]   ;;  %s10252_s3 = inlined_call_operand.vmem [shape: f32[1,16], index: 3, kind: input, shape index: {}]   ;;  %s10253_s4 = inlined_call_operand.vmem [shape: f32[128,32], index: 4, kind: input, shape index: {}]   ;;  %s10254_s5 = inlined_call_operand.vmem [shape: f32[16,32], index: 5, kind: input, shape index: {}]   ;;  %s10255_s6 = inlined_call_operand.vmem [shape: f32[1,32], index: 6, kind: input, shape index: {}]   ;;  %s10256_s7 = inlined_call_operand.vmem [shape: f32[128,64], index: 7, kind: input, shape index: {}]   ;;  %s10257_s8 = inlined_call_operand.vmem [shape: f32[128,64], index: 8, kind: input, shape index: {}]   ;;  %s10258_s9 = inlined_call_operand.vmem [shape: f32[32,64], index: 9, kind: input, shape index: {}]   ;;  %s10259_s10 = inlined_call_operand.vmem [shape: f32[1,64], index: 10, kind: input, shape index: {}]   ;;  %s10260_s11 = inlined_call_operand.vmem [shape: f32[256,128], index: 11, kind: input, shape index: {}]   ;;  %s10261_s12 = inlined_call_operand.vmem [shape: f32[1,128], index: 12, kind: input, shape index: {}]   ;;  %s10262_s13 = inlined_call_operand.vmem [shape: f32[128,64], index: 13, kind: input, shape index: {}]   ;;  %s10263_s14 = inlined_call_operand.vmem [shape: f32[1,64], index: 14, kind: input, shape index: {}]   ;;  %s10264_s15 = inlined_call_operand.vmem [shape: f32[64,4], index: 15, kind: input, shape index: {}]   ;;  %s10265_s16 = inlined_call_operand.vmem [shape: f32[1,4], index: 16, kind: input, shape index: {}]   ;;  %s10266_s17 = inlined_call_operand.hbm [shape: f32[2,1,4], index: 17, kind: output, shape index: {}]  }
   0x1   :  { %10282 = sst [smem:[#allocation18_spill]] %s10249_s0 }
   0x2   :  { %10283 = sst [smem:[#allocation19_spill]] %s10250_s1  ;;  %s10285_s26 = sld [smem:[#allocation18_spill]] }
   0x3   :  { %10284 = sst [smem:[#allocation20_spill]] %s10251_s2 }
   0x8   :  { %22 = sst [smem:[#allocation10]] %s10285_s26 }
   0x9   :  { %23 = vsyncpa [#allocation12], 0 }
   0xa   :  { %25 = vsyncpa [#allocation12 + $0x1], 0  ;;  %s7821_s27 = smov 0   ;;  %s7823_s28 = smov 0  }
   0xb   :  { %s7825_s29 = smov 0   ;;  %s7827_s0 = smov 0  }
   0xc LB: > { %10286 = sst [smem:[#allocation14_spill]] %s7711_s29  ;;  %s7842_s30 = sadd.s32 4294967295, %s7715_s0   ;;  %s7715_s0 = sphi %s7827_s0, %s10301_s0   ;;  %s7711_s29 = sphi %s7825_s29, %s10303_s29   ;;  %s7707_s28 = sphi %s7823_s28, %s10305_s28   ;;  %s7703_s27 = sphi %s7821_s27, %s10304_s27  }
   0xd   : > { %s6251_s18 = sadd.s32 4294967294, %s7715_s0   ;;  %s7846_s19 = sadd.s32 1, %s7715_s0  }
   0xe   : > { %10287 = sst [smem:[#allocation15_spill]] %s7846_s19  ;;  %s400_s1 = sadd.s32 1, %s7711_s29 }
   0xf   : > { %s397_s20 = ssub.s32 %s7715_s0, %s7846_s19  ;;  %p410_p0 = scmp.ne.s32.totalorder %s7711_s29, %s7707_s28 }
  0x10   : > { %p398_p1 = scmp.eq.s32.totalorder %s397_s20, 0  ;;  %p411_p2 = scmp.eq.s32.totalorder %s7842_s30, 1 }
  0x11   : > { %p416_p3 = scmp.ne.s32.totalorder %s7707_s28, %s7703_s27  ;;  %p417_p4 = scmp.eq.s32.totalorder %s6251_s18, 1 }
  0x12   : > { %s7857_s21 = scalar_select %p398_p1, %s7711_s29, %s400_s1  }
  0x13   : > { %p7859_p5 = por %p411_p2, %p410_p0  ;;  %p7863_p6 = por %p417_p4, %p416_p3 }
  0x14   : > { %10288 = sst [smem:[#allocation16_spill]] %s7857_s21  ;;  %p6254_p7 = scmp.ge.s32.totalorder %s7715_s0, 1 }
  0x15   : > { %s10290_s23 = scalar_select %p7863_p6, 1, 0 }
  0x16   : > { %p491_p8 = scmp.lt.s32.totalorder %s7715_s0, 3 }
  0x17   : > { %10291 = sst [smem:[#allocation17_spill]] %s10290_s23 }
  0x18   : > { %p492_p9 = pnand %p6254_p7, %p491_p8 }
  0x19   : > { %s10292_s2 = sld [smem:[#allocation20_spill]] (!%p492_p9)  ;;  %v7717_v3 = vmov (!%p492_p9), 0.0|0.0   ;;  %p542_p10 = scmp.lt.s32.totalorder (!%p492_p9), %s7842_s30, 1  ;;  %vm10277_vm0 = vmmov (!%p492_p9), 0   ;;  %v7719_v6 = vmov (!%p492_p9), 0.0   ;;  %vm983_vm1 = vcmask (!%p492_p9), 1045504  }
  0x1a   : > { %495 = sbr.rel (%p492_p9) target bundleno = 2410 (0x96a), region = 88  ;;  %7366 = vmatprep.subr.bf16.mxu0 (!%p492_p9), %v7717_v3  ;;  %7533 = vmatprep.subr.bf16.mxu1 (!%p492_p9), %v7717_v3  ;;  %s10293_s19 = sld [smem:[#allocation19_spill]] (!%p492_p9)  ;;  %vm667_vm2 = vcmask (!%p492_p9), 441344   ;;  %vm1893_vm3 = vcmask (!%p492_p9), 130048  }
  0x1b   : > { %6742 = vmatprep.mubr.msk.f32.mxu0 (!%p492_p9), %vm10277_vm0, %v7719_v6  ;;  %7009 = vmatprep.mubr.msk.f32.mxu1 (!%p492_p9), %vm10277_vm0, %v7719_v6  ;;  %s10273_s25 = smov (!%p492_p9), 16   ;;  %s10281_s29 = smov (!%p492_p9), 64  }
  0x1c   : > { %s7724_s21 = smov (!%p492_p9), 112   ;;  %s7725_s26 = smov (!%p492_p9), 80  }
  0x1f   : > { %v653_v0 = vld [vmem:[%s10292_s2] sm:$0xff] (!%p492_p9)  ;;  %v654_v1 = vld [vmem:[%s10292_s2 + $0x8] sm:$0xff] (!%p492_p9)  ;;  %v655_v2 = vld [vmem:[%s10292_s2 + $0x10] sm:$0xff] (!%p492_p9) }
  0x20   : > { %v7367_v4 = vpack.c.bf16 (!%p492_p9), %v654_v1, %v653_v0  ;;  %v656_v5 = vld [vmem:[%s10292_s2 + $0x18] sm:$0xff] (!%p492_p9)  ;;  %v657_v8 = vld [vmem:[%s10292_s2 + $0x20] sm:$0xff] (!%p492_p9)  ;;  %v658_v9 = vld [vmem:[%s10292_s2 + $0x28] sm:$0xff] (!%p492_p9) }
  0x21   : > { %v7370_v7 = vpack.c.bf16 %v656_v5, %v655_v2  ;;  %s543_s24 = scalar_select %p542_p10, %s7842_s30, 1  ;;  %v7373_v10 = vpack.c.bf16 %v658_v9, %v657_v8  ;;  %v659_v11 = vld [vmem:[%s10292_s2 + $0x30] sm:$0x3f] }
  0x22   : > { %7368 = vmatpush3.bf16.msra.mxu0 %v7367_v4  ;;  %7537 = vmatpush3.bf16.msra.mxu1 %v7367_v4  ;;  %s540_s2 = sand.u32 1, %s7707_s28  }
  0x23   : > { %7369 = vmatprep.subr.bf16.mxu0 %v7717_v3  ;;  %7534 = vmatprep.subr.bf16.mxu1 %v7717_v3  ;;  %s7581_s18 = smul.u32 840, %s543_s24  ;;  %s10279_s24 = smov 32  }
  0x25   : > { %s7902_s23 = scalar_lea.vmem %s10293_s19, %s7581_s18  ;;  %s547_s18 = sld [smem:[#allocation10]] }
  0x26   : > { %7371 = vmatpush3.bf16.msra.mxu0 %v7370_v7  ;;  %7538 = vmatpush3.bf16.msra.mxu1 %v7370_v7  ;;  %v548_v12 = vld [vmem:[%s7902_s23] sm:$0xff]  ;;  %v637_v13 = vld [vmem:[%s7902_s23 + $0x2c8] sm:$0xff]  ;;  %v638_v15 = vld [vmem:[%s7902_s23 + $0x2d0] sm:$0xff]  ;;  %s10275_s19 = smov 96  }
  0x27   : > { %7372 = vmatprep.subr.bf16.mxu0 %v7717_v3  ;;  %7535 = vmatprep.subr.bf16.mxu1 %v7717_v3  ;;  %v549_v14 = vld [vmem:[%s7902_s23 + $0x8] sm:$0xff]  ;;  %v550_v16 = vld [vmem:[%s7902_s23 + $0x10] sm:$0xff]  ;;  %v639_v17 = vld [vmem:[%s7902_s23 + $0x2d8] sm:$0xff] }
  0x28   : > { %v551_v18 = vld [vmem:[%s7902_s23 + $0x18] sm:$0xff]  ;;  %v640_v19 = vld [vmem:[%s7902_s23 + $0x2e0] sm:$0xff]  ;;  %v641_v21 = vld [vmem:[%s7902_s23 + $0x2e8] sm:$0xff] }
  0x29   : > { %v552_v20 = vld [vmem:[%s7902_s23 + $0x20] sm:$0xff]  ;;  %v553_v22 = vld [vmem:[%s7902_s23 + $0x28] sm:$0xff]  ;;  %v642_v23 = vld [vmem:[%s7902_s23 + $0x2f0] sm:$0xff] }
  0x2a   : > { %7374 = vmatpush3.bf16.msra.mxu0 %v7373_v10  ;;  %7539 = vmatpush3.bf16.msra.mxu1 %v7373_v10  ;;  %v554_v24 = vld [vmem:[%s7902_s23 + $0x30] sm:$0xff]  ;;  %v643_v25 = vld [vmem:[%s7902_s23 + $0x2f8] sm:$0xff]  ;;  %v644_v27 = vld [vmem:[%s7902_s23 + $0x300] sm:$0xff] }
  0x2b   : > { %6740 = vmatprep.subr.mxu0 %v7719_v6  ;;  %7536 = vmatprep.subr.mxu1 %v7719_v6  ;;  %v555_v26 = vld [vmem:[%s7902_s23 + $0x38] sm:$0xff]  ;;  %v556_v28 = vld [vmem:[%s7902_s23 + $0x40] sm:$0xff]  ;;  %v645_v29 = vld [vmem:[%s7902_s23 + $0x308] sm:$0xff] }
  0x2c   : > { %v557_v30 = vld [vmem:[%s7902_s23 + $0x48] sm:$0xff]  ;;  %v646_v31 = vld [vmem:[%s7902_s23 + $0x310] sm:$0xff]  ;;  %v647_v33 = vld [vmem:[%s7902_s23 + $0x318] sm:$0xff] }
  0x2d   : > { %v558_v32 = vld [vmem:[%s7902_s23 + $0x50] sm:$0xff]  ;;  %v559_v34 = vld [vmem:[%s7902_s23 + $0x58] sm:$0xff]  ;;  %v648_v35 = vld [vmem:[%s7902_s23 + $0x320] sm:$0xff] }
  0x2e   : > { %6741 = vmatpush3.msk.msra.mxu0 %vm983_vm1, %v659_v11  ;;  %7540 = vmatpush3.msk.msra.mxu1 %vm983_vm1, %v659_v11  ;;  %v560_v36 = vld [vmem:[%s7902_s23 + $0x60] sm:$0xff]  ;;  %v649_v37 = vld [vmem:[%s7902_s23 + $0x328] sm:$0xff]  ;;  %v650_v39 = vld [vmem:[%s7902_s23 + $0x330] sm:$0xff] }
  0x2f   : > { %6743 = vmatmul.mubr.msk.f32.vlgmr.msra.gmra.mrb[0].mxu0 %vm667_vm2, %v548_v12  ;;  %7010 = vmatmul.mubr.msk.f32.vlgmr.msra.gmra.mrb[0].mxu1 %vm667_vm2, %v637_v13  ;;  %v561_v38 = vld [vmem:[%s7902_s23 + $0x68] sm:$0xff]  ;;  %v562_v40 = vld [vmem:[%s7902_s23 + $0x70] sm:$0xff]  ;;  %v651_v41 = vld [vmem:[%s7902_s23 + $0x338] sm:$0xff] }
  0x30   : > { %6745 = vmatprep.mubr.msk.f32.mxu0 %vm10277_vm0, %v7719_v6  ;;  %7012 = vmatprep.mubr.msk.f32.mxu1 %vm10277_vm0, %v7719_v6  ;;  %v563_v42 = vld [vmem:[%s7902_s23 + $0x78] sm:$0xff]  ;;  %v652_v43 = vld [vmem:[%s7902_s23 + $0x340] sm:$0x3f]  ;;  %v565_v45 = vld [vmem:[%s7902_s23 + $0x88] sm:$0xff] }
  0x31   : > { %v564_v44 = vld [vmem:[%s7902_s23 + $0x80] sm:$0xff]  ;;  %v566_v46 = vld [vmem:[%s7902_s23 + $0x90] sm:$0xff]  ;;  %v567_v47 = vld [vmem:[%s7902_s23 + $0x98] sm:$0xff] }
  0x32   : > { %v568_v48 = vld [vmem:[%s7902_s23 + $0xa0] sm:$0xff]  ;;  %v569_v49 = vld [vmem:[%s7902_s23 + $0xa8] sm:$0xff]  ;;  %v570_v50 = vld [vmem:[%s7902_s23 + $0xb0] sm:$0xff] }
  0x33   : > { %6746 = vmatmul.mubr.msk.f32.gmra.mrb[2].mxu0 %vm667_vm2, %v549_v14  ;;  %7013 = vmatmul.mubr.msk.f32.gmra.mrb[2].mxu1 %vm667_vm2, %v638_v15  ;;  %v571_v51 = vld [vmem:[%s7902_s23 + $0xb8] sm:$0xff]  ;;  %v572_v52 = vld [vmem:[%s7902_s23 + $0xc0] sm:$0xff]  ;;  %v573_v53 = vld [vmem:[%s7902_s23 + $0xc8] sm:$0xff] }
  0x34   : > { %6748 = vmatprep.mubr.msk.f32.mxu0 %vm10277_vm0, %v7719_v6  ;;  %7015 = vmatprep.mubr.msk.f32.mxu1 %vm10277_vm0, %v7719_v6  ;;  %v574_v54 = vld [vmem:[%s7902_s23 + $0xd0] sm:$0xff]  ;;  %v575_v55 = vld [vmem:[%s7902_s23 + $0xd8] sm:$0xff]  ;;  %v576_v56 = vld [vmem:[%s7902_s23 + $0xe0] sm:$0xff] }
  0x35   : > { %v577_v57 = vld [vmem:[%s7902_s23 + $0xe8] sm:$0xff]  ;;  %v578_v58 = vld [vmem:[%s7902_s23 + $0xf0] sm:$0xff]  ;;  %v579_v59 = vld [vmem:[%s7902_s23 + $0xf8] sm:$0xff] }
  0x36   : > { %v580_v60 = vld [vmem:[%s7902_s23 + $0x100] sm:$0xff]  ;;  %v581_v61 = vld [vmem:[%s7902_s23 + $0x108] sm:$0xff]  ;;  %v582_v62 = vld [vmem:[%s7902_s23 + $0x110] sm:$0xff] }
  0x37   : > { %6749 = vmatmul.mubr.msk.f32.gmra.mrb[4].mxu0 %vm667_vm2, %v550_v16  ;;  %7016 = vmatmul.mubr.msk.f32.gmra.mrb[4].mxu1 %vm667_vm2, %v639_v17  ;;  %v583_v63 = vld [vmem:[%s7902_s23 + $0x118] sm:$0xff]  ;;  %v584_v0 = vld [vmem:[%s7902_s23 + $0x120] sm:$0xff]  ;;  %v585_v1 = vld [vmem:[%s7902_s23 + $0x128] sm:$0xff] }
  0x38   : > { %6751 = vmatprep.mubr.msk.f32.mxu0 %vm10277_vm0, %v7719_v6  ;;  %7018 = vmatprep.mubr.msk.f32.mxu1 %vm10277_vm0, %v7719_v6  ;;  %v586_v2 = vld [vmem:[%s7902_s23 + $0x130] sm:$0xff]  ;;  %v587_v4 = vld [vmem:[%s7902_s23 + $0x138] sm:$0xff]  ;;  %v588_v5 = vld [vmem:[%s7902_s23 + $0x140] sm:$0xff] }
  0x39   : > { %v589_v7 = vld [vmem:[%s7902_s23 + $0x148] sm:$0xff]  ;;  %v590_v8 = vld [vmem:[%s7902_s23 + $0x150] sm:$0xff]  ;;  %v591_v9 = vld [vmem:[%s7902_s23 + $0x158] sm:$0xff] }
  0x3a   : > { %v592_v10 = vld [vmem:[%s7902_s23 + $0x160] sm:$0xff]  ;;  %v593_v11 = vld [vmem:[%s7902_s23 + $0x168] sm:$0xff]  ;;  %v594_v12 = vld [vmem:[%s7902_s23 + $0x170] sm:$0xff] }
  0x3b   : > { %6752 = vmatmul.mubr.msk.f32.gmra.mrb[6].mxu0 %vm667_vm2, %v551_v18  ;;  %7019 = vmatmul.mubr.msk.f32.gmra.mrb[6].mxu1 %vm667_vm2, %v640_v19  ;;  %v595_v13 = vld [vmem:[%s7902_s23 + $0x178] sm:$0xff]  ;;  %v596_v14 = vld [vmem:[%s7902_s23 + $0x180] sm:$0xff]  ;;  %v4313_v16 = vld [vmem:[%s10254_s5 + $0x8] sm:$0xff] }
  0x3c   : > { %6754 = vmatprep.mubr.msk.f32.mxu0 %vm10277_vm0, %v7719_v6  ;;  %7021 = vmatprep.mubr.msk.f32.mxu1 %vm10277_vm0, %v7719_v6  ;;  %v4312_v15 = vld [vmem:[%s10254_s5] sm:$0xff]  ;;  %v597_v18 = vld [vmem:[%s7902_s23 + $0x188] sm:$0xff]  ;;  %v598_v19 = vld [vmem:[%s7902_s23 + $0x190] sm:$0xff] }
  0x3d   : > { %v7375_v17 = vpack.c.bf16 %v4313_v16, %v4312_v15 }
  0x3f   : > { %6755 = vmatmul.mubr.msk.f32.gmra.mrb[8].mxu0 %vm667_vm2, %v552_v20  ;;  %7022 = vmatmul.mubr.msk.f32.gmra.mrb[8].mxu1 %vm667_vm2, %v641_v21  ;;  %v599_v20 = vld [vmem:[%s7902_s23 + $0x198] sm:$0xff]  ;;  %v600_v21 = vld [vmem:[%s7902_s23 + $0x1a0] sm:$0xff] }
  0x40   : > { %6757 = vmatprep.mubr.msk.f32.mxu0 %vm10277_vm0, %v7719_v6  ;;  %7024 = vmatprep.mubr.msk.f32.mxu1 %vm10277_vm0, %v7719_v6 }
  0x41   : > { %7376 = vmatprep.subr.bf16.mxu1 %v7375_v17 }
  0x42   : > { %7378 = vmatpush3.bf16.msra.mxu1 %v7375_v17 }
  0x43   : > { %6758 = vmatmul.mubr.msk.f32.gmra.mrb[10].mxu0 %vm667_vm2, %v553_v22  ;;  %7025 = vmatmul.mubr.msk.f32.gmra.mrb[10].mxu1 %vm667_vm2, %v642_v23  ;;  %v8190_v22 = vld [vmem:[%s10252_s3] ss:$0 sm:$0xff]  ;;  %v601_v23 = vld [vmem:[%s7902_s23 + $0x1a8] sm:$0xff] }
  0x44   : > { %6760 = vmatprep.mubr.msk.f32.mxu0 %vm10277_vm0, %v7719_v6  ;;  %7027 = vmatprep.mubr.msk.f32.mxu1 %vm10277_vm0, %v7719_v6 }
  0x47   : > { %6761 = vmatmul.mubr.msk.f32.gmra.mrb[12].mxu0 %vm667_vm2, %v554_v24  ;;  %7028 = vmatmul.mubr.msk.f32.gmra.mrb[12].mxu1 %vm667_vm2, %v643_v25  ;;  %v8195_v25 = vstv %s547_s18  ;;  %s10271_s18 = smov 48  }
  0x48   : > { %6763 = vmatprep.mubr.msk.f32.mxu0 %vm10277_vm0, %v7719_v6  ;;  %7030 = vmatprep.mubr.msk.f32.mxu1 %vm10277_vm0, %v7719_v6 }
  0x4b   : > { %6764 = vmatmul.mubr.msk.f32.gmra.mrb[14].mxu0 %vm667_vm2, %v555_v26  ;;  %7031 = vmatmul.mubr.msk.f32.gmra.mrb[14].mxu1 %vm667_vm2, %v644_v27 }
  0x4c   : > { %6766 = vmatprep.mubr.msk.f32.mxu0 %vm10277_vm0, %v7719_v6  ;;  %7033 = vmatprep.mubr.msk.f32.mxu1 %vm10277_vm0, %v7719_v6 }
  0x4f   : > { %6767 = vmatmul.mubr.msk.f32.gmra.mrb[16].mxu0 %vm667_vm2, %v556_v28  ;;  %7034 = vmatmul.mubr.msk.f32.gmra.mrb[16].mxu1 %vm667_vm2, %v645_v29 }
  0x50   : > { %6769 = vmatprep.mubr.msk.f32.mxu0 %vm10277_vm0, %v7719_v6  ;;  %7036 = vmatprep.mubr.msk.f32.mxu1 %vm10277_vm0, %v7719_v6 }
  0x53   : > { %6770 = vmatmul.mubr.msk.f32.gmra.mrb[18].mxu0 %vm667_vm2, %v557_v30  ;;  %7037 = vmatmul.mubr.msk.f32.gmra.mrb[18].mxu1 %vm667_vm2, %v646_v31  ;;  %v602_v31 = vld [vmem:[%s7902_s23 + $0x1b0] sm:$0xff] }
  0x54   : > { %6772 = vmatprep.mubr.msk.f32.mxu0 %vm10277_vm0, %v7719_v6  ;;  %7039 = vmatprep.mubr.msk.f32.mxu1 %vm10277_vm0, %v7719_v6 }
  0x57   : > { %6773 = vmatmul.mubr.msk.f32.gmra.mrb[20].mxu0 %vm667_vm2, %v558_v32  ;;  %7040 = vmatmul.mubr.msk.f32.gmra.mrb[20].mxu1 %vm667_vm2, %v647_v33 }
  0x58   : > { %6775 = vmatprep.mubr.msk.f32.mxu0 %vm10277_vm0, %v7719_v6  ;;  %7042 = vmatprep.mubr.msk.f32.mxu1 %vm10277_vm0, %v7719_v6 }
  0x5b   : > { %6776 = vmatmul.mubr.msk.f32.gmra.mrb[22].mxu0 %vm667_vm2, %v559_v34  ;;  %7043 = vmatmul.mubr.msk.f32.gmra.mrb[22].mxu1 %vm667_vm2, %v648_v35 }
  0x5c   : > { %6778 = vmatprep.mubr.msk.f32.mxu0 %vm10277_vm0, %v7719_v6  ;;  %7045 = vmatprep.mubr.msk.f32.mxu1 %vm10277_vm0, %v7719_v6 }
  0x5f   : > { %6779 = vmatmul.mubr.msk.f32.gmra.mrb[24].mxu0 %vm667_vm2, %v560_v36  ;;  %7046 = vmatmul.mubr.msk.f32.gmra.mrb[24].mxu1 %vm667_vm2, %v649_v37 }
  0x60   : > { %6781 = vmatprep.mubr.msk.f32.mxu0 %vm10277_vm0, %v7719_v6  ;;  %7048 = vmatprep.mubr.msk.f32.mxu1 %vm10277_vm0, %v7719_v6 }
  0x63   : > { %6782 = vmatmul.mubr.msk.f32.gmra.mrb[26].mxu0 %vm667_vm2, %v561_v38  ;;  %7049 = vmatmul.mubr.msk.f32.gmra.mrb[26].mxu1 %vm667_vm2, %v650_v39 }
  0x64   : > { %6784 = vmatprep.mubr.msk.f32.mxu0 %vm10277_vm0, %v7719_v6  ;;  %7051 = vmatprep.mubr.msk.f32.mxu1 %vm10277_vm0, %v7719_v6 }
  0x67   : > { %6785 = vmatmul.mubr.msk.f32.gmra.mrb[28].mxu0 %vm667_vm2, %v562_v40  ;;  %7052 = vmatmul.mubr.msk.f32.gmra.mrb[28].mxu1 %vm667_vm2, %v651_v41 }
  0x68   : > { %6787 = vmatprep.mubr.msk.f32.mxu0 %vm10277_vm0, %v7719_v6  ;;  %7054 = vmatprep.mubr.msk.f32.mxu1 %vm10277_vm0, %v7719_v6 }
  0x6b   : > { %6788 = vmatmul.mubr.msk.f32.gmra.mrb[30].mxu0 %vm667_vm2, %v563_v42  ;;  %7055 = vmatmul.mubr.msk.f32.gmra.mrb[30].mxu1 %vm667_vm2, %v652_v43  ;;  %v603_v42 = vld [vmem:[%s7902_s23 + $0x1b8] sm:$0xff] }
  0x6c   : > { %6790 = vmatprep.mubr.msk.f32.mxu0 %vm10277_vm0, %v7719_v6 }
  0x6f   : > { %6791 = vmatmul.mubr.msk.f32.gmra.mrb[32].mxu0 %vm667_vm2, %v564_v44 }
  0x70   : > { %6793 = vmatprep.mubr.msk.f32.mxu0 %vm10277_vm0, %v7719_v6 }
  0x73   : > { %6794 = vmatmul.mubr.msk.f32.gmra.mrb[34].mxu0 %vm667_vm2, %v565_v45 }
  0x74   : > { %6796 = vmatprep.mubr.msk.f32.mxu0 %vm10277_vm0, %v7719_v6 }
  0x77   : > { %6797 = vmatmul.mubr.msk.f32.gmra.mrb[36].mxu0 %vm667_vm2, %v566_v46 }
  0x78   : > { %6799 = vmatprep.mubr.msk.f32.mxu0 %vm10277_vm0, %v7719_v6 }
  0x7b   : > { %6800 = vmatmul.mubr.msk.f32.gmra.mrb[38].mxu0 %vm667_vm2, %v567_v47 }
  0x7c   : > { %6802 = vmatprep.mubr.msk.f32.mxu0 %vm10277_vm0, %v7719_v6 }
  0x7f   : > { %6803 = vmatmul.mubr.msk.f32.gmra.mrb[40].mxu0 %vm667_vm2, %v568_v48 }
  0x80   : > { %6805 = vmatprep.mubr.msk.f32.mxu0 %vm10277_vm0, %v7719_v6 }
  0x83   : > { %6806 = vmatmul.mubr.msk.f32.gmra.mrb[42].mxu0 %vm667_vm2, %v569_v49 }
  0x84   : > { %6808 = vmatprep.mubr.msk.f32.mxu0 %vm10277_vm0, %v7719_v6 }
  0x87   : > { %6809 = vmatmul.mubr.msk.f32.gmra.mrb[44].mxu0 %vm667_vm2, %v570_v50 }
  0x88   : > { %6811 = vmatprep.mubr.msk.f32.mxu0 %vm10277_vm0, %v7719_v6 }
  0x8b   : > { %6812 = vmatmul.mubr.msk.f32.gmra.mrb[46].mxu0 %vm667_vm2, %v571_v51 }
  0x8c   : > { %6814 = vmatprep.mubr.msk.f32.mxu0 %vm10277_vm0, %v7719_v6 }
  0x8f   : > { %6815 = vmatmul.mubr.msk.f32.gmra.mrb[48].mxu0 %vm667_vm2, %v572_v52 }
  0x90   : > { %6817 = vmatprep.mubr.msk.f32.mxu0 %vm10277_vm0, %v7719_v6 }
  0x93   : > { %6818 = vmatmul.mubr.msk.f32.gmra.mrb[50].mxu0 %vm667_vm2, %v573_v53  ;;  %v604_v53 = vld [vmem:[%s7902_s23 + $0x1c0] sm:$0xff] }
  0x94   : > { %6820 = vmatprep.mubr.msk.f32.mxu0 %vm10277_vm0, %v7719_v6 }
  0x97   : > { %6821 = vmatmul.mubr.msk.f32.gmra.mrb[52].mxu0 %vm667_vm2, %v574_v54 }
  0x98   : > { %6823 = vmatprep.mubr.msk.f32.mxu0 %vm10277_vm0, %v7719_v6 }
  0x9b   : > { %6824 = vmatmul.mubr.msk.f32.gmra.mrb[54].mxu0 %vm667_vm2, %v575_v55 }
  0x9c   : > { %6826 = vmatprep.mubr.msk.f32.mxu0 %vm10277_vm0, %v7719_v6 }
  0x9f   : > { %6827 = vmatmul.mubr.msk.f32.gmra.mrb[56].mxu0 %vm667_vm2, %v576_v56 }
  0xa0   : > { %6829 = vmatprep.mubr.msk.f32.mxu0 %vm10277_vm0, %v7719_v6 }
  0xa3   : > { %6830 = vmatmul.mubr.msk.f32.gmra.mrb[58].mxu0 %vm667_vm2, %v577_v57 }
  0xa4   : > { %6832 = vmatprep.mubr.msk.f32.mxu0 %vm10277_vm0, %v7719_v6 }
  0xa7   : > { %6833 = vmatmul.mubr.msk.f32.gmra.mrb[60].mxu0 %vm667_vm2, %v578_v58 }
  0xa8   : > { %6835 = vmatprep.mubr.msk.f32.mxu0 %vm10277_vm0, %v7719_v6 }
  0xab   : > { %6836 = vmatmul.mubr.msk.f32.gmra.mrb[62].mxu0 %vm667_vm2, %v579_v59 }
  0xac   : > { %6838 = vmatprep.mubr.msk.f32.mxu0 %vm10277_vm0, %v7719_v6 }
  0xaf   : > { %6839 = vmatmul.mubr.msk.f32.gmra.mrb[64].mxu0 %vm667_vm2, %v580_v60 }
  0xb0   : > { %6841 = vmatprep.mubr.msk.f32.mxu0 %vm10277_vm0, %v7719_v6 }
  0xb3   : > { %6842 = vmatmul.mubr.msk.f32.gmra.mrb[66].mxu0 %vm667_vm2, %v581_v61 }
  0xb4   : > { %6844 = vmatprep.mubr.msk.f32.mxu0 %vm10277_vm0, %v7719_v6 }
  0xb7   : > { %6845 = vmatmul.mubr.msk.f32.gmra.mrb[68].mxu0 %vm667_vm2, %v582_v62 }
  0xb8   : > { %6847 = vmatprep.mubr.msk.f32.mxu0 %vm10277_vm0, %v7719_v6 }
  0xbb   : > { %6848 = vmatmul.mubr.msk.f32.gmra.mrb[70].mxu0 %vm667_vm2, %v583_v63 }
  0xbc   : > { %6850 = vmatprep.mubr.msk.f32.mxu0 %vm10277_vm0, %v7719_v6 }
  0xbf   : > { %6851 = vmatmul.mubr.msk.f32.gmra.mrb[72].mxu0 %vm667_vm2, %v584_v0  ;;  %v605_v0 = vld [vmem:[%s7902_s23 + $0x1c8] sm:$0xff] }
  0xc0   : > { %6853 = vmatprep.mubr.msk.f32.mxu0 %vm10277_vm0, %v7719_v6 }
  0xc3   : > { %6854 = vmatmul.mubr.msk.f32.gmra.mrb[74].mxu0 %vm667_vm2, %v585_v1 }
  0xc4   : > { %6856 = vmatprep.mubr.msk.f32.mxu0 %vm10277_vm0, %v7719_v6 }
  0xc7   : > { %6857 = vmatmul.mubr.msk.f32.gmra.mrb[76].mxu0 %vm667_vm2, %v586_v2 }
  0xc8   : > { %6859 = vmatprep.mubr.msk.f32.mxu0 %vm10277_vm0, %v7719_v6 }
  0xcb   : > { %6860 = vmatmul.mubr.msk.f32.gmra.mrb[78].mxu0 %vm667_vm2, %v587_v4 }
  0xcc   : > { %6862 = vmatprep.mubr.msk.f32.mxu0 %vm10277_vm0, %v7719_v6 }
  0xcf   : > { %6863 = vmatmul.mubr.msk.f32.gmra.mrb[80].mxu0 %vm667_vm2, %v588_v5 }
  0xd0   : > { %6865 = vmatprep.mubr.msk.f32.mxu0 %vm10277_vm0, %v7719_v6 }
  0xd3   : > { %6866 = vmatmul.mubr.msk.f32.gmra.mrb[82].mxu0 %vm667_vm2, %v589_v7 }
  0xd4   : > { %6868 = vmatprep.mubr.msk.f32.mxu0 %vm10277_vm0, %v7719_v6 }
  0xd7   : > { %6869 = vmatmul.mubr.msk.f32.gmra.mrb[84].mxu0 %vm667_vm2, %v590_v8 }
  0xd8   : > { %6871 = vmatprep.mubr.msk.f32.mxu0 %vm10277_vm0, %v7719_v6 }
  0xdb   : > { %6872 = vmatmul.mubr.msk.f32.gmra.mrb[86].mxu0 %vm667_vm2, %v591_v9 }
  0xdc   : > { %6874 = vmatprep.mubr.msk.f32.mxu0 %vm10277_vm0, %v7719_v6 }
  0xdf   : > { %6875 = vmatmul.mubr.msk.f32.gmra.mrb[88].mxu0 %vm667_vm2, %v592_v10 }
  0xe0   : > { %6877 = vmatprep.mubr.msk.f32.mxu0 %vm10277_vm0, %v7719_v6 }
  0xe3   : > { %6878 = vmatmul.mubr.msk.f32.gmra.mrb[90].mxu0 %vm667_vm2, %v593_v11 }
  0xe4   : > { %6880 = vmatprep.mubr.msk.f32.mxu0 %vm10277_vm0, %v7719_v6 }
  0xe7   : > { %6881 = vmatmul.mubr.msk.f32.gmra.mrb[92].mxu0 %vm667_vm2, %v594_v12 }
  0xe8   : > { %6883 = vmatprep.mubr.msk.f32.mxu0 %vm10277_vm0, %v7719_v6 }
  0xeb   : > { %6884 = vmatmul.mubr.msk.f32.gmra.mrb[94].mxu0 %vm667_vm2, %v595_v13  ;;  %v606_v13 = vld [vmem:[%s7902_s23 + $0x1d0] sm:$0xff] }
  0xec   : > { %6886 = vmatprep.mubr.msk.f32.mxu0 %vm10277_vm0, %v7719_v6 }
  0xef   : > { %6887 = vmatmul.mubr.msk.f32.gmra.mrb[96].mxu0 %vm667_vm2, %v596_v14 }
  0xf0   : > { %6889 = vmatprep.mubr.msk.f32.mxu0 %vm10277_vm0, %v7719_v6 }
  0xf3   : > { %6890 = vmatmul.mubr.msk.f32.gmra.mrb[98].mxu0 %vm667_vm2, %v597_v18 }
  0xf4   : > { %6892 = vmatprep.mubr.msk.f32.mxu0 %vm10277_vm0, %v7719_v6 }
  0xf7   : > { %6893 = vmatmul.mubr.msk.f32.gmra.mrb[100].mxu0 %vm667_vm2, %v598_v19 }
  0xf8   : > { %6895 = vmatprep.mubr.msk.f32.mxu0 %vm10277_vm0, %v7719_v6 }
  0xfb   : > { %6896 = vmatmul.mubr.msk.f32.gmra.mrb[102].mxu0 %vm667_vm2, %v599_v20 }
  0xfc   : > { %6898 = vmatprep.mubr.msk.f32.mxu0 %vm10277_vm0, %v7719_v6 }
  0xff   : > { %6899 = vmatmul.mubr.msk.f32.gmra.mrb[104].mxu0 %vm667_vm2, %v600_v21 }
 0x100   : > { %6901 = vmatprep.mubr.msk.f32.mxu0 %vm10277_vm0, %v7719_v6 }
 0x102   : > { %v1053_v24 = vpop.f32.mrb[0].mxu0  ;;  %v1498_v26 = vpop.f32.mrb[0].mxu1 }
 0x103   : > { %v1054_v27 = vadd.f32 %v8190_v22, %v1053_v24  ;;  %v6744_v28 = vpop.f32.mrb[1].mxu0  ;;  %6902 = vmatmul.mubr.msk.f32.gmra.mrb[106].mxu0 %vm667_vm2, %v601_v23  ;;  %v1499_v29 = vadd.f32 %v8190_v22, %v1498_v26  ;;  %v7011_v30 = vpop.f32.mrb[1].mxu1  ;;  %v607_v26 = vld [vmem:[%s7902_s23 + $0x1d8] sm:$0xff] }
 0x104   : > { %6904 = vmatprep.mubr.msk.f32.mxu0 %vm10277_vm0, %v7719_v6 }
 0x105   : > { %vm1577_vm4 = vcmp.ge.f32.partialorder %v1054_v27, 0.0  ;;  %v1683_v32 = vmul.f32 %v8195_v25, %v1054_v27  ;;  %vm1666_vm5 = vcmp.ge.f32.partialorder %v1499_v29, 0.0  ;;  %v1772_v33 = vmul.f32 %v8195_v25, %v1499_v29 }
 0x106   : > { %v1058_v34 = vpop.f32.mrb[2].mxu0  ;;  %v1503_v35 = vpop.f32.mrb[2].mxu1 }
 0x107   : > { %v1788_v36 = vsel %vm1577_vm4, %v1054_v27, %v1683_v32  ;;  %v1877_v37 = vsel %vm1666_vm5, %v1499_v29, %v1772_v33  ;;  %v1059_v38 = vadd.f32 %v8190_v22, %v1058_v34  ;;  %v6747_v39 = vpop.f32.mrb[3].mxu0  ;;  %6905 = vmatmul.mubr.msk.f32.gmra.mrb[108].mxu0 %vm667_vm2, %v602_v31  ;;  %v1504_v40 = vadd.f32 %v8190_v22, %v1503_v35  ;;  %v7014_v41 = vpop.f32.mrb[3].mxu1 }
 0x108   : > { %1894 = vst.msk [vmem:[#allocation2] sm:$0xff] %vm1893_vm3, %v1788_v36  ;;  %1983 = vst.msk [vmem:[#allocation2 + $0x2c8] sm:$0xff] %vm1893_vm3, %v1877_v37  ;;  %6907 = vmatprep.mubr.msk.f32.mxu0 %vm10277_vm0, %v7719_v6  ;;  %v608_v37 = vld [vmem:[%s7902_s23 + $0x1e0] sm:$0xff] }
 0x109   : > { %vm1578_vm6 = vcmp.ge.f32.partialorder %v1059_v38, 0.0  ;;  %v1684_v43 = vmul.f32 %v8195_v25, %v1059_v38  ;;  %vm1667_vm7 = vcmp.ge.f32.partialorder %v1504_v40, 0.0  ;;  %v1773_v44 = vmul.f32 %v8195_v25, %v1504_v40 }
 0x10a   : > { %v1063_v45 = vpop.f32.mrb[4].mxu0  ;;  %v1508_v46 = vpop.f32.mrb[4].mxu1 }
 0x10b   : > { %v1789_v47 = vsel %vm1578_vm6, %v1059_v38, %v1684_v43  ;;  %v1878_v48 = vsel %vm1667_vm7, %v1504_v40, %v1773_v44  ;;  %v1064_v49 = vadd.f32 %v8190_v22, %v1063_v45  ;;  %v1509_v50 = vadd.f32 %v8190_v22, %v1508_v46  ;;  %v6750_v51 = vpop.f32.mrb[5].mxu0  ;;  %6908 = vmatmul.mubr.msk.f32.gmra.mrb[110].mxu0 %vm667_vm2, %v603_v42  ;;  %v7017_v52 = vpop.f32.mrb[5].mxu1 }
 0x10c   : > { %1895 = vst.msk [vmem:[#allocation2 + $0x8] sm:$0xff] %vm1893_vm3, %v1789_v47  ;;  %1984 = vst.msk [vmem:[#allocation2 + $0x2d0] sm:$0xff] %vm1893_vm3, %v1878_v48  ;;  %6910 = vmatprep.mubr.msk.f32.mxu0 %vm10277_vm0, %v7719_v6 }
 0x10d   : > { %vm1579_vm8 = vcmp.ge.f32.partialorder %v1064_v49, 0.0  ;;  %v1685_v54 = vmul.f32 %v8195_v25, %v1064_v49  ;;  %vm1668_vm9 = vcmp.ge.f32.partialorder %v1509_v50, 0.0  ;;  %v1774_v55 = vmul.f32 %v8195_v25, %v1509_v50 }
 0x10e   : > { %v1068_v56 = vpop.f32.mrb[6].mxu0  ;;  %v1513_v57 = vpop.f32.mrb[6].mxu1 }
 0x10f   : > { %v1790_v58 = vsel %vm1579_vm8, %v1064_v49, %v1685_v54  ;;  %v1879_v59 = vsel %vm1668_vm9, %v1509_v50, %v1774_v55  ;;  %v1069_v60 = vadd.f32 %v8190_v22, %v1068_v56  ;;  %v1514_v61 = vadd.f32 %v8190_v22, %v1513_v57  ;;  %v6753_v62 = vpop.f32.mrb[7].mxu0  ;;  %6911 = vmatmul.mubr.msk.f32.gmra.mrb[112].mxu0 %vm667_vm2, %v604_v53  ;;  %v7020_v63 = vpop.f32.mrb[7].mxu1  ;;  %v609_v49 = vld [vmem:[%s7902_s23 + $0x1e8] sm:$0xff]  ;;  %v2000_v55 = vld [vmem:[#allocation2] sm:$0xff] }
 0x110   : > { %1896 = vst.msk [vmem:[#allocation2 + $0x10] sm:$0xff] %vm1893_vm3, %v1790_v58  ;;  %1985 = vst.msk [vmem:[#allocation2 + $0x2d8] sm:$0xff] %vm1893_vm3, %v1879_v59  ;;  %6913 = vmatprep.mubr.msk.f32.mxu0 %vm10277_vm0, %v7719_v6 }
 0x111   : > { %vm1580_vm10 = vcmp.ge.f32.partialorder %v1069_v60, 0.0  ;;  %v1686_v1 = vmul.f32 %v8195_v25, %v1069_v60  ;;  %vm1669_vm11 = vcmp.ge.f32.partialorder %v1514_v61, 0.0  ;;  %v1775_v2 = vmul.f32 %v8195_v25, %v1514_v61 }
 0x112   : > { %v1073_v4 = vpop.f32.mrb[8].mxu0  ;;  %v1518_v5 = vpop.f32.mrb[8].mxu1 }
 0x113   : > { %v1791_v7 = vsel %vm1580_vm10, %v1069_v60, %v1686_v1  ;;  %v1880_v8 = vsel %vm1669_vm11, %v1514_v61, %v1775_v2  ;;  %v1074_v9 = vadd.f32 %v8190_v22, %v1073_v4  ;;  %v1519_v10 = vadd.f32 %v8190_v22, %v1518_v5  ;;  %v6756_v11 = vpop.f32.mrb[9].mxu0  ;;  %6914 = vmatmul.mubr.msk.f32.gmra.mrb[114].mxu0 %vm667_vm2, %v605_v0  ;;  %v7023_v12 = vpop.f32.mrb[9].mxu1  ;;  %v2004_v47 = vld [vmem:[#allocation2 + $0x1] sm:$0xff]  ;;  %v2385_v56 = vld [vmem:[#allocation2 + $0x2d0] sm:$0xff] }
 0x114   : > { %1897 = vst.msk [vmem:[#allocation2 + $0x18] sm:$0xff] %vm1893_vm3, %v1791_v7  ;;  %1986 = vst.msk [vmem:[#allocation2 + $0x2e0] sm:$0xff] %vm1893_vm3, %v1880_v8  ;;  %6916 = vmatprep.mubr.msk.f32.mxu0 %vm10277_vm0, %v7719_v6  ;;  %v2008_v60 = vmax.f32 %v2000_v55, %v2004_v47  ;;  %vm2031_vm11 = vcmask 124928  }
 0x115   : > { %vm1581_vm12 = vcmp.ge.f32.partialorder %v1074_v9, 0.0  ;;  %v1687_v14 = vmul.f32 %v8195_v25, %v1074_v9  ;;  %vm1670_vm13 = vcmp.ge.f32.partialorder %v1519_v10, 0.0  ;;  %v1776_v15 = vmul.f32 %v8195_v25, %v1519_v10 }
 0x116   : > { %v1078_v16 = vpop.f32.mrb[10].mxu0  ;;  %v1523_v17 = vpop.f32.mrb[10].mxu1 }
 0x117   : > { %v1792_v18 = vsel %vm1581_vm12, %v1074_v9, %v1687_v14  ;;  %v1881_v19 = vsel %vm1670_vm13, %v1519_v10, %v1776_v15  ;;  %v1079_v20 = vadd.f32 %v8190_v22, %v1078_v16  ;;  %v1524_v21 = vadd.f32 %v8190_v22, %v1523_v17  ;;  %v6759_v23 = vpop.f32.mrb[11].mxu0  ;;  %6917 = vmatmul.mubr.msk.f32.gmra.mrb[116].mxu0 %vm667_vm2, %v606_v13  ;;  %v7026_v24 = vpop.f32.mrb[11].mxu1  ;;  %v2389_v52 = vld [vmem:[#allocation2 + $0x2d1] sm:$0xff]  ;;  %v2005_v59 = vld [vmem:[#allocation2 + $0x9] sm:$0xff] }
 0x118   : > { %1898 = vst.msk [vmem:[#allocation2 + $0x20] sm:$0xff] %vm1893_vm3, %v1792_v18  ;;  %1987 = vst.msk [vmem:[#allocation2 + $0x2e8] sm:$0xff] %vm1893_vm3, %v1881_v19  ;;  %6919 = vmatprep.mubr.msk.f32.mxu0 %vm10277_vm0, %v7719_v6  ;;  %v610_v9 = vld [vmem:[%s7902_s23 + $0x1f0] sm:$0xff]  ;;  %v2393_v12 = vmax.f32 %v2385_v56, %v2389_v52  ;;  %v2001_v17 = vld [vmem:[#allocation2 + $0x8] sm:$0xff] }
 0x119   : > { %vm1582_vm14 = vcmp.ge.f32.partialorder %v1079_v20, 0.0  ;;  %v1688_v27 = vmul.f32 %v8195_v25, %v1079_v20  ;;  %vm1671_vm15 = vcmp.ge.f32.partialorder %v1524_v21, 0.0  ;;  %v1777_v28 = vmul.f32 %v8195_v25, %v1524_v21  ;;  %v2002_v18 = vld [vmem:[#allocation2 + $0x10] sm:$0xff] }
 0x11a   : > { %v1083_v29 = vpop.f32.mrb[12].mxu0  ;;  %v1528_v30 = vpop.f32.mrb[12].mxu1  ;;  %v2009_v23 = vmax.f32 %v2001_v17, %v2005_v59 }
 0x11b   : > { %v1793_v31 = vsel %vm1582_vm14, %v1079_v20, %v1688_v27  ;;  %v1882_v32 = vsel %vm1671_vm15, %v1524_v21, %v1777_v28  ;;  %v1084_v33 = vadd.f32 %v8190_v22, %v1083_v29  ;;  %v1529_v34 = vadd.f32 %v8190_v22, %v1528_v30  ;;  %v6762_v35 = vpop.f32.mrb[13].mxu0  ;;  %6920 = vmatmul.mubr.msk.f32.gmra.mrb[118].mxu0 %vm667_vm2, %v607_v26  ;;  %v7029_v36 = vpop.f32.mrb[13].mxu1  ;;  %v2006_v14 = vld [vmem:[#allocation2 + $0x11] sm:$0xff]  ;;  %v2390_v19 = vld [vmem:[#allocation2 + $0x2d9] sm:$0xff] }
 0x11c   : > { %1899 = vst.msk [vmem:[#allocation2 + $0x28] sm:$0xff] %vm1893_vm3, %v1793_v31  ;;  %1988 = vst.msk [vmem:[#allocation2 + $0x2f0] sm:$0xff] %vm1893_vm3, %v1882_v32  ;;  %6922 = vmatprep.mubr.msk.f32.mxu0 %vm10277_vm0, %v7719_v6  ;;  %v2386_v36 = vld [vmem:[#allocation2 + $0x2d8] sm:$0xff] }
 0x11d   : > { %vm1583_vm1 = vcmp.ge.f32.partialorder %v1084_v33, 0.0  ;;  %v1689_v38 = vmul.f32 %v8195_v25, %v1084_v33  ;;  %vm1672_vm4 = vcmp.ge.f32.partialorder %v1529_v34, 0.0  ;;  %v1778_v39 = vmul.f32 %v8195_v25, %v1529_v34 }
 0x11e   : > { %v1088_v40 = vpop.f32.mrb[14].mxu0  ;;  %v1533_v41 = vpop.f32.mrb[14].mxu1 }
 0x11f   : > { %v1794_v42 = vsel %vm1583_vm1, %v1084_v33, %v1689_v38  ;;  %v1883_v43 = vsel %vm1672_vm4, %v1529_v34, %v1778_v39  ;;  %v1089_v44 = vadd.f32 %v8190_v22, %v1088_v40  ;;  %v1534_v45 = vadd.f32 %v8190_v22, %v1533_v41  ;;  %6923 = vmatmul.mubr.msk.f32.gmra.mrb[120].mxu0 %vm667_vm2, %v608_v37  ;;  %v6765_v46 = vpop.f32.mrb[15].mxu0  ;;  %v7032_v48 = vpop.f32.mrb[15].mxu1  ;;  %v2012_v50 = vld [vmem:[#allocation2 + $0x1e] sm:$0xff] }
 0x120   : > { %1900 = vst.msk [vmem:[#allocation2 + $0x30] sm:$0xff] %vm1893_vm3, %v1794_v42  ;;  %1989 = vst.msk [vmem:[#allocation2 + $0x2f8] sm:$0xff] %vm1893_vm3, %v1883_v43  ;;  %6925 = vmatprep.mubr.msk.f32.mxu0 %vm10277_vm0, %v7719_v6  ;;  %v2016_v51 = vld [vmem:[#allocation2 + $0x1f] sm:$0xff]  ;;  %v2010_v40 = vmax.f32 %v2002_v18, %v2006_v14  ;;  %v2003_v42 = vld [vmem:[#allocation2 + $0x18] sm:$0x7] }
 0x121   : > { %vm1584_vm5 = vcmp.ge.f32.partialorder %v1089_v44, 0.0  ;;  %v1690_v53 = vmul.f32 %v8195_v25, %v1089_v44  ;;  %vm1673_vm6 = vcmp.ge.f32.partialorder %v1534_v45, 0.0  ;;  %v1779_v54 = vmul.f32 %v8195_v25, %v1534_v45  ;;  %v611_v38 = vld [vmem:[%s7902_s23 + $0x1f8] sm:$0xff]  ;;  %v2391_v46 = vld [vmem:[#allocation2 + $0x2e1] sm:$0xff]  ;;  %v2392_v14 = vld [vmem:[#allocation2 + $0x2e9] sm:$0x7] }
 0x122   : > { %v1093_v57 = vpop.f32.mrb[16].mxu0  ;;  %v1538_v58 = vpop.f32.mrb[16].mxu1  ;;  %v2020_v61 = vmax.f32 %v2012_v50, %v2016_v51  ;;  %v2007_v43 = vld [vmem:[#allocation2 + $0x19] sm:$0x7]  ;;  %v2394_v50 = vmax.f32 %v2386_v36, %v2390_v19 }
 0x123   : > { %v2397_v62 = vld [vmem:[#allocation2 + $0x2ee] sm:$0xff]  ;;  %v1795_v0 = vsel %vm1584_vm5, %v1089_v44, %v1690_v53  ;;  %v1884_v1 = vsel %vm1673_vm6, %v1534_v45, %v1779_v54  ;;  %v1094_v2 = vadd.f32 %v8190_v22, %v1093_v57  ;;  %v1539_v4 = vadd.f32 %v8190_v22, %v1538_v58  ;;  %6926 = vmatmul.mubr.msk.f32.gmra.mrb[122].mxu0 %vm667_vm2, %v609_v49  ;;  %v6768_v5 = vpop.f32.mrb[17].mxu0  ;;  %v7035_v7 = vpop.f32.mrb[17].mxu1  ;;  %v2013_v8 = vld [vmem:[#allocation2 + $0x26] sm:$0xff] }
 0x124   : > { %v2401_v63 = vld [vmem:[#allocation2 + $0x2ef] sm:$0xff]  ;;  %1901 = vst.msk [vmem:[#allocation2 + $0x38] sm:$0xff] %vm1893_vm3, %v1795_v0  ;;  %1990 = vst.msk [vmem:[#allocation2 + $0x300] sm:$0xff] %vm1893_vm3, %v1884_v1  ;;  %6928 = vmatprep.mubr.msk.f32.mxu0 %vm10277_vm0, %v7719_v6  ;;  %v2017_v10 = vld [vmem:[#allocation2 + $0x27] sm:$0xff]  ;;  %v2024_v11 = vmax.f32 %v2008_v60, %v2020_v61  ;;  %v2011_v0 = vmax.f32 %v2003_v42, %v2007_v43 }
 0x125   : > { %v2405_v13 = vmax.f32 %v2397_v62, %v2401_v63  ;;  %vm1585_vm7 = vcmp.ge.f32.partialorder %v1094_v2, 0.0  ;;  %v1691_v15 = vmul.f32 %v8195_v25, %v1094_v2  ;;  %vm1674_vm8 = vcmp.ge.f32.partialorder %v1539_v4, 0.0  ;;  %v612_v61 = vld [vmem:[%s7902_s23 + $0x200] sm:$0xff] }
 0x126   : > { %v1780_v16 = vmul.f32 %v8195_v25, %v1539_v4  ;;  %v1098_v20 = vpop.f32.mrb[18].mxu0  ;;  %v1543_v21 = vpop.f32.mrb[18].mxu1  ;;  %v2021_v24 = vmax.f32 %v2013_v8, %v2017_v10  ;;  %2028 = vst.msk [vmem:[#allocation3] sm:$0xff] %vm1893_vm3, %v2024_v11  ;;  %v2388_v8 = vld [vmem:[#allocation2 + $0x2e8] sm:$0x7] }
 0x127   : > { %v2409_v26 = vmax.f32 %v2393_v12, %v2405_v13  ;;  %v2014_v27 = vld [vmem:[#allocation2 + $0x2e] sm:$0xff]  ;;  %v2398_v29 = vld [vmem:[#allocation2 + $0x2f6] sm:$0xff]  ;;  %v1796_v30 = vsel %vm1585_vm7, %v1094_v2, %v1691_v15  ;;  %v1099_v32 = vadd.f32 %v8190_v22, %v1098_v20  ;;  %6929 = vmatmul.mubr.msk.f32.gmra.mrb[124].mxu0 %vm667_vm2, %v610_v9  ;;  %v6771_v33 = vpop.f32.mrb[19].mxu0  ;;  %v1544_v34 = vadd.f32 %v8190_v22, %v1543_v21  ;;  %v7038_v35 = vpop.f32.mrb[19].mxu1  ;;  %v2387_v2 = vld [vmem:[#allocation2 + $0x2e0] sm:$0xff] }
 0x128   : > { %v2018_v28 = vld [vmem:[#allocation2 + $0x2f] sm:$0xff]  ;;  %v1885_v31 = vsel %vm1674_vm8, %v1539_v4, %v1780_v16  ;;  %v2402_v37 = vld [vmem:[#allocation2 + $0x2f7] sm:$0xff]  ;;  %1902 = vst.msk [vmem:[#allocation2 + $0x40] sm:$0xff] %vm1893_vm3, %v1796_v30  ;;  %6931 = vmatprep.mubr.msk.f32.mxu0 %vm10277_vm0, %v7719_v6  ;;  %v2025_v39 = vmax.f32 %v2009_v23, %v2021_v24  ;;  %v2395_v11 = vmax.f32 %v2387_v2, %v2391_v46 }
 0x129   : > { %1991 = vst.msk [vmem:[#allocation2 + $0x308] sm:$0xff] %vm1893_vm3, %v1885_v31  ;;  %v2022_v41 = vmax.f32 %v2014_v27, %v2018_v28  ;;  %2413 = vst.msk [vmem:[#allocation3 + $0x144] sm:$0xff] %vm1893_vm3, %v2409_v26  ;;  %vm1586_vm9 = vcmp.ge.f32.partialorder %v1099_v32, 0.0  ;;  %v1692_v44 = vmul.f32 %v8195_v25, %v1099_v32  ;;  %vm1675_vm10 = vcmp.ge.f32.partialorder %v1544_v34, 0.0  ;;  %v613_v24 = vld [vmem:[%s7902_s23 + $0x208] sm:$0xff] }
 0x12a   : > { %v1781_v45 = vmul.f32 %v8195_v25, %v1544_v34  ;;  %v1103_v47 = vpop.f32.mrb[20].mxu0  ;;  %v1548_v48 = vpop.f32.mrb[20].mxu1  ;;  %2029 = vst.msk [vmem:[#allocation3 + $0x8] sm:$0xff] %vm1893_vm3, %v2025_v39  ;;  %v2406_v51 = vmax.f32 %v2398_v29, %v2402_v37 }
 0x12b   : > { %v2026_v49 = vmax.f32 %v2010_v40, %v2022_v41  ;;  %v2015_v52 = vld [vmem:[#allocation2 + $0x36] sm:$0x7]  ;;  %v2399_v54 = vld [vmem:[#allocation2 + $0x2fe] sm:$0xff]  ;;  %v1797_v55 = vsel %vm1586_vm9, %v1099_v32, %v1692_v44  ;;  %v1104_v56 = vadd.f32 %v8190_v22, %v1103_v47  ;;  %6932 = vmatmul.mubr.msk.f32.gmra.mrb[126].mxu0 %vm667_vm2, %v611_v38  ;;  %v6774_v57 = vpop.f32.mrb[21].mxu0  ;;  %v1549_v59 = vadd.f32 %v8190_v22, %v1548_v48  ;;  %v7041_v62 = vpop.f32.mrb[21].mxu1 }
 0x12c   : > { %v2019_v53 = vld [vmem:[#allocation2 + $0x37] sm:$0x7]  ;;  %v1886_v58 = vsel %vm1675_vm10, %v1544_v34, %v1781_v45  ;;  %v2403_v60 = vld [vmem:[#allocation2 + $0x2ff] sm:$0xff]  ;;  %1903 = vst.msk [vmem:[#allocation2 + $0x48] sm:$0xff] %vm1893_vm3, %v1797_v55  ;;  %6934 = vmatprep.mubr.msk.f32.mxu0 %vm10277_vm0, %v7719_v6  ;;  %v2410_v63 = vmax.f32 %v2394_v50, %v2406_v51  ;;  %v2396_v34 = vmax.f32 %v2388_v8, %v2392_v14  ;;  %vm1998_vm9 = vcmask 128000  }
 0x12d   : > { %1992 = vst.msk [vmem:[#allocation2 + $0x310] sm:$0xff] %vm1893_vm3, %v1886_v58  ;;  %2030 = vst.msk [vmem:[#allocation3 + $0x10] sm:$0xff] %vm1893_vm3, %v2026_v49  ;;  %v2023_v1 = vmax.f32 %v2015_v52, %v2019_v53  ;;  %vm1587_vm12 = vcmp.ge.f32.partialorder %v1104_v56, 0.0  ;;  %v1693_v4 = vmul.f32 %v8195_v25, %v1104_v56  ;;  %vm1676_vm13 = vcmp.ge.f32.partialorder %v1549_v59, 0.0  ;;  %v2449_v7 = vld [vmem:[#allocation3] sm:$0xff]  ;;  %v614_v44 = vld [vmem:[%s7902_s23 + $0x210] sm:$0xff] }
 0x12e   : > { %v1782_v5 = vmul.f32 %v8195_v25, %v1549_v59  ;;  %v1108_v9 = vpop.f32.mrb[22].mxu0  ;;  %v1553_v10 = vpop.f32.mrb[22].mxu1  ;;  %2414 = vst.msk [vmem:[#allocation3 + $0x14c] sm:$0xff] %vm1893_vm3, %v2410_v63  ;;  %v2407_v12 = vmax.f32 %v2399_v54, %v2403_v60  ;;  %2489 = vst.msk [vmem:[#allocation4] sm:$0xff] %vm1893_vm3, %v2449_v7  ;;  %v615_v57 = vld [vmem:[%s7902_s23 + $0x218] sm:$0xff] }
 0x12f   : > { %v2027_v13 = vmax.f32 %v2011_v0, %v2023_v1  ;;  %v1798_v16 = vsel %vm1587_vm12, %v1104_v56, %v1693_v4  ;;  %6935 = vmatmul.mubr.msk.f32.gmra.mrb[128].mxu0 %vm667_vm2, %v612_v61  ;;  %v1109_v18 = vadd.f32 %v8190_v22, %v1108_v9  ;;  %v6777_v19 = vpop.f32.mrb[23].mxu0  ;;  %v1554_v20 = vadd.f32 %v8190_v22, %v1553_v10  ;;  %v7044_v21 = vpop.f32.mrb[23].mxu1  ;;  %v2033_v8 = vld [vmem:[#allocation2 + $0x3c] sm:$0xff] }
 0x130   : > { %v2400_v15 = vld [vmem:[#allocation2 + $0x306] sm:$0x7]  ;;  %v1887_v17 = vsel %vm1676_vm13, %v1549_v59, %v1782_v5  ;;  %1904 = vst.msk [vmem:[#allocation2 + $0x50] sm:$0xff] %vm1893_vm3, %v1798_v16  ;;  %6937 = vmatprep.mubr.msk.f32.mxu0 %vm10277_vm0, %v7719_v6  ;;  %v2411_v26 = vmax.f32 %v2395_v11, %v2407_v12  ;;  %v2037_v10 = vld [vmem:[#allocation2 + $0x3d] sm:$0xff] }
 0x131   : > { %v2404_v23 = vld [vmem:[#allocation2 + $0x307] sm:$0x7]  ;;  %1993 = vst.msk [vmem:[#allocation2 + $0x318] sm:$0xff] %vm1893_vm3, %v1887_v17  ;;  %v2770_v27 = vld [vmem:[#allocation3 + $0x4] sm:$0xff]  ;;  %vm1588_vm14 = vcmp.ge.f32.partialorder %v1109_v18, 0.0  ;;  %v1694_v29 = vmul.f32 %v8195_v25, %v1109_v18  ;;  %vm1677_vm15 = vcmp.ge.f32.partialorder %v1554_v20, 0.0  ;;  %v1783_v30 = vmul.f32 %v8195_v25, %v1554_v20 }
 0x132   : > { %2032 = vst.msk [vmem:[#allocation3 + $0x18] sm:$0x7] %vm2031_vm11, %v2027_v13  ;;  %v2529_v28 = vld [vmem:[#allocation3 + $0x2] sm:$0xff]  ;;  %2850 = vrot.lane.b32.xlu1 %v2770_v27, %s10279_s24  ;;  %v1113_v32 = vpop.f32.mrb[24].mxu0  ;;  %v1558_v33 = vpop.f32.mrb[24].mxu1  ;;  %v2408_v35 = vmax.f32 %v2400_v15, %v2404_v23  ;;  %v616_v9 = vld [vmem:[%s7902_s23 + $0x220] sm:$0xff] }
 0x133   : > { %v2450_v31 = vld [vmem:[#allocation3 + $0x8] sm:$0xff]  ;;  %2609 = vrot.lane.b32.xlu0 %v2529_v28, %s10273_s25  ;;  %2415 = vst.msk [vmem:[#allocation3 + $0x154] sm:$0xff] %vm1893_vm3, %v2411_v26  ;;  %v1799_v36 = vsel %vm1588_vm14, %v1109_v18, %v1694_v29  ;;  %v1114_v37 = vadd.f32 %v8190_v22, %v1113_v32  ;;  %v1888_v38 = vsel %vm1677_vm15, %v1554_v20, %v1783_v30  ;;  %v6780_v40 = vpop.f32.mrb[25].mxu0  ;;  %v7047_v41 = vpop.f32.mrb[25].mxu1  ;;  %v2034_v26 = vld [vmem:[#allocation2 + $0x44] sm:$0xff] }
 0x134   : > { %2490 = vst.msk [vmem:[#allocation4 + $0x8] sm:$0xff] %vm1893_vm3, %v2450_v31  ;;  %6938 = vmatmul.mubr.msk.f32.gmra.mrb[130].mxu0 %vm667_vm2, %v613_v24  ;;  %v1559_v39 = vadd.f32 %v8190_v22, %v1558_v33  ;;  %1905 = vst.msk [vmem:[#allocation2 + $0x58] sm:$0xff] %vm1893_vm3, %v1799_v36  ;;  %v2771_v42 = vld [vmem:[#allocation3 + $0xc] sm:$0xff]  ;;  %v2412_v45 = vmax.f32 %v2396_v34, %v2408_v35  ;;  %v617_v28 = vld [vmem:[%s7902_s23 + $0x228] sm:$0xff]  ;;  %v2041_v29 = vmax.f32 %v2033_v8, %v2037_v10 }
 0x135   : > { %1994 = vst.msk [vmem:[#allocation2 + $0x320] sm:$0xff] %vm1893_vm3, %v1888_v38  ;;  %v2530_v43 = vld [vmem:[#allocation3 + $0xa] sm:$0xff]  ;;  %6940 = vmatprep.mubr.msk.f32.mxu0 %vm10277_vm0, %v7719_v6  ;;  %vm1589_vm1 = vcmp.ge.f32.partialorder %v1114_v37, 0.0  ;;  %v1695_v46 = vmul.f32 %v8195_v25, %v1114_v37  ;;  %v2038_v31 = vld [vmem:[#allocation2 + $0x45] sm:$0xff] }
 0x136   : > { %vm1678_vm4 = vcmp.ge.f32.partialorder %v1559_v39, 0.0  ;;  %v1784_v47 = vmul.f32 %v8195_v25, %v1559_v39  ;;  %2852 = vrot.lane.b32.xlu1 %v2771_v42, %s10279_s24  ;;  %v1118_v48 = vpop.f32.mrb[26].mxu0  ;;  %v1563_v49 = vpop.f32.mrb[26].mxu1  ;;  %2416 = vst.msk [vmem:[#allocation3 + $0x15c] sm:$0x7] %vm2031_vm11, %v2412_v45  ;;  %v2451_v50 = vld [vmem:[#allocation3 + $0x10] sm:$0xff] }
 0x137   : > { %2611 = vrot.lane.b32.xlu0 %v2530_v43, %s10273_s25  ;;  %v1800_v51 = vsel %vm1589_vm1, %v1114_v37, %v1695_v46  ;;  %v1119_v53 = vadd.f32 %v8190_v22, %v1118_v48  ;;  %v1564_v54 = vadd.f32 %v8190_v22, %v1563_v49  ;;  %v6783_v55 = vpop.f32.mrb[27].mxu0  ;;  %v7050_v56 = vpop.f32.mrb[27].mxu1  ;;  %2491 = vst.msk [vmem:[#allocation4 + $0x10] sm:$0xff] %vm1893_vm3, %v2451_v50  ;;  %v3768_v60 = vld [vmem:[#allocation3 + $0x146] sm:$0xff] }
 0x138   : > { %v1889_v52 = vsel %vm1678_vm4, %v1559_v39, %v1784_v47  ;;  %6941 = vmatmul.mubr.msk.f32.gmra.mrb[132].mxu0 %vm667_vm2, %v614_v44  ;;  %1906 = vst.msk [vmem:[#allocation2 + $0x60] sm:$0xff] %vm1893_vm3, %v1800_v51  ;;  %v3289_v61 = vld [vmem:[#allocation3 + $0x145] sm:$0xff]  ;;  %v2040_v51 = vld [vmem:[#allocation2 + $0x55] sm:$0x7] }
 0x139   : > { %1995 = vst.msk [vmem:[#allocation2 + $0x328] sm:$0xff] %vm1893_vm3, %v1889_v52  ;;  %6943 = vmatprep.mubr.msk.f32.mxu0 %vm10277_vm0, %v7719_v6  ;;  %vm1590_vm5 = vcmp.ge.f32.partialorder %v1119_v53, 0.0  ;;  %v1696_v58 = vmul.f32 %v8195_v25, %v1119_v53  ;;  %vm1679_vm6 = vcmp.ge.f32.partialorder %v1564_v54, 0.0  ;;  %v1785_v59 = vmul.f32 %v8195_v25, %v1564_v54  ;;  %v4009_v12 = vld [vmem:[#allocation3 + $0x148] sm:$0xff] }
 0x13a   : > { %3882 = vrot.lane.b32.xlu1 %v3768_v60, %s10275_s19  ;;  %v1123_v62 = vpop.f32.mrb[28].mxu0  ;;  %v1568_v63 = vpop.f32.mrb[28].mxu1  ;;  %v3530_v13 = vld [vmem:[#allocation3 + $0x147] sm:$0xff] }
 0x13b   : > { %3406 = vrot.lane.b32.xlu0 %v3289_v61, %s10281_s29  ;;  %v1801_v0 = vsel %vm1590_vm5, %v1119_v53, %v1696_v58  ;;  %v1890_v1 = vsel %vm1679_vm6, %v1564_v54, %v1785_v59  ;;  %v1124_v2 = vadd.f32 %v8190_v22, %v1123_v62  ;;  %v1569_v4 = vadd.f32 %v8190_v22, %v1568_v63  ;;  %v7053_v5 = vpop.f32.mrb[29].mxu1  ;;  %v6786_v7 = vpop.f32.mrb[29].mxu0  ;;  %v3049_v33 = vld [vmem:[#allocation3 + $0x14b] sm:$0xff] }
 0x13c   : > { %6944 = vmatmul.mubr.msk.f32.gmra.mrb[134].mxu0 %vm667_vm2, %v615_v57  ;;  %1907 = vst.msk [vmem:[#allocation2 + $0x68] sm:$0xff] %vm1893_vm3, %v1801_v0  ;;  %1996 = vst.msk [vmem:[#allocation2 + $0x330] sm:$0xff] %vm1893_vm3, %v1890_v1  ;;  %v3769_v34 = vld [vmem:[#allocation3 + $0x14e] sm:$0xff]  ;;  %v2417_v36 = vld [vmem:[#allocation2 + $0x30c] sm:$0xff]  ;;  %v2042_v54 = vmax.f32 %v2034_v26, %v2038_v31 }
 0x13d   : > { %6946 = vmatprep.mubr.msk.f32.mxu0 %vm10277_vm0, %v7719_v6  ;;  %vm1591_vm7 = vcmp.ge.f32.partialorder %v1124_v2, 0.0  ;;  %v1697_v11 = vmul.f32 %v8195_v25, %v1124_v2  ;;  %vm1680_vm8 = vcmp.ge.f32.partialorder %v1569_v4, 0.0  ;;  %v1786_v14 = vmul.f32 %v8195_v25, %v1569_v4  ;;  %v2421_v37 = vld [vmem:[#allocation2 + $0x30d] sm:$0xff]  ;;  %v2422_v56 = vld [vmem:[#allocation2 + $0x315] sm:$0xff]  ;;  %v2420_v26 = vld [vmem:[#allocation2 + $0x324] sm:$0x7] }
 0x13e   : > { %4123 = vrot.lane.b32.xlu1 %v4009_v12, %s7724_s21  ;;  %v1573_v15 = vpop.f32.mrb[30].mxu1  ;;  %v1128_v16 = vpop.f32.mrb[30].mxu0  ;;  %v618_v38 = vld [vmem:[%s7902_s23 + $0x230] sm:$0xff]  ;;  %v4010_v57 = vld [vmem:[#allocation3 + $0x150] sm:$0xff]  ;;  %v2425_v60 = vmax.f32 %v2417_v36, %v2421_v37 }
 0x13f   : > { %3647 = vrot.lane.b32.xlu0 %v3530_v13, %s7725_s26  ;;  %v2045_v17 = vld [vmem:[#allocation2 + $0x5a] sm:$0xff]  ;;  %v1802_v19 = vsel %vm1591_vm7, %v1124_v2, %v1697_v11  ;;  %v1574_v20 = vadd.f32 %v8190_v22, %v1573_v15  ;;  %v1129_v21 = vadd.f32 %v8190_v22, %v1128_v16  ;;  %v6789_v23 = vpop.f32.mrb[31].mxu0  ;;  %v7056_v24 = vpop.f32.mrb[31].mxu1  ;;  %v1891_v27 = vsel %vm1680_vm8, %v1569_v4, %v1786_v14  ;;  %v8380_v41 = vld [vmem:[#allocation2 + $0x4c] sm:$0xff]  ;;  %v8382_v42 = vld [vmem:[#allocation2 + $0x54] sm:$0x7] }
 0x140   : > { %v2049_v18 = vld [vmem:[#allocation2 + $0x5b] sm:$0xff]  ;;  %6947 = vmatmul.mubr.msk.f32.gmra.mrb[136].mxu0 %vm667_vm2, %v616_v9  ;;  %1908 = vst.msk [vmem:[#allocation2 + $0x70] sm:$0xff] %vm1893_vm3, %v1802_v19  ;;  %1997 = vst.msk [vmem:[#allocation2 + $0x338] sm:$0xff] %vm1893_vm3, %v1891_v27  ;;  %v8384_v43 = vld [vmem:[#allocation2 + $0x4d] sm:$0xff]  ;;  %v2044_v16 = vmax.f32 %v8382_v42, %v2040_v51 }
 0x141   : > { %6949 = vmatprep.mubr.msk.f32.mxu0 %vm10277_vm0, %v7719_v6  ;;  %v2053_v30 = vmax.f32 %v2045_v17, %v2049_v18  ;;  %vm1681_vm10 = vcmp.ge.f32.partialorder %v1574_v20, 0.0  ;;  %v1787_v32 = vmul.f32 %v8195_v25, %v1574_v20  ;;  %vm1592_vm12 = vcmp.ge.f32.partialorder %v1129_v21, 0.0  ;;  %v2418_v52 = vld [vmem:[#allocation2 + $0x314] sm:$0xff]  ;;  %v2419_v18 = vld [vmem:[#allocation2 + $0x31c] sm:$0xff]  ;;  %v2424_v27 = vld [vmem:[#allocation2 + $0x325] sm:$0x7] }
 0x142   : > { %v1698_v35 = vmul.f32 %v8195_v25, %v1129_v21  ;;  %3167 = vrot.lane.b32.xlu1 %v3049_v33, %s10271_s18  ;;  %v1133_v39 = vpop.f32.mrb[32].mxu0  ;;  %v2531_v58 = vld [vmem:[#allocation3 + $0x12] sm:$0xff]  ;;  %v2043_v14 = vmax.f32 %v8380_v41, %v8384_v43  ;;  %v2426_v17 = vmax.f32 %v2418_v52, %v2422_v56  ;;  %v2428_v42 = vmax.f32 %v2420_v26, %v2424_v27 }
 0x143   : > { %3884 = vrot.lane.b32.xlu0 %v3769_v34, %s10275_s19  ;;  %v2057_v40 = vmax.f32 %v2041_v29, %v2053_v30  ;;  %v2046_v44 = vld [vmem:[#allocation2 + $0x62] sm:$0xff]  ;;  %v2429_v46 = vld [vmem:[#allocation2 + $0x32a] sm:$0xff]  ;;  %v1892_v47 = vsel %vm1681_vm10, %v1574_v20, %v1787_v32  ;;  %v1134_v49 = vadd.f32 %v8190_v22, %v1133_v39  ;;  %v6792_v50 = vpop.f32.mrb[33].mxu0  ;;  %v619_v63 = vld [vmem:[%s7902_s23 + $0x238] sm:$0xff] }
 0x144   : > { %v2050_v45 = vld [vmem:[#allocation2 + $0x63] sm:$0xff]  ;;  %6950 = vmatmul.mubr.msk.f32.gmra.mrb[138].mxu0 %vm667_vm2, %v617_v28  ;;  %v1803_v48 = vsel %vm1592_vm12, %v1129_v21, %v1698_v35  ;;  %v2433_v53 = vld [vmem:[#allocation2 + $0x32b] sm:$0xff]  ;;  %1999 = vst.msk [vmem:[#allocation2 + $0x340] sm:$0x3f] %vm1998_vm9, %v1892_v47  ;;  %v3050_v5 = vld [vmem:[#allocation3 + $0x153] sm:$0xff] }
 0x145   : > { %1909 = vst.msk [vmem:[#allocation2 + $0x78] sm:$0xff] %vm1893_vm3, %v1803_v48  ;;  %6952 = vmatprep.mubr.msk.f32.mxu0 %vm10277_vm0, %v7719_v6  ;;  %2061 = vst.msk [vmem:[#allocation3 + $0x1b] sm:$0xff] %vm1893_vm3, %v2057_v40  ;;  %v2054_v55 = vmax.f32 %v2046_v44, %v2050_v45  ;;  %vm1593_vm13 = vcmp.ge.f32.partialorder %v1134_v49, 0.0  ;;  %v1699_v59 = vmul.f32 %v8195_v25, %v1134_v49  ;;  %v2423_v19 = vld [vmem:[#allocation2 + $0x31d] sm:$0xff]  ;;  %v3290_v20 = vld [vmem:[#allocation3 + $0x14d] sm:$0xff] }
 0x146   : > { %v2437_v61 = vmax.f32 %v2429_v46, %v2433_v53  ;;  %2613 = vrot.lane.b32.xlu1 %v2531_v58, %s10273_s25  ;;  %v1138_v62 = vpop.f32.mrb[34].mxu0  ;;  %v620_v41 = vld [vmem:[%s7902_s23 + $0x240] sm:$0xff]  ;;  %v3531_v44 = vld [vmem:[#allocation3 + $0x14f] sm:$0xff] }
 0x147   : > { %4125 = vrot.lane.b32.xlu0 %v4010_v57, %s7724_s21  ;;  %v2058_v0 = vmax.f32 %v2042_v54, %v2054_v55  ;;  %v2047_v1 = vld [vmem:[#allocation2 + $0x6a] sm:$0xff]  ;;  %v2048_v2 = vld [vmem:[#allocation2 + $0x72] sm:$0x7]  ;;  %v1804_v7 = vsel %vm1593_vm13, %v1134_v49, %v1699_v59  ;;  %v1139_v8 = vadd.f32 %v8190_v22, %v1138_v62  ;;  %v6795_v9 = vpop.f32.mrb[35].mxu0  ;;  %v3770_v45 = vld [vmem:[#allocation3 + $0x156] sm:$0xff] }
 0x148   : > { %v2051_v4 = vld [vmem:[#allocation2 + $0x6b] sm:$0xff]  ;;  %6953 = vmatmul.mubr.msk.f32.gmra.mrb[140].mxu0 %vm667_vm2, %v618_v38  ;;  %v2441_v10 = vmax.f32 %v2425_v60, %v2437_v61  ;;  %v2052_v11 = vld [vmem:[#allocation2 + $0x73] sm:$0x7]  ;;  %1910 = vst.msk [vmem:[#allocation2 + $0x80] sm:$0xff] %vm1893_vm3, %v1804_v7  ;;  %v2427_v38 = vmax.f32 %v2419_v18, %v2423_v19  ;;  %v3291_v56 = vld [vmem:[#allocation3 + $0x155] sm:$0xff] }
 0x149   : > { %v2430_v12 = vld [vmem:[#allocation2 + $0x332] sm:$0xff]  ;;  %6955 = vmatprep.mubr.msk.f32.mxu0 %vm10277_vm0, %v7719_v6  ;;  %2062 = vst.msk [vmem:[#allocation3 + $0x23] sm:$0xff] %vm1893_vm3, %v2058_v0  ;;  %v2055_v15 = vmax.f32 %v2047_v1, %v2051_v4  ;;  %vm1594_vm14 = vcmp.ge.f32.partialorder %v1139_v8, 0.0  ;;  %v1700_v21 = vmul.f32 %v8195_v25, %v1139_v8  ;;  %v2056_v23 = vmax.f32 %v2048_v2, %v2052_v11  ;;  %v621_v54 = vld [vmem:[%s7902_s23 + $0x248] sm:$0xff]  ;;  %v3532_v1 = vld [vmem:[#allocation3 + $0x157] sm:$0xff] }
 0x14a   : > { %v2434_v13 = vld [vmem:[#allocation2 + $0x333] sm:$0xff]  ;;  %2445 = vst.msk [vmem:[#allocation3 + $0x15f] sm:$0xff] %vm1893_vm3, %v2441_v10  ;;  %3408 = vrot.lane.b32.xlu1 %v3290_v20, %s10281_s29  ;;  %v1143_v28 = vpop.f32.mrb[36].mxu0  ;;  %v8449_v9 = vld [vmem:[%s10252_s3] ss:$0 sm:$0xff] }
 0x14b   : > { %v2438_v24 = vmax.f32 %v2430_v12, %v2434_v13  ;;  %3169 = vrot.lane.b32.xlu0 %v3050_v5, %s10271_s18  ;;  %v2059_v29 = vmax.f32 %v2043_v14, %v2055_v15  ;;  %v2431_v30 = vld [vmem:[#allocation2 + $0x33a] sm:$0xff]  ;;  %v2432_v31 = vld [vmem:[#allocation2 + $0x342] sm:$0x7]  ;;  %v1805_v33 = vsel %vm1594_vm14, %v1139_v8, %v1700_v21  ;;  %v1144_v34 = vadd.f32 %v8190_v22, %v1143_v28  ;;  %v6798_v35 = vpop.f32.mrb[37].mxu0 }
 0x14c   : > { %v2435_v32 = vld [vmem:[#allocation2 + $0x33b] sm:$0xff]  ;;  %6956 = vmatmul.mubr.msk.f32.gmra.mrb[142].mxu0 %vm667_vm2, %v619_v63  ;;  %v2060_v36 = vmax.f32 %v2044_v16, %v2056_v23  ;;  %v2436_v39 = vld [vmem:[#allocation2 + $0x343] sm:$0x7]  ;;  %1911 = vst.msk [vmem:[#allocation2 + $0x88] sm:$0xff] %vm1893_vm3, %v1805_v33  ;;  %v622_v63 = vld [vmem:[%s7902_s23 + $0x250] sm:$0xff] }
 0x14d   : > { %v2442_v37 = vmax.f32 %v2426_v17, %v2438_v24  ;;  %v2439_v40 = vmax.f32 %v2431_v30, %v2435_v32  ;;  %6958 = vmatprep.mubr.msk.f32.mxu0 %vm10277_vm0, %v7719_v6  ;;  %2063 = vst.msk [vmem:[#allocation3 + $0x2b] sm:$0xff] %vm1893_vm3, %v2059_v29  ;;  %v2440_v43 = vmax.f32 %v2432_v31, %v2436_v39  ;;  %vm1595_vm15 = vcmp.ge.f32.partialorder %v1144_v34, 0.0  ;;  %v2452_v47 = vld [vmem:[#allocation3 + $0x18] sm:$0xff]  ;;  %v2065_v5 = vld [vmem:[#allocation2 + $0x78] sm:$0xff] }
 0x14e   : > { %v1701_v46 = vmul.f32 %v8195_v25, %v1144_v34  ;;  %2064 = vst.msk [vmem:[#allocation3 + $0x33] sm:$0x7] %vm2031_vm11, %v2060_v36  ;;  %3886 = vrot.lane.b32.xlu1 %v3770_v45, %s10275_s19  ;;  %v1148_v48 = vpop.f32.mrb[38].mxu0  ;;  %v3011_v57 = vld [vmem:[#allocation3 + $0x1b] sm:$0xff]  ;;  %v623_v12 = vld [vmem:[%s7902_s23 + $0x258] sm:$0xff] }
 0x14f   : > { %2446 = vst.msk [vmem:[#allocation3 + $0x167] sm:$0xff] %vm1893_vm3, %v2442_v37  ;;  %3649 = vrot.lane.b32.xlu0 %v3531_v44, %s7725_s26  ;;  %2492 = vst.msk [vmem:[#allocation4 + $0x18] sm:$0xff] %vm1893_vm3, %v2452_v47  ;;  %v2443_v49 = vmax.f32 %v2427_v38, %v2439_v40  ;;  %v1149_v51 = vadd.f32 %v8190_v22, %v1148_v48  ;;  %v6801_v52 = vpop.f32.mrb[39].mxu0  ;;  %v2444_v53 = vmax.f32 %v2428_v42, %v2440_v43  ;;  %v2532_v2 = vld [vmem:[#allocation3 + $0x1a] sm:$0xff]  ;;  %v2069_v7 = vld [vmem:[#allocation2 + $0x79] sm:$0xff] }
 0x150   : > { %v1806_v50 = vsel %vm1595_vm15, %v1144_v34, %v1701_v46  ;;  %6959 = vmatmul.mubr.msk.f32.gmra.mrb[144].mxu0 %vm667_vm2, %v620_v41  ;;  %v2453_v59 = vld [vmem:[#allocation3 + $0x20] sm:$0xff]  ;;  %v2772_v14 = vld [vmem:[#allocation3 + $0x14] sm:$0xff]  ;;  %v2073_v17 = vmax.f32 %v2065_v5, %v2069_v7 }
 0x151   : > { %1912 = vst.msk [vmem:[#allocation2 + $0x90] sm:$0xff] %vm1893_vm3, %v1806_v50  ;;  %6961 = vmatprep.mubr.msk.f32.mxu0 %vm10277_vm0, %v7719_v6  ;;  %2447 = vst.msk [vmem:[#allocation3 + $0x16f] sm:$0xff] %vm1893_vm3, %v2443_v49  ;;  %vm1596_vm1 = vcmp.ge.f32.partialorder %v1149_v51, 0.0  ;;  %v1702_v55 = vmul.f32 %v8195_v25, %v1149_v51  ;;  %v3252_v15 = vld [vmem:[#allocation3 + $0x1d] sm:$0xff] }
 0x152   : > { %2448 = vst.msk [vmem:[#allocation3 + $0x177] sm:$0x7] %vm2031_vm11, %v2444_v53  ;;  %3410 = vrot.lane.b32.xlu1 %v3291_v56, %s10281_s29  ;;  %v1153_v58 = vpop.f32.mrb[40].mxu0  ;;  %v2066_v16 = vld [vmem:[#allocation2 + $0x80] sm:$0xff]  ;;  %v3012_v30 = vld [vmem:[#allocation3 + $0x23] sm:$0xff] }
 0x153   : > { %3091 = vrot.lane.b32.xlu0 %v3011_v57, %s10271_s18  ;;  %v1807_v60 = vsel %vm1596_vm1, %v1149_v51, %v1702_v55  ;;  %v1154_v61 = vadd.f32 %v8190_v22, %v1153_v58  ;;  %v6804_v62 = vpop.f32.mrb[41].mxu0  ;;  %2493 = vst.msk [vmem:[#allocation4 + $0x20] sm:$0xff] %vm1893_vm3, %v2453_v59  ;;  %v2070_v19 = vld [vmem:[#allocation2 + $0x81] sm:$0xff]  ;;  %v626_v58 = vld [vmem:[%s7902_s23 + $0x270] sm:$0xff] }
 0x154   : > { %6962 = vmatmul.mubr.msk.f32.gmra.mrb[146].mxu0 %vm667_vm2, %v621_v54  ;;  %1913 = vst.msk [vmem:[#allocation2 + $0x98] sm:$0xff] %vm1893_vm3, %v1807_v60  ;;  %v2454_v4 = vld [vmem:[#allocation3 + $0x28] sm:$0xff]  ;;  %v624_v28 = vld [vmem:[%s7902_s23 + $0x260] sm:$0xff]  ;;  %v2067_v32 = vld [vmem:[#allocation2 + $0x88] sm:$0xff]  ;;  %v2074_v33 = vmax.f32 %v2066_v16, %v2070_v19 }
 0x155   : > { %6964 = vmatprep.mubr.msk.f32.mxu0 %vm10277_vm0, %v7719_v6  ;;  %vm1597_vm4 = vcmp.ge.f32.partialorder %v1154_v61, 0.0  ;;  %v1703_v0 = vmul.f32 %v8195_v25, %v1154_v61  ;;  %2494 = vst.msk [vmem:[#allocation4 + $0x28] sm:$0xff] %vm1893_vm3, %v2454_v4  ;;  %v2773_v31 = vld [vmem:[#allocation3 + $0x1c] sm:$0xff]  ;;  %v3253_v60 = vld [vmem:[#allocation3 + $0x25] sm:$0xff] }
 0x156   : > { %3651 = vrot.lane.b32.xlu1 %v3532_v1, %s7725_s26  ;;  %v1158_v22 = vpop.f32.mrb[42].mxu0  ;;  %v625_v43 = vld [vmem:[%s7902_s23 + $0x268] sm:$0xff] }
 0x157   : > { %2615 = vrot.lane.b32.xlu0 %v2532_v2, %s10273_s25  ;;  %v1808_v8 = vsel %vm1597_vm4, %v1154_v61, %v1703_v0  ;;  %v1159_v10 = vadd.f32 %v8449_v9, %v1158_v22  ;;  %v6807_v11 = vpop.f32.mrb[43].mxu0  ;;  %v3493_v44 = vld [vmem:[#allocation3 + $0x1f] sm:$0xff] }
 0x158   : > { %6965 = vmatmul.mubr.msk.f32.gmra.mrb[148].mxu0 %vm667_vm2, %v622_v63  ;;  %1914 = vst.msk [vmem:[#allocation2 + $0xa0] sm:$0xff] %vm1893_vm3, %v1808_v8  ;;  %v2071_v36 = vld [vmem:[#allocation2 + $0x89] sm:$0xff]  ;;  %v2072_v51 = vld [vmem:[#allocation2 + $0x91] sm:$0x7]  ;;  %v627_v8 = vld [vmem:[%s7902_s23 + $0x278] sm:$0xff] }
 0x159   : > { %6967 = vmatprep.mubr.msk.f32.mxu0 %vm10277_vm0, %v7719_v6  ;;  %vm1598_vm5 = vcmp.ge.f32.partialorder %v1159_v10, 0.0  ;;  %v1704_v13 = vmul.f32 %v8195_v25, %v1159_v10  ;;  %v3771_v45 = vld [vmem:[#allocation3 + $0x15e] sm:$0xff]  ;;  %v2068_v47 = vld [vmem:[#allocation2 + $0x90] sm:$0x7]  ;;  %v2075_v48 = vmax.f32 %v2067_v32, %v2071_v36  ;;  %v2775_v36 = vld [vmem:[#allocation3 + $0x2c] sm:$0xff] }
 0x15a   : > { %2854 = vrot.lane.b32.xlu1 %v2772_v14, %s10279_s24  ;;  %v1163_v18 = vpop.f32.mrb[44].mxu0  ;;  %v2533_v59 = vld [vmem:[#allocation3 + $0x22] sm:$0xff]  ;;  %v2076_v62 = vmax.f32 %v2068_v47, %v2072_v51 }
 0x15b   : > { %3332 = vrot.lane.b32.xlu0 %v3252_v15, %s10281_s29  ;;  %v2077_v20 = vld [vmem:[#allocation2 + $0x96] sm:$0xff]  ;;  %v1809_v23 = vsel %vm1598_vm5, %v1159_v10, %v1704_v13  ;;  %v1164_v24 = vadd.f32 %v8449_v9, %v1163_v18  ;;  %v6810_v26 = vpop.f32.mrb[45].mxu0  ;;  %v4011_v10 = vld [vmem:[#allocation3 + $0x158] sm:$0xff]  ;;  %v629_v32 = vld [vmem:[%s7902_s23 + $0x288] sm:$0xff] }
 0x15c   : > { %v2081_v21 = vld [vmem:[#allocation2 + $0x97] sm:$0xff]  ;;  %6968 = vmatmul.mubr.msk.f32.gmra.mrb[150].mxu0 %vm667_vm2, %v623_v12  ;;  %1915 = vst.msk [vmem:[#allocation2 + $0xa8] sm:$0xff] %vm1893_vm3, %v1809_v23  ;;  %v3494_v11 = vld [vmem:[#allocation3 + $0x27] sm:$0xff] }
 0x15d   : > { %v2085_v27 = vmax.f32 %v2077_v20, %v2081_v21  ;;  %6970 = vmatprep.mubr.msk.f32.mxu0 %vm10277_vm0, %v7719_v6  ;;  %vm1599_vm6 = vcmp.ge.f32.partialorder %v1164_v24, 0.0  ;;  %v1705_v29 = vmul.f32 %v8195_v25, %v1164_v24  ;;  %v628_v20 = vld [vmem:[%s7902_s23 + $0x280] sm:$0xff]  ;;  %v3013_v23 = vld [vmem:[#allocation3 + $0x2b] sm:$0xff] }
 0x15e   : > { %3093 = vrot.lane.b32.xlu1 %v3012_v30, %s10271_s18  ;;  %v1168_v34 = vpop.f32.mrb[46].mxu0 }
 0x15f   : > { %2856 = vrot.lane.b32.xlu0 %v2773_v31, %s10279_s24  ;;  %v2089_v35 = vmax.f32 %v2073_v17, %v2085_v27  ;;  %v2078_v37 = vld [vmem:[#allocation2 + $0x9e] sm:$0xff]  ;;  %v1810_v39 = vsel %vm1599_vm6, %v1164_v24, %v1705_v29  ;;  %v1169_v40 = vadd.f32 %v8449_v9, %v1168_v34  ;;  %v6813_v41 = vpop.f32.mrb[47].mxu0  ;;  %v2534_v24 = vld [vmem:[#allocation3 + $0x2a] sm:$0xff] }
 0x160   : > { %v2082_v38 = vld [vmem:[#allocation2 + $0x9f] sm:$0xff]  ;;  %6971 = vmatmul.mubr.msk.f32.gmra.mrb[152].mxu0 %vm667_vm2, %v624_v28  ;;  %1916 = vst.msk [vmem:[#allocation2 + $0xb0] sm:$0xff] %vm1893_vm3, %v1810_v39  ;;  %v630_v41 = vld [vmem:[%s7902_s23 + $0x290] sm:$0xff] }
 0x161   : > { %v2086_v42 = vmax.f32 %v2078_v37, %v2082_v38  ;;  %6973 = vmatprep.mubr.msk.f32.mxu0 %vm10277_vm0, %v7719_v6  ;;  %2093 = vst.msk [vmem:[#allocation3 + $0x36] sm:$0xff] %vm1893_vm3, %v2089_v35  ;;  %vm1600_vm7 = vcmp.ge.f32.partialorder %v1169_v40, 0.0  ;;  %v1706_v46 = vmul.f32 %v8195_v25, %v1169_v40  ;;  %v3254_v35 = vld [vmem:[#allocation3 + $0x2d] sm:$0xff] }
 0x162   : > { %3573 = vrot.lane.b32.xlu1 %v3493_v44, %s7725_s26  ;;  %v1173_v49 = vpop.f32.mrb[48].mxu0  ;;  %v4012_v44 = vld [vmem:[#allocation3 + $0x160] sm:$0xff] }
 0x163   : > { %3888 = vrot.lane.b32.xlu0 %v3771_v45, %s10275_s19  ;;  %v2090_v50 = vmax.f32 %v2074_v33, %v2086_v42  ;;  %v2079_v52 = vld [vmem:[#allocation2 + $0xa6] sm:$0xff]  ;;  %v1811_v54 = vsel %vm1600_vm7, %v1169_v40, %v1706_v46  ;;  %v1174_v55 = vadd.f32 %v8449_v9, %v1173_v49  ;;  %v6816_v56 = vpop.f32.mrb[49].mxu0 }
 0x164   : > { %v2083_v53 = vld [vmem:[#allocation2 + $0xa7] sm:$0xff]  ;;  %6974 = vmatmul.mubr.msk.f32.gmra.mrb[154].mxu0 %vm667_vm2, %v625_v43  ;;  %1917 = vst.msk [vmem:[#allocation2 + $0xb8] sm:$0xff] %vm1893_vm3, %v1811_v54 }
 0x165   : > { %v2087_v57 = vmax.f32 %v2079_v52, %v2083_v53  ;;  %6976 = vmatprep.mubr.msk.f32.mxu0 %vm10277_vm0, %v7719_v6  ;;  %2094 = vst.msk [vmem:[#allocation3 + $0x3e] sm:$0xff] %vm1893_vm3, %v2090_v50  ;;  %vm1601_vm8 = vcmp.ge.f32.partialorder %v1174_v55, 0.0  ;;  %v1707_v61 = vmul.f32 %v8195_v25, %v1174_v55  ;;  %v2774_v43 = vld [vmem:[#allocation3 + $0x24] sm:$0xff]  ;;  %v631_v52 = vld [vmem:[%s7902_s23 + $0x298] sm:$0xff] }
 0x166   : > { %2617 = vrot.lane.b32.xlu1 %v2533_v59, %s10273_s25  ;;  %v1178_v0 = vpop.f32.mrb[50].mxu0  ;;  %v3772_v53 = vld [vmem:[#allocation3 + $0x166] sm:$0xff] }
 0x167   : > { %v2091_v63 = vmax.f32 %v2075_v48, %v2087_v57  ;;  %3334 = vrot.lane.b32.xlu0 %v3253_v60, %s10281_s29  ;;  %v2080_v1 = vld [vmem:[#allocation2 + $0xae] sm:$0x7]  ;;  %v1812_v22 = vsel %vm1601_vm8, %v1174_v55, %v1707_v61  ;;  %v1179_v4 = vadd.f32 %v8449_v9, %v1178_v0  ;;  %v6819_v5 = vpop.f32.mrb[51].mxu0 }
 0x168   : > { %v2084_v2 = vld [vmem:[#allocation2 + $0xaf] sm:$0x7]  ;;  %6977 = vmatmul.mubr.msk.f32.gmra.mrb[156].mxu0 %vm667_vm2, %v626_v58  ;;  %1918 = vst.msk [vmem:[#allocation2 + $0xc0] sm:$0xff] %vm1893_vm3, %v1812_v22  ;;  %v2455_v13 = vld [vmem:[#allocation3 + $0x30] sm:$0xff] }
 0x169   : > { %2095 = vst.msk [vmem:[#allocation3 + $0x46] sm:$0xff] %vm1893_vm3, %v2091_v63  ;;  %v2088_v7 = vmax.f32 %v2080_v1, %v2084_v2  ;;  %6979 = vmatprep.mubr.msk.f32.mxu0 %vm10277_vm0, %v7719_v6  ;;  %vm1602_vm9 = vcmp.ge.f32.partialorder %v1179_v4, 0.0  ;;  %v1708_v12 = vmul.f32 %v8195_v25, %v1179_v4  ;;  %2495 = vst.msk [vmem:[#allocation4 + $0x30] sm:$0xff] %vm1893_vm3, %v2455_v13  ;;  %v3734_v54 = vld [vmem:[#allocation3 + $0x36] sm:$0xff] }
 0x16a   : > { %4127 = vrot.lane.b32.xlu1 %v4011_v10, %s7724_s21  ;;  %v1183_v14 = vpop.f32.mrb[52].mxu0  ;;  %v632_v2 = vld [vmem:[%s7902_s23 + $0x2a0] sm:$0xff]  ;;  %v3495_v22 = vld [vmem:[#allocation3 + $0x2f] sm:$0xff] }
 0x16b   : > { %3575 = vrot.lane.b32.xlu0 %v3494_v11, %s7725_s26  ;;  %v2092_v15 = vmax.f32 %v2076_v62, %v2088_v7  ;;  %v1813_v16 = vsel %vm1602_vm9, %v1179_v4, %v1708_v12  ;;  %v1184_v17 = vadd.f32 %v8449_v9, %v1183_v14  ;;  %v6822_v19 = vpop.f32.mrb[53].mxu0  ;;  %v2097_v47 = vld [vmem:[#allocation2 + $0xb4] sm:$0xff] }
 0x16c   : > { %6980 = vmatmul.mubr.msk.f32.gmra.mrb[158].mxu0 %vm667_vm2, %v627_v8  ;;  %v8503_v18 = vld [vmem:[#allocation3 + $0x3a] sm:$0xff]  ;;  %1919 = vst.msk [vmem:[#allocation2 + $0xc8] sm:$0xff] %vm1893_vm3, %v1813_v16  ;;  %v2101_v48 = vld [vmem:[#allocation2 + $0xb5] sm:$0xff] }
 0x16d   : > { %7061 = vmatprep.mubr.msk.f32.mxu1 %vm1893_vm3, %v8503_v18  ;;  %6982 = vmatprep.mubr.msk.f32.mxu0 %vm10277_vm0, %v7719_v6  ;;  %v8511_v21 = vld [vmem:[#allocation3 + $0x38] sm:$0xff]  ;;  %2096 = vst.msk [vmem:[#allocation3 + $0x4e] sm:$0x7] %vm2031_vm11, %v2092_v15  ;;  %vm1603_vm10 = vcmp.ge.f32.partialorder %v1184_v17, 0.0  ;;  %v1709_v26 = vmul.f32 %v8195_v25, %v1184_v17  ;;  %v2105_v56 = vmax.f32 %v2097_v47, %v2101_v48 }
 0x16e   : > { %2496 = vst.msk [vmem:[#allocation4 + $0x38] sm:$0xff] %vm1893_vm3, %v8511_v21  ;;  %3095 = vrot.lane.b32.xlu1 %v3013_v23, %s10271_s18  ;;  %v1188_v27 = vpop.f32.mrb[54].mxu0  ;;  %v3014_v4 = vld [vmem:[#allocation3 + $0x33] sm:$0xff]  ;;  %v3735_v47 = vld [vmem:[#allocation3 + $0x3e] sm:$0xff] }
 0x16f   : > { %2619 = vrot.lane.b32.xlu0 %v2534_v24, %s10273_s25  ;;  %v1814_v28 = vsel %vm1603_vm10, %v1184_v17, %v1709_v26  ;;  %v1189_v29 = vadd.f32 %v8449_v9, %v1188_v27  ;;  %v6825_v31 = vpop.f32.mrb[55].mxu0  ;;  %v2098_v57 = vld [vmem:[#allocation2 + $0xbc] sm:$0xff]  ;;  %v633_v24 = vld [vmem:[%s7902_s23 + $0x2a8] sm:$0xff] }
 0x170   : > { %6983 = vmatmul.mubr.msk.f32.gmra.mrb[160].mxu0 %vm667_vm2, %v628_v20  ;;  %v8521_v30 = vld [vmem:[#allocation3 + $0x42] sm:$0xff]  ;;  %1920 = vst.msk [vmem:[#allocation2 + $0xd0] sm:$0xff] %vm1893_vm3, %v1814_v28  ;;  %v2102_v59 = vld [vmem:[#allocation2 + $0xbd] sm:$0xff] }
 0x171   : > { %7062 = vmatmul.mubr.msk.f32.vlgmr.msra.gmra.mrb[32].mxu1 %vm1893_vm3, %v8521_v30  ;;  %6985 = vmatprep.mubr.msk.f32.mxu0 %vm10277_vm0, %v7719_v6  ;;  %v8529_v33 = vld [vmem:[#allocation3 + $0x40] sm:$0xff]  ;;  %vm1604_vm12 = vcmp.ge.f32.partialorder %v1189_v29, 0.0  ;;  %v1710_v34 = vmul.f32 %v8195_v25, %v1189_v29  ;;  %v2106_v7 = vmax.f32 %v2098_v57, %v2102_v59  ;;  %v3255_v26 = vld [vmem:[#allocation3 + $0x35] sm:$0xff] }
 0x172   : > { %2497 = vst.msk [vmem:[#allocation4 + $0x40] sm:$0xff] %vm1893_vm3, %v8529_v33  ;;  %3336 = vrot.lane.b32.xlu1 %v3254_v35, %s10281_s29  ;;  %v1193_v37 = vpop.f32.mrb[56].mxu0  ;;  %v2535_v27 = vld [vmem:[#allocation3 + $0x32] sm:$0xff] }
 0x173   : > { %2860 = vrot.lane.b32.xlu0 %v2775_v36, %s10279_s24  ;;  %v1815_v38 = vsel %vm1604_vm12, %v1189_v29, %v1710_v34  ;;  %v1194_v39 = vadd.f32 %v8449_v9, %v1193_v37  ;;  %v6828_v40 = vpop.f32.mrb[57].mxu0  ;;  %v2099_v8 = vld [vmem:[#allocation2 + $0xc4] sm:$0xff]  ;;  %v2100_v19 = vld [vmem:[#allocation2 + $0xcc] sm:$0x7]  ;;  %vm2729_vm12 = vcmask 261248  }
 0x174   : > { %6986 = vmatmul.mubr.msk.f32.gmra.mrb[162].mxu0 %vm667_vm2, %v629_v32  ;;  %1921 = vst.msk [vmem:[#allocation2 + $0xd8] sm:$0xff] %vm1893_vm3, %v1815_v38  ;;  %v8542_v42 = vld [vmem:[#allocation3 + $0x48] sm:$0xff]  ;;  %v2103_v12 = vld [vmem:[#allocation2 + $0xc5] sm:$0xff]  ;;  %v2104_v20 = vld [vmem:[#allocation2 + $0xcd] sm:$0x7] }
 0x175   : > { %6988 = vmatprep.mubr.msk.f32.mxu0 %vm10277_vm0, %v7719_v6  ;;  %vm1605_vm13 = vcmp.ge.f32.partialorder %v1194_v39, 0.0  ;;  %v1711_v45 = vmul.f32 %v8195_v25, %v1194_v39  ;;  %2498 = vst.msk [vmem:[#allocation4 + $0x48] sm:$0xff] %vm1893_vm3, %v8542_v42  ;;  %v2107_v29 = vmax.f32 %v2099_v8, %v2103_v12  ;;  %v2108_v34 = vmax.f32 %v2100_v19, %v2104_v20  ;;  %v3496_v57 = vld [vmem:[#allocation3 + $0x37] sm:$0xff] }
 0x176   : > { %2858 = vrot.lane.b32.xlu1 %v2774_v43, %s10279_s24  ;;  %v1198_v46 = vpop.f32.mrb[58].mxu0  ;;  %v2777_v12 = vld [vmem:[#allocation3 + $0x3c] sm:$0xff] }
 0x177   : > { %4129 = vrot.lane.b32.xlu0 %v4012_v44, %s7724_s21  ;;  %v1816_v49 = vsel %vm1605_vm13, %v1194_v39, %v1711_v45  ;;  %v1199_v50 = vadd.f32 %v8449_v9, %v1198_v46  ;;  %v6831_v51 = vpop.f32.mrb[59].mxu0  ;;  %v634_v44 = vld [vmem:[%s7902_s23 + $0x2b0] sm:$0xff]  ;;  %v2776_v46 = vld [vmem:[#allocation3 + $0x34] sm:$0xff]  ;;  %vm2970_vm13 = vcmask 392448  }
 0x178   : > { %6989 = vmatmul.mubr.msk.f32.gmra.mrb[164].mxu0 %vm667_vm2, %v630_v41  ;;  %1922 = vst.msk [vmem:[#allocation2 + $0xe0] sm:$0xff] %vm1893_vm3, %v1816_v49 }
 0x179   : > { %6991 = vmatprep.mubr.msk.f32.mxu0 %vm10277_vm0, %v7719_v6  ;;  %vm1606_vm14 = vcmp.ge.f32.partialorder %v1199_v50, 0.0  ;;  %v1712_v55 = vmul.f32 %v8195_v25, %v1199_v50 }
 0x17a   : > { %3814 = vrot.lane.b32.xlu1 %v3734_v54, %s10275_s19  ;;  %v1203_v58 = vpop.f32.mrb[60].mxu0 }
 0x17b   : > { %3890 = vrot.lane.b32.xlu0 %v3772_v53, %s10275_s19  ;;  %v2109_v60 = vld [vmem:[#allocation2 + $0xd2] sm:$0xff]  ;;  %v1817_v62 = vsel %vm1606_vm14, %v1199_v50, %v1712_v55  ;;  %v1204_v63 = vadd.f32 %v8449_v9, %v1203_v58  ;;  %v6834_v0 = vpop.f32.mrb[61].mxu0 }
 0x17c   : > { %v2113_v61 = vld [vmem:[#allocation2 + $0xd3] sm:$0xff]  ;;  %6992 = vmatmul.mubr.msk.f32.gmra.mrb[166].mxu0 %vm667_vm2, %v631_v52  ;;  %1923 = vst.msk [vmem:[#allocation2 + $0xe8] sm:$0xff] %vm1893_vm3, %v1817_v62 }
 0x17d   : > { %v2117_v1 = vmax.f32 %v2109_v60, %v2113_v61  ;;  %6994 = vmatprep.mubr.msk.f32.mxu0 %vm10277_vm0, %v7719_v6  ;;  %vm1607_vm15 = vcmp.ge.f32.partialorder %v1204_v63, 0.0  ;;  %v1713_v5 = vmul.f32 %v8195_v25, %v1204_v63 }
 0x17e   : > { %3577 = vrot.lane.b32.xlu1 %v3495_v22, %s7725_s26  ;;  %v1208_v10 = vpop.f32.mrb[62].mxu0 }
 0x17f   : > { %3097 = vrot.lane.b32.xlu0 %v3014_v4, %s10271_s18  ;;  %v2121_v11 = vmax.f32 %v2105_v56, %v2117_v1  ;;  %v2110_v13 = vld [vmem:[#allocation2 + $0xda] sm:$0xff]  ;;  %v1818_v15 = vsel %vm1607_vm15, %v1204_v63, %v1713_v5  ;;  %v1209_v16 = vadd.f32 %v8449_v9, %v1208_v10  ;;  %v6837_v17 = vpop.f32.mrb[63].mxu0 }
 0x180   : > { %v2114_v14 = vld [vmem:[#allocation2 + $0xdb] sm:$0xff]  ;;  %6995 = vmatmul.mubr.msk.f32.gmra.mrb[168].mxu0 %vm667_vm2, %v632_v2  ;;  %1924 = vst.msk [vmem:[#allocation2 + $0xf0] sm:$0xff] %vm1893_vm3, %v1818_v15  ;;  %v3015_v2 = vld [vmem:[#allocation3 + $0x3b] sm:$0xff] }
 0x181   : > { %v2118_v23 = vmax.f32 %v2110_v13, %v2114_v14  ;;  %6997 = vmatprep.mubr.msk.f32.mxu0 %vm10277_vm0, %v7719_v6  ;;  %2125 = vst.msk [vmem:[#allocation3 + $0x51] sm:$0xff] %vm1893_vm3, %v2121_v11  ;;  %vm1608_vm1 = vcmp.ge.f32.partialorder %v1209_v16, 0.0  ;;  %v1714_v28 = vmul.f32 %v8195_v25, %v1209_v16  ;;  %v635_v56 = vld [vmem:[%s7902_s23 + $0x2b8] sm:$0xff] }
 0x182   : > { %2621 = vrot.lane.b32.xlu1 %v2535_v27, %s10273_s25  ;;  %v1213_v31 = vpop.f32.mrb[64].mxu0 }
 0x183   : > { %3338 = vrot.lane.b32.xlu0 %v3255_v26, %s10281_s29  ;;  %v2122_v32 = vmax.f32 %v2106_v7, %v2118_v23  ;;  %v2111_v35 = vld [vmem:[#allocation2 + $0xe2] sm:$0xff]  ;;  %v2112_v36 = vld [vmem:[#allocation2 + $0xea] sm:$0x7]  ;;  %v1819_v38 = vsel %vm1608_vm1, %v1209_v16, %v1714_v28  ;;  %v1214_v39 = vadd.f32 %v8449_v9, %v1213_v31  ;;  %v6840_v40 = vpop.f32.mrb[65].mxu0 }
 0x184   : > { %v2115_v37 = vld [vmem:[#allocation2 + $0xe3] sm:$0xff]  ;;  %6998 = vmatmul.mubr.msk.f32.gmra.mrb[170].mxu0 %vm667_vm2, %v633_v24  ;;  %v2116_v41 = vld [vmem:[#allocation2 + $0xeb] sm:$0x7]  ;;  %1925 = vst.msk [vmem:[#allocation2 + $0xf8] sm:$0xff] %vm1893_vm3, %v1819_v38  ;;  %v3736_v24 = vld [vmem:[#allocation3 + $0x46] sm:$0xff] }
 0x185   : > { %v2119_v43 = vmax.f32 %v2111_v35, %v2115_v37  ;;  %7000 = vmatprep.mubr.msk.f32.mxu0 %vm10277_vm0, %v7719_v6  ;;  %2126 = vst.msk [vmem:[#allocation3 + $0x59] sm:$0xff] %vm1893_vm3, %v2122_v32  ;;  %v2120_v45 = vmax.f32 %v2112_v36, %v2116_v41  ;;  %vm1609_vm4 = vcmp.ge.f32.partialorder %v1214_v39, 0.0  ;;  %v1715_v48 = vmul.f32 %v8195_v25, %v1214_v39  ;;  %v3016_v40 = vld [vmem:[#allocation3 + $0x43] sm:$0xff] }
 0x186   : > { %2862 = vrot.lane.b32.xlu1 %v2776_v46, %s10279_s24  ;;  %v1218_v49 = vpop.f32.mrb[66].mxu0 }
 0x187   : > { %3816 = vrot.lane.b32.xlu0 %v3735_v47, %s10275_s19  ;;  %v2123_v50 = vmax.f32 %v2107_v29, %v2119_v43  ;;  %v1820_v51 = vsel %vm1609_vm4, %v1214_v39, %v1715_v48  ;;  %v1219_v52 = vadd.f32 %v8449_v9, %v1218_v49  ;;  %v6843_v54 = vpop.f32.mrb[67].mxu0  ;;  %v2124_v55 = vmax.f32 %v2108_v34, %v2120_v45  ;;  %v2129_v15 = vld [vmem:[#allocation2 + $0xf0] sm:$0xff]  ;;  %v3497_v39 = vld [vmem:[#allocation3 + $0x3f] sm:$0xff] }
 0x188   : > { %7001 = vmatmul.mubr.msk.f32.gmra.mrb[172].mxu0 %vm667_vm2, %v634_v44  ;;  %v8589_v53 = vld [vmem:[#allocation3 + $0x4a] sm:$0xff]  ;;  %1926 = vst.msk [vmem:[#allocation2 + $0x100] sm:$0xff] %vm1893_vm3, %v1820_v51 }
 0x189   : > { %7064 = vmatprep.mubr.msk.f32.mxu1 %vm1893_vm3, %v8589_v53  ;;  %7003 = vmatprep.mubr.msk.f32.mxu0 %vm10277_vm0, %v7719_v6  ;;  %2127 = vst.msk [vmem:[#allocation3 + $0x61] sm:$0xff] %vm1893_vm3, %v2123_v50  ;;  %vm1610_vm5 = vcmp.ge.f32.partialorder %v1219_v52, 0.0  ;;  %v1716_v58 = vmul.f32 %v8195_v25, %v1219_v52  ;;  %v2459_v59 = vld [vmem:[#allocation3 + $0x50] sm:$0xff]  ;;  %v3257_v54 = vld [vmem:[#allocation3 + $0x45] sm:$0xff] }
 0x18a   : > { %2128 = vst.msk [vmem:[#allocation3 + $0x69] sm:$0x7] %vm2031_vm11, %v2124_v55  ;;  %4055 = vrot.lane.b32.xlu1 %v8511_v21, %s7724_s21  ;;  %v1223_v60 = vpop.f32.mrb[68].mxu0  ;;  %v636_v21 = vld [vmem:[%s7902_s23 + $0x2c0] sm:$0xff] }
 0x18b   : > { %3579 = vrot.lane.b32.xlu0 %v3496_v57, %s7725_s26  ;;  %2499 = vst.msk [vmem:[#allocation4 + $0x50] sm:$0xff] %vm1893_vm3, %v2459_v59  ;;  %v1821_v61 = vsel %vm1610_vm5, %v1219_v52, %v1716_v58  ;;  %v1224_v62 = vadd.f32 %v8449_v9, %v1223_v60  ;;  %v6846_v0 = vpop.f32.mrb[69].mxu0  ;;  %v2133_v16 = vld [vmem:[#allocation2 + $0xf1] sm:$0xff] }
 0x18c   : > { %7004 = vmatmul.mubr.msk.f32.gmra.mrb[174].mxu0 %vm667_vm2, %v635_v56  ;;  %v8606_v63 = vld [vmem:[#allocation3 + $0x52] sm:$0xff]  ;;  %1927 = vst.msk [vmem:[#allocation2 + $0x108] sm:$0xff] %vm1893_vm3, %v1821_v61  ;;  %v2137_v28 = vmax.f32 %v2129_v15, %v2133_v16 }
 0x18d   : > { %7006 = vmatprep.mubr.msk.f32.mxu0 %vm10277_vm0, %v7719_v6  ;;  %7065 = vmatmul.mubr.msk.f32.gmra.mrb[34].mxu1 %vm1893_vm3, %v8606_v63  ;;  %vm1611_vm6 = vcmp.ge.f32.partialorder %v1224_v62, 0.0  ;;  %v1717_v1 = vmul.f32 %v8195_v25, %v1224_v62  ;;  %v2460_v4 = vld [vmem:[#allocation3 + $0x58] sm:$0xff]  ;;  %v2130_v27 = vld [vmem:[#allocation2 + $0xf8] sm:$0xff] }
 0x18e   : > { %3099 = vrot.lane.b32.xlu1 %v3015_v2, %s10271_s18  ;;  %v1228_v22 = vpop.f32.mrb[70].mxu0  ;;  %2500 = vst.msk [vmem:[#allocation4 + $0x58] sm:$0xff] %vm1893_vm3, %v2460_v4  ;;  %v3498_v4 = vld [vmem:[#allocation3 + $0x47] sm:$0xff] }
 0x18f   : > { %2623 = vrot.lane.b32.xlu0 %v8503_v18, %s10273_s25  ;;  %v1822_v5 = vsel %vm1611_vm6, %v1224_v62, %v1717_v1  ;;  %v1229_v8 = vadd.f32 %v8449_v9, %v1228_v22  ;;  %v6849_v10 = vpop.f32.mrb[71].mxu0  ;;  %v3256_v18 = vld [vmem:[#allocation3 + $0x3d] sm:$0xff]  ;;  %v2134_v31 = vld [vmem:[#allocation2 + $0xf9] sm:$0xff] }
 0x190   : > { %7007 = vmatmul.mubr.msk.f32.gmra.mrb[176].mxu0 %vm667_vm2, %v636_v21  ;;  %v8619_v7 = vld [vmem:[#allocation3 + $0x5a] sm:$0xff]  ;;  %1928 = vst.msk [vmem:[#allocation2 + $0x110] sm:$0xff] %vm1893_vm3, %v1822_v5  ;;  %v2778_v22 = vld [vmem:[#allocation3 + $0x44] sm:$0xff] }
 0x191   : > { %7067 = vmatprep.mubr.msk.f32.mxu1 %vm1893_vm3, %v8619_v7  ;;  %v8626_v11 = vld [vmem:[#allocation3 + $0x62] sm:$0xff]  ;;  %vm1612_vm2 = vcmp.ge.f32.partialorder %v1229_v8, 0.0  ;;  %v1718_v13 = vmul.f32 %v8195_v25, %v1229_v8  ;;  %v2131_v43 = vld [vmem:[#allocation2 + $0x100] sm:$0xff] }
 0x192   : > { %7068 = vmatmul.mubr.msk.f32.gmra.mrb[36].mxu1 %vm1893_vm3, %v8626_v11  ;;  %3340 = vrot.lane.b32.xlu1 %v3256_v18, %s10281_s29  ;;  %v1233_v14 = vpop.f32.mrb[72].mxu0  ;;  %v2461_v23 = vld [vmem:[#allocation3 + $0x60] sm:$0xff] }
 0x193   : > { %2864 = vrot.lane.b32.xlu0 %v2777_v12, %s10279_s24  ;;  %v1823_v17 = vsel %vm1612_vm2, %v1229_v8, %v1718_v13  ;;  %v1234_v19 = vadd.f32 %v8449_v9, %v1233_v14  ;;  %v6852_v20 = vpop.f32.mrb[73].mxu0  ;;  %2501 = vst.msk [vmem:[#allocation4 + $0x60] sm:$0xff] %vm1893_vm3, %v2461_v23  ;;  %v2135_v46 = vld [vmem:[#allocation2 + $0x101] sm:$0xff]  ;;  %v2136_v60 = vld [vmem:[#allocation2 + $0x109] sm:$0x7]  ;;  %v3737_v23 = vld [vmem:[#allocation3 + $0x4e] sm:$0xff] }
 0x194   : > { %1929 = vst.msk [vmem:[#allocation2 + $0x118] sm:$0xff] %vm1893_vm3, %v1823_v17  ;;  %v2132_v56 = vld [vmem:[#allocation2 + $0x108] sm:$0x7]  ;;  %v2139_v57 = vmax.f32 %v2131_v43, %v2135_v46 }
 0x195   : > { %vm1613_vm7 = vcmp.ge.f32.partialorder %v1234_v19, 0.0  ;;  %v1719_v26 = vmul.f32 %v8195_v25, %v1234_v19 }
 0x196   : > { %3818 = vrot.lane.b32.xlu1 %v3736_v24, %s10275_s19  ;;  %v1238_v29 = vpop.f32.mrb[74].mxu0 }
 0x197   : > { %4057 = vrot.lane.b32.xlu0 %v8529_v33, %s7724_s21  ;;  %v2141_v32 = vld [vmem:[#allocation2 + $0x10e] sm:$0xff]  ;;  %v1824_v35 = vsel %vm1613_vm7, %v1234_v19, %v1719_v26  ;;  %v1239_v36 = vadd.f32 %v8449_v9, %v1238_v29  ;;  %v6855_v37 = vpop.f32.mrb[75].mxu0  ;;  %v2138_v33 = vmax.f32 %v2130_v27, %v2134_v31 }
 0x198   : > { %v2145_v34 = vld [vmem:[#allocation2 + $0x10f] sm:$0xff]  ;;  %1930 = vst.msk [vmem:[#allocation2 + $0x120] sm:$0xff] %vm1893_vm3, %v1824_v35 }
 0x199   : > { %v2149_v38 = vmax.f32 %v2141_v32, %v2145_v34  ;;  %vm1614_vm8 = vcmp.ge.f32.partialorder %v1239_v36, 0.0  ;;  %v1720_v41 = vmul.f32 %v8195_v25, %v1239_v36  ;;  %v3017_v37 = vld [vmem:[#allocation3 + $0x4b] sm:$0xff] }
 0x19a   : > { %3581 = vrot.lane.b32.xlu1 %v3497_v39, %s7725_s26  ;;  %v1243_v45 = vpop.f32.mrb[76].mxu0 }
 0x19b   : > { %3101 = vrot.lane.b32.xlu0 %v3016_v40, %s10271_s18  ;;  %v2153_v44 = vmax.f32 %v2137_v28, %v2149_v38  ;;  %v2142_v47 = vld [vmem:[#allocation2 + $0x116] sm:$0xff]  ;;  %v1825_v49 = vsel %vm1614_vm8, %v1239_v36, %v1720_v41  ;;  %v1244_v50 = vadd.f32 %v8449_v9, %v1243_v45  ;;  %v6858_v51 = vpop.f32.mrb[77].mxu0  ;;  %vm3211_vm8 = vcmask 523648  }
 0x19c   : > { %v2146_v48 = vld [vmem:[#allocation2 + $0x117] sm:$0xff]  ;;  %1931 = vst.msk [vmem:[#allocation2 + $0x128] sm:$0xff] %vm1893_vm3, %v1825_v49 }
 0x19d   : > { %v2150_v52 = vmax.f32 %v2142_v47, %v2146_v48  ;;  %2157 = vst.msk [vmem:[#allocation3 + $0x6c] sm:$0xff] %vm1893_vm3, %v2153_v44  ;;  %vm1615_vm9 = vcmp.ge.f32.partialorder %v1244_v50, 0.0  ;;  %v1721_v55 = vmul.f32 %v8195_v25, %v1244_v50  ;;  %v3258_v47 = vld [vmem:[#allocation3 + $0x4d] sm:$0xff] }
 0x19e   : > { %2625 = vrot.lane.b32.xlu1 %v8521_v30, %s10273_s25  ;;  %v1248_v58 = vpop.f32.mrb[78].mxu0  ;;  %v2140_v30 = vmax.f32 %v2132_v56, %v2136_v60 }
 0x19f   : > { %3342 = vrot.lane.b32.xlu0 %v3257_v54, %s10281_s29  ;;  %v2154_v59 = vmax.f32 %v2138_v33, %v2150_v52  ;;  %v2143_v61 = vld [vmem:[#allocation2 + $0x11e] sm:$0xff]  ;;  %v1826_v0 = vsel %vm1615_vm9, %v1244_v50, %v1721_v55  ;;  %v1249_v21 = vadd.f32 %v8449_v9, %v1248_v58  ;;  %v6861_v1 = vpop.f32.mrb[79].mxu0  ;;  %v2779_v58 = vld [vmem:[#allocation3 + $0x4c] sm:$0xff] }
 0x1a0   : > { %v2147_v62 = vld [vmem:[#allocation2 + $0x11f] sm:$0xff]  ;;  %1932 = vst.msk [vmem:[#allocation2 + $0x130] sm:$0xff] %vm1893_vm3, %v1826_v0 }
 0x1a1   : > { %v2151_v2 = vmax.f32 %v2143_v61, %v2147_v62  ;;  %2158 = vst.msk [vmem:[#allocation3 + $0x74] sm:$0xff] %vm1893_vm3, %v2154_v59  ;;  %vm1616_vm10 = vcmp.ge.f32.partialorder %v1249_v21, 0.0  ;;  %v1722_v5 = vmul.f32 %v8195_v25, %v1249_v21 }
 0x1a2   : > { %2866 = vrot.lane.b32.xlu1 %v2778_v22, %s10279_s24  ;;  %v1253_v8 = vpop.f32.mrb[80].mxu0  ;;  %v3738_v22 = vld [vmem:[#allocation3 + $0x56] sm:$0xff] }
 0x1a3   : > { %3583 = vrot.lane.b32.xlu0 %v3498_v4, %s7725_s26  ;;  %v2155_v10 = vmax.f32 %v2139_v57, %v2151_v2  ;;  %v2144_v12 = vld [vmem:[#allocation2 + $0x126] sm:$0x7]  ;;  %v1827_v14 = vsel %vm1616_vm10, %v1249_v21, %v1722_v5  ;;  %v1254_v15 = vadd.f32 %v8449_v9, %v1253_v8  ;;  %v6864_v16 = vpop.f32.mrb[81].mxu0  ;;  %v3499_v57 = vld [vmem:[#allocation3 + $0x4f] sm:$0xff] }
 0x1a4   : > { %v8658_v18 = vld [vmem:[#allocation3 + $0x6a] sm:$0xff]  ;;  %v2148_v13 = vld [vmem:[#allocation2 + $0x127] sm:$0x7]  ;;  %v2851_v17 = vpop.permute.xlu1 %2850  ;;  %1933 = vst.msk [vmem:[#allocation2 + $0x138] sm:$0xff] %vm1893_vm3, %v1827_v14  ;;  %v3018_v4 = vld [vmem:[#allocation3 + $0x53] sm:$0xff] }
 0x1a5   : > { %v2610_v19 = vpop.permute.xlu0 %2609  ;;  %7070 = vmatprep.mubr.msk.f32.mxu1 %vm1893_vm3, %v8658_v18  ;;  %v2152_v20 = vmax.f32 %v2144_v12, %v2148_v13  ;;  %2159 = vst.msk [vmem:[#allocation3 + $0x7c] sm:$0xff] %vm1893_vm3, %v2155_v10  ;;  %vm1617_vm14 = vcmp.ge.f32.partialorder %v1254_v15, 0.0  ;;  %v1723_v24 = vmul.f32 %v8195_v25, %v1254_v15  ;;  %v2462_v28 = vld [vmem:[#allocation3 + $0x68] sm:$0xff] }
 0x1a6   : > { %2730 = vst.msk [vmem:[#allocation4] sm:$0xff] %vm2729_vm12, %v2610_v19  ;;  %4059 = vrot.lane.b32.xlu1 %v8542_v42, %s7724_s21  ;;  %v1258_v26 = vpop.f32.mrb[82].mxu0  ;;  %v3978_v42 = vld [vmem:[#allocation3 + $0x50] sm:$0xff] }
 0x1a7   : > { %3820 = vrot.lane.b32.xlu0 %v3737_v23, %s10275_s19  ;;  %2971 = vst.msk [vmem:[#allocation4] sm:$0xff] %vm2970_vm13, %v2851_v17  ;;  %v2156_v27 = vmax.f32 %v2140_v30, %v2152_v20  ;;  %v1828_v29 = vsel %vm1617_vm14, %v1254_v15, %v1723_v24  ;;  %v1259_v31 = vadd.f32 %v8449_v9, %v1258_v26  ;;  %v6867_v32 = vpop.f32.mrb[83].mxu0  ;;  %v2161_v60 = vld [vmem:[#allocation2 + $0x12c] sm:$0xff]  ;;  %v3979_v24 = vld [vmem:[#allocation3 + $0x58] sm:$0xff]  ;;  %vm3452_vm14 = vcmask 654848  }
 0x1a8   : > { %v8672_v34 = vld [vmem:[#allocation3 + $0x72] sm:$0xff]  ;;  %2502 = vst.msk [vmem:[#allocation4 + $0x68] sm:$0xff] %vm1893_vm3, %v2462_v28  ;;  %v2853_v35 = vpop.permute.xlu1 %2852  ;;  %1934 = vst.msk [vmem:[#allocation2 + $0x140] sm:$0xff] %vm1893_vm3, %v1828_v29  ;;  %v2165_v61 = vld [vmem:[#allocation2 + $0x12d] sm:$0xff] }
 0x1a9   : > { %v2612_v36 = vpop.permute.xlu0 %2611  ;;  %7071 = vmatmul.mubr.msk.f32.gmra.mrb[38].mxu1 %vm1893_vm3, %v8672_v34  ;;  %2160 = vst.msk [vmem:[#allocation3 + $0x84] sm:$0x7] %vm2031_vm11, %v2156_v27  ;;  %vm1618_vm15 = vcmp.ge.f32.partialorder %v1259_v31, 0.0  ;;  %v1724_v38 = vmul.f32 %v8195_v25, %v1259_v31  ;;  %v2463_v40 = vld [vmem:[#allocation3 + $0x70] sm:$0xff]  ;;  %v2169_v30 = vmax.f32 %v2161_v60, %v2165_v61 }
 0x1aa   : > { %2731 = vst.msk [vmem:[#allocation4 + $0x8] sm:$0xff] %vm2729_vm12, %v2612_v36  ;;  %3103 = vrot.lane.b32.xlu1 %v3017_v37, %s10271_s18  ;;  %v1263_v39 = vpop.f32.mrb[84].mxu0  ;;  %v3259_v26 = vld [vmem:[#allocation3 + $0x55] sm:$0xff] }
 0x1ab   : > { %4061 = vrot.lane.b32.xlu0 %v3978_v42, %s7724_s21  ;;  %2972 = vst.msk [vmem:[#allocation4 + $0x8] sm:$0xff] %vm2970_vm13, %v2853_v35  ;;  %v1829_v41 = vsel %vm1618_vm15, %v1259_v31, %v1724_v38  ;;  %v1264_v43 = vadd.f32 %v8449_v9, %v1263_v39  ;;  %v6870_v44 = vpop.f32.mrb[85].mxu0  ;;  %v2162_v8 = vld [vmem:[#allocation2 + $0x134] sm:$0xff] }
 0x1ac   : > { %v8685_v33 = vld [vmem:[#allocation3 + $0x7a] sm:$0xff]  ;;  %2503 = vst.msk [vmem:[#allocation4 + $0x70] sm:$0xff] %vm1893_vm3, %v2463_v40  ;;  %v8688_v45 = vpop.permute.xlu1 %3882  ;;  %1935 = vst.msk [vmem:[#allocation2 + $0x148] sm:$0xff] %vm1893_vm3, %v1829_v41  ;;  %v2166_v12 = vld [vmem:[#allocation2 + $0x135] sm:$0xff] }
 0x1ad   : > { %v8690_v46 = vpop.permute.xlu0 %3406  ;;  %7073 = vmatprep.mubr.msk.f32.mxu1 %vm1893_vm3, %v8685_v33  ;;  %vm1619_vm1 = vcmp.ge.f32.partialorder %v1264_v43, 0.0  ;;  %v1725_v48 = vmul.f32 %v8195_v25, %v1264_v43  ;;  %v2464_v50 = vld [vmem:[#allocation3 + $0x78] sm:$0xff]  ;;  %v2170_v28 = vmax.f32 %v2162_v8, %v2166_v12 }
 0x1ae   : > { %3344 = vrot.lane.b32.xlu1 %v3258_v47, %s10281_s29  ;;  %v1268_v49 = vpop.f32.mrb[86].mxu0  ;;  %2504 = vst.msk [vmem:[#allocation4 + $0x78] sm:$0xff] %vm1893_vm3, %v2464_v50 }
 0x1af   : > { %2627 = vrot.lane.b32.xlu0 %v8589_v53, %s10273_s25  ;;  %v1830_v51 = vsel %vm1619_vm1, %v1264_v43, %v1725_v48  ;;  %v1269_v52 = vadd.f32 %v8449_v9, %v1268_v49  ;;  %v6873_v54 = vpop.f32.mrb[87].mxu0  ;;  %v2163_v29 = vld [vmem:[#allocation2 + $0x13c] sm:$0xff]  ;;  %v2164_v40 = vld [vmem:[#allocation2 + $0x144] sm:$0x7] }
 0x1b0   : > { %v8701_v55 = vpop.permute.xlu1 %4123  ;;  %1936 = vst.msk [vmem:[#allocation2 + $0x150] sm:$0xff] %vm1893_vm3, %v1830_v51  ;;  %v2167_v35 = vld [vmem:[#allocation2 + $0x13d] sm:$0xff]  ;;  %v2168_v41 = vld [vmem:[#allocation2 + $0x145] sm:$0x7] }
 0x1b1   : > { %v8703_v56 = vpop.permute.xlu0 %3647  ;;  %vm1620_vm4 = vcmp.ge.f32.partialorder %v1269_v52, 0.0  ;;  %v1726_v59 = vmul.f32 %v8195_v25, %v1269_v52  ;;  %v3500_v48 = vld [vmem:[#allocation3 + $0x57] sm:$0xff]  ;;  %v2171_v50 = vmax.f32 %v2163_v29, %v2167_v35  ;;  %v2172_v54 = vmax.f32 %v2164_v40, %v2168_v41 }
 0x1b2   : > { %3585 = vrot.lane.b32.xlu1 %v3499_v57, %s7725_s26  ;;  %v1273_v53 = vpop.f32.mrb[88].mxu0 }
 0x1b3   : > { %2868 = vrot.lane.b32.xlu0 %v2779_v58, %s10279_s24  ;;  %v1831_v62 = vsel %vm1620_vm4, %v1269_v52, %v1726_v59  ;;  %v1274_v0 = vadd.f32 %v8449_v9, %v1273_v53  ;;  %v6876_v21 = vpop.f32.mrb[89].mxu0  ;;  %vm3693_vm4 = vcmask 786048  }
 0x1b4   : > { %v8710_v1 = vpop.permute.xlu1 %3167  ;;  %1937 = vst.msk [vmem:[#allocation2 + $0x158] sm:$0xff] %vm1893_vm3, %v1831_v62 }
 0x1b5   : > { %v8712_v2 = vpop.permute.xlu0 %3884  ;;  %vm1621_vm5 = vcmp.ge.f32.partialorder %v1274_v0, 0.0  ;;  %v1727_v5 = vmul.f32 %v8195_v25, %v1274_v0 }
 0x1b6   : > { %3822 = vrot.lane.b32.xlu1 %v3738_v22, %s10275_s19  ;;  %v1278_v10 = vpop.f32.mrb[90].mxu0 }
 0x1b7   : > { %3105 = vrot.lane.b32.xlu0 %v3018_v4, %s10271_s18  ;;  %v2173_v13 = vld [vmem:[#allocation2 + $0x14a] sm:$0xff]  ;;  %v1832_v15 = vsel %vm1621_vm5, %v1274_v0, %v1727_v5  ;;  %v1279_v16 = vadd.f32 %v8449_v9, %v1278_v10  ;;  %v6879_v17 = vpop.f32.mrb[91].mxu0 }
 0x1b8   : > { %v2177_v14 = vld [vmem:[#allocation2 + $0x14b] sm:$0xff]  ;;  %v2614_v23 = vpop.permute.xlu1 %2613  ;;  %1938 = vst.msk [vmem:[#allocation2 + $0x160] sm:$0xff] %vm1893_vm3, %v1832_v15 }
 0x1b9   : > { %v2181_v19 = vmax.f32 %v2173_v13, %v2177_v14  ;;  %v8719_v20 = vpop.permute.xlu0 %4125  ;;  %2732 = vst.msk [vmem:[#allocation4 + $0x10] sm:$0xff] %vm2729_vm12, %v2614_v23  ;;  %vm1622_vm6 = vcmp.ge.f32.partialorder %v1279_v16, 0.0  ;;  %v1728_v27 = vmul.f32 %v8195_v25, %v1279_v16  ;;  %v3739_v4 = vld [vmem:[#allocation3 + $0x5e] sm:$0xff]  ;;  %v8752_v13 = vld [vmem:[%s10252_s3] ss:$0 sm:$0xff] }
 0x1ba   : > { %4063 = vrot.lane.b32.xlu1 %v3979_v24, %s7724_s21  ;;  %v1283_v32 = vpop.f32.mrb[92].mxu0  ;;  %v3980_v23 = vld [vmem:[#allocation3 + $0x60] sm:$0xff] }
 0x1bb   : > { %3346 = vrot.lane.b32.xlu0 %v3259_v26, %s10281_s29  ;;  %v2185_v31 = vmax.f32 %v2169_v30, %v2181_v19  ;;  %v2174_v36 = vld [vmem:[#allocation2 + $0x152] sm:$0xff]  ;;  %v1833_v37 = vsel %vm1622_vm6, %v1279_v16, %v1728_v27  ;;  %v1284_v38 = vadd.f32 %v8449_v9, %v1283_v32  ;;  %v6882_v39 = vpop.f32.mrb[93].mxu0  ;;  %v3019_v24 = vld [vmem:[#allocation3 + $0x5b] sm:$0xff] }
 0x1bc   : > { %v2178_v42 = vld [vmem:[#allocation2 + $0x153] sm:$0xff]  ;;  %v8729_v44 = vpop.permute.xlu1 %3408  ;;  %1939 = vst.msk [vmem:[#allocation2 + $0x168] sm:$0xff] %vm1893_vm3, %v1833_v37  ;;  %v3020_v37 = vld [vmem:[#allocation3 + $0x63] sm:$0xff] }
 0x1bd   : > { %v8727_v43 = vpop.permute.xlu0 %3169  ;;  %2189 = vst.msk [vmem:[#allocation3 + $0x87] sm:$0xff] %vm1893_vm3, %v2185_v31  ;;  %v2182_v47 = vmax.f32 %v2174_v36, %v2178_v42  ;;  %vm1623_vm2 = vcmp.ge.f32.partialorder %v1284_v38, 0.0  ;;  %v1729_v49 = vmul.f32 %v8195_v25, %v1284_v38 }
 0x1be   : > { %2629 = vrot.lane.b32.xlu1 %v8606_v63, %s10273_s25  ;;  %v1288_v51 = vpop.f32.mrb[94].mxu0  ;;  %v2780_v63 = vld [vmem:[#allocation3 + $0x54] sm:$0xff] }
 0x1bf   : > { %3587 = vrot.lane.b32.xlu0 %v3500_v48, %s7725_s26  ;;  %v2186_v52 = vmax.f32 %v2170_v28, %v2182_v47  ;;  %v2175_v57 = vld [vmem:[#allocation2 + $0x15a] sm:$0xff]  ;;  %v2176_v58 = vld [vmem:[#allocation2 + $0x162] sm:$0x7]  ;;  %v1834_v53 = vsel %vm1623_vm2, %v1284_v38, %v1729_v49  ;;  %v1289_v60 = vadd.f32 %v8449_v9, %v1288_v51  ;;  %v6885_v61 = vpop.f32.mrb[95].mxu0  ;;  %v3260_v38 = vld [vmem:[#allocation3 + $0x5d] sm:$0xff] }
 0x1c0   : > { %v2179_v59 = vld [vmem:[#allocation2 + $0x15b] sm:$0xff]  ;;  %v8740_v0 = vpop.permute.xlu1 %3886  ;;  %v2180_v21 = vld [vmem:[#allocation2 + $0x163] sm:$0x7]  ;;  %1940 = vst.msk [vmem:[#allocation2 + $0x170] sm:$0xff] %vm1893_vm3, %v1834_v53 }
 0x1c1   : > { %v8738_v62 = vpop.permute.xlu0 %3649  ;;  %v2183_v22 = vmax.f32 %v2175_v57, %v2179_v59  ;;  %2190 = vst.msk [vmem:[#allocation3 + $0x8f] sm:$0xff] %vm1893_vm3, %v2186_v52  ;;  %v2184_v5 = vmax.f32 %v2176_v58, %v2180_v21  ;;  %vm1624_vm7 = vcmp.ge.f32.partialorder %v1289_v60, 0.0  ;;  %v1730_v30 = vmul.f32 %v8195_v25, %v1289_v60  ;;  %v3501_v57 = vld [vmem:[#allocation3 + $0x5f] sm:$0xff] }
 0x1c2   : > { %2870 = vrot.lane.b32.xlu1 %v2780_v63, %s10279_s24  ;;  %v1293_v9 = vpop.f32.mrb[96].mxu0 }
 0x1c3   : > { %3824 = vrot.lane.b32.xlu0 %v3739_v4, %s10275_s19  ;;  %v2187_v8 = vmax.f32 %v2171_v50, %v2183_v22  ;;  %v1835_v12 = vsel %vm1624_vm7, %v1289_v60, %v1730_v30  ;;  %v1294_v14 = vadd.f32 %v8752_v13, %v1293_v9  ;;  %v6888_v15 = vpop.f32.mrb[97].mxu0  ;;  %v2188_v16 = vmax.f32 %v2172_v54, %v2184_v5  ;;  %v2193_v60 = vld [vmem:[#allocation2 + $0x168] sm:$0xff] }
 0x1c4   : > { %v8747_v10 = vld [vmem:[#allocation3 + $0x82] sm:$0xff]  ;;  %v8755_v17 = vpop.permute.xlu1 %3410  ;;  %1941 = vst.msk [vmem:[#allocation2 + $0x178] sm:$0xff] %vm1893_vm3, %v1835_v12 }
 0x1c5   : > { %v3092_v19 = vpop.permute.xlu0 %3091  ;;  %7074 = vmatmul.mubr.msk.f32.gmra.mrb[40].mxu1 %vm1893_vm3, %v8747_v10  ;;  %2191 = vst.msk [vmem:[#allocation3 + $0x97] sm:$0xff] %vm1893_vm3, %v2187_v8  ;;  %vm1625_vm9 = vcmp.ge.f32.partialorder %v1294_v14, 0.0  ;;  %v1731_v26 = vmul.f32 %v8195_v25, %v1294_v14  ;;  %v2465_v27 = vld [vmem:[#allocation3 + $0x80] sm:$0xff] }
 0x1c6   : > { %3212 = vst.msk [vmem:[#allocation4] sm:$0xff] %vm3211_vm8, %v3092_v19  ;;  %3107 = vrot.lane.b32.xlu1 %v3019_v24, %s10271_s18  ;;  %v1298_v28 = vpop.f32.mrb[98].mxu0 }
 0x1c7   : > { %2192 = vst.msk [vmem:[#allocation3 + $0x9f] sm:$0x7] %vm2031_vm11, %v2188_v16  ;;  %4065 = vrot.lane.b32.xlu0 %v3980_v23, %s7724_s21  ;;  %v1836_v29 = vsel %vm1625_vm9, %v1294_v14, %v1731_v26  ;;  %v1299_v31 = vadd.f32 %v8752_v13, %v1298_v28  ;;  %v6891_v35 = vpop.f32.mrb[99].mxu0  ;;  %v2197_v61 = vld [vmem:[#allocation2 + $0x169] sm:$0xff] }
 0x1c8   : > { %2505 = vst.msk [vmem:[#allocation4 + $0x80] sm:$0xff] %vm1893_vm3, %v2465_v27  ;;  %v8768_v32 = vld [vmem:[#allocation3 + $0x8a] sm:$0xff]  ;;  %v8770_v36 = vpop.permute.xlu1 %3651  ;;  %1942 = vst.msk [vmem:[#allocation2 + $0x180] sm:$0xff] %vm1893_vm3, %v1836_v29  ;;  %v2201_v12 = vmax.f32 %v2193_v60, %v2197_v61 }
 0x1c9   : > { %v2616_v42 = vpop.permute.xlu0 %2615  ;;  %7076 = vmatprep.mubr.msk.f32.mxu1 %vm1893_vm3, %v8768_v32  ;;  %vm1626_vm10 = vcmp.ge.f32.partialorder %v1299_v31, 0.0  ;;  %v1732_v39 = vmul.f32 %v8195_v25, %v1299_v31  ;;  %v2466_v41 = vld [vmem:[#allocation3 + $0x88] sm:$0xff] }
 0x1ca   : > { %2733 = vst.msk [vmem:[#allocation4 + $0x18] sm:$0xff] %vm2729_vm12, %v2616_v42  ;;  %3348 = vrot.lane.b32.xlu1 %v3260_v38, %s10281_s29  ;;  %v1303_v40 = vpop.f32.mrb[100].mxu0  ;;  %v2194_v8 = vld [vmem:[#allocation2 + $0x170] sm:$0xff] }
 0x1cb   : > { %3109 = vrot.lane.b32.xlu0 %v3020_v37, %s10271_s18  ;;  %v1837_v47 = vsel %vm1626_vm10, %v1299_v31, %v1732_v39  ;;  %v1304_v49 = vadd.f32 %v8752_v13, %v1303_v40  ;;  %v6894_v50 = vpop.f32.mrb[101].mxu0  ;;  %2506 = vst.msk [vmem:[#allocation4 + $0x88] sm:$0xff] %vm1893_vm3, %v2466_v41  ;;  %v2198_v15 = vld [vmem:[#allocation2 + $0x171] sm:$0xff] }
 0x1cc   : > { %v4283_v48 = vld [vmem:[#allocation3 + $0x92] sm:$0xff]  ;;  %v2855_v51 = vpop.permute.xlu1 %2854  ;;  %1943 = vst.msk [vmem:[#allocation2 + $0x188] sm:$0xff] %vm1893_vm3, %v1837_v47  ;;  %v3261_v31 = vld [vmem:[#allocation3 + $0x65] sm:$0xff]  ;;  %v2202_v37 = vmax.f32 %v2194_v8, %v2198_v15 }
 0x1cd   : > { %v3333_v52 = vpop.permute.xlu0 %3332  ;;  %7077 = vmatmul.mubr.msk.f32.gmra.mrb[42].mxu1 %vm1893_vm3, %v4283_v48  ;;  %2973 = vst.msk [vmem:[#allocation4 + $0x10] sm:$0xff] %vm2970_vm13, %v2855_v51  ;;  %vm1627_vm15 = vcmp.ge.f32.partialorder %v1304_v49, 0.0  ;;  %v1733_v58 = vmul.f32 %v8195_v25, %v1304_v49  ;;  %v2467_v53 = vld [vmem:[#allocation3 + $0x90] sm:$0xff] }
 0x1ce   : > { %v4284_v54 = vld [vmem:[#allocation3 + $0x9a] sm:$0xff]  ;;  %3453 = vst.msk [vmem:[#allocation4] sm:$0xff] %vm3452_vm14, %v3333_v52  ;;  %3589 = vrot.lane.b32.xlu1 %v3501_v57, %s7725_s26  ;;  %v1308_v59 = vpop.f32.mrb[102].mxu0  ;;  %v2195_v42 = vld [vmem:[#allocation2 + $0x178] sm:$0xff]  ;;  %v3740_v57 = vld [vmem:[#allocation3 + $0x66] sm:$0xff] }
 0x1cf   : > { %7079 = vmatprep.mubr.msk.f32.mxu1 %vm1893_vm3, %v4284_v54  ;;  %2631 = vrot.lane.b32.xlu0 %v8619_v7, %s10273_s25  ;;  %v1838_v21 = vsel %vm1627_vm15, %v1304_v49, %v1733_v58  ;;  %v1309_v22 = vadd.f32 %v8752_v13, %v1308_v59  ;;  %v6897_v63 = vpop.f32.mrb[103].mxu0  ;;  %2507 = vst.msk [vmem:[#allocation4 + $0x90] sm:$0xff] %vm1893_vm3, %v2467_v53  ;;  %v2468_v30 = vld [vmem:[#allocation3 + $0x98] sm:$0xff]  ;;  %v3502_v58 = vld [vmem:[#allocation3 + $0x67] sm:$0xff]  ;;  %vm3934_vm15 = vcmask 917248  }
 0x1d0   : > { %v3094_v4 = vpop.permute.xlu1 %3093  ;;  %1944 = vst.msk [vmem:[#allocation2 + $0x190] sm:$0xff] %vm1893_vm3, %v1838_v21  ;;  %v2781_v7 = vld [vmem:[#allocation3 + $0x5c] sm:$0xff]  ;;  %2508 = vst.msk [vmem:[#allocation4 + $0x98] sm:$0xff] %vm1893_vm3, %v2468_v30  ;;  %v2199_v40 = vld [vmem:[#allocation2 + $0x179] sm:$0xff] }
 0x1d1   : > { %v2857_v5 = vpop.permute.xlu0 %2856  ;;  %3213 = vst.msk [vmem:[#allocation4 + $0x8] sm:$0xff] %vm3211_vm8, %v3094_v4  ;;  %vm1628_vm1 = vcmp.ge.f32.partialorder %v1309_v22, 0.0  ;;  %v1734_v9 = vmul.f32 %v8195_v25, %v1309_v22  ;;  %v2196_v53 = vld [vmem:[#allocation2 + $0x180] sm:$0x7]  ;;  %v2203_v60 = vmax.f32 %v2195_v42, %v2199_v40 }
 0x1d2   : > { %2974 = vst.msk [vmem:[#allocation4 + $0x18] sm:$0xff] %vm2970_vm13, %v2857_v5  ;;  %2633 = vrot.lane.b32.xlu1 %v8626_v11, %s10273_s25  ;;  %v1313_v14 = vpop.f32.mrb[104].mxu0  ;;  %v2782_v11 = vld [vmem:[#allocation3 + $0x64] sm:$0xff] }
 0x1d3   : > { %2872 = vrot.lane.b32.xlu0 %v2781_v7, %s10279_s24  ;;  %v2205_v16 = vld [vmem:[#allocation2 + $0x186] sm:$0xff]  ;;  %v1839_v23 = vsel %vm1628_vm1, %v1309_v22, %v1734_v9  ;;  %v1314_v24 = vadd.f32 %v8752_v13, %v1313_v14  ;;  %v6900_v26 = vpop.f32.mrb[105].mxu0  ;;  %v2200_v22 = vld [vmem:[#allocation2 + $0x181] sm:$0x7]  ;;  %v3981_v14 = vld [vmem:[#allocation3 + $0x68] sm:$0xff] }
 0x1d4   : > { %v2209_v19 = vld [vmem:[#allocation2 + $0x187] sm:$0xff]  ;;  %v3574_v27 = vpop.permute.xlu1 %3573  ;;  %1945 = vst.msk [vmem:[#allocation2 + $0x198] sm:$0xff] %vm1893_vm3, %v1839_v23 }
 0x1d5   : > { %v8801_v28 = vpop.permute.xlu0 %3888  ;;  %v2213_v29 = vmax.f32 %v2205_v16, %v2209_v19  ;;  %3694 = vst.msk [vmem:[#allocation4] sm:$0xff] %vm3693_vm4, %v3574_v27  ;;  %vm1629_vm5 = vcmp.ge.f32.partialorder %v1314_v24, 0.0  ;;  %v1735_v35 = vmul.f32 %v8195_v25, %v1314_v24  ;;  %v2204_v16 = vmax.f32 %v2196_v53, %v2200_v22 }
 0x1d6   : > { %2874 = vrot.lane.b32.xlu1 %v2782_v11, %s10279_s24  ;;  %v1318_v38 = vpop.f32.mrb[106].mxu0 }
 0x1d7   : > { %3350 = vrot.lane.b32.xlu0 %v3261_v31, %s10281_s29  ;;  %v2217_v39 = vmax.f32 %v2201_v12, %v2213_v29  ;;  %v2206_v41 = vld [vmem:[#allocation2 + $0x18e] sm:$0xff]  ;;  %v1840_v48 = vsel %vm1629_vm5, %v1314_v24, %v1735_v35  ;;  %v1319_v49 = vadd.f32 %v8752_v13, %v1318_v38  ;;  %v6903_v50 = vpop.f32.mrb[107].mxu0 }
 0x1d8   : > { %v2210_v47 = vld [vmem:[#allocation2 + $0x18f] sm:$0xff]  ;;  %v2618_v51 = vpop.permute.xlu1 %2617  ;;  %1946 = vst.msk [vmem:[#allocation2 + $0x1a0] sm:$0xff] %vm1893_vm3, %v1840_v48 }
 0x1d9   : > { %v3335_v52 = vpop.permute.xlu0 %3334  ;;  %v2214_v54 = vmax.f32 %v2206_v41, %v2210_v47  ;;  %2221 = vst.msk [vmem:[#allocation3 + $0xa2] sm:$0xff] %vm1893_vm3, %v2217_v39  ;;  %vm1630_vm6 = vcmp.ge.f32.partialorder %v1319_v49, 0.0  ;;  %v1736_v59 = vmul.f32 %v8195_v25, %v1319_v49  ;;  %v2783_v38 = vld [vmem:[#allocation3 + $0x6c] sm:$0xff] }
 0x1da   : > { %2734 = vst.msk [vmem:[#allocation4 + $0x20] sm:$0xff] %vm2729_vm12, %v2618_v51  ;;  %3826 = vrot.lane.b32.xlu1 %v3740_v57, %s10275_s19  ;;  %v1323_v61 = vpop.f32.mrb[108].mxu0  ;;  %v3741_v57 = vld [vmem:[#allocation3 + $0x6e] sm:$0xff] }
 0x1db   : > { %3454 = vst.msk [vmem:[#allocation4 + $0x8] sm:$0xff] %vm3452_vm14, %v3335_v52  ;;  %3591 = vrot.lane.b32.xlu0 %v3502_v58, %s7725_s26  ;;  %v2218_v21 = vmax.f32 %v2202_v37, %v2214_v54  ;;  %v2207_v63 = vld [vmem:[#allocation2 + $0x196] sm:$0xff]  ;;  %v1841_v5 = vsel %vm1630_vm6, %v1319_v49, %v1736_v59  ;;  %v1324_v30 = vadd.f32 %v8752_v13, %v1323_v61  ;;  %v6906_v7 = vpop.f32.mrb[109].mxu0 }
 0x1dc   : > { %v2211_v4 = vld [vmem:[#allocation2 + $0x197] sm:$0xff]  ;;  %v8817_v9 = vpop.permute.xlu1 %4127  ;;  %1947 = vst.msk [vmem:[#allocation2 + $0x1a8] sm:$0xff] %vm1893_vm3, %v1841_v5 }
 0x1dd   : > { %v3576_v8 = vpop.permute.xlu0 %3575  ;;  %v2215_v12 = vmax.f32 %v2207_v63, %v2211_v4  ;;  %2222 = vst.msk [vmem:[#allocation3 + $0xaa] sm:$0xff] %vm1893_vm3, %v2218_v21  ;;  %vm1631_vm2 = vcmp.ge.f32.partialorder %v1324_v30, 0.0  ;;  %v1737_v15 = vmul.f32 %v8195_v25, %v1324_v30  ;;  %v3262_v58 = vld [vmem:[#allocation3 + $0x6d] sm:$0xff] }
 0x1de   : > { %3695 = vst.msk [vmem:[#allocation4 + $0x8] sm:$0xff] %vm3693_vm4, %v3576_v8  ;;  %4067 = vrot.lane.b32.xlu1 %v3981_v14, %s7724_s21  ;;  %v1328_v19 = vpop.f32.mrb[110].mxu0  ;;  %v3982_v7 = vld [vmem:[#allocation3 + $0x70] sm:$0xff] }
 0x1df   : > { %2635 = vrot.lane.b32.xlu0 %v8658_v18, %s10273_s25  ;;  %v2219_v23 = vmax.f32 %v2203_v60, %v2215_v12  ;;  %v2208_v24 = vld [vmem:[#allocation2 + $0x19e] sm:$0x7]  ;;  %v1842_v27 = vsel %vm1631_vm2, %v1324_v30, %v1737_v15  ;;  %v1329_v29 = vadd.f32 %v8752_v13, %v1328_v19  ;;  %v6909_v11 = vpop.f32.mrb[111].mxu0  ;;  %v3021_v18 = vld [vmem:[#allocation3 + $0x6b] sm:$0xff] }
 0x1e0   : > { %v2212_v26 = vld [vmem:[#allocation2 + $0x19f] sm:$0x7]  ;;  %v4285_v31 = vld [vmem:[#allocation3 + $0xa2] sm:$0xff]  ;;  %v3096_v35 = vpop.permute.xlu1 %3095  ;;  %1948 = vst.msk [vmem:[#allocation2 + $0x1b0] sm:$0xff] %vm1893_vm3, %v1842_v27  ;;  %v3503_v8 = vld [vmem:[#allocation3 + $0x6f] sm:$0xff] }
 0x1e1   : > { %v2620_v42 = vpop.permute.xlu0 %2619  ;;  %v2216_v37 = vmax.f32 %v2208_v24, %v2212_v26  ;;  %7080 = vmatmul.mubr.msk.f32.gmra.mrb[44].mxu1 %vm1893_vm3, %v4285_v31  ;;  %2223 = vst.msk [vmem:[#allocation3 + $0xb2] sm:$0xff] %vm1893_vm3, %v2219_v23  ;;  %vm1632_vm7 = vcmp.ge.f32.partialorder %v1329_v29, 0.0  ;;  %v1738_v39 = vmul.f32 %v8195_v25, %v1329_v29  ;;  %v2469_v47 = vld [vmem:[#allocation3 + $0xa0] sm:$0xff]  ;;  %v3022_v26 = vld [vmem:[#allocation3 + $0x73] sm:$0xff] }
 0x1e2   : > { %3214 = vst.msk [vmem:[#allocation4 + $0x10] sm:$0xff] %vm3211_vm8, %v3096_v35  ;;  %3111 = vrot.lane.b32.xlu1 %v3021_v18, %s10271_s18  ;;  %v1333_v40 = vpop.f32.mrb[112].mxu0 }
 0x1e3   : > { %2735 = vst.msk [vmem:[#allocation4 + $0x28] sm:$0xff] %vm2729_vm12, %v2620_v42  ;;  %2876 = vrot.lane.b32.xlu0 %v2783_v38, %s10279_s24  ;;  %v2220_v41 = vmax.f32 %v2204_v16, %v2216_v37  ;;  %v1843_v48 = vsel %vm1632_vm7, %v1329_v29, %v1738_v39  ;;  %v1334_v49 = vadd.f32 %v8752_v13, %v1333_v40  ;;  %v6912_v50 = vpop.f32.mrb[113].mxu0  ;;  %v2225_v11 = vld [vmem:[#allocation2 + $0x1a4] sm:$0xff]  ;;  %v2784_v39 = vld [vmem:[#allocation3 + $0x74] sm:$0xff]  ;;  %vm4175_vm7 = vcmask 1048448  }
 0x1e4   : > { %v4286_v51 = vld [vmem:[#allocation3 + $0xaa] sm:$0xff]  ;;  %2509 = vst.msk [vmem:[#allocation4 + $0xa0] sm:$0xff] %vm1893_vm3, %v2469_v47  ;;  %v3337_v52 = vpop.permute.xlu1 %3336  ;;  %1949 = vst.msk [vmem:[#allocation2 + $0x1b8] sm:$0xff] %vm1893_vm3, %v1843_v48  ;;  %v2229_v31 = vld [vmem:[#allocation2 + $0x1a5] sm:$0xff] }
 0x1e5   : > { %v2861_v54 = vpop.permute.xlu0 %2860  ;;  %7082 = vmatprep.mubr.msk.f32.mxu1 %vm1893_vm3, %v4286_v51  ;;  %2224 = vst.msk [vmem:[#allocation3 + $0xba] sm:$0x7] %vm2031_vm11, %v2220_v41  ;;  %vm1633_vm9 = vcmp.ge.f32.partialorder %v1334_v49, 0.0  ;;  %v1739_v59 = vmul.f32 %v8195_v25, %v1334_v49  ;;  %v2470_v60 = vld [vmem:[#allocation3 + $0xa8] sm:$0xff]  ;;  %v3263_v40 = vld [vmem:[#allocation3 + $0x75] sm:$0xff]  ;;  %v4257_v47 = vld [vmem:[%s10253_s4 + $0x8] sm:$0xff]  ;;  %v2233_v48 = vmax.f32 %v2225_v11, %v2229_v31 }
 0x1e6   : > { %3455 = vst.msk [vmem:[#allocation4 + $0x10] sm:$0xff] %vm3452_vm14, %v3337_v52  ;;  %3352 = vrot.lane.b32.xlu1 %v3262_v58, %s10281_s29  ;;  %v1338_v53 = vpop.f32.mrb[114].mxu0  ;;  %v4256_v41 = vld [vmem:[%s10253_s4] sm:$0xff] }
 0x1e7   : > { %2976 = vst.msk [vmem:[#allocation4 + $0x28] sm:$0xff] %vm2970_vm13, %v2861_v54  ;;  %3828 = vrot.lane.b32.xlu0 %v3741_v57, %s10275_s19  ;;  %v1844_v61 = vsel %vm1633_vm9, %v1334_v49, %v1739_v59  ;;  %v1339_v21 = vadd.f32 %v8752_v13, %v1338_v53  ;;  %v6915_v22 = vpop.f32.mrb[115].mxu0  ;;  %v2226_v49 = vld [vmem:[#allocation2 + $0x1ac] sm:$0xff]  ;;  %v7379_v51 = vpack.c.bf16 %v4257_v47, %v4256_v41 }
 0x1e8   : > { %v4287_v63 = vld [vmem:[#allocation3 + $0xb2] sm:$0xff]  ;;  %2510 = vst.msk [vmem:[#allocation4 + $0xa8] sm:$0xff] %vm1893_vm3, %v2470_v60  ;;  %v2859_v4 = vpop.permute.xlu1 %2858  ;;  %1950 = vst.msk [vmem:[#allocation2 + $0x1c0] sm:$0xff] %vm1893_vm3, %v1844_v61  ;;  %v2230_v52 = vld [vmem:[#allocation2 + $0x1ad] sm:$0xff] }
 0x1e9   : > { %v8847_v5 = vpop.permute.xlu0 %4129  ;;  %7083 = vmatmul.mubr.msk.f32.gmra.mrb[46].mxu1 %vm1893_vm3, %v4287_v63  ;;  %v8851_v30 = vld [vmem:[#allocation3 + $0xb0] sm:$0xff]  ;;  %2975 = vst.msk [vmem:[#allocation4 + $0x20] sm:$0xff] %vm2970_vm13, %v2859_v4  ;;  %vm1634_vm10 = vcmp.ge.f32.partialorder %v1339_v21, 0.0  ;;  %v1740_v12 = vmul.f32 %v8195_v25, %v1339_v21  ;;  %7380 = vmatprep.subr.bf16.mxu1 %v7379_v51  ;;  %v4261_v41 = vld [vmem:[%s10253_s4 + $0x28] sm:$0xff] }
 0x1ea   : > { %2511 = vst.msk [vmem:[#allocation4 + $0xb0] sm:$0xff] %vm1893_vm3, %v8851_v30  ;;  %3593 = vrot.lane.b32.xlu1 %v3503_v8, %s7725_s26  ;;  %v1343_v14 = vpop.f32.mrb[116].mxu0  ;;  %v3504_v63 = vld [vmem:[#allocation3 + $0x77] sm:$0xff]  ;;  %7382 = vmatpush3.bf16.msra.mxu1 %v7379_v51 }
 0x1eb   : > { %4069 = vrot.lane.b32.xlu0 %v3982_v7, %s7724_s21  ;;  %v1845_v15 = vsel %vm1634_vm10, %v1339_v21, %v1740_v12  ;;  %v1344_v16 = vadd.f32 %v8752_v13, %v1343_v14  ;;  %v6918_v19 = vpop.f32.mrb[117].mxu0  ;;  %v3742_v21 = vld [vmem:[#allocation3 + $0x76] sm:$0xff]  ;;  %v4258_v7 = vld [vmem:[%s10253_s4 + $0x10] sm:$0xff]  ;;  %v2234_v12 = vmax.f32 %v2226_v49, %v2230_v52 }
 0x1ec   : > { %v3815_v24 = vpop.permute.xlu1 %3814  ;;  %1951 = vst.msk [vmem:[#allocation2 + $0x1c8] sm:$0xff] %vm1893_vm3, %v1845_v15  ;;  %v4259_v8 = vld [vmem:[%s10253_s4 + $0x18] sm:$0xff] }
 0x1ed   : > { %v8860_v23 = vpop.permute.xlu0 %3890  ;;  %3935 = vst.msk [vmem:[#allocation4] sm:$0xff] %vm3934_vm15, %v3815_v24  ;;  %vm1635_vm1 = vcmp.ge.f32.partialorder %v1344_v16, 0.0  ;;  %v1741_v27 = vmul.f32 %v8195_v25, %v1344_v16  ;;  %v2227_v14 = vld [vmem:[#allocation2 + $0x1b4] sm:$0xff]  ;;  %v7383_v19 = vpack.c.bf16 %v4259_v8, %v4258_v7 }
 0x1ee   : > { %2637 = vrot.lane.b32.xlu1 %v8672_v34, %s10273_s25  ;;  %v1348_v29 = vpop.f32.mrb[118].mxu0  ;;  %v2231_v24 = vld [vmem:[#allocation2 + $0x1b5] sm:$0xff] }
 0x1ef   : > { %3113 = vrot.lane.b32.xlu0 %v3022_v26, %s10271_s18  ;;  %v1846_v35 = vsel %vm1635_vm1, %v1344_v16, %v1741_v27  ;;  %v1349_v42 = vadd.f32 %v8752_v13, %v1348_v29  ;;  %v6921_v37 = vpop.f32.mrb[119].mxu0  ;;  %7384 = vmatprep.subr.bf16.mxu1 %v7383_v19  ;;  %v2235_v47 = vmax.f32 %v2227_v14, %v2231_v24  ;;  %v4262_v8 = vld [vmem:[%s10253_s4 + $0x30] sm:$0xff]  ;;  %s10295_s18 = smov 16  }
 0x1f0   : > { %v3578_v18 = vpop.permute.xlu1 %3577  ;;  %1952 = vst.msk [vmem:[#allocation2 + $0x1d0] sm:$0xff] %vm1893_vm3, %v1846_v35  ;;  %v2228_v37 = vld [vmem:[#allocation2 + $0x1bc] sm:$0x7]  ;;  %7386 = vmatpush3.bf16.msra.mxu1 %v7383_v19 }
 0x1f1   : > { %v3098_v38 = vpop.permute.xlu0 %3097  ;;  %3696 = vst.msk [vmem:[#allocation4 + $0x10] sm:$0xff] %vm3693_vm4, %v3578_v18  ;;  %vm1636_vm5 = vcmp.ge.f32.partialorder %v1349_v42, 0.0  ;;  %v1742_v34 = vmul.f32 %v8195_v25, %v1349_v42  ;;  %v2232_v18 = vld [vmem:[#allocation2 + $0x1bd] sm:$0x7] }
 0x1f2   : > { %3215 = vst.msk [vmem:[#allocation4 + $0x18] sm:$0xff] %vm3211_vm8, %v3098_v38  ;;  %2878 = vrot.lane.b32.xlu1 %v2784_v39, %s10279_s24  ;;  %v1353_v50 = vpop.f32.mrb[120].mxu0  ;;  %v3983_v39 = vld [vmem:[#allocation3 + $0x78] sm:$0xff]  ;;  %v2236_v51 = vmax.f32 %v2228_v37, %v2232_v18 }
 0x1f3   : > { %3354 = vrot.lane.b32.xlu0 %v3263_v40, %s10281_s29  ;;  %v2237_v54 = vld [vmem:[#allocation2 + $0x1c2] sm:$0xff]  ;;  %v1847_v58 = vsel %vm1636_vm5, %v1349_v42, %v1742_v34  ;;  %v1354_v59 = vadd.f32 %v8752_v13, %v1353_v50  ;;  %v6924_v53 = vpop.f32.mrb[121].mxu0 }
 0x1f4   : > { %v2241_v57 = vld [vmem:[#allocation2 + $0x1c3] sm:$0xff]  ;;  %v2622_v61 = vpop.permute.xlu1 %2621  ;;  %1953 = vst.msk [vmem:[#allocation2 + $0x1d8] sm:$0xff] %vm1893_vm3, %v1847_v58 }
 0x1f5   : > { %v3339_v60 = vpop.permute.xlu0 %3338  ;;  %v2245_v22 = vmax.f32 %v2237_v54, %v2241_v57  ;;  %2736 = vst.msk [vmem:[#allocation4 + $0x30] sm:$0xff] %vm2729_vm12, %v2622_v61  ;;  %vm1637_vm6 = vcmp.ge.f32.partialorder %v1354_v59, 0.0  ;;  %v1743_v4 = vmul.f32 %v8195_v25, %v1354_v59  ;;  %v4260_v34 = vld [vmem:[%s10253_s4 + $0x20] sm:$0xff] }
 0x1f6   : > { %3456 = vst.msk [vmem:[#allocation4 + $0x18] sm:$0xff] %vm3452_vm14, %v3339_v60  ;;  %3830 = vrot.lane.b32.xlu1 %v3742_v21, %s10275_s19  ;;  %v1358_v15 = vpop.f32.mrb[122].mxu0  ;;  %v7387_v50 = vpack.c.bf16 %v4261_v41, %v4260_v34  ;;  %v3023_v21 = vld [vmem:[#allocation3 + $0x7b] sm:$0xff] }
 0x1f7   : > { %3595 = vrot.lane.b32.xlu0 %v3504_v63, %s7725_s26  ;;  %v2249_v16 = vmax.f32 %v2233_v48, %v2245_v22  ;;  %v2238_v26 = vld [vmem:[#allocation2 + $0x1ca] sm:$0xff]  ;;  %v1848_v29 = vsel %vm1637_vm6, %v1354_v59, %v1743_v4  ;;  %v1359_v11 = vadd.f32 %v8752_v13, %v1358_v15  ;;  %v6927_v31 = vpop.f32.mrb[123].mxu0 }
 0x1f8   : > { %v2242_v27 = vld [vmem:[#allocation2 + $0x1cb] sm:$0xff]  ;;  %v2863_v35 = vpop.permute.xlu1 %2862  ;;  %1954 = vst.msk [vmem:[#allocation2 + $0x1e0] sm:$0xff] %vm1893_vm3, %v1848_v29  ;;  %7388 = vmatprep.subr.bf16.mxu1 %v7387_v50 }
 0x1f9   : > { %v3817_v42 = vpop.permute.xlu0 %3816  ;;  %v2246_v38 = vmax.f32 %v2238_v26, %v2242_v27  ;;  %2253 = vst.msk [vmem:[#allocation3 + $0xbd] sm:$0xff] %vm1893_vm3, %v2249_v16  ;;  %vm1638_vm2 = vcmp.ge.f32.partialorder %v1359_v11, 0.0  ;;  %v1744_v40 = vmul.f32 %v8195_v25, %v1359_v11  ;;  %7390 = vmatpush3.bf16.msra.mxu1 %v7387_v50  ;;  %v3264_v37 = vld [vmem:[#allocation3 + $0x7d] sm:$0xff] }
 0x1fa   : > { %2977 = vst.msk [vmem:[#allocation4 + $0x30] sm:$0xff] %vm2970_vm13, %v2863_v35  ;;  %4071 = vrot.lane.b32.xlu1 %v3983_v39, %s7724_s21  ;;  %v1363_v48 = vpop.f32.mrb[124].mxu0 }
 0x1fb   : > { %3936 = vst.msk [vmem:[#allocation4 + $0x8] sm:$0xff] %vm3934_vm15, %v3817_v42  ;;  %2639 = vrot.lane.b32.xlu0 %v8685_v33, %s10273_s25  ;;  %v2250_v49 = vmax.f32 %v2234_v12, %v2246_v38  ;;  %v2239_v52 = vld [vmem:[#allocation2 + $0x1d2] sm:$0xff]  ;;  %v2240_v54 = vld [vmem:[#allocation2 + $0x1da] sm:$0x7]  ;;  %v1849_v58 = vsel %vm1638_vm2, %v1359_v11, %v1744_v40  ;;  %v1364_v59 = vadd.f32 %v8752_v13, %v1363_v48  ;;  %v6930_v53 = vpop.f32.mrb[125].mxu0  ;;  %v2785_v33 = vld [vmem:[#allocation3 + $0x7c] sm:$0xff] }
 0x1fc   : > { %v2243_v57 = vld [vmem:[#allocation2 + $0x1d3] sm:$0xff]  ;;  %v4056_v60 = vpop.permute.xlu1 %4055  ;;  %v2244_v22 = vld [vmem:[#allocation2 + $0x1db] sm:$0x7]  ;;  %1955 = vst.msk [vmem:[#allocation2 + $0x1e8] sm:$0xff] %vm1893_vm3, %v1849_v58  ;;  %s10294_s25 = smov 48   ;;  %v3743_v42 = vld [vmem:[#allocation3 + $0x7e] sm:$0xff] }
 0x1fd   : > { %v3580_v61 = vpop.permute.xlu0 %3579  ;;  %v2247_v63 = vmax.f32 %v2239_v52, %v2243_v57  ;;  %2254 = vst.msk [vmem:[#allocation3 + $0xc5] sm:$0xff] %vm1893_vm3, %v2250_v49  ;;  %v2248_v4 = vmax.f32 %v2240_v54, %v2244_v22  ;;  %vm1639_vm9 = vcmp.ge.f32.partialorder %v1364_v59, 0.0  ;;  %v1745_v7 = vmul.f32 %v8195_v25, %v1364_v59  ;;  %v4263_v12 = vld [vmem:[%s10253_s4 + $0x38] sm:$0xff]  ;;  %v4264_v38 = vld [vmem:[%s10253_s4 + $0x40] sm:$0xff]  ;;  %v4265_v40 = vld [vmem:[%s10253_s4 + $0x48] sm:$0xff] }
 0x1fe   : > { %4176 = vst.msk [vmem:[#allocation4] sm:$0xff] %vm4175_vm7, %v4056_v60  ;;  %3115 = vrot.lane.b32.xlu1 %v3023_v21, %s10294_s25  ;;  %v1368_v14 = vpop.f32.mrb[126].mxu0  ;;  %v7391_v16 = vpack.c.bf16 %v4263_v12, %v4262_v8  ;;  %v7395_v49 = vpack.c.bf16 %v4265_v40, %v4264_v38  ;;  %v3505_v54 = vld [vmem:[#allocation3 + $0x7f] sm:$0xff]  ;;  %v4266_v53 = vld [vmem:[%s10253_s4 + $0x50] sm:$0xff]  ;;  %v4267_v60 = vld [vmem:[%s10253_s4 + $0x58] sm:$0xff] }
 0x1ff   : > { %3697 = vst.msk [vmem:[#allocation4 + $0x18] sm:$0xff] %vm3693_vm4, %v3580_v61  ;;  %2880 = vrot.lane.b32.xlu0 %v2785_v33, %s10279_s24  ;;  %v2251_v15 = vmax.f32 %v2235_v47, %v2247_v63  ;;  %v1850_v19 = vsel %vm1639_vm9, %v1364_v59, %v1745_v7  ;;  %v1369_v24 = vadd.f32 %v8752_v13, %v1368_v14  ;;  %v6933_v26 = vpop.f32.mrb[127].mxu0  ;;  %v3984_v57 = vld [vmem:[#allocation3 + $0x80] sm:$0xff] }
 0x200   : > { %v4288_v27 = vld [vmem:[#allocation3 + $0xba] sm:$0xff]  ;;  %v2252_v29 = vmax.f32 %v2236_v51, %v2248_v4  ;;  %v3100_v11 = vpop.permute.xlu1 %3099  ;;  %1956 = vst.msk [vmem:[#allocation2 + $0x1f0] sm:$0xff] %vm1893_vm3, %v1850_v19  ;;  %7392 = vmatprep.subr.bf16.mxu1 %v7391_v16  ;;  %v7399_v33 = vpack.c.bf16 %v4267_v60, %v4266_v53  ;;  %v3744_v12 = vld [vmem:[#allocation3 + $0x86] sm:$0xff] }
 0x201   : > { %v2624_v31 = vpop.permute.xlu0 %2623  ;;  %7085 = vmatprep.mubr.msk.f32.mxu1 %vm1893_vm3, %v4288_v27  ;;  %2255 = vst.msk [vmem:[#allocation3 + $0xcd] sm:$0xff] %vm1893_vm3, %v2251_v15  ;;  %v8928_v35 = vld [vmem:[#allocation3 + $0xb8] sm:$0xff]  ;;  %vm1640_vm10 = vcmp.ge.f32.partialorder %v1369_v24, 0.0  ;;  %v1746_v18 = vmul.f32 %v8195_v25, %v1369_v24  ;;  %7394 = vmatpush3.bf16.msra.mxu1 %v7391_v16  ;;  %v3024_v14 = vld [vmem:[#allocation3 + $0x83] sm:$0xff] }
 0x202   : > { %3216 = vst.msk [vmem:[#allocation4 + $0x20] sm:$0xff] %vm3211_vm8, %v3100_v11  ;;  %3356 = vrot.lane.b32.xlu1 %v3264_v37, %s10281_s29  ;;  %v1373_v39 = vpop.f32.mrb[128].mxu0  ;;  %7396 = vmatprep.subr.bf16.mxu1 %v7395_v49  ;;  %v4269_v26 = vld [vmem:[%s10253_s4 + $0x68] sm:$0xff]  ;;  %v2257_v27 = vld [vmem:[#allocation2 + $0x1e0] sm:$0xff] }
 0x203   : > { %2737 = vst.msk [vmem:[#allocation4 + $0x38] sm:$0xff] %vm2729_vm12, %v2624_v31  ;;  %3832 = vrot.lane.b32.xlu0 %v3743_v42, %s10275_s19  ;;  %v1851_v34 = vsel %vm1640_vm10, %v1369_v24, %v1746_v18  ;;  %v1374_v41 = vadd.f32 %v8752_v13, %v1373_v39  ;;  %v6936_v47 = vpop.f32.mrb[129].mxu0  ;;  %v4268_v24 = vld [vmem:[%s10253_s4 + $0x60] sm:$0xff]  ;;  %v3265_v39 = vld [vmem:[#allocation3 + $0x85] sm:$0xff] }
 0x204   : > { %2256 = vst.msk [vmem:[#allocation3 + $0xd5] sm:$0x7] %vm2031_vm11, %v2252_v29  ;;  %v4289_v48 = vld [vmem:[#allocation3 + $0xc2] sm:$0xff]  ;;  %v3341_v50 = vpop.permute.xlu1 %3340  ;;  %v2261_v29 = vld [vmem:[#allocation2 + $0x1e1] sm:$0xff]  ;;  %v7403_v37 = vpack.c.bf16 %v4269_v26, %v4268_v24 }
 0x205   : > { %2512 = vst.msk [vmem:[#allocation4 + $0xb8] sm:$0xff] %vm1893_vm3, %v8928_v35  ;;  %v2865_v51 = vpop.permute.xlu0 %2864  ;;  %1957 = vst.msk [vmem:[#allocation2 + $0x1f8] sm:$0xff] %vm1893_vm3, %v1851_v34  ;;  %7086 = vmatmul.mubr.msk.f32.gmra.mrb[48].mxu1 %vm1893_vm3, %v4289_v48  ;;  %v8947_v52 = vld [vmem:[#allocation3 + $0xc0] sm:$0xff]  ;;  %vm1641_vm1 = vcmp.ge.f32.partialorder %v1374_v41, 0.0  ;;  %v1747_v58 = vmul.f32 %v8195_v25, %v1374_v41  ;;  %v4270_v48 = vld [vmem:[%s10253_s4 + $0x70] sm:$0xff] }
 0x206   : > { %3457 = vst.msk [vmem:[#allocation4 + $0x20] sm:$0xff] %vm3452_vm14, %v3341_v50  ;;  %3597 = vrot.lane.b32.xlu1 %v3505_v54, %s7725_s26  ;;  %7398 = vmatpush3.bf16.msra.mxu1 %v7395_v49  ;;  %v2258_v34 = vld [vmem:[#allocation2 + $0x1e8] sm:$0xff]  ;;  %v4271_v49 = vld [vmem:[%s10253_s4 + $0x78] sm:$0xff] }
 0x207   : > { %2978 = vst.msk [vmem:[#allocation4 + $0x38] sm:$0xff] %vm2970_vm13, %v2865_v51  ;;  %4073 = vrot.lane.b32.xlu0 %v3984_v57, %s7724_s21  ;;  %v1378_v59 = vpop.f32.mrb[130].mxu0  ;;  %v1852_v61 = vsel %vm1641_vm1, %v1374_v41, %v1747_v58  ;;  %7400 = vmatprep.subr.bf16.mxu1 %v7399_v33  ;;  %v2265_v41 = vmax.f32 %v2257_v27, %v2261_v29  ;;  %v2262_v50 = vld [vmem:[#allocation2 + $0x1e9] sm:$0xff] }
 0x208   : > { %2513 = vst.msk [vmem:[#allocation4 + $0xc0] sm:$0xff] %vm1893_vm3, %v8947_v52  ;;  %v1379_v21 = vadd.f32 %v8752_v13, %v1378_v59  ;;  %v6939_v22 = vpop.f32.mrb[131].mxu0  ;;  %v4290_v63 = vld [vmem:[#allocation3 + $0xca] sm:$0xff]  ;;  %v3819_v7 = vpop.permute.xlu1 %3818  ;;  %1958 = vst.msk [vmem:[#allocation2 + $0x200] sm:$0xff] %vm1893_vm3, %v1852_v61 }
 0x209   : > { %v4058_v4 = vpop.permute.xlu0 %4057  ;;  %7088 = vmatprep.mubr.msk.f32.mxu1 %vm1893_vm3, %v4290_v63  ;;  %3937 = vst.msk [vmem:[#allocation4 + $0x10] sm:$0xff] %vm3934_vm15, %v3819_v7  ;;  %v8970_v16 = vld [vmem:[#allocation3 + $0xc8] sm:$0xff] }
 0x20a   : > { %4177 = vst.msk [vmem:[#allocation4 + $0x8] sm:$0xff] %vm4175_vm7, %v4058_v4  ;;  %vm1642_vm5 = vcmp.ge.f32.partialorder %v1379_v21, 0.0  ;;  %v1748_v15 = vmul.f32 %v8195_v25, %v1379_v21  ;;  %3834 = vrot.lane.b32.xlu1 %v3744_v12, %s10275_s19  ;;  %7402 = vmatpush3.bf16.msra.mxu1 %v7399_v33  ;;  %v2786_v22 = vld [vmem:[#allocation3 + $0x84] sm:$0xff]  ;;  %v2266_v4 = vmax.f32 %v2258_v34, %v2262_v50  ;;  %s10296_s19 = smov 96  }
 0x20b   : > { %v8965_v8 = vld [vmem:[#allocation3 + $0xd0] sm:$0xff]  ;;  %3117 = vrot.lane.b32.xlu0 %v3024_v14, %s10294_s25  ;;  %v1383_v19 = vpop.f32.mrb[132].mxu0  ;;  %2514 = vst.msk [vmem:[#allocation4 + $0xc8] sm:$0xff] %vm1893_vm3, %v8970_v16  ;;  %7404 = vmatprep.subr.bf16.mxu1 %v7403_v37  ;;  %v2259_v33 = vld [vmem:[#allocation2 + $0x1f0] sm:$0xff] }
 0x20c   : > { %2515 = vst.msk [vmem:[#allocation4 + $0xd0] sm:$0xff] %vm1893_vm3, %v8965_v8  ;;  %v1853_v11 = vsel %vm1642_vm5, %v1379_v21, %v1748_v15  ;;  %v1384_v31 = vadd.f32 %v8752_v13, %v1383_v19  ;;  %v6942_v42 = vpop.f32.mrb[133].mxu0  ;;  %v3582_v18 = vpop.permute.xlu1 %3581  ;;  %v3506_v21 = vld [vmem:[#allocation3 + $0x87] sm:$0xff] }
 0x20d   : > { %v3102_v38 = vpop.permute.xlu0 %3101  ;;  %1959 = vst.msk [vmem:[#allocation2 + $0x208] sm:$0xff] %vm1893_vm3, %v1853_v11  ;;  %v2263_v14 = vld [vmem:[#allocation2 + $0x1f1] sm:$0xff] }
 0x20e   : > { %3698 = vst.msk [vmem:[#allocation4 + $0x20] sm:$0xff] %vm3693_vm4, %v3582_v18  ;;  %vm1643_vm6 = vcmp.ge.f32.partialorder %v1384_v31, 0.0  ;;  %v1749_v40 = vmul.f32 %v8195_v25, %v1384_v31  ;;  %2641 = vrot.lane.b32.xlu1 %v8747_v10, %s10295_s18  ;;  %7406 = vmatpush3.bf16.msra.mxu1 %v7403_v37  ;;  %v7407_v10 = vpack.c.bf16 %v4271_v49, %v4270_v48  ;;  %v3985_v42 = vld [vmem:[#allocation3 + $0x88] sm:$0xff] }
 0x20f   : > { %3217 = vst.msk [vmem:[#allocation4 + $0x28] sm:$0xff] %vm3211_vm8, %v3102_v38  ;;  %3358 = vrot.lane.b32.xlu0 %v3265_v39, %s10281_s29  ;;  %v1388_v47 = vpop.f32.mrb[134].mxu0  ;;  %v2269_v51 = vld [vmem:[#allocation2 + $0x1fe] sm:$0xff]  ;;  %v3745_v37 = vld [vmem:[#allocation3 + $0x8e] sm:$0xff]  ;;  %v2267_v39 = vmax.f32 %v2259_v33, %v2263_v14 }
 0x210   : > { %v2273_v54 = vld [vmem:[#allocation2 + $0x1ff] sm:$0xff]  ;;  %v1854_v57 = vsel %vm1643_vm6, %v1384_v31, %v1749_v40  ;;  %v1389_v58 = vadd.f32 %v8752_v13, %v1388_v47  ;;  %v6945_v59 = vpop.f32.mrb[135].mxu0  ;;  %v2626_v60 = vpop.permute.xlu1 %2625  ;;  %7408 = vmatprep.subr.bf16.mxu1 %v7407_v10  ;;  %v2260_v38 = vld [vmem:[#allocation2 + $0x1f8] sm:$0x7] }
 0x211   : > { %v3343_v53 = vpop.permute.xlu0 %3342  ;;  %v2277_v61 = vmax.f32 %v2269_v51, %v2273_v54  ;;  %1960 = vst.msk [vmem:[#allocation2 + $0x210] sm:$0xff] %vm1893_vm3, %v1854_v57  ;;  %v3025_v59 = vld [vmem:[#allocation3 + $0x8b] sm:$0xff] }
 0x212   : > { %3458 = vst.msk [vmem:[#allocation4 + $0x28] sm:$0xff] %vm3452_vm14, %v3343_v53  ;;  %vm1644_vm2 = vcmp.ge.f32.partialorder %v1389_v58, 0.0  ;;  %v1750_v63 = vmul.f32 %v8195_v25, %v1389_v58  ;;  %2882 = vrot.lane.b32.xlu1 %v2786_v22, %s10279_s24  ;;  %7410 = vmatpush3.bf16.msra.mxu1 %v7407_v10 }
 0x213   : > { %2738 = vst.msk [vmem:[#allocation4 + $0x40] sm:$0xff] %vm2729_vm12, %v2626_v60  ;;  %3599 = vrot.lane.b32.xlu0 %v3506_v21, %s7725_s26  ;;  %v1393_v7 = vpop.f32.mrb[136].mxu0  ;;  %v2281_v12 = vmax.f32 %v2265_v41, %v2277_v61  ;;  %7411 = vmatprep.subr.bf16.mxu1 %v7717_v3  ;;  %v2264_v41 = vld [vmem:[#allocation2 + $0x1f9] sm:$0x7] }
 0x214   : > { %v2270_v15 = vld [vmem:[#allocation2 + $0x206] sm:$0xff]  ;;  %v1855_v24 = vsel %vm1644_vm2, %v1389_v58, %v1750_v63  ;;  %v1394_v26 = vadd.f32 %v8752_v13, %v1393_v7  ;;  %v6948_v27 = vpop.f32.mrb[137].mxu0  ;;  %v2867_v29 = vpop.permute.xlu1 %2866  ;;  %v2268_v53 = vmax.f32 %v2260_v38, %v2264_v41 }
 0x215   : > { %v2274_v19 = vld [vmem:[#allocation2 + $0x207] sm:$0xff]  ;;  %v3584_v11 = vpop.permute.xlu0 %3583  ;;  %1961 = vst.msk [vmem:[#allocation2 + $0x218] sm:$0xff] %vm1893_vm3, %v1855_v24  ;;  %2285 = vst.msk [vmem:[#allocation3 + $0xd8] sm:$0xff] %vm1893_vm3, %v2281_v12  ;;  %v2787_v24 = vld [vmem:[#allocation3 + $0x8c] sm:$0xff] }
 0x216   : > { %v2278_v31 = vmax.f32 %v2270_v15, %v2274_v19  ;;  %2979 = vst.msk [vmem:[#allocation4 + $0x40] sm:$0xff] %vm2970_vm13, %v2867_v29  ;;  %vm1645_vm9 = vcmp.ge.f32.partialorder %v1394_v26, 0.0  ;;  %v1751_v18 = vmul.f32 %v8195_v25, %v1394_v26  ;;  %4075 = vrot.lane.b32.xlu1 %v3985_v42, %s7724_s21  ;;  %v3266_v19 = vld [vmem:[#allocation3 + $0x8d] sm:$0xff] }
 0x217   : > { %3699 = vst.msk [vmem:[#allocation4 + $0x28] sm:$0xff] %vm3693_vm4, %v3584_v11  ;;  %3836 = vrot.lane.b32.xlu0 %v3745_v37, %s10296_s19  ;;  %v1398_v40 = vpop.f32.mrb[138].mxu0  ;;  %v9039_v11 = vld [vmem:[%s10252_s3] ss:$0 sm:$0xff] }
 0x218   : > { %v2282_v34 = vmax.f32 %v2266_v4, %v2278_v31  ;;  %v2271_v47 = vld [vmem:[#allocation2 + $0x20e] sm:$0xff]  ;;  %v1856_v49 = vsel %vm1645_vm9, %v1394_v26, %v1751_v18  ;;  %v1399_v50 = vadd.f32 %v8752_v13, %v1398_v40  ;;  %v6951_v51 = vpop.f32.mrb[139].mxu0  ;;  %v4060_v54 = vpop.permute.xlu1 %4059  ;;  %v3507_v40 = vld [vmem:[#allocation3 + $0x8f] sm:$0xff] }
 0x219   : > { %v2275_v48 = vld [vmem:[#allocation2 + $0x20f] sm:$0xff]  ;;  %v3821_v57 = vpop.permute.xlu0 %3820  ;;  %1962 = vst.msk [vmem:[#allocation2 + $0x220] sm:$0xff] %vm1893_vm3, %v1856_v49 }
 0x21a   : > { %v2279_v58 = vmax.f32 %v2271_v47, %v2275_v48  ;;  %2286 = vst.msk [vmem:[#allocation3 + $0xe0] sm:$0xff] %vm1893_vm3, %v2282_v34  ;;  %vm1646_vm10 = vcmp.ge.f32.partialorder %v1399_v50, 0.0  ;;  %v1752_v10 = vmul.f32 %v8195_v25, %v1399_v50  ;;  %3119 = vrot.lane.b32.xlu1 %v3025_v59, %s10294_s25  ;;  %v3986_v34 = vld [vmem:[#allocation3 + $0x90] sm:$0xff] }
 0x21b   : > { %4178 = vst.msk [vmem:[#allocation4 + $0x10] sm:$0xff] %vm4175_vm7, %v4060_v54  ;;  %2643 = vrot.lane.b32.xlu0 %v8768_v32, %s10295_s18  ;;  %v1403_v60 = vpop.f32.mrb[140].mxu0  ;;  %v3026_v59 = vld [vmem:[#allocation3 + $0x93] sm:$0xff] }
 0x21c   : > { %3938 = vst.msk [vmem:[#allocation4 + $0x18] sm:$0xff] %vm3934_vm15, %v3821_v57  ;;  %v2283_v61 = vmax.f32 %v2267_v39, %v2279_v58  ;;  %v2272_v21 = vld [vmem:[#allocation2 + $0x216] sm:$0x7]  ;;  %v1857_v63 = vsel %vm1646_vm10, %v1399_v50, %v1752_v10  ;;  %v1404_v33 = vadd.f32 %v8752_v13, %v1403_v60  ;;  %v6954_v4 = vpop.f32.mrb[141].mxu0  ;;  %v4291_v7 = vld [vmem:[#allocation3 + $0xd2] sm:$0xff]  ;;  %v3104_v14 = vpop.permute.xlu1 %3103 }
 0x21d   : > { %v2276_v22 = vld [vmem:[#allocation2 + $0x217] sm:$0x7]  ;;  %v4062_v12 = vpop.permute.xlu0 %4061  ;;  %1963 = vst.msk [vmem:[#allocation2 + $0x228] sm:$0xff] %vm1893_vm3, %v1857_v63  ;;  %7089 = vmatmul.mubr.msk.f32.gmra.mrb[50].mxu1 %vm1893_vm3, %v4291_v7  ;;  %v9027_v32 = vld [vmem:[#allocation3 + $0xd8] sm:$0xff] }
 0x21e   : > { %v2280_v15 = vmax.f32 %v2272_v21, %v2276_v22  ;;  %2287 = vst.msk [vmem:[#allocation3 + $0xe8] sm:$0xff] %vm1893_vm3, %v2283_v61  ;;  %vm1647_vm1 = vcmp.ge.f32.partialorder %v1404_v33, 0.0  ;;  %v1753_v13 = vmul.f32 %v8195_v25, %v1404_v33  ;;  %2516 = vst.msk [vmem:[#allocation4 + $0xd8] sm:$0xff] %vm1893_vm3, %v9027_v32  ;;  %3360 = vrot.lane.b32.xlu1 %v3266_v19, %s10281_s29  ;;  %v3746_v58 = vld [vmem:[#allocation3 + $0x96] sm:$0xff] }
 0x21f   : > { %4179 = vst.msk [vmem:[#allocation4 + $0x18] sm:$0xff] %vm4175_vm7, %v4062_v12  ;;  %2884 = vrot.lane.b32.xlu0 %v2787_v24, %s10279_s24  ;;  %v1408_v26 = vpop.f32.mrb[142].mxu0  ;;  %v3987_v7 = vld [vmem:[#allocation3 + $0x98] sm:$0xff] }
 0x220   : > { %3218 = vst.msk [vmem:[#allocation4 + $0x30] sm:$0xff] %vm3211_vm8, %v3104_v14  ;;  %v2284_v27 = vmax.f32 %v2268_v53, %v2280_v15  ;;  %v1858_v29 = vsel %vm1647_vm1, %v1404_v33, %v1753_v13  ;;  %v1409_v31 = vadd.f32 %v9039_v11, %v1408_v26  ;;  %v6957_v42 = vpop.f32.mrb[143].mxu0  ;;  %v3345_v18 = vpop.permute.xlu1 %3344  ;;  %v3267_v12 = vld [vmem:[#allocation3 + $0x95] sm:$0xff] }
 0x221   : > { %v4292_v37 = vld [vmem:[#allocation3 + $0xda] sm:$0xff]  ;;  %v2628_v38 = vpop.permute.xlu0 %2627  ;;  %1964 = vst.msk [vmem:[#allocation2 + $0x230] sm:$0xff] %vm1893_vm3, %v1858_v29 }
 0x222   : > { %7091 = vmatprep.mubr.msk.f32.mxu1 %vm1893_vm3, %v4292_v37  ;;  %2288 = vst.msk [vmem:[#allocation3 + $0xf0] sm:$0x7] %vm2031_vm11, %v2284_v27  ;;  %v9045_v39 = vld [vmem:[#allocation3 + $0xe0] sm:$0xff]  ;;  %vm1648_vm5 = vcmp.ge.f32.partialorder %v1409_v31, 0.0  ;;  %v1754_v41 = vmul.f32 %v8195_v25, %v1409_v31  ;;  %3601 = vrot.lane.b32.xlu1 %v3507_v40, %s7725_s26  ;;  %v2289_v19 = vld [vmem:[#allocation2 + $0x21c] sm:$0xff] }
 0x223   : > { %3459 = vst.msk [vmem:[#allocation4 + $0x30] sm:$0xff] %vm3452_vm14, %v3345_v18  ;;  %4077 = vrot.lane.b32.xlu0 %v3986_v34, %s7724_s21  ;;  %v1413_v47 = vpop.f32.mrb[144].mxu0  ;;  %v2293_v24 = vld [vmem:[#allocation2 + $0x21d] sm:$0xff] }
 0x224   : > { %2739 = vst.msk [vmem:[#allocation4 + $0x48] sm:$0xff] %vm2729_vm12, %v2628_v38  ;;  %v1859_v48 = vsel %vm1648_vm5, %v1409_v31, %v1754_v41  ;;  %v1414_v49 = vadd.f32 %v9039_v11, %v1413_v47  ;;  %v6960_v50 = vpop.f32.mrb[145].mxu0  ;;  %v3586_v54 = vpop.permute.xlu1 %3585  ;;  %v3508_v42 = vld [vmem:[#allocation3 + $0x97] sm:$0xff]  ;;  %v2297_v38 = vmax.f32 %v2289_v19, %v2293_v24 }
 0x225   : > { %2517 = vst.msk [vmem:[#allocation4 + $0xe0] sm:$0xff] %vm1893_vm3, %v9045_v39  ;;  %v4293_v51 = vld [vmem:[#allocation3 + $0xe2] sm:$0xff]  ;;  %v2869_v57 = vpop.permute.xlu0 %2868  ;;  %1965 = vst.msk [vmem:[#allocation2 + $0x238] sm:$0xff] %vm1893_vm3, %v1859_v48  ;;  %v7639_v18 = vld [vmem:[#allocation3 + $0x92] sm:$0xff] }
 0x226   : > { %7092 = vmatmul.mubr.msk.f32.gmra.mrb[52].mxu1 %vm1893_vm3, %v4293_v51  ;;  %3700 = vst.msk [vmem:[#allocation4 + $0x30] sm:$0xff] %vm3693_vm4, %v3586_v54  ;;  %vm1649_vm6 = vcmp.ge.f32.partialorder %v1414_v49, 0.0  ;;  %v1755_v10 = vmul.f32 %v8195_v25, %v1414_v49  ;;  %v9060_v53 = vld [vmem:[#allocation3 + $0xe8] sm:$0xff]  ;;  %3838 = vrot.lane.b32.xlu1 %v3746_v58, %s10296_s19  ;;  %v2290_v40 = vld [vmem:[#allocation2 + $0x224] sm:$0xff] }
 0x227   : > { %2980 = vst.msk [vmem:[#allocation4 + $0x48] sm:$0xff] %vm2970_vm13, %v2869_v57  ;;  %3121 = vrot.lane.b32.xlu0 %v3026_v59, %s10294_s25  ;;  %v1418_v60 = vpop.f32.mrb[146].mxu0  ;;  %v2294_v41 = vld [vmem:[#allocation2 + $0x225] sm:$0xff]  ;;  %v2788_v59 = vld [vmem:[#allocation3 + $0x94] sm:$0xff] }
 0x228   : > { %2518 = vst.msk [vmem:[#allocation4 + $0xe8] sm:$0xff] %vm1893_vm3, %v9060_v53  ;;  %v1860_v61 = vsel %vm1649_vm6, %v1414_v49, %v1755_v10  ;;  %v1419_v21 = vadd.f32 %v9039_v11, %v1418_v60  ;;  %v6963_v22 = vpop.f32.mrb[147].mxu0  ;;  %v3823_v63 = vpop.permute.xlu1 %3822  ;;  %v7640_v60 = vld [vmem:[#allocation3 + $0x9a] sm:$0xff] }
 0x229   : > { %v3106_v33 = vpop.permute.xlu0 %3105  ;;  %1966 = vst.msk [vmem:[#allocation2 + $0x240] sm:$0xff] %vm1893_vm3, %v1860_v61  ;;  %v4294_v4 = vld [vmem:[#allocation3 + $0xea] sm:$0xff]  ;;  %v2298_v61 = vmax.f32 %v2290_v40, %v2294_v41 }
 0x22a   : > { %3939 = vst.msk [vmem:[#allocation4 + $0x20] sm:$0xff] %vm3934_vm15, %v3823_v63  ;;  %vm1650_vm2 = vcmp.ge.f32.partialorder %v1419_v21, 0.0  ;;  %v1756_v14 = vmul.f32 %v8195_v25, %v1419_v21  ;;  %7094 = vmatprep.mubr.msk.f32.mxu1 %vm1893_vm3, %v4294_v4  ;;  %4079 = vrot.lane.b32.xlu1 %v3987_v7, %s7724_s21 }
 0x22b   : > { %3219 = vst.msk [vmem:[#allocation4 + $0x38] sm:$0xff] %vm3211_vm8, %v3106_v33  ;;  %3362 = vrot.lane.b32.xlu0 %v3267_v12, %s10281_s29  ;;  %v1423_v15 = vpop.f32.mrb[148].mxu0  ;;  %v2295_v33 = vld [vmem:[#allocation2 + $0x22d] sm:$0xff] }
 0x22c   : > { %v1861_v13 = vsel %vm1650_vm2, %v1419_v21, %v1756_v14  ;;  %v1424_v26 = vadd.f32 %v9039_v11, %v1423_v15  ;;  %v6966_v27 = vpop.f32.mrb[149].mxu0  ;;  %v4064_v29 = vpop.permute.xlu1 %4063  ;;  %v2291_v21 = vld [vmem:[#allocation2 + $0x22c] sm:$0xff] }
 0x22d   : > { %v3347_v31 = vpop.permute.xlu0 %3346  ;;  %1967 = vst.msk [vmem:[#allocation2 + $0x248] sm:$0xff] %vm1893_vm3, %v1861_v13  ;;  %v2292_v13 = vld [vmem:[#allocation2 + $0x234] sm:$0x7] }
 0x22e   : > { %4180 = vst.msk [vmem:[#allocation4 + $0x20] sm:$0xff] %vm4175_vm7, %v4064_v29  ;;  %vm1651_vm9 = vcmp.ge.f32.partialorder %v1424_v26, 0.0  ;;  %v1757_v37 = vmul.f32 %v8195_v25, %v1424_v26  ;;  %2645 = vrot.lane.b32.xlu1 %v7639_v18, %s10295_s18  ;;  %v3747_v29 = vld [vmem:[#allocation3 + $0x9e] sm:$0xff] }
 0x22f   : > { %3460 = vst.msk [vmem:[#allocation4 + $0x38] sm:$0xff] %vm3452_vm14, %v3347_v31  ;;  %3603 = vrot.lane.b32.xlu0 %v3508_v42, %s7725_s26  ;;  %v1428_v34 = vpop.f32.mrb[150].mxu0  ;;  %v3027_v31 = vld [vmem:[#allocation3 + $0x9b] sm:$0xff] }
 0x230   : > { %v2301_v47 = vld [vmem:[#allocation2 + $0x23a] sm:$0xff]  ;;  %v1862_v49 = vsel %vm1651_vm9, %v1424_v26, %v1757_v37  ;;  %v1429_v50 = vadd.f32 %v9039_v11, %v1428_v34  ;;  %v6969_v51 = vpop.f32.mrb[151].mxu0  ;;  %v2630_v57 = vpop.permute.xlu1 %2629  ;;  %v2296_v26 = vld [vmem:[#allocation2 + $0x235] sm:$0x7]  ;;  %v2299_v37 = vmax.f32 %v2291_v21, %v2295_v33 }
 0x231   : > { %v2305_v48 = vld [vmem:[#allocation2 + $0x23b] sm:$0xff]  ;;  %v3588_v54 = vpop.permute.xlu0 %3587  ;;  %1968 = vst.msk [vmem:[#allocation2 + $0x250] sm:$0xff] %vm1893_vm3, %v1862_v49  ;;  %v2300_v40 = vmax.f32 %v2292_v13, %v2296_v26  ;;  %v2789_v13 = vld [vmem:[#allocation3 + $0x9c] sm:$0xff] }
 0x232   : > { %v2309_v58 = vmax.f32 %v2301_v47, %v2305_v48  ;;  %3701 = vst.msk [vmem:[#allocation4 + $0x38] sm:$0xff] %vm3693_vm4, %v3588_v54  ;;  %vm1652_vm10 = vcmp.ge.f32.partialorder %v1429_v50, 0.0  ;;  %v1758_v10 = vmul.f32 %v8195_v25, %v1429_v50  ;;  %2886 = vrot.lane.b32.xlu1 %v2788_v59, %s10279_s24  ;;  %v3988_v59 = vld [vmem:[#allocation3 + $0xa0] sm:$0xff] }
 0x233   : > { %2740 = vst.msk [vmem:[#allocation4 + $0x50] sm:$0xff] %vm2729_vm12, %v2630_v57  ;;  %2647 = vrot.lane.b32.xlu0 %v7640_v60, %s10295_s18  ;;  %v1433_v22 = vpop.f32.mrb[152].mxu0 }
 0x234   : > { %v2313_v63 = vmax.f32 %v2297_v38, %v2309_v58  ;;  %v2302_v4 = vld [vmem:[#allocation2 + $0x242] sm:$0xff]  ;;  %v1863_v12 = vsel %vm1652_vm10, %v1429_v50, %v1758_v10  ;;  %v1434_v14 = vadd.f32 %v9039_v11, %v1433_v22  ;;  %v6972_v15 = vpop.f32.mrb[153].mxu0  ;;  %v2871_v19 = vpop.permute.xlu1 %2870 }
 0x235   : > { %v2306_v7 = vld [vmem:[#allocation2 + $0x243] sm:$0xff]  ;;  %v3825_v24 = vpop.permute.xlu0 %3824  ;;  %1969 = vst.msk [vmem:[#allocation2 + $0x258] sm:$0xff] %vm1893_vm3, %v1863_v12 }
 0x236   : > { %v2310_v27 = vmax.f32 %v2302_v4, %v2306_v7  ;;  %2317 = vst.msk [vmem:[#allocation3 + $0xf3] sm:$0xff] %vm1893_vm3, %v2313_v63  ;;  %vm1653_vm1 = vcmp.ge.f32.partialorder %v1434_v14, 0.0  ;;  %v1759_v42 = vmul.f32 %v8195_v25, %v1434_v14  ;;  %3123 = vrot.lane.b32.xlu1 %v3027_v31, %s10294_s25  ;;  %v3268_v10 = vld [vmem:[#allocation3 + $0x9d] sm:$0xff] }
 0x237   : > { %2981 = vst.msk [vmem:[#allocation4 + $0x50] sm:$0xff] %vm2970_vm13, %v2871_v19  ;;  %3840 = vrot.lane.b32.xlu0 %v3747_v29, %s10296_s19  ;;  %v1438_v18 = vpop.f32.mrb[154].mxu0 }
 0x238   : > { %3940 = vst.msk [vmem:[#allocation4 + $0x28] sm:$0xff] %vm3934_vm15, %v3825_v24  ;;  %v2314_v38 = vmax.f32 %v2298_v61, %v2310_v27  ;;  %v2303_v34 = vld [vmem:[#allocation2 + $0x24a] sm:$0xff]  ;;  %v2304_v41 = vld [vmem:[#allocation2 + $0x252] sm:$0x7]  ;;  %v1864_v48 = vsel %vm1653_vm1, %v1434_v14, %v1759_v42  ;;  %v1439_v49 = vadd.f32 %v9039_v11, %v1438_v18  ;;  %v6975_v50 = vpop.f32.mrb[155].mxu0  ;;  %v3108_v54 = vpop.permute.xlu1 %3107 }
 0x239   : > { %v2307_v47 = vld [vmem:[#allocation2 + $0x24b] sm:$0xff]  ;;  %v4066_v51 = vpop.permute.xlu0 %4065  ;;  %v2308_v57 = vld [vmem:[#allocation2 + $0x253] sm:$0x7]  ;;  %1970 = vst.msk [vmem:[#allocation2 + $0x260] sm:$0xff] %vm1893_vm3, %v1864_v48 }
 0x23a   : > { %v2311_v58 = vmax.f32 %v2303_v34, %v2307_v47  ;;  %2318 = vst.msk [vmem:[#allocation3 + $0xfb] sm:$0xff] %vm1893_vm3, %v2314_v38  ;;  %v2312_v60 = vmax.f32 %v2304_v41, %v2308_v57  ;;  %vm1654_vm5 = vcmp.ge.f32.partialorder %v1439_v49, 0.0  ;;  %v1760_v61 = vmul.f32 %v8195_v25, %v1439_v49  ;;  %3364 = vrot.lane.b32.xlu1 %v3268_v10, %s10281_s29  ;;  %v3509_v24 = vld [vmem:[#allocation3 + $0x9f] sm:$0xff] }
 0x23b   : > { %4181 = vst.msk [vmem:[#allocation4 + $0x28] sm:$0xff] %vm4175_vm7, %v4066_v51  ;;  %4081 = vrot.lane.b32.xlu0 %v3988_v59, %s7724_s21  ;;  %v1443_v21 = vpop.f32.mrb[156].mxu0  ;;  %v7641_v47 = vld [vmem:[#allocation3 + $0xa2] sm:$0xff] }
 0x23c   : > { %3220 = vst.msk [vmem:[#allocation4 + $0x40] sm:$0xff] %vm3211_vm8, %v3108_v54  ;;  %v2315_v22 = vmax.f32 %v2299_v37, %v2311_v58  ;;  %v1865_v63 = vsel %vm1654_vm5, %v1439_v49, %v1760_v61  ;;  %v1444_v33 = vadd.f32 %v9039_v11, %v1443_v21  ;;  %v6978_v4 = vpop.f32.mrb[157].mxu0  ;;  %v2316_v12 = vmax.f32 %v2300_v40, %v2312_v60  ;;  %v3349_v15 = vpop.permute.xlu1 %3348  ;;  %v3028_v40 = vld [vmem:[#allocation3 + $0xa3] sm:$0xff] }
 0x23d   : > { %v9105_v7 = vld [vmem:[#allocation3 + $0xf2] sm:$0xff]  ;;  %v3110_v14 = vpop.permute.xlu0 %3109  ;;  %1971 = vst.msk [vmem:[#allocation2 + $0x268] sm:$0xff] %vm1893_vm3, %v1865_v63  ;;  %v3748_v10 = vld [vmem:[#allocation3 + $0xa6] sm:$0xff] }
 0x23e   : > { %7095 = vmatmul.mubr.msk.f32.gmra.mrb[54].mxu1 %vm1893_vm3, %v9105_v7  ;;  %2319 = vst.msk [vmem:[#allocation3 + $0x103] sm:$0xff] %vm1893_vm3, %v2315_v22  ;;  %v9111_v19 = vld [vmem:[#allocation3 + $0xf0] sm:$0xff]  ;;  %vm1655_vm6 = vcmp.ge.f32.partialorder %v1444_v33, 0.0  ;;  %v1761_v26 = vmul.f32 %v8195_v25, %v1444_v33  ;;  %3605 = vrot.lane.b32.xlu1 %v3509_v24, %s7725_s26  ;;  %v3269_v60 = vld [vmem:[#allocation3 + $0xa5] sm:$0xff] }
 0x23f   : > { %3221 = vst.msk [vmem:[#allocation4 + $0x48] sm:$0xff] %vm3211_vm8, %v3110_v14  ;;  %2888 = vrot.lane.b32.xlu0 %v2789_v13, %s10279_s24  ;;  %v1448_v27 = vpop.f32.mrb[158].mxu0  ;;  %v2321_v22 = vld [vmem:[#allocation2 + $0x258] sm:$0xff]  ;;  %v3989_v24 = vld [vmem:[#allocation3 + $0xa8] sm:$0xff] }
 0x240   : > { %3461 = vst.msk [vmem:[#allocation4 + $0x40] sm:$0xff] %vm3452_vm14, %v3349_v15  ;;  %v1866_v29 = vsel %vm1655_vm6, %v1444_v33, %v1761_v26  ;;  %v1449_v31 = vadd.f32 %v9039_v11, %v1448_v27  ;;  %v6981_v42 = vpop.f32.mrb[159].mxu0  ;;  %v3590_v18 = vpop.permute.xlu1 %3589  ;;  %v2325_v63 = vld [vmem:[#allocation2 + $0x259] sm:$0xff]  ;;  %v3510_v13 = vld [vmem:[#allocation3 + $0xa7] sm:$0xff] }
 0x241   : > { %2320 = vst.msk [vmem:[#allocation3 + $0x10b] sm:$0x7] %vm2031_vm11, %v2316_v12  ;;  %v9122_v37 = vld [vmem:[#allocation3 + $0xfa] sm:$0xff]  ;;  %v2632_v38 = vpop.permute.xlu0 %2631 }
 0x242   : > { %2519 = vst.msk [vmem:[#allocation4 + $0xf0] sm:$0xff] %vm1893_vm3, %v9111_v19  ;;  %1972 = vst.msk [vmem:[#allocation2 + $0x270] sm:$0xff] %vm1893_vm3, %v1866_v29  ;;  %7097 = vmatprep.mubr.msk.f32.mxu1 %vm1893_vm3, %v9122_v37  ;;  %vm1656_vm2 = vcmp.ge.f32.partialorder %v1449_v31, 0.0  ;;  %v1762_v34 = vmul.f32 %v8195_v25, %v1449_v31  ;;  %v9130_v41 = vld [vmem:[#allocation3 + $0xf8] sm:$0xff]  ;;  %2649 = vrot.lane.b32.xlu1 %v7641_v47, %s10295_s18  ;;  %v2329_v29 = vmax.f32 %v2321_v22, %v2325_v63 }
 0x243   : > { %3702 = vst.msk [vmem:[#allocation4 + $0x40] sm:$0xff] %vm3693_vm4, %v3590_v18  ;;  %3125 = vrot.lane.b32.xlu0 %v3028_v40, %s10294_s25  ;;  %v1453_v48 = vpop.f32.mrb[160].mxu0  ;;  %v2322_v27 = vld [vmem:[#allocation2 + $0x260] sm:$0xff] }
 0x244   : > { %2741 = vst.msk [vmem:[#allocation4 + $0x58] sm:$0xff] %vm2729_vm12, %v2632_v38  ;;  %v1867_v49 = vsel %vm1656_vm2, %v1449_v31, %v1762_v34  ;;  %v1454_v50 = vadd.f32 %v9039_v11, %v1453_v48  ;;  %v6984_v51 = vpop.f32.mrb[161].mxu0  ;;  %v2634_v57 = vpop.permute.xlu1 %2633  ;;  %v2326_v42 = vld [vmem:[#allocation2 + $0x261] sm:$0xff] }
 0x245   : > { %2520 = vst.msk [vmem:[#allocation4 + $0xf8] sm:$0xff] %vm1893_vm3, %v9130_v41  ;;  %v4297_v54 = vld [vmem:[#allocation3 + $0x102] sm:$0xff]  ;;  %v2873_v58 = vpop.permute.xlu0 %2872  ;;  %1973 = vst.msk [vmem:[#allocation2 + $0x278] sm:$0xff] %vm1893_vm3, %v1867_v49 }
 0x246   : > { %7098 = vmatmul.mubr.msk.f32.gmra.mrb[56].mxu1 %vm1893_vm3, %v4297_v54  ;;  %v9139_v59 = vld [vmem:[#allocation3 + $0x100] sm:$0xff]  ;;  %2742 = vst.msk [vmem:[#allocation4 + $0x60] sm:$0xff] %vm2729_vm12, %v2634_v57  ;;  %vm1657_vm9 = vcmp.ge.f32.partialorder %v1454_v50, 0.0  ;;  %v1763_v61 = vmul.f32 %v8195_v25, %v1454_v50  ;;  %3842 = vrot.lane.b32.xlu1 %v3748_v10, %s10296_s19  ;;  %v7642_v10 = vld [vmem:[#allocation3 + $0xaa] sm:$0xff] }
 0x247   : > { %2982 = vst.msk [vmem:[#allocation4 + $0x58] sm:$0xff] %vm2970_vm13, %v2873_v58  ;;  %3366 = vrot.lane.b32.xlu0 %v3269_v60, %s10281_s29  ;;  %v1458_v21 = vpop.f32.mrb[162].mxu0  ;;  %v2790_v51 = vld [vmem:[#allocation3 + $0xa4] sm:$0xff]  ;;  %v2330_v58 = vmax.f32 %v2322_v27, %v2326_v42 }
 0x248   : > { %2521 = vst.msk [vmem:[#allocation4 + $0x100] sm:$0xff] %vm1893_vm3, %v9139_v59  ;;  %v1868_v33 = vsel %vm1657_vm9, %v1454_v50, %v1763_v61  ;;  %v1459_v4 = vadd.f32 %v9039_v11, %v1458_v21  ;;  %v6987_v12 = vpop.f32.mrb[163].mxu0  ;;  %v2875_v14 = vpop.permute.xlu1 %2874  ;;  %v2323_v57 = vld [vmem:[#allocation2 + $0x268] sm:$0xff] }
 0x249   : > { %v3351_v15 = vpop.permute.xlu0 %3350  ;;  %1974 = vst.msk [vmem:[#allocation2 + $0x280] sm:$0xff] %vm1893_vm3, %v1868_v33  ;;  %v2327_v21 = vld [vmem:[#allocation2 + $0x269] sm:$0xff] }
 0x24a   : > { %2983 = vst.msk [vmem:[#allocation4 + $0x60] sm:$0xff] %vm2970_vm13, %v2875_v14  ;;  %vm1658_vm10 = vcmp.ge.f32.partialorder %v1459_v4, 0.0  ;;  %v1764_v26 = vmul.f32 %v8195_v25, %v1459_v4  ;;  %4083 = vrot.lane.b32.xlu1 %v3989_v24, %s7724_s21 }
 0x24b   : > { %3462 = vst.msk [vmem:[#allocation4 + $0x48] sm:$0xff] %vm3452_vm14, %v3351_v15  ;;  %3607 = vrot.lane.b32.xlu0 %v3510_v13, %s7725_s26  ;;  %v1463_v31 = vpop.f32.mrb[164].mxu0  ;;  %v3749_v13 = vld [vmem:[#allocation3 + $0xae] sm:$0xff] }
 0x24c   : > { %v2333_v18 = vld [vmem:[#allocation2 + $0x276] sm:$0xff]  ;;  %v1869_v40 = vsel %vm1658_vm10, %v1459_v4, %v1764_v26  ;;  %v1464_v34 = vadd.f32 %v9039_v11, %v1463_v31  ;;  %v6990_v47 = vpop.f32.mrb[165].mxu0  ;;  %v3827_v48 = vpop.permute.xlu1 %3826  ;;  %v2331_v31 = vmax.f32 %v2323_v57, %v2327_v21 }
 0x24d   : > { %v2337_v38 = vld [vmem:[#allocation2 + $0x277] sm:$0xff]  ;;  %v3592_v49 = vpop.permute.xlu0 %3591  ;;  %1975 = vst.msk [vmem:[#allocation2 + $0x288] sm:$0xff] %vm1893_vm3, %v1869_v40 }
 0x24e   : > { %v2341_v50 = vmax.f32 %v2333_v18, %v2337_v38  ;;  %3941 = vst.msk [vmem:[#allocation4 + $0x30] sm:$0xff] %vm3934_vm15, %v3827_v48  ;;  %vm1659_vm1 = vcmp.ge.f32.partialorder %v1464_v34, 0.0  ;;  %v1765_v54 = vmul.f32 %v8195_v25, %v1464_v34  ;;  %2890 = vrot.lane.b32.xlu1 %v2790_v51, %s10279_s24  ;;  %v3029_v26 = vld [vmem:[#allocation3 + $0xab] sm:$0xff] }
 0x24f   : > { %3703 = vst.msk [vmem:[#allocation4 + $0x48] sm:$0xff] %vm3693_vm4, %v3592_v49  ;;  %2651 = vrot.lane.b32.xlu0 %v7642_v10, %s10295_s18  ;;  %v1468_v60 = vpop.f32.mrb[166].mxu0  ;;  %v2328_v38 = vld [vmem:[#allocation2 + $0x271] sm:$0x7]  ;;  %v3270_v57 = vld [vmem:[#allocation3 + $0xad] sm:$0xff] }
 0x250   : > { %v2345_v61 = vmax.f32 %v2329_v29, %v2341_v50  ;;  %v2334_v22 = vld [vmem:[#allocation2 + $0x27e] sm:$0xff]  ;;  %v1870_v33 = vsel %vm1659_vm1, %v1464_v34, %v1765_v54  ;;  %v1469_v4 = vadd.f32 %v9039_v11, %v1468_v60  ;;  %v6993_v12 = vpop.f32.mrb[167].mxu0  ;;  %v4068_v15 = vpop.permute.xlu1 %4067  ;;  %v2324_v29 = vld [vmem:[#allocation2 + $0x270] sm:$0x7] }
 0x251   : > { %v2338_v63 = vld [vmem:[#allocation2 + $0x27f] sm:$0xff]  ;;  %v2636_v24 = vpop.permute.xlu0 %2635  ;;  %1976 = vst.msk [vmem:[#allocation2 + $0x290] sm:$0xff] %vm1893_vm3, %v1870_v33  ;;  %v2332_v10 = vmax.f32 %v2324_v29, %v2328_v38 }
 0x252   : > { %v2342_v14 = vmax.f32 %v2334_v22, %v2338_v63  ;;  %2349 = vst.msk [vmem:[#allocation3 + $0x10e] sm:$0xff] %vm1893_vm3, %v2345_v61  ;;  %vm1660_vm5 = vcmp.ge.f32.partialorder %v1469_v4, 0.0  ;;  %v1766_v27 = vmul.f32 %v8195_v25, %v1469_v4  ;;  %3127 = vrot.lane.b32.xlu1 %v3029_v26, %s10294_s25  ;;  %v3511_v26 = vld [vmem:[#allocation3 + $0xaf] sm:$0xff] }
 0x253   : > { %4182 = vst.msk [vmem:[#allocation4 + $0x30] sm:$0xff] %vm4175_vm7, %v4068_v15  ;;  %3844 = vrot.lane.b32.xlu0 %v3749_v13, %s10296_s19  ;;  %v1473_v42 = vpop.f32.mrb[168].mxu0 }
 0x254   : > { %2743 = vst.msk [vmem:[#allocation4 + $0x68] sm:$0xff] %vm2729_vm12, %v2636_v24  ;;  %v2346_v18 = vmax.f32 %v2330_v58, %v2342_v14  ;;  %v2335_v40 = vld [vmem:[#allocation2 + $0x286] sm:$0xff]  ;;  %v1871_v47 = vsel %vm1660_vm5, %v1469_v4, %v1766_v27  ;;  %v1474_v48 = vadd.f32 %v9039_v11, %v1473_v42  ;;  %v6996_v49 = vpop.f32.mrb[169].mxu0  ;;  %v3112_v51 = vpop.permute.xlu1 %3111  ;;  %v2791_v27 = vld [vmem:[#allocation3 + $0xac] sm:$0xff] }
 0x255   : > { %v2339_v34 = vld [vmem:[#allocation2 + $0x287] sm:$0xff]  ;;  %v2877_v54 = vpop.permute.xlu0 %2876  ;;  %1977 = vst.msk [vmem:[#allocation2 + $0x298] sm:$0xff] %vm1893_vm3, %v1871_v47 }
 0x256   : > { %v2343_v50 = vmax.f32 %v2335_v40, %v2339_v34  ;;  %2350 = vst.msk [vmem:[#allocation3 + $0x116] sm:$0xff] %vm1893_vm3, %v2346_v18  ;;  %vm1661_vm6 = vcmp.ge.f32.partialorder %v1474_v48, 0.0  ;;  %v1767_v58 = vmul.f32 %v8195_v25, %v1474_v48  ;;  %3368 = vrot.lane.b32.xlu1 %v3270_v57, %s10281_s29 }
 0x257   : > { %3222 = vst.msk [vmem:[#allocation4 + $0x50] sm:$0xff] %vm3211_vm8, %v3112_v51  ;;  %4085 = vrot.lane.b32.xlu0 %v8851_v30, %s7724_s21  ;;  %v1478_v60 = vpop.f32.mrb[170].mxu0 }
 0x258   : > { %2984 = vst.msk [vmem:[#allocation4 + $0x68] sm:$0xff] %vm2970_vm13, %v2877_v54  ;;  %v2347_v61 = vmax.f32 %v2331_v31, %v2343_v50  ;;  %v2336_v21 = vld [vmem:[#allocation2 + $0x28e] sm:$0x7]  ;;  %v1872_v63 = vsel %vm1661_vm6, %v1474_v48, %v1767_v58  ;;  %v1479_v33 = vadd.f32 %v9039_v11, %v1478_v60  ;;  %v6999_v4 = vpop.f32.mrb[171].mxu0  ;;  %v3353_v24 = vpop.permute.xlu1 %3352  ;;  %v3030_v48 = vld [vmem:[#allocation3 + $0xb3] sm:$0xff] }
 0x259   : > { %v2340_v22 = vld [vmem:[#allocation2 + $0x28f] sm:$0x7]  ;;  %v9180_v12 = vld [vmem:[#allocation3 + $0x10a] sm:$0xff]  ;;  %1978 = vst.msk [vmem:[#allocation2 + $0x2a0] sm:$0xff] %vm1893_vm3, %v1872_v63  ;;  %v3829_v15 = vpop.permute.xlu0 %3828  ;;  %v7643_v50 = vld [vmem:[#allocation3 + $0xb2] sm:$0xff] }
 0x25a   : > { %v2344_v14 = vmax.f32 %v2336_v21, %v2340_v22  ;;  %7100 = vmatprep.mubr.msk.f32.mxu1 %vm1893_vm3, %v9180_v12  ;;  %2351 = vst.msk [vmem:[#allocation3 + $0x11e] sm:$0xff] %vm1893_vm3, %v2347_v61  ;;  %v9186_v30 = vld [vmem:[#allocation3 + $0x108] sm:$0xff]  ;;  %vm1662_vm2 = vcmp.ge.f32.partialorder %v1479_v33, 0.0  ;;  %v1768_v13 = vmul.f32 %v8195_v25, %v1479_v33  ;;  %3609 = vrot.lane.b32.xlu1 %v3511_v26, %s7725_s26  ;;  %v3271_v22 = vld [vmem:[#allocation3 + $0xb5] sm:$0xff]  ;;  %v2372_v4 = vld [vmem:[#allocation2 + $0x2cb] sm:$0x7] }
 0x25b   : > { %3942 = vst.msk [vmem:[#allocation4 + $0x38] sm:$0xff] %vm3934_vm15, %v3829_v15  ;;  %2892 = vrot.lane.b32.xlu0 %v2791_v27, %s10279_s24  ;;  %v1483_v29 = vpop.f32.mrb[172].mxu0  ;;  %v2792_v63 = vld [vmem:[#allocation3 + $0xb4] sm:$0xff] }
 0x25c   : > { %3463 = vst.msk [vmem:[#allocation4 + $0x50] sm:$0xff] %vm3452_vm14, %v3353_v24  ;;  %v2348_v31 = vmax.f32 %v2332_v10, %v2344_v14  ;;  %v1873_v42 = vsel %vm1662_vm2, %v1479_v33, %v1768_v13  ;;  %v1484_v18 = vadd.f32 %v9039_v11, %v1483_v29  ;;  %v7002_v38 = vpop.f32.mrb[173].mxu0  ;;  %v3594_v47 = vpop.permute.xlu1 %3593  ;;  %v2368_v33 = vld [vmem:[#allocation2 + $0x2ca] sm:$0x7] }
 0x25d   : > { %2522 = vst.msk [vmem:[#allocation4 + $0x108] sm:$0xff] %vm1893_vm3, %v9186_v30  ;;  %v9196_v40 = vld [vmem:[#allocation3 + $0x112] sm:$0xff]  ;;  %1979 = vst.msk [vmem:[#allocation2 + $0x2a8] sm:$0xff] %vm1893_vm3, %v1873_v42  ;;  %v4070_v34 = vpop.permute.xlu0 %4069  ;;  %v2376_v42 = vmax.f32 %v2368_v33, %v2372_v4 }
 0x25e   : > { %7101 = vmatmul.mubr.msk.f32.gmra.mrb[58].mxu1 %vm1893_vm3, %v9196_v40  ;;  %2352 = vst.msk [vmem:[#allocation3 + $0x126] sm:$0x7] %vm2031_vm11, %v2348_v31  ;;  %vm1663_vm9 = vcmp.ge.f32.partialorder %v1484_v18, 0.0  ;;  %v1769_v49 = vmul.f32 %v8195_v25, %v1484_v18  ;;  %2653 = vrot.lane.b32.xlu1 %v7643_v50, %s10295_s18 }
 0x25f   : > { %4183 = vst.msk [vmem:[#allocation4 + $0x38] sm:$0xff] %vm4175_vm7, %v4070_v34  ;;  %3129 = vrot.lane.b32.xlu0 %v3030_v48, %s10294_s25  ;;  %v1488_v51 = vpop.f32.mrb[174].mxu0  ;;  %v3750_v34 = vld [vmem:[#allocation3 + $0xb6] sm:$0xff]  ;;  %v2353_v48 = vld [vmem:[#allocation2 + $0x294] sm:$0xff] }
 0x260   : > { %3704 = vst.msk [vmem:[#allocation4 + $0x50] sm:$0xff] %vm3693_vm4, %v3594_v47  ;;  %v1874_v54 = vsel %vm1663_vm9, %v1484_v18, %v1769_v49  ;;  %v1489_v57 = vadd.f32 %v9039_v11, %v1488_v51  ;;  %v7005_v58 = vpop.f32.mrb[175].mxu0  ;;  %v2638_v61 = vpop.permute.xlu1 %2637  ;;  %v3512_v47 = vld [vmem:[#allocation3 + $0xb7] sm:$0xff]  ;;  %v2357_v49 = vld [vmem:[#allocation2 + $0x295] sm:$0xff] }
 0x261   : > { %v9208_v10 = vld [vmem:[#allocation3 + $0x11a] sm:$0xff]  ;;  %1980 = vst.msk [vmem:[#allocation2 + $0x2b0] sm:$0xff] %vm1893_vm3, %v1874_v54  ;;  %v3114_v60 = vpop.permute.xlu0 %3113  ;;  %v2361_v58 = vmax.f32 %v2353_v48, %v2357_v49 }
 0x262   : > { %7103 = vmatprep.mubr.msk.f32.mxu1 %vm1893_vm3, %v9208_v10  ;;  %3223 = vst.msk [vmem:[#allocation4 + $0x58] sm:$0xff] %vm3211_vm8, %v3114_v60  ;;  %vm1664_vm10 = vcmp.ge.f32.partialorder %v1489_v57, 0.0  ;;  %v1770_v21 = vmul.f32 %v8195_v25, %v1489_v57  ;;  %2894 = vrot.lane.b32.xlu1 %v2792_v63, %s10279_s24  ;;  %v2354_v60 = vld [vmem:[#allocation2 + $0x29c] sm:$0xff] }
 0x263   : > { %2744 = vst.msk [vmem:[#allocation4 + $0x70] sm:$0xff] %vm2729_vm12, %v2638_v61  ;;  %3370 = vrot.lane.b32.xlu0 %v3271_v22, %s10281_s29  ;;  %v1493_v14 = vpop.f32.mrb[176].mxu0  ;;  %v7644_v61 = vld [vmem:[#allocation3 + $0xba] sm:$0xff] }
 0x264   : > { %v2356_v15 = vld [vmem:[#allocation2 + $0x2ac] sm:$0x7]  ;;  %v1875_v24 = vsel %vm1664_vm10, %v1489_v57, %v1770_v21  ;;  %v1494_v13 = vadd.f32 %v9039_v11, %v1493_v14  ;;  %v7008_v26 = vpop.f32.mrb[177].mxu0  ;;  %v2879_v29 = vpop.permute.xlu1 %2878  ;;  %v9225_v11 = vld [vmem:[#allocation3 + $0x110] sm:$0xff]  ;;  %v9236_v21 = vld [vmem:[#allocation3 + $0x118] sm:$0xff] }
 0x265   : > { %v2360_v27 = vld [vmem:[#allocation2 + $0x2ad] sm:$0x7]  ;;  %1981 = vst.msk [vmem:[#allocation2 + $0x2b8] sm:$0xff] %vm1893_vm3, %v1875_v24  ;;  %v3355_v31 = vpop.permute.xlu0 %3354  ;;  %2523 = vst.msk [vmem:[#allocation4 + $0x110] sm:$0xff] %vm1893_vm3, %v9225_v11  ;;  %v2358_v22 = vld [vmem:[#allocation2 + $0x29d] sm:$0xff] }
 0x266   : > { %v2364_v18 = vmax.f32 %v2356_v15, %v2360_v27  ;;  %2985 = vst.msk [vmem:[#allocation4 + $0x70] sm:$0xff] %vm2970_vm13, %v2879_v29  ;;  %vm1665_vm1 = vcmp.ge.f32.partialorder %v1494_v13, 0.0  ;;  %v1771_v38 = vmul.f32 %v8195_v25, %v1494_v13  ;;  %3846 = vrot.lane.b32.xlu1 %v3750_v34, %s10296_s19  ;;  %v2355_v4 = vld [vmem:[#allocation2 + $0x2a4] sm:$0xff]  ;;  %v2362_v27 = vmax.f32 %v2354_v60, %v2358_v22 }
 0x267   : > { %3464 = vst.msk [vmem:[#allocation4 + $0x58] sm:$0xff] %vm3452_vm14, %v3355_v31  ;;  %3611 = vrot.lane.b32.xlu0 %v3512_v47, %s7725_s26  ;;  %v2359_v14 = vld [vmem:[#allocation2 + $0x2a5] sm:$0xff] }
 0x268   : > { %v1876_v50 = vsel %vm1665_vm1, %v1494_v13, %v1771_v38  ;;  %v2380_v51 = vmax.f32 %v2364_v18, %v2376_v42  ;;  %v3831_v54 = vpop.permute.xlu1 %3830  ;;  %2524 = vst.msk [vmem:[#allocation4 + $0x118] sm:$0xff] %vm1893_vm3, %v9236_v21  ;;  %v2793_v26 = vld [vmem:[#allocation3 + $0xbc] sm:$0xff]  ;;  %v2363_v42 = vmax.f32 %v2355_v4, %v2359_v14 }
 0x269   : > { %1982 = vst.msk [vmem:[#allocation2 + $0x2c0] sm:$0xff] %vm1893_vm3, %v1876_v50  ;;  %v3596_v57 = vpop.permute.xlu0 %3595  ;;  %v9244_v31 = vld [vmem:[#allocation3 + $0x120] sm:$0xff] }
 0x26a   : > { %3943 = vst.msk [vmem:[#allocation4 + $0x40] sm:$0xff] %vm3934_vm15, %v3831_v54  ;;  %4087 = vrot.lane.b32.xlu1 %v8928_v35, %s7724_s21  ;;  %v3031_v35 = vld [vmem:[#allocation3 + $0xbb] sm:$0xff] }
 0x26b   : > { %3705 = vst.msk [vmem:[#allocation4 + $0x58] sm:$0xff] %vm3693_vm4, %v3596_v57  ;;  %2655 = vrot.lane.b32.xlu0 %v7644_v61, %s10295_s18  ;;  %v3272_v54 = vld [vmem:[#allocation3 + $0xbd] sm:$0xff] }
 0x26c   : > { %2384 = vst.msk [vmem:[#allocation3 + $0x141] sm:$0x7] %vm2031_vm11, %v2380_v51  ;;  %v2365_v63 = vld [vmem:[#allocation2 + $0x2b2] sm:$0xff]  ;;  %v4072_v24 = vpop.permute.xlu1 %4071  ;;  %v3751_v57 = vld [vmem:[#allocation3 + $0xbe] sm:$0xff]  ;;  %vm5131_vm11 = vcmask 261120  }
 0x26d   : > { %v2369_v33 = vld [vmem:[#allocation2 + $0x2b3] sm:$0xff]  ;;  %v2640_v13 = vpop.permute.xlu0 %2639  ;;  %4184 = vst.msk [vmem:[#allocation4 + $0x40] sm:$0xff] %vm4175_vm7, %v4072_v24  ;;  %v3032_v24 = vld [vmem:[#allocation3 + $0xc3] sm:$0xff] }
 0x26e   : > { %v2373_v15 = vmax.f32 %v2365_v63, %v2369_v33  ;;  %2745 = vst.msk [vmem:[#allocation4 + $0x78] sm:$0xff] %vm2729_vm12, %v2640_v13  ;;  %3131 = vrot.lane.b32.xlu1 %v3031_v35, %s10294_s25  ;;  %v3513_v63 = vld [vmem:[#allocation3 + $0xbf] sm:$0xff] }
 0x26f   : > { %2896 = vrot.lane.b32.xlu0 %v2793_v26, %s10279_s24  ;;  %2525 = vst.msk [vmem:[#allocation4 + $0x120] sm:$0xff] %vm1893_vm3, %v9244_v31 }
 0x270   : > { %v2377_v29 = vmax.f32 %v2361_v58, %v2373_v15  ;;  %v2366_v18 = vld [vmem:[#allocation2 + $0x2ba] sm:$0xff]  ;;  %v2367_v38 = vld [vmem:[#allocation2 + $0x2c2] sm:$0xff]  ;;  %v3116_v49 = vpop.permute.xlu1 %3115 }
 0x271   : > { %v2370_v34 = vld [vmem:[#allocation2 + $0x2bb] sm:$0xff]  ;;  %v2371_v47 = vld [vmem:[#allocation2 + $0x2c3] sm:$0xff]  ;;  %v2881_v50 = vpop.permute.xlu0 %2880  ;;  %3224 = vst.msk [vmem:[#allocation4 + $0x60] sm:$0xff] %vm3211_vm8, %v3116_v49 }
 0x272   : > { %v2374_v48 = vmax.f32 %v2366_v18, %v2370_v34  ;;  %2381 = vst.msk [vmem:[#allocation3 + $0x129] sm:$0xff] %vm1893_vm3, %v2377_v29  ;;  %v2375_v51 = vmax.f32 %v2367_v38, %v2371_v47  ;;  %3372 = vrot.lane.b32.xlu1 %v3272_v54, %s10281_s29  ;;  %v3273_v29 = vld [vmem:[#allocation3 + $0xc5] sm:$0xff]  ;;  %v3753_v49 = vld [vmem:[#allocation3 + $0xce] sm:$0xff] }
 0x273   : > { %2986 = vst.msk [vmem:[#allocation4 + $0x78] sm:$0xff] %vm2970_vm13, %v2881_v50  ;;  %3848 = vrot.lane.b32.xlu0 %v3751_v57, %s10296_s19  ;;  %v3752_v50 = vld [vmem:[#allocation3 + $0xc6] sm:$0xff] }
 0x274   : > { %v2378_v58 = vmax.f32 %v2362_v27, %v2374_v48  ;;  %v2379_v60 = vmax.f32 %v2363_v42, %v2375_v51  ;;  %v3357_v22 = vpop.permute.xlu1 %3356  ;;  %v2794_v42 = vld [vmem:[#allocation3 + $0xc4] sm:$0xff] }
 0x275   : > { %v3833_v61 = vpop.permute.xlu0 %3832  ;;  %3465 = vst.msk [vmem:[#allocation4 + $0x60] sm:$0xff] %vm3452_vm14, %v3357_v22  ;;  %v4305_v48 = vld [vmem:[#allocation3 + $0x142] sm:$0xff]  ;;  %v4306_v51 = vld [vmem:[#allocation3 + $0x14a] sm:$0xff] }
 0x276   : > { %2382 = vst.msk [vmem:[#allocation3 + $0x131] sm:$0xff] %vm1893_vm3, %v2378_v58  ;;  %2383 = vst.msk [vmem:[#allocation3 + $0x139] sm:$0xff] %vm1893_vm3, %v2379_v60  ;;  %3613 = vrot.lane.b32.xlu1 %v3513_v63, %s7725_s26  ;;  %v4307_v58 = vld [vmem:[#allocation3 + $0x152] sm:$0xff]  ;;  %v4308_v60 = vld [vmem:[#allocation3 + $0x15a] sm:$0xff] }
 0x277   : > { %3944 = vst.msk [vmem:[#allocation4 + $0x48] sm:$0xff] %vm3934_vm15, %v3833_v61  ;;  %4089 = vrot.lane.b32.xlu0 %v8947_v52, %s7724_s21  ;;  %v7645_v52 = vld [vmem:[#allocation3 + $0xc2] sm:$0xff] }
 0x278   : > { %v3598_v14 = vpop.permute.xlu1 %3597  ;;  %v4309_v63 = vld [vmem:[#allocation3 + $0x162] sm:$0xff] }
 0x279   : > { %v9260_v33 = vld [vmem:[#allocation3 + $0x122] sm:$0xff]  ;;  %v4074_v15 = vpop.permute.xlu0 %4073  ;;  %3706 = vst.msk [vmem:[#allocation4 + $0x60] sm:$0xff] %vm3693_vm4, %v3598_v14 }
 0x27a   : > { %v9262_v4 = vld [vmem:[#allocation3 + $0x128] sm:$0xff]  ;;  %7104 = vmatmul.mubr.msk.f32.gmra.mrb[60].mxu1 %vm1893_vm3, %v9260_v33  ;;  %4185 = vst.msk [vmem:[#allocation4 + $0x48] sm:$0xff] %vm4175_vm7, %v4074_v15  ;;  %2657 = vrot.lane.b32.xlu1 %v7645_v52, %s10295_s18  ;;  %v4311_v52 = vld [vmem:[#allocation3 + $0x172] sm:$0xff] }
 0x27b   : > { %2526 = vst.msk [vmem:[#allocation4 + $0x128] sm:$0xff] %vm1893_vm3, %v9262_v4  ;;  %3133 = vrot.lane.b32.xlu0 %v3032_v24, %s10294_s25  ;;  %v3514_v14 = vld [vmem:[#allocation3 + $0xc7] sm:$0xff] }
 0x27c   : > { %v3835_v35 = vpop.permute.xlu1 %3834  ;;  %v3033_v15 = vld [vmem:[#allocation3 + $0xcb] sm:$0xff] }
 0x27d   : > { %v4302_v13 = vld [vmem:[#allocation3 + $0x12a] sm:$0xff]  ;;  %v3118_v26 = vpop.permute.xlu0 %3117  ;;  %v4303_v27 = vld [vmem:[#allocation3 + $0x132] sm:$0xff]  ;;  %3945 = vst.msk [vmem:[#allocation4 + $0x50] sm:$0xff] %vm3934_vm15, %v3835_v35  ;;  %v4304_v38 = vld [vmem:[#allocation3 + $0x13a] sm:$0xff] }
 0x27e   : > { %7106 = vmatprep.mubr.msk.f32.mxu1 %vm1893_vm3, %v4302_v13  ;;  %3225 = vst.msk [vmem:[#allocation4 + $0x68] sm:$0xff] %vm3211_vm8, %v3118_v26  ;;  %v9276_v18 = vld [vmem:[#allocation3 + $0x138] sm:$0xff]  ;;  %2898 = vrot.lane.b32.xlu1 %v2794_v42, %s10279_s24  ;;  %v3274_v13 = vld [vmem:[#allocation3 + $0xcd] sm:$0xff]  ;;  %v4216_v26 = vld [vmem:[#allocation4] sm:$0xff] }
 0x27f   : > { %7107 = vmatmul.mubr.msk.f32.gmra.mrb[62].mxu1 %vm1893_vm3, %v4303_v27  ;;  %3374 = vrot.lane.b32.xlu0 %v3273_v29, %s10281_s29  ;;  %2528 = vst.msk [vmem:[#allocation4 + $0x138] sm:$0xff] %vm1893_vm3, %v9276_v18  ;;  %v7646_v35 = vld [vmem:[#allocation3 + $0xca] sm:$0xff] }
 0x280   : > { %7109 = vmatprep.mubr.msk.f32.mxu1 %vm1893_vm3, %v4304_v38  ;;  %v2642_v47 = vpop.permute.xlu1 %2641  ;;  %v4217_v42 = vld [vmem:[#allocation4 + $0x8] sm:$0xff] }
 0x281   : > { %v3359_v34 = vpop.permute.xlu0 %3358  ;;  %2746 = vst.msk [vmem:[#allocation4 + $0x80] sm:$0xff] %vm2729_vm12, %v2642_v47  ;;  %v3515_v38 = vld [vmem:[#allocation3 + $0xcf] sm:$0xff] }
 0x282   : > { %3466 = vst.msk [vmem:[#allocation4 + $0x68] sm:$0xff] %vm3452_vm14, %v3359_v34  ;;  %3850 = vrot.lane.b32.xlu1 %v3752_v50, %s10296_s19  ;;  %v2795_v34 = vld [vmem:[#allocation3 + $0xcc] sm:$0xff] }
 0x283   : > { %7110 = vmatmul.mubr.msk.f32.gmra.mrb[64].mxu1 %vm1893_vm3, %v4305_v48  ;;  %3852 = vrot.lane.b32.xlu0 %v3753_v49, %s10296_s19  ;;  %v4218_v47 = vld [vmem:[#allocation4 + $0x10] sm:$0xff] }
 0x284   : > { %7112 = vmatprep.mubr.msk.f32.mxu1 %vm1893_vm3, %v4306_v51  ;;  %v2883_v57 = vpop.permute.xlu1 %2882  ;;  %v9312_v48 = vld [vmem:[#allocation3 + $0x130] sm:$0xff]  ;;  %v4219_v51 = vld [vmem:[#allocation4 + $0x18] sm:$0xff] }
 0x285   : > { %v3600_v54 = vpop.permute.xlu0 %3599  ;;  %2987 = vst.msk [vmem:[#allocation4 + $0x80] sm:$0xff] %vm2970_vm13, %v2883_v57  ;;  %v3034_v57 = vld [vmem:[#allocation3 + $0xd3] sm:$0xff] }
 0x286   : > { %3707 = vst.msk [vmem:[#allocation4 + $0x68] sm:$0xff] %vm3693_vm4, %v3600_v54  ;;  %4091 = vrot.lane.b32.xlu1 %v8970_v16, %s7724_s21  ;;  %v3754_v54 = vld [vmem:[#allocation3 + $0xd6] sm:$0xff] }
 0x287   : > { %7113 = vmatmul.mubr.msk.f32.gmra.mrb[66].mxu1 %vm1893_vm3, %v4307_v58  ;;  %4093 = vrot.lane.b32.xlu0 %v8965_v8, %s7724_s21  ;;  %v4310_v8 = vld [vmem:[#allocation3 + $0x16a] sm:$0xff]  ;;  %2527 = vst.msk [vmem:[#allocation4 + $0x130] sm:$0xff] %vm1893_vm3, %v9312_v48  ;;  %v4220_v58 = vld [vmem:[#allocation4 + $0x20] sm:$0xff] }
 0x288   : > { %7115 = vmatprep.mubr.msk.f32.mxu1 %vm1893_vm3, %v4308_v60  ;;  %v4076_v61 = vpop.permute.xlu1 %4075 }
 0x289   : > { %v3837_v22 = vpop.permute.xlu0 %3836  ;;  %4186 = vst.msk [vmem:[#allocation4 + $0x50] sm:$0xff] %vm4175_vm7, %v4076_v61 }
 0x28a   : > { %3946 = vst.msk [vmem:[#allocation4 + $0x58] sm:$0xff] %vm3934_vm15, %v3837_v22  ;;  %3135 = vrot.lane.b32.xlu1 %v3033_v15, %s10294_s25  ;;  %v4221_v22 = vld [vmem:[#allocation4 + $0x28] sm:$0xff] }
 0x28b   : > { %7116 = vmatmul.mubr.msk.f32.gmra.mrb[68].mxu1 %vm1893_vm3, %v4309_v63  ;;  %3615 = vrot.lane.b32.xlu0 %v3514_v14, %s7725_s26  ;;  %v3275_v63 = vld [vmem:[#allocation3 + $0xd5] sm:$0xff] }
 0x28c   : > { %7118 = vmatprep.mubr.msk.f32.mxu1 %vm1893_vm3, %v4310_v8  ;;  %v3120_v16 = vpop.permute.xlu1 %3119  ;;  %v4222_v14 = vld [vmem:[#allocation4 + $0x30] sm:$0xff] }
 0x28d   : > { %v2644_v24 = vpop.permute.xlu0 %2643  ;;  %3226 = vst.msk [vmem:[#allocation4 + $0x70] sm:$0xff] %vm3211_vm8, %v3120_v16  ;;  %v4223_v16 = vld [vmem:[#allocation4 + $0x38] sm:$0xff] }
 0x28e   : > { %2747 = vst.msk [vmem:[#allocation4 + $0x88] sm:$0xff] %vm2729_vm12, %v2644_v24  ;;  %3376 = vrot.lane.b32.xlu1 %v3274_v13, %s10281_s29  ;;  %v3516_v24 = vld [vmem:[#allocation3 + $0xd7] sm:$0xff]  ;;  %v4224_v13 = vld [vmem:[#allocation4 + $0x40] sm:$0xff] }
 0x28f   : > { %7119 = vmatmul.mubr.msk.f32.gmra.mrb[70].mxu1 %vm1893_vm3, %v4311_v52  ;;  %2659 = vrot.lane.b32.xlu0 %v7646_v35, %s10295_s18  ;;  %v7647_v52 = vld [vmem:[#allocation3 + $0xd2] sm:$0xff] }
 0x290   : > { %7153 = vmatprep.mubr.f32.mxu1 %v4216_v26  ;;  %v3361_v27 = vpop.permute.xlu1 %3360  ;;  %v4225_v26 = vld [vmem:[#allocation4 + $0x48] sm:$0xff] }
 0x291   : > { %v2885_v29 = vpop.permute.xlu0 %2884  ;;  %3467 = vst.msk [vmem:[#allocation4 + $0x70] sm:$0xff] %vm3452_vm14, %v3361_v27  ;;  %v2796_v27 = vld [vmem:[#allocation3 + $0xd4] sm:$0xff] }
 0x292   : > { %2988 = vst.msk [vmem:[#allocation4 + $0x88] sm:$0xff] %vm2970_vm13, %v2885_v29  ;;  %3617 = vrot.lane.b32.xlu1 %v3515_v38, %s7725_s26  ;;  %v3755_v29 = vld [vmem:[#allocation3 + $0xde] sm:$0xff] }
 0x293   : > { %7154 = vmatmul.mubr.f32.vlgmr.msra.gmra.mrb[32].mxu1 %v4217_v42  ;;  %2900 = vrot.lane.b32.xlu0 %v2795_v34, %s10279_s24  ;;  %v4226_v42 = vld [vmem:[#allocation4 + $0x50] sm:$0xff] }
 0x294   : > { %7156 = vmatprep.mubr.f32.mxu1 %v4218_v47  ;;  %v3602_v49 = vpop.permute.xlu1 %3601 }
 0x295   : > { %v4078_v50 = vpop.permute.xlu0 %4077  ;;  %3708 = vst.msk [vmem:[#allocation4 + $0x70] sm:$0xff] %vm3693_vm4, %v3602_v49  ;;  %v3035_v49 = vld [vmem:[#allocation3 + $0xdb] sm:$0xff] }
 0x296   : > { %4187 = vst.msk [vmem:[#allocation4 + $0x58] sm:$0xff] %vm4175_vm7, %v4078_v50  ;;  %3854 = vrot.lane.b32.xlu1 %v3754_v54, %s10296_s19 }
 0x297   : > { %7157 = vmatmul.mubr.f32.gmra.mrb[34].mxu1 %v4219_v51  ;;  %3137 = vrot.lane.b32.xlu0 %v3034_v57, %s10294_s25  ;;  %v3276_v57 = vld [vmem:[#allocation3 + $0xdd] sm:$0xff] }
 0x298   : > { %7159 = vmatprep.mubr.f32.mxu1 %v4220_v58  ;;  %v3839_v60 = vpop.permute.xlu1 %3838  ;;  %v7648_v58 = vld [vmem:[#allocation3 + $0xda] sm:$0xff] }
 0x299   : > { %v3122_v61 = vpop.permute.xlu0 %3121  ;;  %3947 = vst.msk [vmem:[#allocation4 + $0x60] sm:$0xff] %vm3934_vm15, %v3839_v60 }
 0x29a   : > { %3227 = vst.msk [vmem:[#allocation4 + $0x78] sm:$0xff] %vm3211_vm8, %v3122_v61  ;;  %4095 = vrot.lane.b32.xlu1 %v9027_v32, %s7724_s21 }
 0x29b   : > { %7160 = vmatmul.mubr.f32.gmra.mrb[36].mxu1 %v4221_v22  ;;  %3378 = vrot.lane.b32.xlu0 %v3275_v63, %s10281_s29  ;;  %v2797_v22 = vld [vmem:[#allocation3 + $0xdc] sm:$0xff] }
 0x29c   : > { %7162 = vmatprep.mubr.f32.mxu1 %v4222_v14  ;;  %v4080_v15 = vpop.permute.xlu1 %4079 }
 0x29d   : > { %v3363_v8 = vpop.permute.xlu0 %3362  ;;  %4188 = vst.msk [vmem:[#allocation4 + $0x60] sm:$0xff] %vm4175_vm7, %v4080_v15  ;;  %v4227_v47 = vld [vmem:[#allocation4 + $0x58] sm:$0xff]  ;;  %v3756_v15 = vld [vmem:[#allocation3 + $0xe6] sm:$0xff] }
 0x29e   : > { %3468 = vst.msk [vmem:[#allocation4 + $0x78] sm:$0xff] %vm3452_vm14, %v3363_v8  ;;  %2661 = vrot.lane.b32.xlu1 %v7647_v52, %s10295_s18  ;;  %v3036_v8 = vld [vmem:[#allocation3 + $0xe3] sm:$0xff] }
 0x29f   : > { %7163 = vmatmul.mubr.f32.gmra.mrb[38].mxu1 %v4223_v16  ;;  %3619 = vrot.lane.b32.xlu0 %v3516_v24, %s7725_s26 }
 0x2a0   : > { %7165 = vmatprep.mubr.f32.mxu1 %v4224_v13  ;;  %v2646_v35 = vpop.permute.xlu1 %2645  ;;  %v3277_v13 = vld [vmem:[#allocation3 + $0xe5] sm:$0xff] }
 0x2a1   : > { %v3604_v32 = vpop.permute.xlu0 %3603  ;;  %2748 = vst.msk [vmem:[#allocation4 + $0x90] sm:$0xff] %vm2729_vm12, %v2646_v35 }
 0x2a2   : > { %3709 = vst.msk [vmem:[#allocation4 + $0x78] sm:$0xff] %vm3693_vm4, %v3604_v32  ;;  %2902 = vrot.lane.b32.xlu1 %v2796_v27, %s10279_s24  ;;  %v7649_v27 = vld [vmem:[#allocation3 + $0xe2] sm:$0xff] }
 0x2a3   : > { %7166 = vmatmul.mubr.f32.gmra.mrb[40].mxu1 %v4225_v26  ;;  %3856 = vrot.lane.b32.xlu0 %v3755_v29, %s10296_s19  ;;  %v3518_v26 = vld [vmem:[#allocation3 + $0xe7] sm:$0xff] }
 0x2a4   : > { %7168 = vmatprep.mubr.f32.mxu1 %v4226_v42  ;;  %v2887_v34 = vpop.permute.xlu1 %2886  ;;  %v4228_v50 = vld [vmem:[#allocation4 + $0x60] sm:$0xff] }
 0x2a5   : > { %v2648_v38 = vpop.permute.xlu0 %2647  ;;  %2989 = vst.msk [vmem:[#allocation4 + $0x90] sm:$0xff] %vm2970_vm13, %v2887_v34 }
 0x2a6   : > { %2749 = vst.msk [vmem:[#allocation4 + $0x98] sm:$0xff] %vm2729_vm12, %v2648_v38  ;;  %3139 = vrot.lane.b32.xlu1 %v3035_v49, %s10294_s25  ;;  %v7650_v38 = vld [vmem:[#allocation3 + $0xea] sm:$0xff] }
 0x2a7   : > { %7169 = vmatmul.mubr.f32.gmra.mrb[42].mxu1 %v4227_v47  ;;  %4097 = vrot.lane.b32.xlu0 %v9045_v39, %s7724_s21  ;;  %v3517_v39 = vld [vmem:[#allocation3 + $0xdf] sm:$0xff]  ;;  %v3037_v49 = vld [vmem:[#allocation3 + $0xeb] sm:$0xff] }
 0x2a8   : > { %7171 = vmatprep.mubr.f32.mxu1 %v4228_v50  ;;  %v3124_v54 = vpop.permute.xlu1 %3123  ;;  %v3757_v50 = vld [vmem:[#allocation3 + $0xee] sm:$0xff] }
 0x2a9   : > { %v3841_v51 = vpop.permute.xlu0 %3840  ;;  %3228 = vst.msk [vmem:[#allocation4 + $0x80] sm:$0xff] %vm3211_vm8, %v3124_v54 }
 0x2aa   : > { %3948 = vst.msk [vmem:[#allocation4 + $0x68] sm:$0xff] %vm3934_vm15, %v3841_v51  ;;  %3380 = vrot.lane.b32.xlu1 %v3276_v57, %s10281_s29 }
 0x2ab   : > { %2663 = vrot.lane.b32.xlu0 %v7648_v58, %s10295_s18  ;;  %v3278_v58 = vld [vmem:[#allocation3 + $0xed] sm:$0xff] }
 0x2ac   : > { %v3365_v61 = vpop.permute.xlu1 %3364 }
 0x2ad   : > { %v4082_v60 = vpop.permute.xlu0 %4081  ;;  %3469 = vst.msk [vmem:[#allocation4 + $0x80] sm:$0xff] %vm3452_vm14, %v3365_v61 }
 0x2ae   : > { %4189 = vst.msk [vmem:[#allocation4 + $0x68] sm:$0xff] %vm4175_vm7, %v4082_v60  ;;  %3621 = vrot.lane.b32.xlu1 %v3517_v39, %s7725_s26  ;;  %v3519_v39 = vld [vmem:[#allocation3 + $0xef] sm:$0xff] }
 0x2af   : > { %2904 = vrot.lane.b32.xlu0 %v2797_v22, %s10279_s24  ;;  %v3038_v22 = vld [vmem:[#allocation3 + $0xf3] sm:$0xff] }
 0x2b0   : > { %v3606_v63 = vpop.permute.xlu1 %3605 }
 0x2b1   : > { %v2889_v14 = vpop.permute.xlu0 %2888  ;;  %3710 = vst.msk [vmem:[#allocation4 + $0x80] sm:$0xff] %vm3693_vm4, %v3606_v63 }
 0x2b2   : > { %2990 = vst.msk [vmem:[#allocation4 + $0x98] sm:$0xff] %vm2970_vm13, %v2889_v14  ;;  %3858 = vrot.lane.b32.xlu1 %v3756_v15, %s10296_s19 }
 0x2b3   : > { %3141 = vrot.lane.b32.xlu0 %v3036_v8, %s10294_s25 }
 0x2b4   : > { %v2650_v16 = vpop.permute.xlu1 %2649 }
 0x2b5   : > { %v3126_v24 = vpop.permute.xlu0 %3125  ;;  %v4229_v52 = vld [vmem:[#allocation4 + $0x68] sm:$0xff]  ;;  %2750 = vst.msk [vmem:[#allocation4 + $0xa0] sm:$0xff] %vm2729_vm12, %v2650_v16 }
 0x2b6   : > { %3229 = vst.msk [vmem:[#allocation4 + $0x88] sm:$0xff] %vm3211_vm8, %v3126_v24  ;;  %7172 = vmatmul.mubr.f32.gmra.mrb[44].mxu1 %v4229_v52  ;;  %4099 = vrot.lane.b32.xlu1 %v9060_v53, %s7724_s21  ;;  %v2798_v53 = vld [vmem:[#allocation3 + $0xe4] sm:$0xff]  ;;  %v3758_v24 = vld [vmem:[#allocation3 + $0xf6] sm:$0xff] }
 0x2b7   : > { %3382 = vrot.lane.b32.xlu0 %v3277_v13, %s10281_s29  ;;  %v3279_v52 = vld [vmem:[#allocation3 + $0xf5] sm:$0xff] }
 0x2b8   : > { %v3843_v32 = vpop.permute.xlu1 %3842 }
 0x2b9   : > { %v3367_v35 = vpop.permute.xlu0 %3366  ;;  %3949 = vst.msk [vmem:[#allocation4 + $0x70] sm:$0xff] %vm3934_vm15, %v3843_v32 }
 0x2ba   : > { %3470 = vst.msk [vmem:[#allocation4 + $0x88] sm:$0xff] %vm3452_vm14, %v3367_v35  ;;  %2665 = vrot.lane.b32.xlu1 %v7649_v27, %s10295_s18  ;;  %v3039_v27 = vld [vmem:[#allocation3 + $0xfb] sm:$0xff] }
 0x2bb   : > { %3623 = vrot.lane.b32.xlu0 %v3518_v26, %s7725_s26 }
 0x2bc   : > { %v4084_v29 = vpop.permute.xlu1 %4083 }
 0x2bd   : > { %v3608_v42 = vpop.permute.xlu0 %3607  ;;  %4190 = vst.msk [vmem:[#allocation4 + $0x70] sm:$0xff] %vm4175_vm7, %v4084_v29 }
 0x2be   : > { %3711 = vst.msk [vmem:[#allocation4 + $0x88] sm:$0xff] %vm3693_vm4, %v3608_v42  ;;  %2906 = vrot.lane.b32.xlu1 %v2798_v53, %s10279_s24  ;;  %v3759_v53 = vld [vmem:[#allocation3 + $0xfe] sm:$0xff] }
 0x2bf   : > { %2667 = vrot.lane.b32.xlu0 %v7650_v38, %s10295_s18 }
 0x2c0   : > { %v2891_v34 = vpop.permute.xlu1 %2890 }
 0x2c1   : > { %v2652_v47 = vpop.permute.xlu0 %2651  ;;  %2991 = vst.msk [vmem:[#allocation4 + $0xa0] sm:$0xff] %vm2970_vm13, %v2891_v34 }
 0x2c2   : > { %2751 = vst.msk [vmem:[#allocation4 + $0xa8] sm:$0xff] %vm2729_vm12, %v2652_v47  ;;  %3143 = vrot.lane.b32.xlu1 %v3037_v49, %s10294_s25  ;;  %v3760_v47 = vld [vmem:[#allocation3 + $0x106] sm:$0xff] }
 0x2c3   : > { %3860 = vrot.lane.b32.xlu0 %v3757_v50, %s10296_s19 }
 0x2c4   : > { %v3128_v54 = vpop.permute.xlu1 %3127  ;;  %v4230_v57 = vld [vmem:[#allocation4 + $0x70] sm:$0xff] }
 0x2c5   : > { %v3845_v51 = vpop.permute.xlu0 %3844  ;;  %3230 = vst.msk [vmem:[#allocation4 + $0x90] sm:$0xff] %vm3211_vm8, %v3128_v54  ;;  %7174 = vmatprep.mubr.f32.mxu1 %v4230_v57  ;;  %v3040_v54 = vld [vmem:[#allocation3 + $0x103] sm:$0xff] }
 0x2c6   : > { %3950 = vst.msk [vmem:[#allocation4 + $0x78] sm:$0xff] %vm3934_vm15, %v3845_v51  ;;  %3384 = vrot.lane.b32.xlu1 %v3278_v58, %s10281_s29  ;;  %v3280_v51 = vld [vmem:[#allocation3 + $0xfd] sm:$0xff] }
 0x2c7   : > { %4101 = vrot.lane.b32.xlu0 %v9111_v19, %s7724_s21  ;;  %v2799_v19 = vld [vmem:[#allocation3 + $0xec] sm:$0xff] }
 0x2c8   : > { %v3369_v61 = vpop.permute.xlu1 %3368 }
 0x2c9   : > { %v4086_v60 = vpop.permute.xlu0 %4085  ;;  %3471 = vst.msk [vmem:[#allocation4 + $0x90] sm:$0xff] %vm3452_vm14, %v3369_v61 }
 0x2ca   : > { %4191 = vst.msk [vmem:[#allocation4 + $0x78] sm:$0xff] %vm4175_vm7, %v4086_v60  ;;  %3625 = vrot.lane.b32.xlu1 %v3519_v39, %s7725_s26  ;;  %v3281_v60 = vld [vmem:[#allocation3 + $0x105] sm:$0xff] }
 0x2cb   : > { %3145 = vrot.lane.b32.xlu0 %v3038_v22, %s10294_s25  ;;  %v2801_v22 = vld [vmem:[#allocation3 + $0xfc] sm:$0xff] }
 0x2cc   : > { %v3610_v63 = vpop.permute.xlu1 %3609 }
 0x2cd   : > { %v2893_v14 = vpop.permute.xlu0 %2892  ;;  %3712 = vst.msk [vmem:[#allocation4 + $0x90] sm:$0xff] %vm3693_vm4, %v3610_v63  ;;  %v7651_v63 = vld [vmem:[#allocation3 + $0x102] sm:$0xff] }
 0x2ce   : > { %2992 = vst.msk [vmem:[#allocation4 + $0xa8] sm:$0xff] %vm2970_vm13, %v2893_v14  ;;  %2669 = vrot.lane.b32.xlu1 %v9105_v7, %s10295_s18  ;;  %v3520_v7 = vld [vmem:[#allocation3 + $0xf7] sm:$0xff] }
 0x2cf   : > { %2908 = vrot.lane.b32.xlu0 %v2799_v19, %s10279_s24 }
 0x2d0   : > { %v2654_v15 = vpop.permute.xlu1 %2653 }
 0x2d1   : > { %v3130_v8 = vpop.permute.xlu0 %3129  ;;  %v4231_v16 = vld [vmem:[#allocation4 + $0x78] sm:$0xff]  ;;  %2752 = vst.msk [vmem:[#allocation4 + $0xb0] sm:$0xff] %vm2729_vm12, %v2654_v15 }
 0x2d2   : > { %3231 = vst.msk [vmem:[#allocation4 + $0x98] sm:$0xff] %vm3211_vm8, %v3130_v8  ;;  %7175 = vmatmul.mubr.f32.gmra.mrb[46].mxu1 %v4231_v16  ;;  %3862 = vrot.lane.b32.xlu1 %v3758_v24, %s10296_s19  ;;  %v2802_v8 = vld [vmem:[#allocation3 + $0x104] sm:$0xff]  ;;  %v3761_v16 = vld [vmem:[#allocation3 + $0x10e] sm:$0xff] }
 0x2d3   : > { %3386 = vrot.lane.b32.xlu0 %v3279_v52, %s10281_s29 }
 0x2d4   : > { %v2895_v32 = vpop.permute.xlu1 %2894 }
 0x2d5   : > { %v3371_v13 = vpop.permute.xlu0 %3370  ;;  %2993 = vst.msk [vmem:[#allocation4 + $0xb0] sm:$0xff] %vm2970_vm13, %v2895_v32 }
 0x2d6   : > { %3472 = vst.msk [vmem:[#allocation4 + $0x98] sm:$0xff] %vm3452_vm14, %v3371_v13  ;;  %4103 = vrot.lane.b32.xlu1 %v9130_v41, %s7724_s21  ;;  %v2800_v41 = vld [vmem:[#allocation3 + $0xf4] sm:$0xff]  ;;  %v3522_v13 = vld [vmem:[#allocation3 + $0x107] sm:$0xff] }
 0x2d7   : > { %3627 = vrot.lane.b32.xlu0 %v3520_v7, %s7725_s26 }
 0x2d8   : > { %v3847_v35 = vpop.permute.xlu1 %3846 }
 0x2d9   : > { %v3612_v26 = vpop.permute.xlu0 %3611  ;;  %3951 = vst.msk [vmem:[#allocation4 + $0x80] sm:$0xff] %vm3934_vm15, %v3847_v35  ;;  %v3041_v35 = vld [vmem:[#allocation3 + $0x10b] sm:$0xff] }
 0x2da   : > { %3713 = vst.msk [vmem:[#allocation4 + $0x98] sm:$0xff] %vm3693_vm4, %v3612_v26  ;;  %3147 = vrot.lane.b32.xlu1 %v3039_v27, %s10294_s25 }
 0x2db   : > { %2671 = vrot.lane.b32.xlu0 %v9122_v37, %s10295_s18 }
 0x2dc   : > { %v4088_v29 = vpop.permute.xlu1 %4087 }
 0x2dd   : > { %v2656_v42 = vpop.permute.xlu0 %2655  ;;  %4192 = vst.msk [vmem:[#allocation4 + $0x80] sm:$0xff] %vm4175_vm7, %v4088_v29  ;;  %v2803_v29 = vld [vmem:[#allocation3 + $0x10c] sm:$0xff] }
 0x2de   : > { %2753 = vst.msk [vmem:[#allocation4 + $0xb8] sm:$0xff] %vm2729_vm12, %v2656_v42  ;;  %2910 = vrot.lane.b32.xlu1 %v2800_v41, %s10279_s24 }
 0x2df   : > { %3864 = vrot.lane.b32.xlu0 %v3759_v53, %s10296_s19 }
 0x2e0   : > { %v3132_v38 = vpop.permute.xlu1 %3131 }
 0x2e1   : > { %v2897_v34 = vpop.permute.xlu0 %2896  ;;  %3232 = vst.msk [vmem:[#allocation4 + $0xa0] sm:$0xff] %vm3211_vm8, %v3132_v38 }
 0x2e2   : > { %2994 = vst.msk [vmem:[#allocation4 + $0xb8] sm:$0xff] %vm2970_vm13, %v2897_v34  ;;  %3866 = vrot.lane.b32.xlu1 %v3760_v47, %s10296_s19 }
 0x2e3   : > { %4105 = vrot.lane.b32.xlu0 %v9139_v59, %s7724_s21  ;;  %v3521_v59 = vld [vmem:[#allocation3 + $0xff] sm:$0xff] }
 0x2e4   : > { %v3373_v37 = vpop.permute.xlu1 %3372  ;;  %v4232_v50 = vld [vmem:[#allocation4 + $0x80] sm:$0xff] }
 0x2e5   : > { %v3849_v49 = vpop.permute.xlu0 %3848  ;;  %3473 = vst.msk [vmem:[#allocation4 + $0xa0] sm:$0xff] %vm3452_vm14, %v3373_v37  ;;  %7177 = vmatprep.mubr.f32.mxu1 %v4232_v50  ;;  %v3523_v37 = vld [vmem:[#allocation3 + $0x10f] sm:$0xff] }
 0x2e6   : > { %3952 = vst.msk [vmem:[#allocation4 + $0x88] sm:$0xff] %vm3934_vm15, %v3849_v49  ;;  %3388 = vrot.lane.b32.xlu1 %v3280_v51, %s10281_s29  ;;  %v3042_v49 = vld [vmem:[#allocation3 + $0x113] sm:$0xff] }
 0x2e7   : > { %3149 = vrot.lane.b32.xlu0 %v3040_v54, %s10294_s25 }
 0x2e8   : > { %v3614_v58 = vpop.permute.xlu1 %3613 }
 0x2e9   : > { %v4090_v57 = vpop.permute.xlu0 %4089  ;;  %3714 = vst.msk [vmem:[#allocation4 + $0xa0] sm:$0xff] %vm3693_vm4, %v3614_v58  ;;  %v2804_v58 = vld [vmem:[#allocation3 + $0x114] sm:$0xff] }
 0x2ea   : > { %4193 = vst.msk [vmem:[#allocation4 + $0x88] sm:$0xff] %vm4175_vm7, %v4090_v57  ;;  %3629 = vrot.lane.b32.xlu1 %v3521_v59, %s7725_s26  ;;  %v3763_v59 = vld [vmem:[#allocation3 + $0x11e] sm:$0xff] }
 0x2eb   : > { %3390 = vrot.lane.b32.xlu0 %v3281_v60, %s10281_s29 }
 0x2ec   : > { %v2658_v39 = vpop.permute.xlu1 %2657 }
 0x2ed   : > { %v3134_v61 = vpop.permute.xlu0 %3133  ;;  %2754 = vst.msk [vmem:[#allocation4 + $0xc0] sm:$0xff] %vm2729_vm12, %v2658_v39  ;;  %v3524_v39 = vld [vmem:[#allocation3 + $0x117] sm:$0xff] }
 0x2ee   : > { %3233 = vst.msk [vmem:[#allocation4 + $0xa8] sm:$0xff] %vm3211_vm8, %v3134_v61  ;;  %2673 = vrot.lane.b32.xlu1 %v7651_v63, %s10295_s18 }
 0x2ef   : > { %2912 = vrot.lane.b32.xlu0 %v2801_v22, %s10279_s24 }
 0x2f0   : > { %v2899_v19 = vpop.permute.xlu1 %2898 }
 0x2f1   : > { %v3375_v14 = vpop.permute.xlu0 %3374  ;;  %v4233_v15 = vld [vmem:[#allocation4 + $0x88] sm:$0xff]  ;;  %2995 = vst.msk [vmem:[#allocation4 + $0xc0] sm:$0xff] %vm2970_vm13, %v2899_v19 }
 0x2f2   : > { %3474 = vst.msk [vmem:[#allocation4 + $0xa8] sm:$0xff] %vm3452_vm14, %v3375_v14  ;;  %7178 = vmatmul.mubr.f32.gmra.mrb[48].mxu1 %v4233_v15  ;;  %2914 = vrot.lane.b32.xlu1 %v2802_v8, %s10279_s24  ;;  %v3043_v14 = vld [vmem:[#allocation3 + $0x11b] sm:$0xff] }
 0x2f3   : > { %3868 = vrot.lane.b32.xlu0 %v3761_v16, %s10296_s19  ;;  %v2805_v8 = vld [vmem:[#allocation3 + $0x11c] sm:$0xff] }
 0x2f4   : > { %v3851_v52 = vpop.permute.xlu1 %3850 }
 0x2f5   : > { %v3853_v24 = vpop.permute.xlu0 %3852  ;;  %3953 = vst.msk [vmem:[#allocation4 + $0x90] sm:$0xff] %vm3934_vm15, %v3851_v52  ;;  %v3525_v52 = vld [vmem:[#allocation3 + $0x11f] sm:$0xff] }
 0x2f6   : > { %3954 = vst.msk [vmem:[#allocation4 + $0x98] sm:$0xff] %vm3934_vm15, %v3853_v24  ;;  %4107 = vrot.lane.b32.xlu1 %v9186_v30, %s7724_s21  ;;  %v3282_v30 = vld [vmem:[#allocation3 + $0x10d] sm:$0xff] }
 0x2f7   : > { %3631 = vrot.lane.b32.xlu0 %v3522_v13, %s7725_s26 }
 0x2f8   : > { %v4092_v7 = vpop.permute.xlu1 %4091 }
 0x2f9   : > { %v4094_v32 = vpop.permute.xlu0 %4093  ;;  %4194 = vst.msk [vmem:[#allocation4 + $0x90] sm:$0xff] %vm4175_vm7, %v4092_v7  ;;  %v3048_v7 = vld [vmem:[#allocation3 + $0x143] sm:$0xff] }
 0x2fa   : > { %4195 = vst.msk [vmem:[#allocation4 + $0x98] sm:$0xff] %vm4175_vm7, %v4094_v32  ;;  %3151 = vrot.lane.b32.xlu1 %v3041_v35, %s10294_s25  ;;  %v3764_v35 = vld [vmem:[#allocation3 + $0x126] sm:$0xff] }
 0x2fb   : > { %2675 = vrot.lane.b32.xlu0 %v9180_v12, %s10295_s18  ;;  %v3762_v12 = vld [vmem:[#allocation3 + $0x116] sm:$0xff] }
 0x2fc   : > { %v3136_v27 = vpop.permute.xlu1 %3135 }
 0x2fd   : > { %v3616_v26 = vpop.permute.xlu0 %3615  ;;  %3234 = vst.msk [vmem:[#allocation4 + $0xb0] sm:$0xff] %vm3211_vm8, %v3136_v27 }
 0x2fe   : > { %3715 = vst.msk [vmem:[#allocation4 + $0xa8] sm:$0xff] %vm3693_vm4, %v3616_v26  ;;  %3392 = vrot.lane.b32.xlu1 %v3282_v30, %s10281_s29 }
 0x2ff   : > { %2916 = vrot.lane.b32.xlu0 %v2803_v29, %s10279_s24 }
 0x300   : > { %v3377_v42 = vpop.permute.xlu1 %3376  ;;  %v4234_v53 = vld [vmem:[#allocation4 + $0x90] sm:$0xff] }
 0x301   : > { %v2660_v41 = vpop.permute.xlu0 %2659  ;;  %v4235_v38 = vld [vmem:[#allocation4 + $0x98] sm:$0xff]  ;;  %3475 = vst.msk [vmem:[#allocation4 + $0xb0] sm:$0xff] %vm3452_vm14, %v3377_v42  ;;  %7180 = vmatprep.mubr.f32.mxu1 %v4234_v53  ;;  %v3285_v42 = vld [vmem:[#allocation3 + $0x125] sm:$0xff] }
 0x302   : > { %2755 = vst.msk [vmem:[#allocation4 + $0xc8] sm:$0xff] %vm2729_vm12, %v2660_v41  ;;  %3870 = vrot.lane.b32.xlu1 %v3762_v12, %s10296_s19  ;;  %7181 = vmatmul.mubr.f32.gmra.mrb[50].mxu1 %v4235_v38  ;;  %v2806_v38 = vld [vmem:[#allocation3 + $0x124] sm:$0xff] }
 0x303   : > { %4109 = vrot.lane.b32.xlu0 %v9225_v11, %s7724_s21  ;;  %v3283_v11 = vld [vmem:[#allocation3 + $0x115] sm:$0xff] }
 0x304   : > { %v3618_v34 = vpop.permute.xlu1 %3617 }
 0x305   : > { %v2901_v47 = vpop.permute.xlu0 %2900  ;;  %3716 = vst.msk [vmem:[#allocation4 + $0xb0] sm:$0xff] %vm3693_vm4, %v3618_v34 }
 0x306   : > { %2996 = vst.msk [vmem:[#allocation4 + $0xc8] sm:$0xff] %vm2970_vm13, %v2901_v47  ;;  %3633 = vrot.lane.b32.xlu1 %v3523_v37, %s7725_s26  ;;  %v3765_v37 = vld [vmem:[#allocation3 + $0x12e] sm:$0xff] }
 0x307   : > { %3153 = vrot.lane.b32.xlu0 %v3042_v49, %s10294_s25 }
 0x308   : > { %v3855_v50 = vpop.permute.xlu1 %3854 }
 0x309   : > { %v3138_v51 = vpop.permute.xlu0 %3137  ;;  %3955 = vst.msk [vmem:[#allocation4 + $0xa0] sm:$0xff] %vm3934_vm15, %v3855_v50 }
 0x30a   : > { %3235 = vst.msk [vmem:[#allocation4 + $0xb8] sm:$0xff] %vm3211_vm8, %v3138_v51  ;;  %2677 = vrot.lane.b32.xlu1 %v9196_v40, %s10295_s18  ;;  %v3045_v51 = vld [vmem:[#allocation3 + $0x12b] sm:$0xff] }
 0x30b   : > { %3394 = vrot.lane.b32.xlu0 %v3283_v11, %s10281_s29 }
 0x30c   : > { %v4096_v54 = vpop.permute.xlu1 %4095 }
 0x30d   : > { %v3379_v57 = vpop.permute.xlu0 %3378  ;;  %4196 = vst.msk [vmem:[#allocation4 + $0xa0] sm:$0xff] %vm4175_vm7, %v4096_v54 }
 0x30e   : > { %3476 = vst.msk [vmem:[#allocation4 + $0xb8] sm:$0xff] %vm3452_vm14, %v3379_v57  ;;  %2918 = vrot.lane.b32.xlu1 %v2804_v58, %s10279_s24  ;;  %v3767_v57 = vld [vmem:[#allocation3 + $0x13e] sm:$0xff] }
 0x30f   : > { %3872 = vrot.lane.b32.xlu0 %v3763_v59, %s10296_s19 }
 0x310   : > { %v2662_v61 = vpop.permute.xlu1 %2661 }
 0x311   : > { %v3620_v60 = vpop.permute.xlu0 %3619  ;;  %2756 = vst.msk [vmem:[#allocation4 + $0xd0] sm:$0xff] %vm2729_vm12, %v2662_v61 }
 0x312   : > { %3717 = vst.msk [vmem:[#allocation4 + $0xb8] sm:$0xff] %vm3693_vm4, %v3620_v60  ;;  %4111 = vrot.lane.b32.xlu1 %v9236_v21, %s7724_s21  ;;  %v3284_v21 = vld [vmem:[#allocation3 + $0x11d] sm:$0xff]  ;;  %v3286_v60 = vld [vmem:[#allocation3 + $0x12d] sm:$0xff] }
 0x313   : > { %3635 = vrot.lane.b32.xlu0 %v3524_v39, %s7725_s26 }
 0x314   : > { %v2903_v40 = vpop.permute.xlu1 %2902  ;;  %v4236_v63 = vld [vmem:[#allocation4 + $0xa0] sm:$0xff] }
 0x315   : > { %v3857_v22 = vpop.permute.xlu0 %3856  ;;  %2997 = vst.msk [vmem:[#allocation4 + $0xd0] sm:$0xff] %vm2970_vm13, %v2903_v40  ;;  %7183 = vmatprep.mubr.f32.mxu1 %v4236_v63 }
 0x316   : > { %3956 = vst.msk [vmem:[#allocation4 + $0xa8] sm:$0xff] %vm3934_vm15, %v3857_v22  ;;  %3155 = vrot.lane.b32.xlu1 %v3043_v14, %s10294_s25  ;;  %v3527_v22 = vld [vmem:[#allocation3 + $0x12f] sm:$0xff] }
 0x317   : > { %2679 = vrot.lane.b32.xlu0 %v9208_v10, %s10295_s18 }
 0x318   : > { %v3140_v15 = vpop.permute.xlu1 %3139 }
 0x319   : > { %v4098_v19 = vpop.permute.xlu0 %4097  ;;  %3236 = vst.msk [vmem:[#allocation4 + $0xc0] sm:$0xff] %vm3211_vm8, %v3140_v15  ;;  %v3047_v15 = vld [vmem:[#allocation3 + $0x13b] sm:$0xff] }
 0x31a   : > { %4197 = vst.msk [vmem:[#allocation4 + $0xa8] sm:$0xff] %vm4175_vm7, %v4098_v19  ;;  %3396 = vrot.lane.b32.xlu1 %v3284_v21, %s10281_s29  ;;  %v3287_v19 = vld [vmem:[#allocation3 + $0x135] sm:$0xff] }
 0x31b   : > { %2920 = vrot.lane.b32.xlu0 %v2805_v8, %s10279_s24 }
 0x31c   : > { %v3381_v16 = vpop.permute.xlu1 %3380 }
 0x31d   : > { %v2664_v24 = vpop.permute.xlu0 %2663  ;;  %3477 = vst.msk [vmem:[#allocation4 + $0xc0] sm:$0xff] %vm3452_vm14, %v3381_v16  ;;  %v3288_v16 = vld [vmem:[#allocation3 + $0x13d] sm:$0xff] }
 0x31e   : > { %2757 = vst.msk [vmem:[#allocation4 + $0xd8] sm:$0xff] %vm2729_vm12, %v2664_v24  ;;  %3637 = vrot.lane.b32.xlu1 %v3525_v52, %s7725_s26  ;;  %v2566_v24 = vld [vmem:[#allocation3 + $0x12a] sm:$0xff] }
 0x31f   : > { %4113 = vrot.lane.b32.xlu0 %v9244_v31, %s7724_s21  ;;  %v3044_v31 = vld [vmem:[#allocation3 + $0x123] sm:$0xff] }
 0x320   : > { %v3622_v10 = vpop.permute.xlu1 %3621 }
 0x321   : > { %v2905_v13 = vpop.permute.xlu0 %2904  ;;  %v4237_v32 = vld [vmem:[#allocation4 + $0xa8] sm:$0xff]  ;;  %3718 = vst.msk [vmem:[#allocation4 + $0xc0] sm:$0xff] %vm3693_vm4, %v3622_v10 }
 0x322   : > { %2998 = vst.msk [vmem:[#allocation4 + $0xd8] sm:$0xff] %vm2970_vm13, %v2905_v13  ;;  %7184 = vmatmul.mubr.f32.gmra.mrb[52].mxu1 %v4237_v32  ;;  %3874 = vrot.lane.b32.xlu1 %v3764_v35, %s10296_s19  ;;  %v2567_v13 = vld [vmem:[#allocation3 + $0x132] sm:$0xff] }
 0x323   : > { %3165 = vrot.lane.b32.xlu0 %v3048_v7, %s10294_s25  ;;  %v3528_v32 = vld [vmem:[#allocation3 + $0x137] sm:$0xff] }
 0x324   : > { %v3859_v26 = vpop.permute.xlu1 %3858 }
 0x325   : > { %v3142_v27 = vpop.permute.xlu0 %3141  ;;  %3957 = vst.msk [vmem:[#allocation4 + $0xb0] sm:$0xff] %vm3934_vm15, %v3859_v26 }
 0x326   : > { %3237 = vst.msk [vmem:[#allocation4 + $0xc8] sm:$0xff] %vm3211_vm8, %v3142_v27  ;;  %4115 = vrot.lane.b32.xlu1 %v9262_v4, %s7724_s21  ;;  %v3526_v4 = vld [vmem:[#allocation3 + $0x127] sm:$0xff]  ;;  %v3529_v27 = vld [vmem:[#allocation3 + $0x13f] sm:$0xff] }
 0x327   : > { %3157 = vrot.lane.b32.xlu0 %v3044_v31, %s10294_s25  ;;  %v2807_v31 = vld [vmem:[#allocation3 + $0x12c] sm:$0xff] }
 0x328   : > { %v4100_v30 = vpop.permute.xlu1 %4099 }
 0x329   : > { %v3383_v29 = vpop.permute.xlu0 %3382  ;;  %4198 = vst.msk [vmem:[#allocation4 + $0xb0] sm:$0xff] %vm4175_vm7, %v4100_v30 }
 0x32a   : > { %3478 = vst.msk [vmem:[#allocation4 + $0xc8] sm:$0xff] %vm3452_vm14, %v3383_v29  ;;  %2681 = vrot.lane.b32.xlu1 %v9260_v33, %s10295_s18  ;;  %v3766_v33 = vld [vmem:[#allocation3 + $0x136] sm:$0xff] }
 0x32b   : > { %3398 = vrot.lane.b32.xlu0 %v3285_v42, %s10281_s29  ;;  %v2808_v42 = vld [vmem:[#allocation3 + $0x134] sm:$0xff] }
 0x32c   : > { %v2666_v53 = vpop.permute.xlu1 %2665 }
 0x32d   : > { %v3624_v41 = vpop.permute.xlu0 %3623  ;;  %2758 = vst.msk [vmem:[#allocation4 + $0xe0] sm:$0xff] %vm2729_vm12, %v2666_v53 }
 0x32e   : > { %3719 = vst.msk [vmem:[#allocation4 + $0xc8] sm:$0xff] %vm3693_vm4, %v3624_v41  ;;  %2922 = vrot.lane.b32.xlu1 %v2806_v38, %s10279_s24  ;;  %v2568_v41 = vld [vmem:[#allocation3 + $0x13a] sm:$0xff]  ;;  %v3773_v38 = vld [vmem:[#allocation3 + $0x16e] sm:$0xff] }
 0x32f   : > { %3639 = vrot.lane.b32.xlu0 %v3526_v4, %s7725_s26 }
 0x330   : > { %v2907_v12 = vpop.permute.xlu1 %2906  ;;  %v4238_v47 = vld [vmem:[#allocation4 + $0xb0] sm:$0xff] }
 0x331   : > { %v2668_v34 = vpop.permute.xlu0 %2667  ;;  %2999 = vst.msk [vmem:[#allocation4 + $0xe0] sm:$0xff] %vm2970_vm13, %v2907_v12  ;;  %7186 = vmatprep.mubr.f32.mxu1 %v4238_v47  ;;  %v2809_v12 = vld [vmem:[#allocation3 + $0x13c] sm:$0xff] }
 0x332   : > { %2759 = vst.msk [vmem:[#allocation4 + $0xe8] sm:$0xff] %vm2729_vm12, %v2668_v34  ;;  %3878 = vrot.lane.b32.xlu1 %v3766_v33, %s10296_s19 }
 0x333   : > { %3876 = vrot.lane.b32.xlu0 %v3765_v37, %s10296_s19  ;;  %v4014_v37 = vld [vmem:[#allocation3 + $0x170] sm:$0xff] }
 0x334   : > { %v3144_v49 = vpop.permute.xlu1 %3143 }
 0x335   : > { %v3861_v50 = vpop.permute.xlu0 %3860  ;;  %3238 = vst.msk [vmem:[#allocation4 + $0xd0] sm:$0xff] %vm3211_vm8, %v3144_v49  ;;  %v4013_v49 = vld [vmem:[#allocation3 + $0x168] sm:$0xff] }
 0x336   : > { %3958 = vst.msk [vmem:[#allocation4 + $0xb8] sm:$0xff] %vm3934_vm15, %v3861_v50  ;;  %3159 = vrot.lane.b32.xlu1 %v3045_v51, %s10294_s25 }
 0x337   : > { %4117 = vrot.lane.b32.xlu0 %v9312_v48, %s7724_s21  ;;  %v3046_v48 = vld [vmem:[#allocation3 + $0x133] sm:$0xff] }
 0x338   : > { %v3385_v54 = vpop.permute.xlu1 %3384 }
 0x339   : > { %v4102_v11 = vpop.permute.xlu0 %4101  ;;  %3479 = vst.msk [vmem:[#allocation4 + $0xd0] sm:$0xff] %vm3452_vm14, %v3385_v54 }
 0x33a   : > { %4199 = vst.msk [vmem:[#allocation4 + $0xb8] sm:$0xff] %vm4175_vm7, %v4102_v11  ;;  %4119 = vrot.lane.b32.xlu1 %v9276_v18, %s7724_s21  ;;  %v4008_v18 = vld [vmem:[#allocation3 + $0x140] sm:$0xff]  ;;  %v9544_v11 = vld [vmem:[%s10255_s6] ss:$0 sm:$0xff] }
 0x33b   : > { %3880 = vrot.lane.b32.xlu0 %v3767_v57, %s10296_s19 }
 0x33c   : > { %v3626_v58 = vpop.permute.xlu1 %3625 }
 0x33d   : > { %v3146_v59 = vpop.permute.xlu0 %3145  ;;  %3720 = vst.msk [vmem:[#allocation4 + $0xd0] sm:$0xff] %vm3693_vm4, %v3626_v58 }
 0x33e   : > { %3239 = vst.msk [vmem:[#allocation4 + $0xd8] sm:$0xff] %vm3211_vm8, %v3146_v59  ;;  %3400 = vrot.lane.b32.xlu1 %v3286_v60, %s10281_s29 }
 0x33f   : > { %3161 = vrot.lane.b32.xlu0 %v3046_v48, %s10294_s25 }
 0x340   : > { %v2670_v39 = vpop.permute.xlu1 %2669 }
 0x341   : > { %v2909_v61 = vpop.permute.xlu0 %2908  ;;  %v4239_v40 = vld [vmem:[#allocation4 + $0xb8] sm:$0xff]  ;;  %2760 = vst.msk [vmem:[#allocation4 + $0xf0] sm:$0xff] %vm2729_vm12, %v2670_v39 }
 0x342   : > { %3000 = vst.msk [vmem:[#allocation4 + $0xe8] sm:$0xff] %vm2970_vm13, %v2909_v61  ;;  %7187 = vmatmul.mubr.f32.gmra.mrb[54].mxu1 %v4239_v40  ;;  %3641 = vrot.lane.b32.xlu1 %v3527_v22, %s7725_s26 }
 0x343   : > { %4121 = vrot.lane.b32.xlu0 %v4008_v18, %s7724_s21 }
 0x344   : > { %v3863_v63 = vpop.permute.xlu1 %3862 }
 0x345   : > { %v3387_v14 = vpop.permute.xlu0 %3386  ;;  %3959 = vst.msk [vmem:[#allocation4 + $0xc0] sm:$0xff] %vm3934_vm15, %v3863_v63 }
 0x346   : > { %3480 = vst.msk [vmem:[#allocation4 + $0xd8] sm:$0xff] %vm3452_vm14, %v3387_v14  ;;  %3163 = vrot.lane.b32.xlu1 %v3047_v15, %s10294_s25 }
 0x347   : > { %3402 = vrot.lane.b32.xlu0 %v3287_v19, %s10281_s29 }
 0x348   : > { %v4104_v21 = vpop.permute.xlu1 %4103 }
 0x349   : > { %v3628_v8 = vpop.permute.xlu0 %3627  ;;  %4200 = vst.msk [vmem:[#allocation4 + $0xc0] sm:$0xff] %vm4175_vm7, %v4104_v21 }
 0x34a   : > { %3721 = vst.msk [vmem:[#allocation4 + $0xd8] sm:$0xff] %vm3693_vm4, %v3628_v8  ;;  %3404 = vrot.lane.b32.xlu1 %v3288_v16, %s10281_s29 }
 0x34b   : > { %2683 = vrot.lane.b32.xlu0 %v2566_v24, %s10295_s18 }
 0x34c   : > { %v3148_v52 = vpop.permute.xlu1 %3147 }
 0x34d   : > { %v2672_v10 = vpop.permute.xlu0 %2671  ;;  %3240 = vst.msk [vmem:[#allocation4 + $0xe0] sm:$0xff] %vm3211_vm8, %v3148_v52 }
 0x34e   : > { %2761 = vst.msk [vmem:[#allocation4 + $0xf8] sm:$0xff] %vm2729_vm12, %v2672_v10  ;;  %2685 = vrot.lane.b32.xlu1 %v2567_v13, %s10295_s18 }
 0x34f   : > { %3643 = vrot.lane.b32.xlu0 %v3528_v32, %s7725_s26 }
 0x350   : > { %v2911_v7 = vpop.permute.xlu1 %2910  ;;  %v4240_v26 = vld [vmem:[#allocation4 + $0xc0] sm:$0xff] }
 0x351   : > { %v3865_v35 = vpop.permute.xlu0 %3864  ;;  %3001 = vst.msk [vmem:[#allocation4 + $0xf0] sm:$0xff] %vm2970_vm13, %v2911_v7  ;;  %7189 = vmatprep.mubr.f32.mxu1 %v4240_v26 }
 0x352   : > { %3960 = vst.msk [vmem:[#allocation4 + $0xc8] sm:$0xff] %vm3934_vm15, %v3865_v35  ;;  %3645 = vrot.lane.b32.xlu1 %v3529_v27, %s7725_s26  ;;  %s6409_s26 = sshll.u32 %s7842_s30, 4  ;;  %s7727_s30 = smov [#allocation11]  }
 0x353   : > { %2924 = vrot.lane.b32.xlu0 %v2807_v31, %s10279_s24  ;;  %s10207_s20 = scalar_lea.hbm %s10266_s17, %s6409_s26  ;;  %s7657_s25 = sshll.u32 %s7727_s30, 4  ;;  %s7658_s25 = int_to_ptr.vmem [resolvable:$false] %s7657_s25 }
 0x354   : > { %v3867_v30 = vpop.permute.xlu1 %3866 }
 0x355   : > { %v4106_v29 = vpop.permute.xlu0 %4105  ;;  %3961 = vst.msk [vmem:[#allocation4 + $0xd0] sm:$0xff] %vm3934_vm15, %v3867_v30 }
 0x356   : > { %4201 = vst.msk [vmem:[#allocation4 + $0xc8] sm:$0xff] %vm4175_vm7, %v4106_v29  ;;  %2926 = vrot.lane.b32.xlu1 %v2808_v42, %s10279_s24 }
 0x357   : > { %2687 = vrot.lane.b32.xlu0 %v2568_v41, %s10295_s18  ;;  %s10298_s18 = smov 32  }
 0x358   : > { %v3389_v53 = vpop.permute.xlu1 %3388 }
 0x359   : > { %v3150_v4 = vpop.permute.xlu0 %3149  ;;  %3481 = vst.msk [vmem:[#allocation4 + $0xe0] sm:$0xff] %vm3452_vm14, %v3389_v53 }
 0x35a   : > { %3241 = vst.msk [vmem:[#allocation4 + $0xe8] sm:$0xff] %vm3211_vm8, %v3150_v4  ;;  %3892 = vrot.lane.b32.xlu1 %v3773_v38, %s10296_s19 }
 0x35b   : > { %2928 = vrot.lane.b32.xlu0 %v2809_v12, %s10279_s24 }
 0x35c   : > { %v3630_v34 = vpop.permute.xlu1 %3629 }
 0x35d   : > { %v3391_v47 = vpop.permute.xlu0 %3390  ;;  %v4241_v33 = vld [vmem:[#allocation4 + $0xc8] sm:$0xff]  ;;  %3722 = vst.msk [vmem:[#allocation4 + $0xe0] sm:$0xff] %vm3693_vm4, %v3630_v34 }
 0x35e   : > { %3482 = vst.msk [vmem:[#allocation4 + $0xe8] sm:$0xff] %vm3452_vm14, %v3391_v47  ;;  %7190 = vmatmul.mubr.f32.gmra.mrb[56].mxu1 %v4241_v33  ;;  %4133 = vrot.lane.b32.xlu1 %v4014_v37, %s7724_s21 }
 0x35f   : > { %4131 = vrot.lane.b32.xlu0 %v4013_v49, %s7724_s21 }
 0x360   : > { %v2674_v51 = vpop.permute.xlu1 %2673 }
 0x361   : > { %v2913_v50 = vpop.permute.xlu0 %2912  ;;  %2762 = vst.msk [vmem:[#allocation4 + $0x100] sm:$0xff] %vm2729_vm12, %v2674_v51 }
 0x362   : > { %3002 = vst.msk [vmem:[#allocation4 + $0xf8] sm:$0xff] %vm2970_vm13, %v2913_v50 }
 0x364   : > { %v2915_v54 = vpop.permute.xlu1 %2914 }
 0x365   : > { %v3869_v57 = vpop.permute.xlu0 %3868  ;;  %3003 = vst.msk [vmem:[#allocation4 + $0x100] sm:$0xff] %vm2970_vm13, %v2915_v54 }
 0x366   : > { %3962 = vst.msk [vmem:[#allocation4 + $0xd8] sm:$0xff] %vm3934_vm15, %v3869_v57  ;;  %v7155_v58 = vpop.f32.mrb[32].mxu1 }
 0x367   : > { %v4972_v59 = vadd.f32 %v7155_v58, %v9544_v11  ;;  %v4765_v48 = vpop.f32.mrb[33].mxu1 }
 0x368   : > { %v4971_v60 = vadd.f32 %v9544_v11, %v4765_v48  ;;  %v4108_v39 = vpop.permute.xlu1 %4107 }
 0x369   : > { %vm5012_vm3 = vcmp.ge.f32.partialorder %v4972_v59, 0.0  ;;  %v5052_v61 = vmul.f32 %v4972_v59, %v8195_v25  ;;  %v3632_v40 = vpop.permute.xlu0 %3631  ;;  %4202 = vst.msk [vmem:[#allocation4 + $0xd0] sm:$0xff] %vm4175_vm7, %v4108_v39 }
 0x36a   : > { %vm5011_vm5 = vcmp.ge.f32.partialorder %v4971_v60, 0.0  ;;  %v5051_v18 = vmul.f32 %v4971_v60, %v8195_v25  ;;  %3723 = vst.msk [vmem:[#allocation4 + $0xe8] sm:$0xff] %vm3693_vm4, %v3632_v40  ;;  %v7158_v22 = vpop.f32.mrb[34].mxu1 }
 0x36b   : > { %v5092_v63 = vsel %vm5012_vm3, %v4972_v59, %v5052_v61  ;;  %v4974_v14 = vadd.f32 %v7158_v22, %v9544_v11  ;;  %v4775_v19 = vpop.f32.mrb[35].mxu1 }
 0x36c   : > { %5133 = vst.msk [vmem:[#allocation5 + $0x8] sm:$0xff] %vm5131_vm11, %v5092_v63  ;;  %v5091_v15 = vsel %vm5011_vm5, %v4971_v60, %v5051_v18  ;;  %v4973_v21 = vadd.f32 %v9544_v11, %v4775_v19  ;;  %v3152_v16 = vpop.permute.xlu1 %3151 }
 0x36d   : > { %5132 = vst.msk [vmem:[#allocation5] sm:$0xff] %vm5131_vm11, %v5091_v15  ;;  %vm5014_vm6 = vcmp.ge.f32.partialorder %v4974_v14, 0.0  ;;  %v5054_v8 = vmul.f32 %v4974_v14, %v8195_v25  ;;  %v2676_v24 = vpop.permute.xlu0 %2675 }
 0x36e   : > { %vm5013_vm2 = vcmp.ge.f32.partialorder %v4973_v21, 0.0  ;;  %v5053_v52 = vmul.f32 %v4973_v21, %v8195_v25  ;;  %3242 = vst.msk [vmem:[#allocation4 + $0xf0] sm:$0xff] %vm3211_vm8, %v3152_v16  ;;  %v7161_v10 = vpop.f32.mrb[36].mxu1 }
 0x36f   : > { %2763 = vst.msk [vmem:[#allocation4 + $0x108] sm:$0xff] %vm2729_vm12, %v2676_v24  ;;  %v5094_v13 = vsel %vm5014_vm6, %v4974_v14, %v5054_v8  ;;  %v4976_v32 = vadd.f32 %v7161_v10, %v9544_v11  ;;  %v4785_v7 = vpop.f32.mrb[37].mxu1 }
 0x370   : > { %5135 = vst.msk [vmem:[#allocation5 + $0x18] sm:$0xff] %vm5131_vm11, %v5094_v13  ;;  %v5093_v35 = vsel %vm5013_vm2, %v4973_v21, %v5053_v52  ;;  %v4975_v26 = vadd.f32 %v9544_v11, %v4785_v7  ;;  %v3393_v31 = vpop.permute.xlu1 %3392  ;;  %v4242_v29 = vld [vmem:[#allocation4 + $0xd0] sm:$0xff] }
 0x371   : > { %5134 = vst.msk [vmem:[#allocation5 + $0x10] sm:$0xff] %vm5131_vm11, %v5093_v35  ;;  %vm5016_vm9 = vcmp.ge.f32.partialorder %v4976_v32, 0.0  ;;  %v5056_v27 = vmul.f32 %v4976_v32, %v8195_v25  ;;  %v2917_v30 = vpop.permute.xlu0 %2916  ;;  %7192 = vmatprep.mubr.f32.mxu1 %v4242_v29 }
 0x372   : > { %vm5015_vm10 = vcmp.ge.f32.partialorder %v4975_v26, 0.0  ;;  %v5055_v42 = vmul.f32 %v4975_v26, %v8195_v25  ;;  %3483 = vst.msk [vmem:[#allocation4 + $0xf0] sm:$0xff] %vm3452_vm14, %v3393_v31  ;;  %v7164_v41 = vpop.f32.mrb[38].mxu1 }
 0x373   : > { %3004 = vst.msk [vmem:[#allocation4 + $0x108] sm:$0xff] %vm2970_vm13, %v2917_v30  ;;  %v5096_v53 = vsel %vm5016_vm9, %v4976_v32, %v5056_v27  ;;  %v4978_v4 = vadd.f32 %v7164_v41, %v9544_v11  ;;  %v4795_v38 = vpop.f32.mrb[39].mxu1  ;;  %v5173_v10 = vld [vmem:[#allocation5 + $0x8] sm:$0xff] }
 0x374   : > { %5137 = vst.msk [vmem:[#allocation5 + $0x28] sm:$0xff] %vm5131_vm11, %v5096_v53  ;;  %v5095_v12 = vsel %vm5015_vm10, %v4975_v26, %v5055_v42  ;;  %v4977_v34 = vadd.f32 %v9544_v11, %v4795_v38  ;;  %v3871_v37 = vpop.permute.xlu1 %3870  ;;  %v5172_v39 = vld [vmem:[#allocation5] sm:$0xff]  ;;  %vm5206_vm10 = vcmask 1040384  }
 0x375   : > { %5136 = vst.msk [vmem:[#allocation5 + $0x20] sm:$0xff] %vm5131_vm11, %v5095_v12  ;;  %vm5018_vm1 = vcmp.ge.f32.partialorder %v4978_v4, 0.0  ;;  %v5058_v47 = vmul.f32 %v4978_v4, %v8195_v25  ;;  %v4110_v33 = vpop.permute.xlu0 %4109  ;;  %v5175_v40 = vld [vmem:[#allocation5 + $0x2] sm:$0xff] }
 0x376   : > { %vm5017_vm3 = vcmp.ge.f32.partialorder %v4977_v34, 0.0  ;;  %v5057_v49 = vmul.f32 %v4977_v34, %v8195_v25  ;;  %4203 = vst.msk [vmem:[#allocation4 + $0xd8] sm:$0xff] %vm4175_vm7, %v4110_v33  ;;  %v7167_v50 = vpop.f32.mrb[40].mxu1  ;;  %v5178_v13 = vmax.f32 %v5172_v39, %v5175_v40 }
 0x377   : > { %3963 = vst.msk [vmem:[#allocation4 + $0xe0] sm:$0xff] %vm3934_vm15, %v3871_v37  ;;  %v5098_v51 = vsel %vm5018_vm1, %v4978_v4, %v5058_v47  ;;  %v4980_v54 = vadd.f32 %v7167_v50, %v9544_v11  ;;  %v4805_v57 = vpop.f32.mrb[41].mxu1  ;;  %vm5208_vm1 = vcmask 1041408  }
 0x378   : > { %5139 = vst.msk [vmem:[#allocation5 + $0x38] sm:$0xff] %vm5131_vm11, %v5098_v51  ;;  %v5097_v58 = vsel %vm5017_vm3, %v4977_v34, %v5057_v49  ;;  %v4979_v59 = vadd.f32 %v9544_v11, %v4805_v57  ;;  %v3634_v60 = vpop.permute.xlu1 %3633  ;;  %v5176_v63 = vld [vmem:[#allocation5 + $0xa] sm:$0xff]  ;;  %v5177_v29 = vld [vmem:[#allocation5 + $0x12] sm:$0x1f]  ;;  %vm5210_vm3 = vcmask 1042432  }
 0x379   : > { %5138 = vst.msk [vmem:[#allocation5 + $0x30] sm:$0xff] %vm5131_vm11, %v5097_v58  ;;  %vm5020_vm5 = vcmp.ge.f32.partialorder %v4980_v54, 0.0  ;;  %v5060_v48 = vmul.f32 %v4980_v54, %v8195_v25  ;;  %v3154_v61 = vpop.permute.xlu0 %3153  ;;  %v5174_v30 = vld [vmem:[#allocation5 + $0x10] sm:$0x1f]  ;;  %v5179_v42 = vmax.f32 %v5173_v10, %v5176_v63 }
 0x37a   : > { %vm5019_vm6 = vcmp.ge.f32.partialorder %v4979_v59, 0.0  ;;  %v5059_v18 = vmul.f32 %v4979_v59, %v8195_v25  ;;  %3724 = vst.msk [vmem:[#allocation4 + $0xf0] sm:$0xff] %vm3693_vm4, %v3634_v60  ;;  %v7170_v22 = vpop.f32.mrb[42].mxu1  ;;  %v5180_v37 = vmax.f32 %v5174_v30, %v5177_v29 }
 0x37b   : > { %3243 = vst.msk [vmem:[#allocation4 + $0xf8] sm:$0xff] %vm3211_vm8, %v3154_v61  ;;  %v5100_v14 = vsel %vm5020_vm5, %v4980_v54, %v5060_v48  ;;  %v4982_v19 = vadd.f32 %v7170_v22, %v9544_v11  ;;  %v4815_v15 = vpop.f32.mrb[43].mxu1  ;;  %v5183_v12 = vld [vmem:[#allocation5 + $0x2b] sm:$0x1f]  ;;  %vm5212_vm5 = vcmask 1043456  }
 0x37c   : > { %v5181_v21 = vld [vmem:[#allocation5 + $0x1b] sm:$0xff]  ;;  %v5182_v8 = vld [vmem:[#allocation5 + $0x23] sm:$0xff]  ;;  %5141 = vst.msk [vmem:[#allocation5 + $0x48] sm:$0xff] %vm5131_vm11, %v5100_v14  ;;  %v5099_v24 = vsel %vm5019_vm6, %v4979_v59, %v5059_v18  ;;  %v4981_v52 = vadd.f32 %v9544_v11, %v4815_v15  ;;  %v2678_v27 = vpop.permute.xlu1 %2677  ;;  %vm5214_vm6 = vcmask 1044480  }
 0x37d   : > { %v5184_v16 = vld [vmem:[#allocation5 + $0x1d] sm:$0xff]  ;;  %v5185_v32 = vld [vmem:[#allocation5 + $0x25] sm:$0xff]  ;;  %5140 = vst.msk [vmem:[#allocation5 + $0x40] sm:$0xff] %vm5131_vm11, %v5099_v24  ;;  %vm5022_vm2 = vcmp.ge.f32.partialorder %v4982_v19, 0.0  ;;  %v5062_v35 = vmul.f32 %v4982_v19, %v8195_v25  ;;  %v3395_v26 = vpop.permute.xlu0 %3394 }
 0x37e   : > { %v5187_v7 = vmax.f32 %v5181_v21, %v5184_v16  ;;  %v4243_v31 = vld [vmem:[#allocation4 + $0xd8] sm:$0xff]  ;;  %v5188_v41 = vmax.f32 %v5182_v8, %v5185_v32  ;;  %vm5021_vm9 = vcmp.ge.f32.partialorder %v4981_v52, 0.0  ;;  %v5061_v53 = vmul.f32 %v4981_v52, %v8195_v25  ;;  %3484 = vst.msk [vmem:[#allocation4 + $0xf8] sm:$0xff] %vm3452_vm14, %v3395_v26 }
 0x37f   : > { %2764 = vst.msk [vmem:[#allocation4 + $0x110] sm:$0xff] %vm2729_vm12, %v2678_v27  ;;  %7193 = vmatmul.mubr.f32.gmra.mrb[58].mxu1 %v4243_v31  ;;  %v5102_v38 = vsel %vm5022_vm2, %v4982_v19, %v5062_v35  ;;  %vm5216_vm2 = vcmask 259072   ;;  %v5221_v30 = vld [vmem:[#allocation5 + $0x38] sm:$0xff] }
 0x380   : > { %v5190_v4 = vmax.f32 %v5178_v13, %v5187_v7  ;;  %v5191_v34 = vmax.f32 %v5179_v42, %v5188_v41  ;;  %v5186_v47 = vld [vmem:[#allocation5 + $0x2d] sm:$0x1f]  ;;  %5143 = vst.msk [vmem:[#allocation5 + $0x58] sm:$0xff] %vm5131_vm11, %v5102_v38  ;;  %v5101_v33 = vsel %vm5021_vm9, %v4981_v52, %v5061_v53  ;;  %v2919_v51 = vpop.permute.xlu1 %2918  ;;  %v5218_v29 = vld [vmem:[#allocation5 + $0x36] sm:$0xff] }
 0x381   : > { %v5189_v50 = vmax.f32 %v5183_v12, %v5186_v47  ;;  %5142 = vst.msk [vmem:[#allocation5 + $0x50] sm:$0xff] %vm5131_vm11, %v5101_v33  ;;  %v3873_v54 = vpop.permute.xlu0 %3872 }
 0x382   : > { %v5194_v49 = vrot.slane %v5190_v4, 3  ;;  %v5197_v57 = vrot.slane %v5191_v34, 6  ;;  %3005 = vst.msk [vmem:[#allocation4 + $0x110] sm:$0xff] %vm2970_vm13, %v2919_v51  ;;  %v5199_v48 = vrot.slane %v5191_v34, 1 }
 0x383   : > { %3964 = vst.msk [vmem:[#allocation4 + $0xe8] sm:$0xff] %vm3934_vm15, %v3873_v54  ;;  %v5192_v58 = vmax.f32 %v5180_v37, %v5189_v50  ;;  %v5223_v37 = vld [vmem:[#allocation5 + $0x48] sm:$0x1f] }
 0x384   : > { %v5207_v59 = vsel %vm5206_vm10, %v5190_v4, %v5194_v49  ;;  %v4112_v39 = vpop.permute.xlu1 %4111  ;;  %v5224_v4 = vmax.f32 %v5218_v29, %v5221_v30  ;;  %v5219_v34 = vld [vmem:[#allocation5 + $0x3e] sm:$0xff]  ;;  %v5220_v49 = vld [vmem:[#allocation5 + $0x46] sm:$0x1f] }
 0x385   : > { %v5209_v60 = vsel %vm5208_vm1, %v5207_v59, %v5197_v57  ;;  %v5202_v61 = vrot.slane %v5192_v58, 4  ;;  %v3636_v40 = vpop.permute.xlu0 %3635  ;;  %v5204_v18 = vrot.slane %v5192_v58, 7  ;;  %4204 = vst.msk [vmem:[#allocation4 + $0xe0] sm:$0xff] %vm4175_vm7, %v4112_v39  ;;  %v5222_v47 = vld [vmem:[#allocation5 + $0x40] sm:$0xff]  ;;  %v5226_v39 = vmax.f32 %v5220_v49, %v5223_v37 }
 0x386   : > { %3725 = vst.msk [vmem:[#allocation4 + $0xf8] sm:$0xff] %vm3693_vm4, %v3636_v40  ;;  %v5211_v22 = vsel %vm5210_vm3, %v5209_v60, %v5199_v48  ;;  %v5225_v57 = vmax.f32 %v5219_v34, %v5222_v47 }
 0x387   : > { %v5213_v63 = vsel %vm5212_vm5, %v5211_v22, %v5202_v61 }
 0x388   : > { %v5215_v14 = vsel %vm5214_vm6, %v5213_v63, %v5204_v18  ;;  %v3156_v19 = vpop.permute.xlu1 %3155  ;;  %v5227_v35 = vld [vmem:[#allocation5 + $0x51] sm:$0xff] }
 0x389   : > { %v2680_v15 = vpop.permute.xlu0 %2679  ;;  %5217 = vst.msk [vmem:[#allocation6] sm:$0x3f] %vm5216_vm2, %v5215_v14  ;;  %v7173_v21 = vpop.f32.mrb[44].mxu1  ;;  %v5230_v26 = vld [vmem:[#allocation5 + $0x53] sm:$0xff] }
 0x38a   : > { %3244 = vst.msk [vmem:[#allocation4 + $0x100] sm:$0xff] %vm3211_vm8, %v3156_v19  ;;  %v4984_v8 = vadd.f32 %v7173_v21, %v9544_v11  ;;  %v4825_v16 = vpop.f32.mrb[45].mxu1  ;;  %v5233_v53 = vmax.f32 %v5227_v35, %v5230_v26 }
 0x38b   : > { %2765 = vst.msk [vmem:[#allocation4 + $0x118] sm:$0xff] %vm2729_vm12, %v2680_v15  ;;  %v4983_v24 = vadd.f32 %v9544_v11, %v4825_v16 }
 0x38c   : > { %vm5024_vm9 = vcmp.ge.f32.partialorder %v4984_v8, 0.0  ;;  %v5064_v52 = vmul.f32 %v4984_v8, %v8195_v25  ;;  %v3397_v10 = vpop.permute.xlu1 %3396  ;;  %v4244_v32 = vld [vmem:[#allocation4 + $0xe0] sm:$0xff]  ;;  %v5236_v33 = vmax.f32 %v5224_v4, %v5233_v53 }
 0x38d   : > { %v2921_v13 = vpop.permute.xlu0 %2920  ;;  %vm5023_vm0 = vcmp.ge.f32.partialorder %v4983_v24, 0.0  ;;  %v5063_v7 = vmul.f32 %v4983_v24, %v8195_v25  ;;  %3485 = vst.msk [vmem:[#allocation4 + $0x100] sm:$0xff] %vm3452_vm14, %v3397_v10  ;;  %7195 = vmatprep.mubr.f32.mxu1 %v4244_v32 }
 0x38e   : > { %3006 = vst.msk [vmem:[#allocation4 + $0x118] sm:$0xff] %vm2970_vm13, %v2921_v13  ;;  %v5104_v27 = vsel %vm5024_vm9, %v4984_v8, %v5064_v52  ;;  %v5240_v40 = vrot.slane %v5236_v33, 3 }
 0x38f   : > { %5145 = vst.msk [vmem:[#allocation5 + $0x68] sm:$0xff] %vm5131_vm11, %v5104_v27  ;;  %v5103_v31 = vsel %vm5023_vm0, %v4983_v24, %v5063_v7 }
 0x390   : > { %5144 = vst.msk [vmem:[#allocation5 + $0x60] sm:$0xff] %vm5131_vm11, %v5103_v31  ;;  %v3638_v41 = vpop.permute.xlu1 %3637  ;;  %v5252_v8 = vsel %vm5206_vm10, %v5236_v33, %v5240_v40 }
 0x391   : > { %v4114_v42 = vpop.permute.xlu0 %4113  ;;  %3726 = vst.msk [vmem:[#allocation4 + $0x100] sm:$0xff] %vm3693_vm4, %v3638_v41 }
 0x392   : > { %4205 = vst.msk [vmem:[#allocation4 + $0xe8] sm:$0xff] %vm4175_vm7, %v4114_v42 }
 0x394   : > { %v3875_v12 = vpop.permute.xlu1 %3874 }
 0x395   : > { %v9618_v38 = vpop.permute.xlu0 %3165  ;;  %3965 = vst.msk [vmem:[#allocation4 + $0xf0] sm:$0xff] %vm3934_vm15, %v3875_v12 }
 0x397   : > { %v5228_v50 = vld [vmem:[#allocation5 + $0x59] sm:$0xff]  ;;  %v5229_v51 = vld [vmem:[#allocation5 + $0x61] sm:$0x1f] }
 0x398   : > { %v5231_v54 = vld [vmem:[#allocation5 + $0x5b] sm:$0xff]  ;;  %v5232_v58 = vld [vmem:[#allocation5 + $0x63] sm:$0x1f]  ;;  %v4116_v48 = vpop.permute.xlu1 %4115 }
 0x399   : > { %v5234_v59 = vmax.f32 %v5228_v50, %v5231_v54  ;;  %v3158_v60 = vpop.permute.xlu0 %3157  ;;  %v4245_v61 = vld [vmem:[#allocation4 + $0xe8] sm:$0xff]  ;;  %v5235_v18 = vmax.f32 %v5229_v51, %v5232_v58  ;;  %4206 = vst.msk [vmem:[#allocation4 + $0xf0] sm:$0xff] %vm4175_vm7, %v4116_v48 }
 0x39a   : > { %3245 = vst.msk [vmem:[#allocation4 + $0x108] sm:$0xff] %vm3211_vm8, %v3158_v60  ;;  %7196 = vmatmul.mubr.f32.gmra.mrb[60].mxu1 %v4245_v61 }
 0x39b   : > { %v5237_v22 = vmax.f32 %v5225_v57, %v5234_v59  ;;  %v5238_v63 = vmax.f32 %v5226_v39, %v5235_v18 }
 0x39c   : > { %v2682_v21 = vpop.permute.xlu1 %2681 }
 0x39d   : > { %v5243_v14 = vrot.slane %v5237_v22, 6  ;;  %v5245_v19 = vrot.slane %v5237_v22, 1  ;;  %v3399_v15 = vpop.permute.xlu0 %3398  ;;  %2766 = vst.msk [vmem:[#allocation4 + $0x120] sm:$0xff] %vm2729_vm12, %v2682_v21  ;;  %v5248_v16 = vrot.slane %v5238_v63, 4  ;;  %v5250_v52 = vrot.slane %v5238_v63, 7 }
 0x39e   : > { %3486 = vst.msk [vmem:[#allocation4 + $0x108] sm:$0xff] %vm3452_vm14, %v3399_v15 }
 0x39f   : > { %v5253_v24 = vsel %vm5208_vm1, %v5252_v8, %v5243_v14 }
 0x3a0   : > { %v5254_v10 = vsel %vm5210_vm3, %v5253_v24, %v5245_v19  ;;  %v2923_v32 = vpop.permute.xlu1 %2922  ;;  %v4246_v7 = vld [vmem:[#allocation4 + $0xf0] sm:$0xff] }
 0x3a1   : > { %v3640_v13 = vpop.permute.xlu0 %3639  ;;  %v5255_v35 = vsel %vm5212_vm5, %v5254_v10, %v5248_v16  ;;  %3007 = vst.msk [vmem:[#allocation4 + $0x120] sm:$0xff] %vm2970_vm13, %v2923_v32  ;;  %7198 = vmatprep.mubr.f32.mxu1 %v4246_v7 }
 0x3a2   : > { %3727 = vst.msk [vmem:[#allocation4 + $0x108] sm:$0xff] %vm3693_vm4, %v3640_v13  ;;  %v5256_v26 = vsel %vm5214_vm6, %v5255_v35, %v5250_v52 }
 0x3a3   : > { %5257 = vst.msk [vmem:[#allocation6 + $0x6] sm:$0x3f] %vm5216_vm2, %v5256_v26 }
 0x3a4   : > { %v3879_v31 = vpop.permute.xlu1 %3878 }
 0x3a5   : > { %v7176_v27 = vpop.f32.mrb[46].mxu1  ;;  %3967 = vst.msk [vmem:[#allocation4 + $0x100] sm:$0xff] %vm3934_vm15, %v3879_v31  ;;  %v3877_v29 = vpop.permute.xlu0 %3876 }
 0x3a6   : > { %v4986_v30 = vadd.f32 %v7176_v27, %v9544_v11  ;;  %v4835_v42 = vpop.f32.mrb[47].mxu1  ;;  %3966 = vst.msk [vmem:[#allocation4 + $0xf8] sm:$0xff] %vm3934_vm15, %v3877_v29 }
 0x3a7   : > { %v4985_v41 = vadd.f32 %v9544_v11, %v4835_v42 }
 0x3a8   : > { %vm5026_vm0 = vcmp.ge.f32.partialorder %v4986_v30, 0.0  ;;  %v5066_v53 = vmul.f32 %v4986_v30, %v8195_v25  ;;  %v3160_v12 = vpop.permute.xlu1 %3159 }
 0x3a9   : > { %vm5025_vm9 = vcmp.ge.f32.partialorder %v4985_v41, 0.0  ;;  %v5065_v4 = vmul.f32 %v4985_v41, %v8195_v25  ;;  %v4118_v47 = vpop.permute.xlu0 %4117  ;;  %3246 = vst.msk [vmem:[#allocation4 + $0x110] sm:$0xff] %vm3211_vm8, %v3160_v12 }
 0x3aa   : > { %v5106_v34 = vsel %vm5026_vm0, %v4986_v30, %v5066_v53  ;;  %v5418_v33 = vld [vmem:[#allocation6] sm:$0xff]  ;;  %4207 = vst.msk [vmem:[#allocation4 + $0xf8] sm:$0xff] %vm4175_vm7, %v4118_v47 }
 0x3ab   : > { %5147 = vst.msk [vmem:[#allocation5 + $0x78] sm:$0xff] %vm5131_vm11, %v5106_v34  ;;  %v5105_v37 = vsel %vm5025_vm9, %v4985_v41, %v5065_v4  ;;  %5421 = vst.msk [vmem:[#allocation7] sm:$0xff] %vm5131_vm11, %v5418_v33 }
 0x3ac   : > { %5146 = vst.msk [vmem:[#allocation5 + $0x70] sm:$0xff] %vm5131_vm11, %v5105_v37  ;;  %v4120_v49 = vpop.permute.xlu1 %4119 }
 0x3ad   : > { %v3881_v50 = vpop.permute.xlu0 %3880  ;;  %4208 = vst.msk [vmem:[#allocation4 + $0x100] sm:$0xff] %vm4175_vm7, %v4120_v49 }
 0x3ae   : > { %3968 = vst.msk [vmem:[#allocation4 + $0x108] sm:$0xff] %vm3934_vm15, %v3881_v50 }
 0x3b0   : > { %v3401_v51 = vpop.permute.xlu1 %3400 }
 0x3b1   : > { %v3162_v54 = vpop.permute.xlu0 %3161  ;;  %3487 = vst.msk [vmem:[#allocation4 + $0x110] sm:$0xff] %vm3452_vm14, %v3401_v51  ;;  %v4247_v57 = vld [vmem:[#allocation4 + $0xf8] sm:$0xff] }
 0x3b2   : > { %3247 = vst.msk [vmem:[#allocation4 + $0x118] sm:$0xff] %vm3211_vm8, %v3162_v54  ;;  %7199 = vmatmul.mubr.f32.gmra.mrb[62].mxu1 %v4247_v57 }
 0x3b3   : > { %v5258_v35 = vld [vmem:[#allocation5 + $0x6c] sm:$0xff]  ;;  %v5259_v26 = vld [vmem:[#allocation5 + $0x74] sm:$0xff] }
 0x3b4   : > { %v3642_v58 = vpop.permute.xlu1 %3641  ;;  %v4248_v59 = vld [vmem:[#allocation4 + $0x100] sm:$0xff]  ;;  %v5261_v27 = vld [vmem:[#allocation5 + $0x6e] sm:$0xff]  ;;  %v5262_v31 = vld [vmem:[#allocation5 + $0x76] sm:$0xff] }
 0x3b5   : > { %v4122_v48 = vpop.permute.xlu0 %4121  ;;  %3728 = vst.msk [vmem:[#allocation4 + $0x110] sm:$0xff] %vm3693_vm4, %v3642_v58  ;;  %7201 = vmatprep.mubr.f32.mxu1 %v4248_v59  ;;  %v5264_v34 = vmax.f32 %v5258_v35, %v5261_v27  ;;  %v5265_v49 = vmax.f32 %v5259_v26, %v5262_v31  ;;  %v5568_v31 = vld [vmem:[%s10257_s8 + $0x10] sm:$0xff] }
 0x3b6   : > { %4209 = vst.msk [vmem:[#allocation4 + $0x108] sm:$0xff] %vm4175_vm7, %v4122_v48 }
 0x3b7   : > { %3969 = vst.msk [vmem:[#allocation4 + $0x110] sm:$0xff] %vm3934_vm15, %v8688_v45 }
 0x3b8   : > { %4210 = vst.msk [vmem:[#allocation4 + $0x110] sm:$0xff] %vm4175_vm7, %v8701_v55  ;;  %v3164_v60 = vpop.permute.xlu1 %3163 }
 0x3b9   : > { %v3403_v61 = vpop.permute.xlu0 %3402  ;;  %3248 = vst.msk [vmem:[#allocation4 + $0x120] sm:$0xff] %vm3211_vm8, %v3164_v60 }
 0x3ba   : > { %3488 = vst.msk [vmem:[#allocation4 + $0x118] sm:$0xff] %vm3452_vm14, %v3403_v61 }
 0x3bc   : > { %v3405_v39 = vpop.permute.xlu1 %3404 }
 0x3bd   : > { %3489 = vst.msk [vmem:[#allocation4 + $0x120] sm:$0xff] %vm3452_vm14, %v3405_v39  ;;  %v2684_v40 = vpop.permute.xlu0 %2683  ;;  %v4249_v18 = vld [vmem:[#allocation4 + $0x108] sm:$0xff] }
 0x3be   : > { %2767 = vst.msk [vmem:[#allocation4 + $0x128] sm:$0xff] %vm2729_vm12, %v2684_v40  ;;  %7202 = vmatmul.mubr.f32.gmra.mrb[64].mxu1 %v4249_v18 }
 0x3bf   : > { %v4250_v22 = vld [vmem:[#allocation4 + $0x110] sm:$0xff] }
 0x3c0   : > { %7204 = vmatprep.mubr.f32.mxu1 %v4250_v22  ;;  %v2686_v45 = vpop.permute.xlu1 %2685 }
 0x3c1   : > { %2768 = vst.msk [vmem:[#allocation4 + $0x130] sm:$0xff] %vm2729_vm12, %v2686_v45  ;;  %v3644_v55 = vpop.permute.xlu0 %3643 }
 0x3c2   : > { %3729 = vst.msk [vmem:[#allocation4 + $0x118] sm:$0xff] %vm3693_vm4, %v3644_v55 }
 0x3c3   : > { %3970 = vst.msk [vmem:[#allocation4 + $0x118] sm:$0xff] %vm3934_vm15, %v8712_v2 }
 0x3c4   : > { %4211 = vst.msk [vmem:[#allocation4 + $0x118] sm:$0xff] %vm4175_vm7, %v8719_v20  ;;  %v3646_v14 = vpop.permute.xlu1 %3645 }
 0x3c5   : > { %v7179_v63 = vpop.f32.mrb[48].mxu1  ;;  %3730 = vst.msk [vmem:[#allocation4 + $0x120] sm:$0xff] %vm3693_vm4, %v3646_v14  ;;  %v2925_v15 = vpop.permute.xlu0 %2924 }
 0x3c6   : > { %v4988_v19 = vadd.f32 %v7179_v63, %v9544_v11  ;;  %v4845_v21 = vpop.f32.mrb[49].mxu1  ;;  %3971 = vst.msk [vmem:[#allocation4 + $0x120] sm:$0xff] %vm3934_vm15, %v8740_v0 }
 0x3c7   : > { %3008 = vst.msk [vmem:[#allocation4 + $0x128] sm:$0xff] %vm2970_vm13, %v2925_v15  ;;  %v4987_v8 = vadd.f32 %v9544_v11, %v4845_v21 }
 0x3c8   : > { %vm5028_vm0 = vcmp.ge.f32.partialorder %v4988_v19, 0.0  ;;  %v5068_v2 = vmul.f32 %v4988_v19, %v8195_v25  ;;  %4212 = vst.msk [vmem:[#allocation4 + $0x120] sm:$0xff] %vm4175_vm7, %v8817_v9  ;;  %v2927_v0 = vpop.permute.xlu1 %2926 }
 0x3c9   : > { %3249 = vst.msk [vmem:[#allocation4 + $0x128] sm:$0xff] %vm3211_vm8, %v9618_v38  ;;  %vm5027_vm9 = vcmp.ge.f32.partialorder %v4987_v8, 0.0  ;;  %v5067_v20 = vmul.f32 %v4987_v8, %v8195_v25  ;;  %v2688_v24 = vpop.permute.xlu0 %2687 }
 0x3ca   : > { %3490 = vst.msk [vmem:[#allocation4 + $0x128] sm:$0xff] %vm3452_vm14, %v8690_v46  ;;  %v5108_v16 = vsel %vm5028_vm0, %v4988_v19, %v5068_v2 }
 0x3cb   : > { %3731 = vst.msk [vmem:[#allocation4 + $0x128] sm:$0xff] %vm3693_vm4, %v8703_v56  ;;  %v5107_v9 = vsel %vm5027_vm9, %v4987_v8, %v5067_v20  ;;  %v4251_v46 = vld [vmem:[#allocation4 + $0x118] sm:$0xff] }
 0x3cc   : > { %3009 = vst.msk [vmem:[#allocation4 + $0x130] sm:$0xff] %vm2970_vm13, %v2927_v0  ;;  %7205 = vmatmul.mubr.f32.gmra.mrb[66].mxu1 %v4251_v46  ;;  %v3893_v56 = vpop.permute.xlu1 %3892 }
 0x3cd   : > { %5149 = vst.msk [vmem:[#allocation5 + $0x88] sm:$0xff] %vm5131_vm11, %v5108_v16  ;;  %5148 = vst.msk [vmem:[#allocation5 + $0x80] sm:$0xff] %vm5131_vm11, %v5107_v9 }
 0x3ce   : > { %3972 = vst.msk [vmem:[#allocation4 + $0x128] sm:$0xff] %vm3934_vm15, %v8801_v28 }
 0x3cf   : > { %3250 = vst.msk [vmem:[#allocation4 + $0x130] sm:$0xff] %vm3211_vm8, %v8710_v1  ;;  %v2929_v1 = vpop.permute.xlu0 %2928  ;;  %v4252_v28 = vld [vmem:[#allocation4 + $0x120] sm:$0xff] }
 0x3d0   : > { %2769 = vst.msk [vmem:[#allocation4 + $0x138] sm:$0xff] %vm2729_vm12, %v2688_v24  ;;  %7207 = vmatprep.mubr.f32.mxu1 %v4252_v28 }
 0x3d1   : > { %4213 = vst.msk [vmem:[#allocation4 + $0x128] sm:$0xff] %vm4175_vm7, %v8847_v5 }
 0x3d2   : > { %3491 = vst.msk [vmem:[#allocation4 + $0x130] sm:$0xff] %vm3452_vm14, %v8729_v44  ;;  %v4134_v44 = vpop.permute.xlu1 %4133 }
 0x3d3   : > { %3732 = vst.msk [vmem:[#allocation4 + $0x130] sm:$0xff] %vm3693_vm4, %v8738_v62  ;;  %v4132_v62 = vpop.permute.xlu0 %4131 }
 0x3d4   : > { %3973 = vst.msk [vmem:[#allocation4 + $0x130] sm:$0xff] %vm3934_vm15, %v8860_v23  ;;  %v5260_v30 = vld [vmem:[#allocation5 + $0x7c] sm:$0x1f]  ;;  %v5267_v42 = vld [vmem:[#allocation5 + $0x87] sm:$0xff] }
 0x3d5   : > { %3010 = vst.msk [vmem:[#allocation4 + $0x138] sm:$0xff] %vm2970_vm13, %v2929_v1  ;;  %v7182_v23 = vpop.f32.mrb[50].mxu1  ;;  %v5263_v29 = vld [vmem:[#allocation5 + $0x7e] sm:$0x1f] }
 0x3d6   : > { %3251 = vst.msk [vmem:[#allocation4 + $0x138] sm:$0xff] %vm3211_vm8, %v8727_v43  ;;  %v4990_v43 = vadd.f32 %v7182_v23, %v9544_v11  ;;  %v4855_v38 = vpop.f32.mrb[51].mxu1  ;;  %vm10297_vm8 = vmmov 0   ;;  %v5266_v50 = vmax.f32 %v5260_v30, %v5263_v29  ;;  %v5569_v30 = vld [vmem:[%s10257_s8 + $0x18] sm:$0xff] }
 0x3d7   : > { %3492 = vst.msk [vmem:[#allocation4 + $0x138] sm:$0xff] %vm3452_vm14, %v8755_v17  ;;  %v4989_v52 = vadd.f32 %v9544_v11, %v4855_v38 }
 0x3d8   : > { %3733 = vst.msk [vmem:[#allocation4 + $0x138] sm:$0xff] %vm3693_vm4, %v8770_v36  ;;  %v4253_v5 = vld [vmem:[#allocation4 + $0x128] sm:$0xff]  ;;  %vm5030_vm12 = vcmp.ge.f32.partialorder %v4990_v43, 0.0  ;;  %v5070_v17 = vmul.f32 %v4990_v43, %v8195_v25 }
 0x3d9   : > { %3974 = vst.msk [vmem:[#allocation4 + $0x138] sm:$0xff] %vm3934_vm15, %v3893_v56  ;;  %7208 = vmatmul.mubr.f32.gmra.mrb[68].mxu1 %v4253_v5  ;;  %vm5029_vm13 = vcmp.ge.f32.partialorder %v4989_v52, 0.0  ;;  %v5069_v36 = vmul.f32 %v4989_v52, %v8195_v25 }
 0x3da   : > { %4214 = vst.msk [vmem:[#allocation4 + $0x130] sm:$0xff] %vm4175_vm7, %v4132_v62  ;;  %4215 = vst.msk [vmem:[#allocation4 + $0x138] sm:$0xff] %vm4175_vm7, %v4134_v44  ;;  %v5110_v32 = vsel %vm5030_vm12, %v4990_v43, %v5070_v17 }
 0x3db   : > { %5151 = vst.msk [vmem:[#allocation5 + $0x98] sm:$0xff] %vm5131_vm11, %v5110_v32  ;;  %v5109_v7 = vsel %vm5029_vm13, %v4989_v52, %v5069_v36  ;;  %v5567_v32 = vld [vmem:[%s10257_s8 + $0x8] sm:$0xff] }
 0x3dc   : > { %5150 = vst.msk [vmem:[#allocation5 + $0x90] sm:$0xff] %vm5131_vm11, %v5109_v7 }
 0x3e1   : > { %v4254_v10 = vld [vmem:[#allocation4 + $0x130] sm:$0xff]  ;;  %v4255_v13 = vld [vmem:[#allocation4 + $0x138] sm:$0xff] }
 0x3e2   : > { %7210 = vmatprep.mubr.f32.mxu1 %v4254_v10  ;;  %v5272_v41 = vld [vmem:[#allocation5 + $0x99] sm:$0x1f] }
 0x3e3   : > { %7211 = vmatmul.mubr.f32.gmra.mrb[70].mxu1 %v4255_v13  ;;  %v5268_v53 = vld [vmem:[#allocation5 + $0x8f] sm:$0xff]  ;;  %v5269_v4 = vld [vmem:[#allocation5 + $0x97] sm:$0x1f] }
 0x3e4   : > { %7245 = vmatprep.mubr.msk.f32.mxu1 %vm10297_vm8, %v7719_v6  ;;  %v5270_v12 = vld [vmem:[#allocation5 + $0x89] sm:$0xff]  ;;  %v5271_v47 = vld [vmem:[#allocation5 + $0x91] sm:$0xff]  ;;  %v5275_v37 = vmax.f32 %v5269_v4, %v5272_v41  ;;  %v7415_v4 = vpack.c.bf16 %v5569_v30, %v5568_v31 }
 0x3e5   : > { %v5273_v33 = vmax.f32 %v5267_v42, %v5270_v12  ;;  %v5274_v51 = vmax.f32 %v5268_v53, %v5271_v47  ;;  %v5566_v13 = vld [vmem:[%s10257_s8] sm:$0xff] }
 0x3e6   : > { %v5278_v58 = vmax.f32 %v5266_v50, %v5275_v37  ;;  %v7412_v7 = vpack.c.bf16 %v5567_v32, %v5566_v13  ;;  %v5581_v13 = vld [vmem:[%s10257_s8 + $0x78] sm:$0xff] }
 0x3e7   : > { %v5276_v54 = vmax.f32 %v5264_v34, %v5273_v33  ;;  %v5277_v57 = vmax.f32 %v5265_v49, %v5274_v51 }
 0x3e8   : > { %v5288_v39 = vrot.slane %v5278_v58, 4  ;;  %v5290_v18 = vrot.slane %v5278_v58, 7  ;;  %7413 = vmatpush3.bf16.msra.mxu1 %v7412_v7 }
 0x3e9   : > { %v5280_v59 = vrot.slane %v5276_v54, 3  ;;  %v5283_v48 = vrot.slane %v5277_v57, 6  ;;  %v5285_v60 = vrot.slane %v5277_v57, 1  ;;  %7414 = vmatprep.subr.bf16.mxu1 %v7717_v3  ;;  %v5570_v57 = vld [vmem:[%s10257_s8 + $0x20] sm:$0xff] }
 0x3eb   : > { %v5292_v61 = vsel %vm5206_vm10, %v5276_v54, %v5280_v59 }
 0x3ec   : > { %v5293_v40 = vsel %vm5208_vm1, %v5292_v61, %v5283_v48  ;;  %7416 = vmatpush3.bf16.msra.mxu1 %v7415_v4 }
 0x3ed   : > { %v5294_v22 = vsel %vm5210_vm3, %v5293_v40, %v5285_v60  ;;  %7417 = vmatprep.subr.bf16.mxu1 %v7717_v3  ;;  %v5572_v40 = vld [vmem:[%s10257_s8 + $0x30] sm:$0xff] }
 0x3ee   : > { %v5295_v45 = vsel %vm5212_vm5, %v5294_v22, %v5288_v39 }
 0x3ef   : > { %v5296_v55 = vsel %vm5214_vm6, %v5295_v45, %v5290_v18  ;;  %v5573_v18 = vld [vmem:[%s10257_s8 + $0x38] sm:$0xff] }
 0x3f0   : > { %5297 = vst.msk [vmem:[#allocation6 + $0xc] sm:$0x3f] %vm5216_vm2, %v5296_v55  ;;  %v7421_v45 = vpack.c.bf16 %v5573_v18, %v5572_v40 }
 0x3f5   : > { %v7185_v63 = vpop.f32.mrb[52].mxu1 }
 0x3f6   : > { %v4992_v14 = vadd.f32 %v7185_v63, %v9544_v11  ;;  %v4865_v19 = vpop.f32.mrb[53].mxu1 }
 0x3f7   : > { %v4991_v15 = vadd.f32 %v9544_v11, %v4865_v19  ;;  %v5450_v8 = vld [vmem:[#allocation6 + $0x8] sm:$0xff]  ;;  %v5574_v19 = vld [vmem:[%s10257_s8 + $0x40] sm:$0xff] }
 0x3f8   : > { %vm5032_vm14 = vcmp.ge.f32.partialorder %v4992_v14, 0.0  ;;  %v5072_v21 = vmul.f32 %v4992_v14, %v8195_v25  ;;  %v5424_v2 = vld [vmem:[#allocation6 + $0x7] sm:$0xff]  ;;  %5456 = vrot.lane.b32.xlu0 %v5450_v8, %s10279_s24  ;;  %5422 = vst.msk [vmem:[#allocation7 + $0x8] sm:$0xff] %vm5131_vm11, %v5450_v8  ;;  %s541_s24 = scalar_lea.vmem [#allocation11], %s540_s2 }
 0x3f9   : > { %vm5031_vm4 = vcmp.ge.f32.partialorder %v4991_v15, 0.0  ;;  %v5071_v20 = vmul.f32 %v4991_v15, %v8195_v25  ;;  %5427 = vst.msk [vmem:[#allocation8] sm:$0xff] %vm5131_vm11, %v5424_v2  ;;  %s6196_s21 = sshll.u32 %s541_s24, 4  ;;  %s10209_s21 = int_to_ptr.vmem [resolvable:$true] %s6196_s21 }
 0x3fa   : > { %v5112_v0 = vsel %vm5032_vm14, %v4992_v14, %v5072_v21  ;;  %vm5445_vm14 = vcmask 523520   ;;  %s7653_s23 = scalar_lea.vmem %s10209_s21, 16  ;;  %p7660_p0 = scmp.lt.s32.totalorder %s10209_s21, %s7658_s25 }
 0x3fb   : > { %5153 = vst.msk [vmem:[#allocation5 + $0xa8] sm:$0xff] %vm5131_vm11, %v5112_v0  ;;  %v5111_v16 = vsel %vm5031_vm4, %v4991_v15, %v5071_v20  ;;  %v5575_v15 = vld [vmem:[%s10257_s8 + $0x48] sm:$0xff]  ;;  %p7654_p11 = scmp.ne.s32.totalorder %s10209_s21, %s7653_s23 }
 0x3fc   : > { %5152 = vst.msk [vmem:[#allocation5 + $0xa0] sm:$0xff] %vm5131_vm11, %v5111_v16  ;;  %v7424_v8 = vpack.c.bf16 %v5575_v15, %v5574_v19 }
 0x3fd   : > { %p7655_p12 = pnand %p7654_p11, %p7859_p5 }
 0x3ff   : > { %p7656_p13 = pneg %p7655_p12 }
 0x403   : > { %v5298_v29 = vld [vmem:[#allocation5 + $0xa2] sm:$0xff] }
 0x404   : > { %v5301_v42 = vld [vmem:[#allocation5 + $0xa4] sm:$0xff] }
 0x405   : > { %v5304_v50 = vmax.f32 %v5298_v29, %v5301_v42 }
 0x415   : > { %v7188_v24 = vpop.f32.mrb[54].mxu1 }
 0x416   : > { %v4994_v9 = vadd.f32 %v7188_v24, %v9544_v11  ;;  %v4875_v46 = vpop.f32.mrb[55].mxu1 }
 0x417   : > { %v4993_v56 = vadd.f32 %v9544_v11, %v4875_v46  ;;  %v5577_v46 = vld [vmem:[%s10257_s8 + $0x58] sm:$0xff] }
 0x418   : > { %vm5034_vm15 = vcmp.ge.f32.partialorder %v4994_v9, 0.0  ;;  %v5074_v1 = vmul.f32 %v4994_v9, %v8195_v25 }
 0x419   : > { %vm5033_vm7 = vcmp.ge.f32.partialorder %v4993_v56, 0.0  ;;  %v5073_v28 = vmul.f32 %v4993_v56, %v8195_v25 }
 0x41a   : > { %v5114_v44 = vsel %vm5034_vm15, %v4994_v9, %v5074_v1  ;;  %v5576_v9 = vld [vmem:[%s10257_s8 + $0x50] sm:$0xff] }
 0x41b   : > { %5155 = vst.msk [vmem:[#allocation5 + $0xb8] sm:$0xff] %vm5131_vm11, %v5114_v44  ;;  %v5113_v62 = vsel %vm5033_vm7, %v4993_v56, %v5073_v28  ;;  %v7427_v28 = vpack.c.bf16 %v5577_v46, %v5576_v9 }
 0x41c   : > { %5154 = vst.msk [vmem:[#allocation5 + $0xb0] sm:$0xff] %vm5131_vm11, %v5113_v62 }
 0x423   : > { %v5299_v37 = vld [vmem:[#allocation5 + $0xaa] sm:$0xff]  ;;  %v5300_v63 = vld [vmem:[#allocation5 + $0xb2] sm:$0x1f] }
 0x424   : > { %v5302_v51 = vld [vmem:[#allocation5 + $0xac] sm:$0xff]  ;;  %v5303_v14 = vld [vmem:[#allocation5 + $0xb4] sm:$0x1f] }
 0x425   : > { %v5305_v39 = vmax.f32 %v5299_v37, %v5302_v51  ;;  %v5306_v16 = vmax.f32 %v5300_v63, %v5303_v14  ;;  %v5468_v37 = vld [vmem:[#allocation6 + $0x2] sm:$0xff] }
 0x431   : > { %v7191_v5 = vpop.f32.mrb[56].mxu1 }
 0x432   : > { %v4996_v23 = vadd.f32 %v7191_v5, %v9544_v11  ;;  %v4885_v43 = vpop.f32.mrb[57].mxu1 }
 0x433   : > { %v4995_v38 = vadd.f32 %v9544_v11, %v4885_v43  ;;  %v5579_v43 = vld [vmem:[%s10257_s8 + $0x68] sm:$0xff] }
 0x434   : > { %vm5036_vm0 = vcmp.ge.f32.partialorder %v4996_v23, 0.0  ;;  %v5076_v52 = vmul.f32 %v4996_v23, %v8195_v25 }
 0x435   : > { %vm5035_vm9 = vcmp.ge.f32.partialorder %v4995_v38, 0.0  ;;  %v5075_v17 = vmul.f32 %v4995_v38, %v8195_v25 }
 0x436   : > { %v5116_v10 = vsel %vm5036_vm0, %v4996_v23, %v5076_v52  ;;  %v5578_v23 = vld [vmem:[%s10257_s8 + $0x60] sm:$0xff] }
 0x437   : > { %5157 = vst.msk [vmem:[#allocation5 + $0xc8] sm:$0xff] %vm5131_vm11, %v5116_v10  ;;  %v5115_v36 = vsel %vm5035_vm9, %v4995_v38, %v5075_v17  ;;  %v7430_v52 = vpack.c.bf16 %v5579_v43, %v5578_v23 }
 0x438   : > { %5156 = vst.msk [vmem:[#allocation5 + $0xc0] sm:$0xff] %vm5131_vm11, %v5115_v36  ;;  %v5580_v36 = vld [vmem:[%s10257_s8 + $0x70] sm:$0xff] }
 0x439   : > { %v7433_v32 = vpack.c.bf16 %v5581_v13, %v5580_v36 }
 0x43f   : > { %v5307_v35 = vld [vmem:[#allocation5 + $0xbd] sm:$0xff]  ;;  %v5308_v12 = vld [vmem:[#allocation5 + $0xc5] sm:$0xff] }
 0x440   : > { %v5310_v26 = vld [vmem:[#allocation5 + $0xbf] sm:$0xff]  ;;  %v5311_v34 = vld [vmem:[#allocation5 + $0xc7] sm:$0xff] }
 0x441   : > { %v5313_v47 = vmax.f32 %v5307_v35, %v5310_v26  ;;  %v5314_v58 = vmax.f32 %v5308_v12, %v5311_v34  ;;  %v9813_v26 = vld [vmem:[%s10255_s6] ss:$0 sm:$0xff] }
 0x443   : > { %v5316_v60 = vmax.f32 %v5304_v50, %v5313_v47  ;;  %v5317_v22 = vmax.f32 %v5305_v39, %v5314_v58 }
 0x445   : > { %v5320_v55 = vrot.slane %v5316_v60, 3  ;;  %v5323_v21 = vrot.slane %v5317_v22, 6  ;;  %v5325_v44 = vrot.slane %v5317_v22, 1 }
 0x447   : > { %v5332_v0 = vsel %vm5206_vm10, %v5316_v60, %v5320_v55 }
 0x448   : > { %v5333_v1 = vsel %vm5208_vm1, %v5332_v0, %v5323_v21 }
 0x449   : > { %v5334_v38 = vsel %vm5210_vm3, %v5333_v1, %v5325_v44 }
 0x452   : > { %v7194_v27 = vpop.f32.mrb[58].mxu1 }
 0x453   : > { %v4998_v41 = vadd.f32 %v7194_v27, %v9544_v11  ;;  %v4895_v53 = vpop.f32.mrb[59].mxu1 }
 0x454   : > { %v4997_v33 = vadd.f32 %v9544_v11, %v4895_v53  ;;  %v5571_v11 = vld [vmem:[%s10257_s8 + $0x28] sm:$0xff] }
 0x455   : > { %vm5038_vm12 = vcmp.ge.f32.partialorder %v4998_v41, 0.0  ;;  %v5078_v49 = vmul.f32 %v4998_v41, %v8195_v25  ;;  %v7418_v48 = vpack.c.bf16 %v5571_v11, %v5570_v57 }
 0x456   : > { %vm5037_vm13 = vcmp.ge.f32.partialorder %v4997_v33, 0.0  ;;  %v5077_v54 = vmul.f32 %v4997_v33, %v8195_v25 }
 0x457   : > { %v5118_v59 = vsel %vm5038_vm12, %v4998_v41, %v5078_v49  ;;  %7419 = vmatpush3.bf16.msra.mxu1 %v7418_v48 }
 0x458   : > { %5159 = vst.msk [vmem:[#allocation5 + $0xd8] sm:$0xff] %vm5131_vm11, %v5118_v59  ;;  %v5117_v61 = vsel %vm5037_vm13, %v4997_v33, %v5077_v54  ;;  %7420 = vmatprep.subr.bf16.mxu1 %v7717_v3  ;;  %v5430_v33 = vld [vmem:[#allocation6 + $0x1] sm:$0xff] }
 0x459   : > { %5158 = vst.msk [vmem:[#allocation5 + $0xd0] sm:$0xff] %vm5131_vm11, %v5117_v61 }
 0x45b   : > { %7422 = vmatpush3.bf16.msra.mxu1 %v7421_v45 }
 0x45c   : > { %7423 = vmatprep.subr.bf16.mxu1 %v7717_v3 }
 0x45f   : > { %7425 = vmatpush3.bf16.msra.mxu1 %v7424_v8  ;;  %v5338_v21 = vld [vmem:[#allocation5 + $0xd8] sm:$0xff] }
 0x460   : > { %v5309_v2 = vld [vmem:[#allocation5 + $0xcd] sm:$0x1f]  ;;  %7426 = vmatprep.subr.bf16.mxu1 %v7717_v3 }
 0x461   : > { %v5312_v20 = vld [vmem:[#allocation5 + $0xcf] sm:$0x1f] }
 0x462   : > { %v5315_v24 = vmax.f32 %v5309_v2, %v5312_v20 }
 0x463   : > { %7428 = vmatpush3.bf16.msra.mxu1 %v7427_v28 }
 0x464   : > { %v5318_v56 = vmax.f32 %v5306_v16, %v5315_v24  ;;  %7429 = vmatprep.subr.bf16.mxu1 %v7717_v3 }
 0x466   : > { %v5328_v62 = vrot.slane %v5318_v56, 4  ;;  %v5330_v5 = vrot.slane %v5318_v56, 7 }
 0x467   : > { %7431 = vmatpush3.bf16.msra.mxu1 %v7430_v52 }
 0x468   : > { %v5335_v17 = vsel %vm5212_vm5, %v5334_v38, %v5328_v62  ;;  %7432 = vmatprep.subr.bf16.mxu1 %v7717_v3 }
 0x469   : > { %v5336_v10 = vsel %vm5214_vm6, %v5335_v17, %v5330_v5 }
 0x46a   : > { %5337 = vst.msk [vmem:[#allocation6 + $0x12] sm:$0x3f] %vm5216_vm2, %v5336_v10  ;;  %v5457_v7 = vpop.permute.xlu0 %5456 }
 0x46b   : > { %5465 = vst.msk [vmem:[#allocation8] sm:$0xff] %vm5445_vm14, %v5457_v7  ;;  %7434 = vmatpush3.bf16.msra.mxu1 %v7433_v32 }
 0x46c   : > { %7435 = vmatprep.subr.bf16.mxu1 %v7717_v3 }
 0x46d   : > { %v7197_v35 = vpop.f32.mrb[60].mxu1 }
 0x46e   : > { %v5000_v27 = vadd.f32 %v9813_v26, %v7197_v35  ;;  %v4905_v31 = vpop.f32.mrb[61].mxu1 }
 0x46f   : > { %v4999_v30 = vadd.f32 %v9813_v26, %v4905_v31 }
 0x470   : > { %vm5040_vm4 = vcmp.ge.f32.partialorder %v5000_v27, 0.0  ;;  %v5080_v41 = vmul.f32 %v5000_v27, %v8195_v25 }
 0x471   : > { %v5488_v29 = vld [vmem:[#allocation6 + $0xc] sm:$0xff]  ;;  %vm5039_vm15 = vcmp.ge.f32.partialorder %v4999_v30, 0.0  ;;  %v5079_v53 = vmul.f32 %v4999_v30, %v8195_v25 }
 0x472   : > { %v5526_v42 = vld [vmem:[#allocation6 + $0xd] sm:$0xff]  ;;  %5494 = vrot.lane.b32.xlu1 %v5488_v29, %s10281_s29  ;;  %v5120_v34 = vsel %vm5040_vm4, %v5000_v27, %v5080_v41 }
 0x473   : > { %5532 = vrot.lane.b32.xlu0 %v5526_v42, %s10296_s19  ;;  %v5425_v4 = vld [vmem:[#allocation6 + $0xf] sm:$0xff]  ;;  %5161 = vst.msk [vmem:[#allocation5 + $0xe8] sm:$0xff] %vm5131_vm11, %v5120_v34  ;;  %v5119_v47 = vsel %vm5039_vm15, %v4999_v30, %v5079_v53 }
 0x474   : > { %v5420_v12 = vld [vmem:[#allocation6 + $0x10] sm:$0x3f]  ;;  %5428 = vst.msk [vmem:[#allocation8 + $0x8] sm:$0xff] %vm5131_vm11, %v5425_v4  ;;  %5160 = vst.msk [vmem:[#allocation5 + $0xe0] sm:$0xff] %vm5131_vm11, %v5119_v47 }
 0x475   : > { %5423 = vst.msk [vmem:[#allocation7 + $0x10] sm:$0x3f] %vm5216_vm2, %v5420_v12  ;;  %v5451_v49 = vld [vmem:[#allocation6 + $0x10] sm:$0xff] }
 0x476   : > { %5436 = vrot.lane.b32.xlu1 %v5430_v33, %s10298_s18 }
 0x477   : > { %5474 = vrot.lane.b32.xlu0 %v5468_v37, %s10281_s29 }
 0x47a   : > { %5458 = vrot.lane.b32.xlu1 %v5451_v49, %s10298_s18  ;;  %v5340_v16 = vld [vmem:[#allocation5 + $0xe8] sm:$0x1f] }
 0x47b   : > { %v5341_v19 = vld [vmem:[#allocation5 + $0xda] sm:$0xff]  ;;  %v5342_v20 = vld [vmem:[#allocation5 + $0xe2] sm:$0xff]  ;;  %v5343_v24 = vld [vmem:[#allocation5 + $0xea] sm:$0x1f] }
 0x47c   : > { %v5344_v8 = vmax.f32 %v5338_v21, %v5341_v19  ;;  %v5339_v2 = vld [vmem:[#allocation5 + $0xe0] sm:$0xff]  ;;  %v5346_v43 = vmax.f32 %v5340_v16, %v5343_v24 }
 0x47d   : > { %v5345_v28 = vmax.f32 %v5339_v2, %v5342_v20 }
 0x485   : > { %v7200_v50 = vpop.f32.mrb[62].mxu1 }
 0x486   : > { %v5002_v51 = vadd.f32 %v9813_v26, %v7200_v50  ;;  %v4915_v54 = vpop.f32.mrb[63].mxu1 }
 0x487   : > { %v5001_v57 = vadd.f32 %v9813_v26, %v4915_v54 }
 0x488   : > { %vm5042_vm7 = vcmp.ge.f32.partialorder %v5002_v51, 0.0  ;;  %v5082_v11 = vmul.f32 %v5002_v51, %v8195_v25 }
 0x489   : > { %vm5041_vm0 = vcmp.ge.f32.partialorder %v5001_v57, 0.0  ;;  %v5081_v58 = vmul.f32 %v5001_v57, %v8195_v25 }
 0x48a   : > { %v5122_v59 = vsel %vm5042_vm7, %v5002_v51, %v5082_v11 }
 0x48b   : > { %5163 = vst.msk [vmem:[#allocation5 + $0xf8] sm:$0xff] %vm5131_vm11, %v5122_v59  ;;  %v5121_v48 = vsel %vm5041_vm0, %v5001_v57, %v5081_v58 }
 0x48c   : > { %5162 = vst.msk [vmem:[#allocation5 + $0xf0] sm:$0xff] %vm5131_vm11, %v5121_v48 }
 0x491   : > { %v7203_v60 = vpop.f32.mrb[64].mxu1 }
 0x492   : > { %v5004_v61 = vadd.f32 %v9813_v26, %v7203_v60  ;;  %v4925_v39 = vpop.f32.mrb[65].mxu1 }
 0x493   : > { %v5003_v40 = vadd.f32 %v9813_v26, %v4925_v39  ;;  %v5347_v45 = vld [vmem:[#allocation5 + $0xf3] sm:$0xff] }
 0x494   : > { %vm5044_vm9 = vcmp.ge.f32.partialorder %v5004_v61, 0.0  ;;  %v5084_v18 = vmul.f32 %v5004_v61, %v8195_v25  ;;  %v5350_v55 = vld [vmem:[#allocation5 + $0xf5] sm:$0xff] }
 0x495   : > { %vm5043_vm12 = vcmp.ge.f32.partialorder %v5003_v40, 0.0  ;;  %v5083_v22 = vmul.f32 %v5003_v40, %v8195_v25  ;;  %v5353_v15 = vmax.f32 %v5347_v45, %v5350_v55 }
 0x496   : > { %v5124_v63 = vsel %vm5044_vm9, %v5004_v61, %v5084_v18 }
 0x497   : > { %5165 = vst.msk [vmem:[#allocation5 + $0x108] sm:$0xff] %vm5131_vm11, %v5124_v63  ;;  %v5123_v14 = vsel %vm5043_vm12, %v5003_v40, %v5083_v22  ;;  %v5356_v0 = vmax.f32 %v5344_v8, %v5353_v15 }
 0x498   : > { %5164 = vst.msk [vmem:[#allocation5 + $0x100] sm:$0xff] %vm5131_vm11, %v5123_v14 }
 0x499   : > { %v5360_v38 = vrot.slane %v5356_v0, 3 }
 0x49b   : > { %v5372_v30 = vsel %vm5206_vm10, %v5356_v0, %v5360_v38 }
 0x49f   : > { %v5348_v9 = vld [vmem:[#allocation5 + $0xfb] sm:$0xff]  ;;  %v5349_v46 = vld [vmem:[#allocation5 + $0x103] sm:$0x1f]  ;;  %v7206_v1 = vpop.f32.mrb[66].mxu1 }
 0x4a0   : > { %v5351_v56 = vld [vmem:[#allocation5 + $0xfd] sm:$0xff]  ;;  %v5352_v44 = vld [vmem:[#allocation5 + $0x105] sm:$0x1f]  ;;  %v5006_v5 = vadd.f32 %v9813_v26, %v7206_v1  ;;  %v4935_v23 = vpop.f32.mrb[67].mxu1 }
 0x4a1   : > { %v5354_v62 = vmax.f32 %v5348_v9, %v5351_v56  ;;  %v5355_v52 = vmax.f32 %v5349_v46, %v5352_v44  ;;  %v5005_v17 = vadd.f32 %v9813_v26, %v4935_v23 }
 0x4a2   : > { %vm5046_vm13 = vcmp.ge.f32.partialorder %v5006_v5, 0.0  ;;  %v5086_v36 = vmul.f32 %v5006_v5, %v8195_v25 }
 0x4a3   : > { %v5357_v10 = vmax.f32 %v5345_v28, %v5354_v62  ;;  %v5358_v13 = vmax.f32 %v5346_v43, %v5355_v52  ;;  %vm5045_vm4 = vcmp.ge.f32.partialorder %v5005_v17, 0.0  ;;  %v5085_v32 = vmul.f32 %v5005_v17, %v8195_v25 }
 0x4a4   : > { %v5126_v27 = vsel %vm5046_vm13, %v5006_v5, %v5086_v36  ;;  %vm5863_vm13 = vcmask 521216  }
 0x4a5   : > { %v5363_v7 = vrot.slane %v5357_v10, 6  ;;  %v5365_v35 = vrot.slane %v5357_v10, 1  ;;  %5167 = vst.msk [vmem:[#allocation5 + $0x118] sm:$0xff] %vm5131_vm11, %v5126_v27  ;;  %v5125_v31 = vsel %vm5045_vm4, %v5005_v17, %v5085_v32  ;;  %v5368_v29 = vrot.slane %v5358_v13, 4 }
 0x4a6   : > { %5166 = vst.msk [vmem:[#allocation5 + $0x110] sm:$0xff] %vm5131_vm11, %v5125_v31  ;;  %v5370_v53 = vrot.slane %v5358_v13, 7  ;;  %v5431_v31 = vld [vmem:[#allocation6 + $0x9] sm:$0xff] }
 0x4a7   : > { %v5373_v42 = vsel %vm5208_vm1, %v5372_v30, %v5363_v7  ;;  %v5506_v30 = vld [vmem:[#allocation6 + $0x6] sm:$0xff] }
 0x4a8   : > { %v5374_v4 = vsel %vm5210_vm3, %v5373_v42, %v5365_v35  ;;  %v5469_v42 = vld [vmem:[#allocation6 + $0xa] sm:$0xff] }
 0x4a9   : > { %v5375_v47 = vsel %vm5212_vm5, %v5374_v4, %v5368_v29  ;;  %v9878_v29 = vld [vmem:[#allocation6 + $0xe] sm:$0xff] }
 0x4aa   : > { %v5376_v37 = vsel %vm5214_vm6, %v5375_v47, %v5370_v53  ;;  %v5432_v53 = vld [vmem:[#allocation6 + $0x11] sm:$0x3f] }
 0x4ab   : > { %5377 = vst.msk [vmem:[#allocation6 + $0x18] sm:$0x3f] %vm5216_vm2, %v5376_v37  ;;  %v5547_v37 = vld [vmem:[%s10256_s7] sm:$0xff] }
 0x4ac   : > { %v7209_v41 = vpop.f32.mrb[68].mxu1  ;;  %v5382_v45 = vld [vmem:[#allocation5 + $0x118] sm:$0xff] }
 0x4ad   : > { %v5008_v12 = vadd.f32 %v9813_v26, %v7209_v41  ;;  %v4945_v34 = vpop.f32.mrb[69].mxu1  ;;  %v5378_v55 = vld [vmem:[#allocation5 + $0x10e] sm:$0xff]  ;;  %v5379_v63 = vld [vmem:[#allocation5 + $0x116] sm:$0xff] }
 0x4ae   : > { %v5007_v33 = vadd.f32 %v9813_v26, %v4945_v34  ;;  %v5381_v14 = vld [vmem:[#allocation5 + $0x110] sm:$0xff]  ;;  %v5385_v56 = vmax.f32 %v5379_v63, %v5382_v45  ;;  %v5557_v45 = vld [vmem:[%s10256_s7 + $0x50] sm:$0xff] }
 0x4af   : > { %vm5048_vm15 = vcmp.ge.f32.partialorder %v5008_v12, 0.0  ;;  %v5088_v49 = vmul.f32 %v5008_v12, %v8195_v25  ;;  %v5384_v24 = vmax.f32 %v5378_v55, %v5381_v14  ;;  %v5470_v41 = vld [vmem:[#allocation6 + $0x12] sm:$0x3f]  ;;  %v5559_v14 = vld [vmem:[%s10256_s7 + $0x60] sm:$0xff] }
 0x4b0   : > { %vm5047_vm7 = vcmp.ge.f32.partialorder %v5007_v33, 0.0  ;;  %v5087_v50 = vmul.f32 %v5007_v33, %v8195_v25  ;;  %v5558_v55 = vld [vmem:[%s10256_s7 + $0x58] sm:$0xff] }
 0x4b1   : > { %v5128_v51 = vsel %vm5048_vm15, %v5008_v12, %v5088_v49  ;;  %v5548_v49 = vld [vmem:[%s10256_s7 + $0x8] sm:$0xff]  ;;  %v7451_v63 = vpack.c.bf16 %v5558_v55, %v5557_v45  ;;  %vm6181_vm15 = vcmask 24576  }
 0x4b2   : > { %5169 = vst.msk [vmem:[#allocation5 + $0x128] sm:$0xff] %vm5131_vm11, %v5128_v51  ;;  %v5127_v54 = vsel %vm5047_vm7, %v5007_v33, %v5087_v50  ;;  %v5527_v60 = vld [vmem:[#allocation6 + $0x15] sm:$0xff]  ;;  %v7436_v50 = vpack.c.bf16 %v5548_v49, %v5547_v37  ;;  %v5905_v49 = vld [vmem:[%s10260_s11 + $0x10] sm:$0xff] }
 0x4b3   : > { %5168 = vst.msk [vmem:[#allocation5 + $0x120] sm:$0xff] %vm5131_vm11, %v5127_v54  ;;  %v5489_v61 = vld [vmem:[#allocation6 + $0x14] sm:$0xff]  ;;  %5534 = vrot.lane.b32.xlu1 %v5527_v60, %s10296_s19  ;;  %v5549_v54 = vld [vmem:[%s10256_s7 + $0x10] sm:$0xff] }
 0x4b4   : > { %5496 = vrot.lane.b32.xlu0 %v5489_v61, %s10281_s29  ;;  %v5426_v40 = vld [vmem:[#allocation6 + $0x17] sm:$0x3f]  ;;  %v5553_v61 = vld [vmem:[%s10256_s7 + $0x30] sm:$0xff] }
 0x4b5   : > { %5429 = vst.msk [vmem:[#allocation8 + $0x10] sm:$0x3f] %vm5216_vm2, %v5426_v40  ;;  %v5508_v4 = vld [vmem:[#allocation6 + $0x16] sm:$0x3f] }
 0x4b6   : > { %v7212_v57 = vpop.f32.mrb[70].mxu1 }
 0x4b7   : > { %v5010_v11 = vadd.f32 %v9813_v26, %v7212_v57  ;;  %v4955_v58 = vpop.f32.mrb[71].mxu1  ;;  %v5550_v57 = vld [vmem:[%s10256_s7 + $0x18] sm:$0xff] }
 0x4b8   : > { %v5009_v59 = vadd.f32 %v9813_v26, %v4955_v58  ;;  %v5452_v26 = vld [vmem:[#allocation6 + $0x18] sm:$0x3f]  ;;  %v7439_v58 = vpack.c.bf16 %v5550_v57, %v5549_v54  ;;  %v5924_v54 = vld [vmem:[%s10260_s11 + $0xa8] sm:$0xff] }
 0x4b9   : > { %vm5050_vm0 = vcmp.ge.f32.partialorder %v5010_v11, 0.0  ;;  %v5090_v48 = vmul.f32 %v5010_v11, %v8195_v25  ;;  %5460 = vrot.lane.b32.xlu0 %v5452_v26, %s10298_s18 }
 0x4ba   : > { %vm5049_vm9 = vcmp.ge.f32.partialorder %v5009_v59, 0.0  ;;  %v5089_v39 = vmul.f32 %v5009_v59, %v8195_v25  ;;  %v5380_v19 = vld [vmem:[#allocation5 + $0x11e] sm:$0x1f] }
 0x4bb   : > { %v5130_v18 = vsel %vm5050_vm0, %v5010_v11, %v5090_v48  ;;  %v5383_v15 = vld [vmem:[#allocation5 + $0x120] sm:$0x1f] }
 0x4bc   : > { %5171 = vst.msk [vmem:[#allocation5 + $0x138] sm:$0xff] %vm5131_vm11, %v5130_v18  ;;  %v5129_v22 = vsel %vm5049_vm9, %v5009_v59, %v5089_v39  ;;  %v5386_v1 = vmax.f32 %v5380_v19, %v5383_v15  ;;  %v5551_v59 = vld [vmem:[%s10256_s7 + $0x20] sm:$0xff]  ;;  %v5552_v48 = vld [vmem:[%s10256_s7 + $0x28] sm:$0xff]  ;;  %v5554_v39 = vld [vmem:[%s10256_s7 + $0x38] sm:$0xff] }
 0x4bd   : > { %5170 = vst.msk [vmem:[#allocation5 + $0x130] sm:$0xff] %vm5131_vm11, %v5129_v22  ;;  %v7442_v60 = vpack.c.bf16 %v5552_v48, %v5551_v59  ;;  %v7445_v40 = vpack.c.bf16 %v5554_v39, %v5553_v61  ;;  %v5555_v18 = vld [vmem:[%s10256_s7 + $0x40] sm:$0xff]  ;;  %v5556_v22 = vld [vmem:[%s10256_s7 + $0x48] sm:$0xff]  ;;  %v5925_v48 = vld [vmem:[%s10260_s11 + $0xb0] sm:$0xff] }
 0x4be   : > { %v7448_v26 = vpack.c.bf16 %v5556_v22, %v5555_v18  ;;  %v5560_v19 = vld [vmem:[%s10256_s7 + $0x68] sm:$0xff]  ;;  %v5910_v18 = vld [vmem:[%s10260_s11 + $0x38] sm:$0xff]  ;;  %v5927_v22 = vld [vmem:[%s10260_s11 + $0xc0] sm:$0xff] }
 0x4bf   : > { %v7454_v15 = vpack.c.bf16 %v5560_v19, %v5559_v14  ;;  %v5908_v59 = vld [vmem:[%s10260_s11 + $0x28] sm:$0xff]  ;;  %v5929_v19 = vld [vmem:[%s10260_s11 + $0xd0] sm:$0xff] }
 0x4c0   : > { %v5912_v14 = vld [vmem:[%s10260_s11 + $0x48] sm:$0xff] }
 0x4c3   : > { %v5389_v21 = vld [vmem:[#allocation5 + $0x139] sm:$0x1f] }
 0x4c4   : > { %v5392_v8 = vld [vmem:[#allocation5 + $0x13b] sm:$0x1f]  ;;  %v5387_v20 = vld [vmem:[#allocation5 + $0x129] sm:$0xff]  ;;  %v5388_v0 = vld [vmem:[#allocation5 + $0x131] sm:$0xff] }
 0x4c5   : > { %v5395_v2 = vmax.f32 %v5389_v21, %v5392_v8  ;;  %v5390_v16 = vld [vmem:[#allocation5 + $0x12b] sm:$0xff]  ;;  %v5391_v9 = vld [vmem:[#allocation5 + $0x133] sm:$0xff] }
 0x4c6   : > { %v5393_v46 = vmax.f32 %v5387_v20, %v5390_v16  ;;  %v5394_v28 = vmax.f32 %v5388_v0, %v5391_v9  ;;  %v5561_v21 = vld [vmem:[%s10256_s7 + $0x70] sm:$0xff]  ;;  %v5562_v8 = vld [vmem:[%s10256_s7 + $0x78] sm:$0xff] }
 0x4c7   : > { %v5398_v62 = vmax.f32 %v5386_v1, %v5395_v2  ;;  %v7457_v2 = vpack.c.bf16 %v5562_v8, %v5561_v21 }
 0x4c8   : > { %v5396_v44 = vmax.f32 %v5384_v24, %v5393_v46  ;;  %v5397_v5 = vmax.f32 %v5385_v56, %v5394_v28 }
 0x4c9   : > { %v5408_v17 = vrot.slane %v5398_v62, 4  ;;  %v5410_v36 = vrot.slane %v5398_v62, 7  ;;  %v5745_v62 = vld [vmem:[%s10258_s9] sm:$0xff] }
 0x4ca   : > { %v5400_v23 = vrot.slane %v5396_v44, 3  ;;  %v5403_v43 = vrot.slane %v5397_v5, 6  ;;  %v5405_v38 = vrot.slane %v5397_v5, 1  ;;  %v5746_v5 = vld [vmem:[%s10258_s9 + $0x8] sm:$0xff] }
 0x4cc   : > { %v5412_v52 = vsel %vm5206_vm10, %v5396_v44, %v5400_v23  ;;  %vm5483_vm10 = vcmask 785920  }
 0x4cd   : > { %v5413_v10 = vsel %vm5208_vm1, %v5412_v52, %v5403_v43  ;;  %vm5521_vm1 = vcmask 1048320   ;;  %v7460_v43 = vpack.c.bf16 %v5746_v5, %v5745_v62 }
 0x4ce   : > { %v5414_v13 = vsel %vm5210_vm3, %v5413_v10, %v5405_v38  ;;  %vm5448_vm3 = vcmask 521472   ;;  %v5747_v10 = vld [vmem:[%s10258_s9 + $0x10] sm:$0xff] }
 0x4cf   : > { %v5415_v32 = vsel %vm5212_vm5, %v5414_v13, %v5408_v17  ;;  %vm5486_vm5 = vcmask 783872  }
 0x4d0   : > { %v5416_v7 = vsel %vm5214_vm6, %v5415_v32, %v5410_v36  ;;  %vm5524_vm6 = vcmask 1046272   ;;  %v5748_v36 = vld [vmem:[%s10258_s9 + $0x18] sm:$0xff] }
 0x4d1   : > { %5417 = vst.msk [vmem:[#allocation6 + $0x1e] sm:$0x3f] %vm5216_vm2, %v5416_v7  ;;  %v7463_v13 = vpack.c.bf16 %v5748_v36, %v5747_v10  ;;  %vm5860_vm2 = vcmask 523264  }
 0x4d8   : > { %v5528_v35 = vld [vmem:[#allocation6 + $0x1d] sm:$0x3f] }
 0x4d9   : > { %v5490_v27 = vld [vmem:[#allocation6 + $0x1c] sm:$0x3f]  ;;  %5536 = vrot.lane.b32.xlu0 %v5528_v35, %s10296_s19 }
 0x4da   : > { %5498 = vrot.lane.b32.xlu1 %v5490_v27, %s10281_s29  ;;  %v5743_v27 = vld [vmem:[#allocation6 + $0x16] sm:$0xff] }
 0x4dd   : > { %5438 = vrot.lane.b32.xlu0 %v5431_v31, %s10298_s18  ;;  %v5744_v31 = vld [vmem:[#allocation6 + $0x1e] sm:$0x3f] }
 0x4de   : > { %5512 = vrot.lane.b32.xlu1 %v5506_v30, %s10296_s19 }
 0x4e1   : > { %5514 = vrot.lane.b32.xlu0 %v9878_v29, %s10296_s19 }
 0x4e2   : > { %5476 = vrot.lane.b32.xlu1 %v5469_v42, %s10281_s29 }
 0x4e4   : > { %v5495_v12 = vpop.permute.xlu1 %5494 }
 0x4e5   : > { %5478 = vrot.lane.b32.xlu0 %v5470_v41, %s10281_s29  ;;  %v5533_v34 = vpop.permute.xlu0 %5532  ;;  %5503 = vst.msk [vmem:[#allocation8] sm:$0xff] %vm5483_vm10, %v5495_v12  ;;  %v5919_v41 = vld [vmem:[%s10260_s11 + $0x80] sm:$0xff]  ;;  %v5904_v12 = vld [vmem:[%s10260_s11 + $0x8] sm:$0xff]  ;;  %s6184_s29 = scalar_lea.sflag [#allocation12], %s540_s2 }
 0x4e6   : > { %5440 = vrot.lane.b32.xlu1 %v5432_v53, %s10298_s18  ;;  %5541 = vst.msk [vmem:[#allocation8] sm:$0xff] %vm5521_vm1, %v5533_v34  ;;  %v5903_v53 = vld [vmem:[%s10260_s11] sm:$0xff]  ;;  %v5921_v34 = vld [vmem:[%s10260_s11 + $0x90] sm:$0xff] }
 0x4e8   : > { %v5437_v47 = vpop.permute.xlu1 %5436 }
 0x4e9   : > { %v5475_v33 = vpop.permute.xlu0 %5474  ;;  %5446 = vst.msk [vmem:[#allocation7] sm:$0xff] %vm5445_vm14, %v5437_v47  ;;  %v5922_v47 = vld [vmem:[%s10260_s11 + $0x98] sm:$0xff] }
 0x4ea   : > { %5516 = vrot.lane.b32.xlu1 %v5508_v4, %s10296_s19  ;;  %5484 = vst.msk [vmem:[#allocation7] sm:$0xff] %vm5483_vm10, %v5475_v33  ;;  %v7467_v33 = vpack.c.bf16 %v5904_v12, %v5903_v53  ;;  %v7469_v37 = vpack.c.bf16 %v5922_v47, %v5921_v34  ;;  %s10299_s19 = smov 64  }
 0x4ec   : > { %v5459_v51 = vpop.permute.xlu1 %5458 }
 0x4ed   : > { %5466 = vst.msk [vmem:[#allocation8 + $0x8] sm:$0xff] %vm5445_vm14, %v5459_v51  ;;  %v5563_v11 = vld [vmem:[#allocation8] sm:$0xff]  ;;  %v5923_v51 = vld [vmem:[%s10260_s11 + $0xa0] sm:$0xff] }
 0x4ee   : > { %7246 = vmatmul.mubr.f32.vlgmr.msra.gmra.mrb[72].mxu1 %v5563_v11  ;;  %v7473_v11 = vpack.c.bf16 %v5924_v54, %v5923_v51 }
 0x4ef   : > { %7248 = vmatprep.mubr.msk.f32.mxu1 %vm10297_vm8, %v7719_v6  ;;  %7437 = vmatpush3.bf16.msra.mxu1 %v7436_v50  ;;  %v5906_v50 = vld [vmem:[%s10260_s11 + $0x18] sm:$0xff] }
 0x4f0   : > { %7438 = vmatprep.subr.bf16.mxu1 %v7717_v3  ;;  %v7471_v57 = vpack.c.bf16 %v5906_v50, %v5905_v49 }
 0x4f3   : > { %7440 = vmatpush3.bf16.msra.mxu1 %v7439_v58  ;;  %v5907_v58 = vld [vmem:[%s10260_s11 + $0x20] sm:$0xff] }
 0x4f4   : > { %7441 = vmatprep.subr.bf16.mxu1 %v7717_v3  ;;  %v7475_v61 = vpack.c.bf16 %v5908_v59, %v5907_v58 }
 0x4f7   : > { %7443 = vmatpush3.bf16.msra.mxu1 %v7442_v60  ;;  %v5926_v60 = vld [vmem:[%s10260_s11 + $0xb8] sm:$0xff] }
 0x4f8   : > { %7444 = vmatprep.subr.bf16.mxu1 %v7717_v3  ;;  %v7477_v39 = vpack.c.bf16 %v5926_v60, %v5925_v48  ;;  %v5933_v60 = vld [vmem:[%s10260_s11 + $0xf0] sm:$0xff] }
 0x4fb   : > { %7446 = vmatpush3.bf16.msra.mxu1 %v7445_v40  ;;  %v5909_v40 = vld [vmem:[%s10260_s11 + $0x30] sm:$0xff] }
 0x4fc   : > { %7447 = vmatprep.subr.bf16.mxu1 %v7717_v3  ;;  %v7479_v45 = vpack.c.bf16 %v5910_v18, %v5909_v40  ;;  %v5917_v18 = vld [vmem:[%s10260_s11 + $0x70] sm:$0xff] }
 0x4ff   : > { %7449 = vmatpush3.bf16.msra.mxu1 %v7448_v26  ;;  %v5928_v26 = vld [vmem:[%s10260_s11 + $0xc8] sm:$0xff] }
 0x500   : > { %7450 = vmatprep.subr.bf16.mxu1 %v7717_v3  ;;  %v7481_v55 = vpack.c.bf16 %v5928_v26, %v5927_v22  ;;  %v5918_v22 = vld [vmem:[%s10260_s11 + $0x78] sm:$0xff] }
 0x503   : > { %7452 = vmatpush3.bf16.msra.mxu1 %v7451_v63  ;;  %v5911_v63 = vld [vmem:[%s10260_s11 + $0x40] sm:$0xff] }
 0x504   : > { %7453 = vmatprep.subr.bf16.mxu1 %v7717_v3  ;;  %v7483_v21 = vpack.c.bf16 %v5912_v14, %v5911_v63 }
 0x507   : > { %7455 = vmatpush3.bf16.msra.mxu1 %v7454_v15  ;;  %v5930_v15 = vld [vmem:[%s10260_s11 + $0xd8] sm:$0xff] }
 0x508   : > { %7456 = vmatprep.subr.bf16.mxu1 %v7717_v3  ;;  %v7485_v8 = vpack.c.bf16 %v5930_v15, %v5929_v19 }
 0x50b   : > { %7458 = vmatpush3.bf16.msra.mxu1 %v7457_v2  ;;  %v5913_v2 = vld [vmem:[%s10260_s11 + $0x50] sm:$0xff] }
 0x50c   : > { %7459 = vmatprep.subr.bf16.mxu1 %v7717_v3 }
 0x525   : > { %v5535_v20 = vpop.permute.xlu1 %5534 }
 0x526   : > { %v5497_v0 = vpop.permute.xlu0 %5496 }
 0x527   : > { %5504 = vst.msk [vmem:[#allocation8 + $0x8] sm:$0xff] %vm5483_vm10, %v5497_v0  ;;  %v5931_v0 = vld [vmem:[%s10260_s11 + $0xe0] sm:$0xff] }
 0x528   : > { %5542 = vst.msk [vmem:[#allocation8 + $0x8] sm:$0xff] %vm5521_vm1, %v5535_v20  ;;  %v5914_v20 = vld [vmem:[%s10260_s11 + $0x58] sm:$0xff] }
 0x52b   : > { %v5461_v16 = vpop.permute.xlu0 %5460 }
 0x52c   : > { %5467 = vst.msk [vmem:[#allocation8 + $0x10] sm:$0x3f] %vm5448_vm3, %v5461_v16  ;;  %v5932_v16 = vld [vmem:[%s10260_s11 + $0xe8] sm:$0xff] }
 0x52f   : > { %v5564_v24 = vld [vmem:[#allocation8 + $0x8] sm:$0xff] }
 0x530   : > { %7249 = vmatmul.mubr.f32.gmra.mrb[74].mxu1 %v5564_v24  ;;  %v7487_v24 = vpack.c.bf16 %v5914_v20, %v5913_v2 }
 0x531   : > { %7251 = vmatprep.mubr.msk.f32.mxu1 %vm10297_vm8, %v7719_v6 }
 0x54b   : > { %v5537_v9 = vpop.permute.xlu0 %5536 }
 0x54c   : > { %v5499_v46 = vpop.permute.xlu1 %5498 }
 0x54d   : > { %5505 = vst.msk [vmem:[#allocation8 + $0x10] sm:$0x3f] %vm5486_vm5, %v5499_v46  ;;  %v5915_v46 = vld [vmem:[%s10260_s11 + $0x60] sm:$0xff] }
 0x54e   : > { %5543 = vst.msk [vmem:[#allocation8 + $0x10] sm:$0x3f] %vm5524_vm6, %v5537_v9  ;;  %v7489_v9 = vpack.c.bf16 %v5932_v16, %v5931_v0 }
 0x54f   : > { %v5439_v56 = vpop.permute.xlu0 %5438 }
 0x550   : > { %v5513_v1 = vpop.permute.xlu1 %5512  ;;  %5447 = vst.msk [vmem:[#allocation7 + $0x8] sm:$0xff] %vm5445_vm14, %v5439_v56  ;;  %v5916_v56 = vld [vmem:[%s10260_s11 + $0x68] sm:$0xff] }
 0x551   : > { %5522 = vst.msk [vmem:[#allocation7] sm:$0xff] %vm5521_vm1, %v5513_v1  ;;  %v7491_v1 = vpack.c.bf16 %v5916_v56, %v5915_v46 }
 0x553   : > { %v5515_v28 = vpop.permute.xlu0 %5514 }
 0x554   : > { %v5477_v44 = vpop.permute.xlu1 %5476 }
 0x555   : > { %5485 = vst.msk [vmem:[#allocation7 + $0x8] sm:$0xff] %vm5483_vm10, %v5477_v44  ;;  %v5565_v23 = vld [vmem:[#allocation8 + $0x10] sm:$0x3f] }
 0x556   : > { %5523 = vst.msk [vmem:[#allocation7 + $0x8] sm:$0xff] %vm5521_vm1, %v5515_v28  ;;  %7252 = vmatmul.mubr.f32.gmra.mrb[76].mxu1 %v5565_v23 }
 0x557   : > { %7286 = vmatprep.mubr.msk.f32.mxu1 %vm10297_vm8, %v7719_v6  ;;  %v5479_v38 = vpop.permute.xlu0 %5478 }
 0x558   : > { %v5441_v52 = vpop.permute.xlu1 %5440  ;;  %v5544_v17 = vld [vmem:[#allocation7] sm:$0xff] }
 0x559   : > { %5449 = vst.msk [vmem:[#allocation7 + $0x10] sm:$0x3f] %vm5448_vm3, %v5441_v52 }
 0x55a   : > { %5487 = vst.msk [vmem:[#allocation7 + $0x10] sm:$0x3f] %vm5486_vm5, %v5479_v38  ;;  %7287 = vmatmul.mubr.f32.vlgmr.msra.gmra.mrb[78].mxu1 %v5544_v17 }
 0x55b   : > { %7289 = vmatprep.mubr.msk.f32.mxu1 %vm10297_vm8, %v7719_v6  ;;  %7461 = vmatpush3.bf16.msra.mxu1 %v7460_v43 }
 0x55c   : > { %v5517_v32 = vpop.permute.xlu1 %5516  ;;  %7462 = vmatprep.subr.bf16.mxu1 %v7717_v3 }
 0x55d   : > { %5525 = vst.msk [vmem:[#allocation7 + $0x10] sm:$0x3f] %vm5524_vm6, %v5517_v32  ;;  %v5545_v7 = vld [vmem:[#allocation7 + $0x8] sm:$0xff] }
 0x55e   : > { %7290 = vmatmul.mubr.f32.gmra.mrb[80].mxu1 %v5545_v7 }
 0x55f   : > { %7464 = vmatpush3.bf16.msra.mxu1 %v7463_v13  ;;  %7292 = vmatprep.mubr.msk.f32.mxu1 %vm10297_vm8, %v7719_v6 }
 0x564   : > { %v5546_v35 = vld [vmem:[#allocation7 + $0x10] sm:$0x3f] }
 0x565   : > { %7293 = vmatmul.mubr.f32.gmra.mrb[82].mxu1 %v5546_v35  ;;  %v6407_v35 = vld [vmem:[%s10259_s10] ss:$0 sm:$0xff] }
 0x566   : > { %7303 = vmatprep.mubr.msk.f32.mxu1 %vm10297_vm8, %v7719_v6 }
 0x569   : > { %7304 = vmatmul.mubr.msk.f32.vlgmr.msra.gmra.mrb[84].mxu1 %vm5131_vm11, %v9878_v29  ;;  %v5920_v29 = vld [vmem:[%s10260_s11 + $0x88] sm:$0xff] }
 0x56a   : > { %7306 = vmatprep.mubr.msk.f32.mxu1 %vm10297_vm8, %v7719_v6  ;;  %v7465_v4 = vpack.c.bf16 %v5920_v29, %v5919_v41 }
 0x56c   : > { %7466 = vmatprep.subr.bf16.mxu1 %v7465_v4 }
 0x56d   : > { %7307 = vmatmul.mubr.msk.f32.gmra.mrb[86].mxu1 %vm5131_vm11, %v5743_v27 }
 0x56e   : > { %7309 = vmatprep.mubr.msk.f32.mxu1 %vm10297_vm8, %v7719_v6  ;;  %7468 = vmatpush3.bf16.msra.mxu1 %v7467_v33 }
 0x56f   : > { %7470 = vmatprep.subr.bf16.mxu1 %v7469_v37 }
 0x571   : > { %7310 = vmatmul.mubr.msk.f32.gmra.mrb[88].mxu1 %vm5131_vm11, %v5744_v31 }
 0x572   : > { %7472 = vmatpush3.bf16.msra.mxu1 %v7471_v57 }
 0x573   : > { %7474 = vmatprep.subr.bf16.mxu1 %v7473_v11 }
 0x576   : > { %7476 = vmatpush3.bf16.msra.mxu1 %v7475_v61  ;;  %v5934_v61 = vld [vmem:[%s10260_s11 + $0xf8] sm:$0xff] }
 0x577   : > { %7478 = vmatprep.subr.bf16.mxu1 %v7477_v39  ;;  %v7493_v40 = vpack.c.bf16 %v5934_v61, %v5933_v60 }
 0x57a   : > { %7480 = vmatpush3.bf16.msra.mxu1 %v7479_v45  ;;  %v7495_v45 = vpack.c.bf16 %v5918_v22, %v5917_v18 }
 0x57b   : > { %7482 = vmatprep.subr.bf16.mxu1 %v7481_v55 }
 0x57e   : > { %7484 = vmatpush3.bf16.msra.mxu1 %v7483_v21 }
 0x57f   : > { %7486 = vmatprep.subr.bf16.mxu1 %v7485_v8 }
 0x582   : > { %7488 = vmatpush3.bf16.msra.mxu1 %v7487_v24 }
 0x583   : > { %7490 = vmatprep.subr.bf16.mxu1 %v7489_v9 }
 0x586   : > { %7492 = vmatpush3.bf16.msra.mxu1 %v7491_v1 }
 0x587   : > { %7494 = vmatprep.subr.bf16.mxu1 %v7493_v40  ;;  %v6100_v40 = vld [vmem:[%s10264_s15 + $0x8] sm:$0xff] }
 0x58a   : > { %7496 = vmatpush3.bf16.msra.mxu1 %v7495_v45  ;;  %v6101_v45 = vld [vmem:[%s10264_s15 + $0x10] sm:$0xff] }
 0x58b   : > { %7497 = vmatprep.subr.bf16.mxu1 %v7717_v3 }
 0x5c1   : > { %v9992_v30 = vpop.f32.mrb[72].mxu1 }
 0x5c2   : > { %v7247_v42 = vpop.f32.mrb[73].mxu1 }
 0x603   : > { %v5653_v28 = vpop.f32.mrb[74].mxu1 }
 0x604   : > { %v7250_v44 = vpop.f32.mrb[75].mxu1 }
 0x629   : > { %v5658_v62 = vpop.f32.mrb[76].mxu1 }
 0x62a   : > { %v7253_v5 = vpop.f32.mrb[77].mxu1 }
 0x62d   : > { %v5728_v23 = vpop.f32.mrb[78].mxu1 }
 0x62e   : > { %v5729_v43 = vadd.f32 %v5728_v23, %v9992_v30  ;;  %v7288_v38 = vpop.f32.mrb[79].mxu1  ;;  %v6009_v23 = vld [vmem:[%s10262_s13] sm:$0xff] }
 0x631   : > { %v5733_v52 = vpop.f32.mrb[80].mxu1 }
 0x632   : > { %v5734_v17 = vadd.f32 %v5733_v52, %v5653_v28  ;;  %v7291_v10 = vpop.f32.mrb[81].mxu1 }
 0x638   : > { %v5738_v36 = vpop.f32.mrb[82].mxu1 }
 0x639   : > { %v5739_v13 = vadd.f32 %v5738_v36, %v5658_v62  ;;  %v7294_v32 = vpop.f32.mrb[83].mxu1 }
 0x63c   : > { %v5824_v7 = vpop.f32.mrb[84].mxu1 }
 0x63d   : > { %v5838_v27 = vadd.f32 %v5824_v7, %v5729_v43  ;;  %v7305_v31 = vpop.f32.mrb[85].mxu1  ;;  %v6010_v43 = vld [vmem:[%s10262_s13 + $0x8] sm:$0xff] }
 0x63f   : > { %v5848_v42 = vadd.f32 %v6407_v35, %v5838_v27  ;;  %v6012_v27 = vld [vmem:[%s10262_s13 + $0x18] sm:$0xff] }
 0x640   : > { %v5829_v41 = vpop.f32.mrb[86].mxu1 }
 0x641   : > { %vm5851_vm11 = vcmp.ge.f32.partialorder %v5848_v42, 0.0  ;;  %v5854_v29 = vmul.f32 %v5848_v42, %v8195_v25  ;;  %v5839_v30 = vadd.f32 %v5829_v41, %v5734_v17  ;;  %v7308_v53 = vpop.f32.mrb[87].mxu1  ;;  %v6014_v41 = vld [vmem:[%s10262_s13 + $0x28] sm:$0xff] }
 0x642   : > { %v6016_v53 = vld [vmem:[%s10262_s13 + $0x38] sm:$0xff] }
 0x643   : > { %v5857_v4 = vsel %vm5851_vm11, %v5848_v42, %v5854_v29  ;;  %v5849_v12 = vadd.f32 %v6407_v35, %v5839_v30  ;;  %v6013_v42 = vld [vmem:[%s10262_s13 + $0x20] sm:$0xff]  ;;  %v6015_v30 = vld [vmem:[%s10262_s13 + $0x30] sm:$0xff] }
 0x644   : > { %5861 = vst.msk [vmem:[#allocation9] sm:$0xff] %vm5860_vm2, %v5857_v4  ;;  %v5834_v34 = vpop.f32.mrb[88].mxu1  ;;  %v7504_v29 = vpack.c.bf16 %v6014_v41, %v6013_v42  ;;  %v7507_v4 = vpack.c.bf16 %v6016_v53, %v6015_v30 }
 0x645   : > { %vm5852_vm14 = vcmp.ge.f32.partialorder %v5849_v12, 0.0  ;;  %v5855_v47 = vmul.f32 %v5849_v12, %v8195_v25  ;;  %v5840_v33 = vadd.f32 %v5834_v34, %v5739_v13  ;;  %v7311_v37 = vpop.f32.mrb[89].mxu1  ;;  %v7498_v13 = vpack.c.bf16 %v6010_v43, %v6009_v23  ;;  %v6018_v34 = vld [vmem:[%s10262_s13 + $0x48] sm:$0xff] }
 0x646   : > { %v6020_v37 = vld [vmem:[%s10262_s13 + $0x58] sm:$0xff] }
 0x647   : > { %v5858_v49 = vsel %vm5852_vm14, %v5849_v12, %v5855_v47  ;;  %v5850_v50 = vadd.f32 %v6407_v35, %v5840_v33  ;;  %v6011_v35 = vld [vmem:[%s10262_s13 + $0x10] sm:$0xff]  ;;  %v6017_v12 = vld [vmem:[%s10262_s13 + $0x40] sm:$0xff] }
 0x648   : > { %5862 = vst.msk [vmem:[#allocation9 + $0x8] sm:$0xff] %vm5860_vm2, %v5858_v49  ;;  %v7501_v31 = vpack.c.bf16 %v6012_v27, %v6011_v35  ;;  %v7510_v47 = vpack.c.bf16 %v6018_v34, %v6017_v12  ;;  %v6019_v33 = vld [vmem:[%s10262_s13 + $0x50] sm:$0xff] }
 0x649   : > { %vm5853_vm12 = vcmp.ge.f32.partialorder %v5850_v50, 0.0  ;;  %v5856_v51 = vmul.f32 %v5850_v50, %v8195_v25  ;;  %v7513_v49 = vpack.c.bf16 %v6020_v37, %v6019_v33 }
 0x64b   : > { %v5859_v54 = vsel %vm5853_vm12, %v5850_v50, %v5856_v51  ;;  %v5872_v57 = vld [vmem:[#allocation9 + $0x2] sm:$0x1]  ;;  %v5873_v11 = vld [vmem:[#allocation9 + $0x3] sm:$0x1]  ;;  %v5865_v20 = vld [vmem:[#allocation9] sm:$0x1] }
 0x64c   : > { %5864 = vst.msk [vmem:[#allocation9 + $0x10] sm:$0x3f] %vm5863_vm13, %v5859_v54  ;;  %v5874_v14 = vmax.f32 %v5872_v57, %v5873_v11  ;;  %v5866_v0 = vld [vmem:[#allocation9 + $0x1] sm:$0x1]  ;;  %v5868_v16 = vld [vmem:[#allocation9 + $0x6] sm:$0x1] }
 0x64d   : > { %v5869_v24 = vld [vmem:[#allocation9 + $0x7] sm:$0x1]  ;;  %v5867_v28 = vmax.f32 %v5865_v20, %v5866_v0  ;;  %v6022_v51 = vld [vmem:[%s10262_s13 + $0x68] sm:$0xff]  ;;  %v6023_v57 = vld [vmem:[%s10262_s13 + $0x70] sm:$0xff] }
 0x64e   : > { %v5870_v44 = vmax.f32 %v5868_v16, %v5869_v24  ;;  %v6021_v50 = vld [vmem:[%s10262_s13 + $0x60] sm:$0xff]  ;;  %v6024_v11 = vld [vmem:[%s10262_s13 + $0x78] sm:$0xff] }
 0x64f   : > { %v5875_v58 = vld [vmem:[#allocation9 + $0x8] sm:$0x1]  ;;  %v5876_v59 = vld [vmem:[#allocation9 + $0x9] sm:$0x1]  ;;  %v5886_v48 = vld [vmem:[#allocation9 + $0xe] sm:$0x1]  ;;  %v7516_v54 = vpack.c.bf16 %v6022_v51, %v6021_v50 }
 0x650   : > { %v5887_v39 = vld [vmem:[#allocation9 + $0xf] sm:$0x1]  ;;  %v5877_v26 = vmax.f32 %v5875_v58, %v5876_v59  ;;  %v5879_v56 = vld [vmem:[#allocation9 + $0xc] sm:$0x1]  ;;  %v5880_v1 = vld [vmem:[#allocation9 + $0xd] sm:$0x1]  ;;  %v5871_v52 = vmax.f32 %v5867_v28, %v5870_v44  ;;  %v7519_v58 = vpack.c.bf16 %v6024_v11, %v6023_v57 }
 0x651   : > { %v5888_v19 = vmax.f32 %v5886_v48, %v5887_v39  ;;  %v5881_v5 = vmax.f32 %v5879_v56, %v5880_v1  ;;  %v5935_v48 = vld [vmem:[%s10261_s12] sm:$0x1] }
 0x652   : > { %v5878_v21 = vmax.f32 %v5874_v14, %v5877_v26  ;;  %v6099_v39 = vld [vmem:[%s10264_s15] sm:$0xff] }
 0x653   : > { %v5889_v55 = vld [vmem:[#allocation9 + $0x14] sm:$0x1]  ;;  %v5890_v63 = vld [vmem:[#allocation9 + $0x15] sm:$0x1]  ;;  %v5882_v9 = vld [vmem:[#allocation9 + $0x12] sm:$0x1]  ;;  %v7522_v26 = vpack.c.bf16 %v6100_v40, %v6099_v39 }
 0x654   : > { %v5891_v15 = vmax.f32 %v5889_v55, %v5890_v63  ;;  %v5883_v46 = vld [vmem:[#allocation9 + $0x13] sm:$0x1]  ;;  %v6102_v55 = vld [vmem:[%s10264_s15 + $0x18] sm:$0xff]  ;;  %v6025_v20 = vld [vmem:[%s10263_s14] sm:$0x1] }
 0x655   : > { %v5884_v62 = vmax.f32 %v5882_v9, %v5883_v46  ;;  %v7525_v14 = vpack.c.bf16 %v6102_v55, %v6101_v45  ;;  %v6107_v46 = vld [vmem:[%s10265_s16] sm:$0x1] }
 0x656   : > { %v5892_v8 = vmax.f32 %v5888_v19, %v5891_v15  ;;  %v6103_v19 = vld [vmem:[%s10264_s15 + $0x20] sm:$0xff]  ;;  %v6104_v15 = vld [vmem:[%s10264_s15 + $0x28] sm:$0xff] }
 0x657   : > { %v5885_v36 = vmax.f32 %v5881_v5, %v5884_v62 }
 0x658   : > { %v7631_v2 = vpack.i.bf16 %v5878_v21, %v5892_v8  ;;  %v7528_v21 = vpack.c.bf16 %v6104_v15, %v6103_v19  ;;  %v6106_v8 = vld [vmem:[%s10264_s15 + $0x38] sm:$0xff] }
 0x65a   : > { %7632 = vrot.lane.b32.xlu0 %v7631_v2, %s10299_s19  ;;  %s7659_s19 = scalar_lea.vmem %s7658_s25, 32 }
 0x65b   : > { %p7661_p1 = scmp.lt.s32.totalorder %s7659_s19, %s7653_s23 }
 0x65d   : > { %p7662_p2 = por %p7661_p1, %p7660_p0 }
 0x65f   : > { %p7663_p3 = pnand %p7662_p2, %p7656_p13 }
 0x6cc   : > { %v7633_v38 = vpop.permute.xlu0 %7632 }
 0x6cd   : > { %v7635_v17 = vunpack.i.h.bf16 %v7633_v38  ;;  %v7634_v10 = vunpack.i.l.bf16 %v7633_v38 }
 0x6cf   : > { %v5901_v32 = vsel %vm5860_vm2, %v5871_v52, %v7635_v17  ;;  %v5902_v7 = vsel %vm5860_vm2, %v5885_v36, %v7634_v10 }
 0x6d0   : > { %6000 = vmatprep.mubr.f32.mxu1 %v5902_v7 }
 0x6d1   : > { %6001 = vmatmul.mubr.f32.vlgmr.msra.gmra.mrb[90].mxu1 %v5901_v32 }
 0x6d2   : > { %7499 = vmatpush3.bf16.msra.mxu1 %v7498_v13  ;;  %7344 = vmatprep.mubr.msk.f32.mxu1 %vm10297_vm8, %v7719_v6 }
 0x6d3   : > { %7500 = vmatprep.subr.bf16.mxu1 %v7717_v3 }
 0x6d6   : > { %7502 = vmatpush3.bf16.msra.mxu1 %v7501_v31 }
 0x6d7   : > { %7503 = vmatprep.subr.bf16.mxu1 %v7717_v3 }
 0x6da   : > { %7505 = vmatpush3.bf16.msra.mxu1 %v7504_v29 }
 0x6db   : > { %7506 = vmatprep.subr.bf16.mxu1 %v7717_v3 }
 0x6de   : > { %7508 = vmatpush3.bf16.msra.mxu1 %v7507_v4 }
 0x6df   : > { %7509 = vmatprep.subr.bf16.mxu1 %v7717_v3 }
 0x6e2   : > { %7511 = vmatpush3.bf16.msra.mxu1 %v7510_v47 }
 0x6e3   : > { %7512 = vmatprep.subr.bf16.mxu1 %v7717_v3 }
 0x6e6   : > { %7514 = vmatpush3.bf16.msra.mxu1 %v7513_v49 }
 0x6e7   : > { %7515 = vmatprep.subr.bf16.mxu1 %v7717_v3 }
 0x6ea   : > { %7517 = vmatpush3.bf16.msra.mxu1 %v7516_v54 }
 0x6eb   : > { %7518 = vmatprep.subr.bf16.mxu1 %v7717_v3 }
 0x6ee   : > { %7520 = vmatpush3.bf16.msra.mxu1 %v7519_v58 }
 0x6ef   : > { %7521 = vmatprep.subr.bf16.mxu1 %v7717_v3 }
 0x7a4   : > { %v6699_v59 = vpop.f32.mrb[90].mxu1 }
 0x7a5   : > { %v6700_v60 = vpop.f32.mrb[91].mxu1 }
 0x7a6   : > { %v6701_v61 = vadd.f32 %v6700_v60, %v6699_v59 }
 0x7a8   : > { %v6003_v18 = vadd.f32 %v6701_v61, %v5935_v48 }
 0x7aa   : > { %v6007_v22 = vmul.f32 %v6003_v18, %v8195_v25  ;;  %vm6006_vm4 = vcmp.ge.f32.partialorder %v6003_v18, 0.0 }
 0x7ac   : > { %v6008_v63 = vsel %vm6006_vm4, %v6003_v18, %v6007_v22 }
 0x7ad   : > { %7345 = vmatmul.mubr.f32.vlgmr.msra.gmra.mrb[92].mxu1 %v6008_v63 }
 0x7ae   : > { %7523 = vmatpush3.bf16.msra.mxu1 %v7522_v26  ;;  %7363 = vmatprep.mubr.msk.f32.mxu1 %vm10297_vm8, %v7719_v6  ;;  %v6105_v6 = vld [vmem:[%s10264_s15 + $0x30] sm:$0xff] }
 0x7af   : > { %7524 = vmatprep.subr.bf16.mxu1 %v7717_v3  ;;  %v7531_v2 = vpack.c.bf16 %v6106_v8, %v6105_v6 }
 0x7b2   : > { %7526 = vmatpush3.bf16.msra.mxu1 %v7525_v14 }
 0x7b3   : > { %7527 = vmatprep.subr.bf16.mxu1 %v7717_v3 }
 0x7b6   : > { %7529 = vmatpush3.bf16.msra.mxu1 %v7528_v21 }
 0x7b7   : > { %7530 = vmatprep.subr.bf16.mxu1 %v7717_v3 }
 0x7ba   : > { %7532 = vmatpush3.bf16.msra.mxu1 %v7531_v2 }
 0x880   : > { %v6092_v0 = vpop.f32.mrb[92].mxu1 }
 0x881   : > { %v6093_v16 = vadd.f32 %v6092_v0, %v6025_v20  ;;  %v7346_v24 = vpop.f32.mrb[93].mxu1 }
 0x883   : > { %vm6096_vm8 = vcmp.ge.f32.partialorder %v6093_v16, 0.0  ;;  %v6097_v3 = vmul.f32 %v6093_v16, %v8195_v25 }
 0x885   : > { %v6098_v9 = vsel %vm6096_vm8, %v6093_v16, %v6097_v3 }
 0x886   : > { %7364 = vmatmul.mubr.msk.f32.vlgmr.msra.gmra.mrb[94].mxu1 %vm5860_vm2, %v6098_v9 }
 0x959   : > { %v6177_v56 = vpop.f32.mrb[94].mxu1 }
 0x95a   : > { %v6178_v1 = vadd.f32 %v6177_v56, %v6107_v46  ;;  %v7365_v28 = vpop.f32.mrb[95].mxu1 }
 0x95c   : > { %6182 = vst.msk [vmem:[%s541_s24] sm:$0x1] %vm6181_vm15, %v6178_v1 }
 0x95d   : > { %7666 = shalt.err (!%p7663_p3)
}
 0x95e   : > { %s7667_s2 = scalar_lea.hbm %s10207_s20, 16  ;;  %s7671_s18 = scalar_lea.hbm %s10266_s17, 32 }
 0x95f   : > { %p7668_p4 = scmp.ne.s32.totalorder %s10207_s20, %s7667_s2  ;;  %p7672_p9 = scmp.lt.u32.totalorder %s10207_s20, %s10266_s17 }
 0x960   : > { %p7673_p10 = scmp.lt.u32.totalorder %s7671_s18, %s7667_s2  ;;  %p7675_p12 = scmp.lt.u32.totalorder %s7667_s2, %s10207_s20 }
 0x961   : > { %p7669_p7 = pnand %p7668_p4, %p7859_p5 }
 0x962   : > { %p7674_p11 = por %p7673_p10, %p7672_p9 }
 0x963   : > { %p7670_p8 = pneg %p7669_p7 }
 0x964   : > { %p7676_p13 = por %p7675_p12, %p7674_p11 }
 0x966   : > { %p7677_p0 = pnand %p7676_p13, %p7670_p8 }
 0x968   : > { %7680 = shalt.err (!%p7677_p0)
}
 0x969   : > { %7582 = dma.vmem_to_hbm [thread:$0]  (%p7859_p5), %s10209_s21, 16, %s10207_s20, %s6184_s29  }
 0x96a PF: > { %p7588_p1 = scmp.ge.s32.totalorder %s7715_s0, 2  ;;  %s6208_s25 = sand.u32 1, %s7703_s27  }
 0x96b   : > { %s6209_s19 = scalar_lea.sflag [#allocation12], %s6208_s25 }
 0x96c   : > { %p7585_p2 = pnand %p7588_p1, %p7863_p6 }
 0x96e   : > { %7698 = dma.done.wait (!%p7585_p2), %s6209_s19, 16  }
 0x96f   : > { %7700 = vsyncadd (!%p7585_p2), %s6209_s19, 4294967280  ;;  %s10301_s0 = sld [smem:[#allocation15_spill]]  ;;  %s10302_s2 = sld [smem:[#allocation14_spill]] }
 0x970   : > { %s10303_s29 = sld [smem:[#allocation16_spill]]  ;;  %s10304_s27 = smov %s7707_s28 }
 0x975   : > { %p28_p3 = scmp.ge.s32.totalorder %s10301_s0, 4   ;;  %s10305_s28 = smov %s10302_s2 }
 0x977   :  { %30 = sbr.rel (!%p28_p3) target bundleno = 12 (0xc), region = 123 }
 0x97e   :  { %6213 = vsyncpa [#allocation12], 1 }
 0x97f   :  { %6215 = vsyncpa [#allocation12 + $0x1], 1 }

</bundles_post_ra>
